<compile_context>
chip_gen: v6e
topology: v6e:2x2x1
jax: 0.10.0
libtpu: 0.0.40
codegen_flags: <defaults>
</compile_context>

<pallas_src>
import functools

import jax
import jax.numpy as jnp
from jax.experimental import pallas as pl
from jax.experimental.pallas import tpu as pltpu


# ---------------------------------------------------------------------------
# Pallas kernel (built per static model configuration)
# ---------------------------------------------------------------------------
def _make_rnn_kernel(num_layers, T, B, H):
    def kernel(*refs):
        # inputs: x, W[0..L-1], b[0..L-1], fc_w, fc_b | output: out | scratch: 2 bufs
        x_ref = refs[0]                                      # (T, B, D0)
        w_refs = refs[1:1 + num_layers]                      # each (2, Din+H, 4H)
        b_refs = refs[1 + num_layers:1 + 2 * num_layers]     # each (2, 1, 4H)
        fc_w_ref = refs[1 + 2 * num_layers]                  # (2H, O)
        fc_b_ref = refs[2 + 2 * num_layers]                  # (1, O)
        out_ref = refs[3 + 2 * num_layers]                   # (B, O)
        bufs = refs[4 + 2 * num_layers:6 + 2 * num_layers]   # 2 x (T, B, 2H) VMEM

        def run_direction(w, b, read_in, buf_out, col0, reverse):
            # w: (Din+H, 4H), b: (1, 4H). Writes hidden states into
            # buf_out[:, :, col0:col0+H]; `reverse` picks scan direction.
            h = jnp.zeros((B, H), jnp.float32)
            c = jnp.zeros((B, H), jnp.float32)
            for s in range(T):                      # static unroll (T small)
                t = T - 1 - s if reverse else s
                x_t = read_in(t)                    # (B, Din)
                z = jnp.concatenate([x_t, h], axis=-1)          # (B, Din+H)
                gates = jnp.dot(z, w, preferred_element_type=jnp.float32) + b
                # NOTE: 4H == 128 at H=32, so each gates row is exactly one lane
                # vreg; per-gate slices are static lane sub-slices (cheap here).
                i_g = jax.nn.sigmoid(gates[:, 0 * H:1 * H])
                f_g = jax.nn.sigmoid(gates[:, 1 * H:2 * H])
                g_g = jnp.tanh(gates[:, 2 * H:3 * H])
                o_g = jax.nn.sigmoid(gates[:, 3 * H:4 * H])
                c = f_g * c + i_g * g_g
                h = o_g * jnp.tanh(c)
                buf_out[t, :, col0:col0 + H] = h

        for layer in range(num_layers):
            if layer == 0:
                read_in = lambda t: x_ref[t]
            else:
                src = bufs[(layer - 1) % 2]
                read_in = lambda t, src=src: src[t]
            dst = bufs[layer % 2]
            w_l = w_refs[layer]
            b_l = b_refs[layer]
            # forward direction -> columns [0, H); backward -> [H, 2H)
            run_direction(w_l[0], b_l[0], read_in, dst, 0, reverse=False)
            run_direction(w_l[1], b_l[1], read_in, dst, H, reverse=True)
            # TODO(synk): inter-layer dropout (p=0.4) omitted -- PyTorch applies
            #             it only in training mode; this is eval/inference.

        # out[:, -1, :] -> Linear -> Sigmoid, fused into the same kernel.
        h_last = bufs[(num_layers - 1) % 2][T - 1]            # (B, 2H)
        y = jnp.dot(h_last, fc_w_ref[...], preferred_element_type=jnp.float32)
        y = y + fc_b_ref[...]
        out_ref[...] = jax.nn.sigmoid(y).astype(out_ref.dtype)

    return kernel


# ---------------------------------------------------------------------------
# Wrappers
# ---------------------------------------------------------------------------
def rnn_forward_fused(x_tbd, lstm_w, lstm_b, fc_w, fc_b):
    """One pallas_call running all LSTM layers (both directions) + FC + sigmoid.

    x_tbd    : (T, B, D0) time-major input.
    lstm_w[l]: (2, Din_l + H, 4H) fused [W_ih; W_hh] per direction.
    lstm_b[l]: (2, 1, 4H) combined (b_ih + b_hh) per direction.
    """
    T, B, _ = x_tbd.shape
    num_layers = len(lstm_w)
    H = lstm_w[0].shape[-1] // 4
    O = fc_w.shape[-1]

    n_inputs = 1 + 2 * num_layers + 2
    kernel = _make_rnn_kernel(num_layers, T, B, H)
    return pl.pallas_call(
        kernel,
        out_shape=jax.ShapeDtypeStruct((B, O), jnp.float32),
        # Whole arrays resident in VMEM; tiny at these shapes, single grid step,
        # so no pipelining / double-buffering is involved at all.
        in_specs=[pl.BlockSpec(memory_space=pltpu.MemorySpace.VMEM)] * n_inputs,
        out_specs=pl.BlockSpec(memory_space=pltpu.MemorySpace.VMEM),
        scratch_shapes=[
            pltpu.VMEM((T, B, 2 * H), jnp.float32),   # ping activation buffer
            pltpu.VMEM((T, B, 2 * H), jnp.float32),   # pong activation buffer
        ],
    )(x_tbd, *lstm_w, *lstm_b, fc_w, fc_b)


@functools.partial(jax.jit, static_argnames=("num_layers",))
def rnn_model_forward(x_btd, params, *, num_layers):
    """Bidirectional multi-layer LSTM -> last timestep -> Linear -> Sigmoid.

    x_btd: (B, T, input_size) batch_first, matching the PyTorch module.
    Returns (B, output_size).
    """
    assert len(params["lstm_w"]) == num_layers
    x = jnp.transpose(x_btd, (1, 0, 2))  # (B,T,D) -> (T,B,D) time-major
    return rnn_forward_fused(x, params["lstm_w"], params["lstm_b"],
                             params["fc_w"], params["fc_b"])


# ---------------------------------------------------------------------------
# Deterministic parameters (PyTorch-style uniform(-1/sqrt(H), 1/sqrt(H)))
# ---------------------------------------------------------------------------
def init_params(key, input_size, hidden_size, output_size, num_layers):
    H = hidden_size
    bound = 1.0 / (H ** 0.5)
    params = {"lstm_w": [], "lstm_b": []}
    for layer in range(num_layers):
        d_in = input_size if layer == 0 else 2 * H
        ws, bs = [], []
        for _direction in range(2):
            key, k1, k2, k3, k4 = jax.random.split(key, 5)
            wih = jax.random.uniform(k1, (d_in, 4 * H), jnp.float32, -bound, bound)
            whh = jax.random.uniform(k2, (H, 4 * H), jnp.float32, -bound, bound)
            b_ih = jax.random.uniform(k3, (1, 4 * H), jnp.float32, -bound, bound)
            b_hh = jax.random.uniform(k4, (1, 4 * H), jnp.float32, -bound, bound)
            ws.append(jnp.concatenate([wih, whh], axis=0))   # fused (d_in+H, 4H)
            bs.append(b_ih + b_hh)                           # combined bias
        params["lstm_w"].append(jnp.stack(ws, axis=0))       # (2, d_in+H, 4H)
        params["lstm_b"].append(jnp.stack(bs, axis=0))       # (2, 1, 4H)

    key, k1, k2 = jax.random.split(key, 3)
    fc_bound = 1.0 / ((2 * H) ** 0.5)
    params["fc_w"] = jax.random.uniform(
        k1, (2 * H, output_size), jnp.float32, -fc_bound, fc_bound)
    params["fc_b"] = jax.random.uniform(
        k2, (1, output_size), jnp.float32, -fc_bound, fc_bound)
    return params


# ---------------------------------------------------------------------------
# Pure-JAX reference (same math, no Pallas) for a correctness check
# ---------------------------------------------------------------------------
def _reference_forward(x_btd, params):
    x = jnp.transpose(x_btd, (1, 0, 2))
    T, B, _ = x.shape
    H = params["lstm_w"][0].shape[-1] // 4
    for w_l, b_l in zip(params["lstm_w"], params["lstm_b"]):
        dir_outs = []
        for d, reverse in ((0, False), (1, True)):
            w, b = w_l[d], b_l[d]
            h = jnp.zeros((B, H), jnp.float32)
            c = jnp.zeros((B, H), jnp.float32)
            hs = [None] * T
            order = range(T - 1, -1, -1) if reverse else range(T)
            for t in order:
                z = jnp.concatenate([x[t], h], axis=-1)
                g = z @ w + b
                i = jax.nn.sigmoid(g[:, :H])
                f = jax.nn.sigmoid(g[:, H:2 * H])
                gg = jnp.tanh(g[:, 2 * H:3 * H])
                o = jax.nn.sigmoid(g[:, 3 * H:])
                c = f * c + i * gg
                h = o * jnp.tanh(c)
                hs[t] = h
            dir_outs.append(jnp.stack(hs, axis=0))
        x = jnp.concatenate(dir_outs, axis=-1)
    y = x[-1] @ params["fc_w"] + params["fc_b"]
    return jax.nn.sigmoid(y)


if __name__ == "__main__":
    # Small shapes consistent with the module's forward pass.
    batch = 2
    seq_len = 8
    input_size = 16
    hidden_size = 32
    num_layers = 3
    output_size = 1

    key = jax.random.PRNGKey(0)
    key, pkey, xkey = jax.random.split(key, 3)

    params = init_params(pkey, input_size, hidden_size, output_size, num_layers)
    x = jax.random.normal(xkey, (batch, seq_len, input_size), jnp.float32)

    out = rnn_model_forward(x, params, num_layers=num_layers)
    out = jax.block_until_ready(out)

    assert out.shape == (batch, output_size)
    assert bool(jnp.all((out >= 0.0) & (out <= 1.0)))

    ref = _reference_forward(x, params)
    assert bool(jnp.allclose(out, ref, atol=1e-3, rtol=1e-3))
    print("KERNEL_OK")
</pallas_src>

<mosaic_0001>
module attributes {stable_mosaic.version = 11 : i64} {
  func.func @kernel(%arg0: memref<8x2x16xf32, #tpu.memory_space<vmem>>, %arg1: memref<2x48x128xf32, #tpu.memory_space<vmem>>, %arg2: memref<2x96x128xf32, #tpu.memory_space<vmem>>, %arg3: memref<2x96x128xf32, #tpu.memory_space<vmem>>, %arg4: memref<2x1x128xf32, #tpu.memory_space<vmem>>, %arg5: memref<2x1x128xf32, #tpu.memory_space<vmem>>, %arg6: memref<2x1x128xf32, #tpu.memory_space<vmem>>, %arg7: memref<64x1xf32, #tpu.memory_space<vmem>>, %arg8: memref<1x1xf32, #tpu.memory_space<vmem>>, %arg9: memref<2x1xf32, #tpu.memory_space<vmem>>, %arg10: memref<8x2x64xf32, #tpu.memory_space<vmem>>, %arg11: memref<8x2x64xf32, #tpu.memory_space<vmem>>) attributes {dimension_semantics = [], scalar_prefetch = 0 : i64, scratch_operands = 2 : i64, tpu.core_type = #tpu.core_type<tc>} {
    %c0 = arith.constant 0 : index
    %c0_0 = arith.constant 0 : index
    %c0_1 = arith.constant 0 : index
    %0 = vector.load %arg1[%c0, %c0_0, %c0_1] : memref<2x48x128xf32, #tpu.memory_space<vmem>>, vector<1x48x128xf32>
    %1 = vector.shape_cast %0 : vector<1x48x128xf32> to vector<48x128xf32>
    %c0_2 = arith.constant 0 : index
    %c0_3 = arith.constant 0 : index
    %c0_4 = arith.constant 0 : index
    %2 = vector.load %arg4[%c0_2, %c0_3, %c0_4] : memref<2x1x128xf32, #tpu.memory_space<vmem>>, vector<1x1x128xf32>
    %3 = vector.shape_cast %2 : vector<1x1x128xf32> to vector<1x128xf32>
    %cst = arith.constant 0.000000e+00 : f32
    %4 = vector.broadcast %cst : f32 to vector<2x32xf32>
    %cst_5 = arith.constant 0.000000e+00 : f32
    %5 = vector.broadcast %cst_5 : f32 to vector<2x32xf32>
    %c0_6 = arith.constant 0 : index
    %c0_7 = arith.constant 0 : index
    %c0_8 = arith.constant 0 : index
    %6 = vector.load %arg0[%c0_6, %c0_7, %c0_8] : memref<8x2x16xf32, #tpu.memory_space<vmem>>, vector<1x2x16xf32>
    %7 = vector.shape_cast %6 : vector<1x2x16xf32> to vector<2x16xf32>
    %8 = tpu.concatenate %7, %4 in 1 : vector<2x16xf32>, vector<2x32xf32> -> vector<2x48xf32>
    %cst_9 = arith.constant dense<0.000000e+00> : vector<2x128xf32>
    %9 = tpu.matmul %8, %1, %cst_9 {dimension_numbers = #tpu.dot_dimension_numbers<[1], [0], [0], [1], [0, 0, 1, 1], [], []>} : vector<2x48xf32>, vector<48x128xf32>, vector<2x128xf32> -> vector<2x128xf32>
    %10 = vector.broadcast %3 : vector<1x128xf32> to vector<2x128xf32>
    %11 = arith.addf %9, %10 : vector<2x128xf32>
    %12 = vector.extract_strided_slice %11 {offsets = [0, 0], sizes = [2, 32], strides = [1, 1]} : vector<2x128xf32> to vector<2x32xf32>
    %13 = arith.negf %12 : vector<2x32xf32>
    %14 = math.exp %13 : vector<2x32xf32>
    %cst_10 = arith.constant 1.000000e+00 : f32
    %15 = vector.broadcast %cst_10 : f32 to vector<2x32xf32>
    %16 = arith.addf %15, %14 : vector<2x32xf32>
    %17 = arith.divf %15, %16 : vector<2x32xf32>
    %18 = vector.extract_strided_slice %11 {offsets = [0, 32], sizes = [2, 32], strides = [1, 1]} : vector<2x128xf32> to vector<2x32xf32>
    %19 = arith.negf %18 : vector<2x32xf32>
    %20 = math.exp %19 : vector<2x32xf32>
    %cst_11 = arith.constant 1.000000e+00 : f32
    %21 = vector.broadcast %cst_11 : f32 to vector<2x32xf32>
    %22 = arith.addf %21, %20 : vector<2x32xf32>
    %23 = arith.divf %21, %22 : vector<2x32xf32>
    %24 = vector.extract_strided_slice %11 {offsets = [0, 64], sizes = [2, 32], strides = [1, 1]} : vector<2x128xf32> to vector<2x32xf32>
    %25 = math.tanh %24 : vector<2x32xf32>
    %26 = vector.extract_strided_slice %11 {offsets = [0, 96], sizes = [2, 32], strides = [1, 1]} : vector<2x128xf32> to vector<2x32xf32>
    %27 = arith.negf %26 : vector<2x32xf32>
    %28 = math.exp %27 : vector<2x32xf32>
    %cst_12 = arith.constant 1.000000e+00 : f32
    %29 = vector.broadcast %cst_12 : f32 to vector<2x32xf32>
    %30 = arith.addf %29, %28 : vector<2x32xf32>
    %31 = arith.divf %29, %30 : vector<2x32xf32>
    %32 = arith.mulf %23, %5 : vector<2x32xf32>
    %33 = arith.mulf %17, %25 : vector<2x32xf32>
    %34 = arith.addf %32, %33 : vector<2x32xf32>
    %35 = math.tanh %34 : vector<2x32xf32>
    %36 = arith.mulf %31, %35 : vector<2x32xf32>
    %c0_13 = arith.constant 0 : index
    %c0_14 = arith.constant 0 : index
    %c0_15 = arith.constant 0 : index
    %37 = vector.load %arg10[%c0_13, %c0_14, %c0_15] : memref<8x2x64xf32, #tpu.memory_space<vmem>>, vector<1x2x32xf32>
    %38 = vector.shape_cast %37 : vector<1x2x32xf32> to vector<2x32xf32>
    %39 = vector.shape_cast %36 : vector<2x32xf32> to vector<1x2x32xf32>
    tpu.vector_store %arg10[%c0_13, %c0_14, %c0_15], %39 {strides = array<i32>} : memref<8x2x64xf32, #tpu.memory_space<vmem>>, vector<1x2x32xf32>,
    %c1 = arith.constant 1 : index
    %c0_16 = arith.constant 0 : index
    %c0_17 = arith.constant 0 : index
    %40 = vector.load %arg0[%c1, %c0_16, %c0_17] : memref<8x2x16xf32, #tpu.memory_space<vmem>>, vector<1x2x16xf32>
    %41 = vector.shape_cast %40 : vector<1x2x16xf32> to vector<2x16xf32>
    %42 = tpu.concatenate %41, %36 in 1 : vector<2x16xf32>, vector<2x32xf32> -> vector<2x48xf32>
    %cst_18 = arith.constant dense<0.000000e+00> : vector<2x128xf32>
    %43 = tpu.matmul %42, %1, %cst_18 {dimension_numbers = #tpu.dot_dimension_numbers<[1], [0], [0], [1], [0, 0, 1, 1], [], []>} : vector<2x48xf32>, vector<48x128xf32>, vector<2x128xf32> -> vector<2x128xf32>
    %44 = vector.broadcast %3 : vector<1x128xf32> to vector<2x128xf32>
    %45 = arith.addf %43, %44 : vector<2x128xf32>
    %46 = vector.extract_strided_slice %45 {offsets = [0, 0], sizes = [2, 32], strides = [1, 1]} : vector<2x128xf32> to vector<2x32xf32>
    %47 = arith.negf %46 : vector<2x32xf32>
    %48 = math.exp %47 : vector<2x32xf32>
    %cst_19 = arith.constant 1.000000e+00 : f32
    %49 = vector.broadcast %cst_19 : f32 to vector<2x32xf32>
    %50 = arith.addf %49, %48 : vector<2x32xf32>
    %51 = arith.divf %49, %50 : vector<2x32xf32>
    %52 = vector.extract_strided_slice %45 {offsets = [0, 32], sizes = [2, 32], strides = [1, 1]} : vector<2x128xf32> to vector<2x32xf32>
    %53 = arith.negf %52 : vector<2x32xf32>
    %54 = math.exp %53 : vector<2x32xf32>
    %cst_20 = arith.constant 1.000000e+00 : f32
    %55 = vector.broadcast %cst_20 : f32 to vector<2x32xf32>
    %56 = arith.addf %55, %54 : vector<2x32xf32>
    %57 = arith.divf %55, %56 : vector<2x32xf32>
    %58 = vector.extract_strided_slice %45 {offsets = [0, 64], sizes = [2, 32], strides = [1, 1]} : vector<2x128xf32> to vector<2x32xf32>
    %59 = math.tanh %58 : vector<2x32xf32>
    %60 = vector.extract_strided_slice %45 {offsets = [0, 96], sizes = [2, 32], strides = [1, 1]} : vector<2x128xf32> to vector<2x32xf32>
    %61 = arith.negf %60 : vector<2x32xf32>
    %62 = math.exp %61 : vector<2x32xf32>
    %cst_21 = arith.constant 1.000000e+00 : f32
    %63 = vector.broadcast %cst_21 : f32 to vector<2x32xf32>
    %64 = arith.addf %63, %62 : vector<2x32xf32>
    %65 = arith.divf %63, %64 : vector<2x32xf32>
    %66 = arith.mulf %57, %34 : vector<2x32xf32>
    %67 = arith.mulf %51, %59 : vector<2x32xf32>
    %68 = arith.addf %66, %67 : vector<2x32xf32>
    %69 = math.tanh %68 : vector<2x32xf32>
    %70 = arith.mulf %65, %69 : vector<2x32xf32>
    %c1_22 = arith.constant 1 : index
    %c0_23 = arith.constant 0 : index
    %c0_24 = arith.constant 0 : index
    %71 = vector.load %arg10[%c1_22, %c0_23, %c0_24] : memref<8x2x64xf32, #tpu.memory_space<vmem>>, vector<1x2x32xf32>
    %72 = vector.shape_cast %71 : vector<1x2x32xf32> to vector<2x32xf32>
    %73 = vector.shape_cast %70 : vector<2x32xf32> to vector<1x2x32xf32>
    tpu.vector_store %arg10[%c1_22, %c0_23, %c0_24], %73 {strides = array<i32>} : memref<8x2x64xf32, #tpu.memory_space<vmem>>, vector<1x2x32xf32>,
    %c2 = arith.constant 2 : index
    %c0_25 = arith.constant 0 : index
    %c0_26 = arith.constant 0 : index
    %74 = vector.load %arg0[%c2, %c0_25, %c0_26] : memref<8x2x16xf32, #tpu.memory_space<vmem>>, vector<1x2x16xf32>
    %75 = vector.shape_cast %74 : vector<1x2x16xf32> to vector<2x16xf32>
    %76 = tpu.concatenate %75, %70 in 1 : vector<2x16xf32>, vector<2x32xf32> -> vector<2x48xf32>
    %cst_27 = arith.constant dense<0.000000e+00> : vector<2x128xf32>
    %77 = tpu.matmul %76, %1, %cst_27 {dimension_numbers = #tpu.dot_dimension_numbers<[1], [0], [0], [1], [0, 0, 1, 1], [], []>} : vector<2x48xf32>, vector<48x128xf32>, vector<2x128xf32> -> vector<2x128xf32>
    %78 = vector.broadcast %3 : vector<1x128xf32> to vector<2x128xf32>
    %79 = arith.addf %77, %78 : vector<2x128xf32>
    %80 = vector.extract_strided_slice %79 {offsets = [0, 0], sizes = [2, 32], strides = [1, 1]} : vector<2x128xf32> to vector<2x32xf32>
    %81 = arith.negf %80 : vector<2x32xf32>
    %82 = math.exp %81 : vector<2x32xf32>
    %cst_28 = arith.constant 1.000000e+00 : f32
    %83 = vector.broadcast %cst_28 : f32 to vector<2x32xf32>
    %84 = arith.addf %83, %82 : vector<2x32xf32>
    %85 = arith.divf %83, %84 : vector<2x32xf32>
    %86 = vector.extract_strided_slice %79 {offsets = [0, 32], sizes = [2, 32], strides = [1, 1]} : vector<2x128xf32> to vector<2x32xf32>
    %87 = arith.negf %86 : vector<2x32xf32>
    %88 = math.exp %87 : vector<2x32xf32>
    %cst_29 = arith.constant 1.000000e+00 : f32
    %89 = vector.broadcast %cst_29 : f32 to vector<2x32xf32>
    %90 = arith.addf %89, %88 : vector<2x32xf32>
    %91 = arith.divf %89, %90 : vector<2x32xf32>
    %92 = vector.extract_strided_slice %79 {offsets = [0, 64], sizes = [2, 32], strides = [1, 1]} : vector<2x128xf32> to vector<2x32xf32>
    %93 = math.tanh %92 : vector<2x32xf32>
    %94 = vector.extract_strided_slice %79 {offsets = [0, 96], sizes = [2, 32], strides = [1, 1]} : vector<2x128xf32> to vector<2x32xf32>
    %95 = arith.negf %94 : vector<2x32xf32>
    %96 = math.exp %95 : vector<2x32xf32>
    %cst_30 = arith.constant 1.000000e+00 : f32
    %97 = vector.broadcast %cst_30 : f32 to vector<2x32xf32>
    %98 = arith.addf %97, %96 : vector<2x32xf32>
    %99 = arith.divf %97, %98 : vector<2x32xf32>
    %100 = arith.mulf %91, %68 : vector<2x32xf32>
    %101 = arith.mulf %85, %93 : vector<2x32xf32>
    %102 = arith.addf %100, %101 : vector<2x32xf32>
    %103 = math.tanh %102 : vector<2x32xf32>
    %104 = arith.mulf %99, %103 : vector<2x32xf32>
    %c2_31 = arith.constant 2 : index
    %c0_32 = arith.constant 0 : index
    %c0_33 = arith.constant 0 : index
    %105 = vector.load %arg10[%c2_31, %c0_32, %c0_33] : memref<8x2x64xf32, #tpu.memory_space<vmem>>, vector<1x2x32xf32>
    %106 = vector.shape_cast %105 : vector<1x2x32xf32> to vector<2x32xf32>
    %107 = vector.shape_cast %104 : vector<2x32xf32> to vector<1x2x32xf32>
    tpu.vector_store %arg10[%c2_31, %c0_32, %c0_33], %107 {strides = array<i32>} : memref<8x2x64xf32, #tpu.memory_space<vmem>>, vector<1x2x32xf32>,
    %c3 = arith.constant 3 : index
    %c0_34 = arith.constant 0 : index
    %c0_35 = arith.constant 0 : index
    %108 = vector.load %arg0[%c3, %c0_34, %c0_35] : memref<8x2x16xf32, #tpu.memory_space<vmem>>, vector<1x2x16xf32>
    %109 = vector.shape_cast %108 : vector<1x2x16xf32> to vector<2x16xf32>
    %110 = tpu.concatenate %109, %104 in 1 : vector<2x16xf32>, vector<2x32xf32> -> vector<2x48xf32>
    %cst_36 = arith.constant dense<0.000000e+00> : vector<2x128xf32>
    %111 = tpu.matmul %110, %1, %cst_36 {dimension_numbers = #tpu.dot_dimension_numbers<[1], [0], [0], [1], [0, 0, 1, 1], [], []>} : vector<2x48xf32>, vector<48x128xf32>, vector<2x128xf32> -> vector<2x128xf32>
    %112 = vector.broadcast %3 : vector<1x128xf32> to vector<2x128xf32>
    %113 = arith.addf %111, %112 : vector<2x128xf32>
    %114 = vector.extract_strided_slice %113 {offsets = [0, 0], sizes = [2, 32], strides = [1, 1]} : vector<2x128xf32> to vector<2x32xf32>
    %115 = arith.negf %114 : vector<2x32xf32>
    %116 = math.exp %115 : vector<2x32xf32>
    %cst_37 = arith.constant 1.000000e+00 : f32
    %117 = vector.broadcast %cst_37 : f32 to vector<2x32xf32>
    %118 = arith.addf %117, %116 : vector<2x32xf32>
    %119 = arith.divf %117, %118 : vector<2x32xf32>
    %120 = vector.extract_strided_slice %113 {offsets = [0, 32], sizes = [2, 32], strides = [1, 1]} : vector<2x128xf32> to vector<2x32xf32>
    %121 = arith.negf %120 : vector<2x32xf32>
    %122 = math.exp %121 : vector<2x32xf32>
    %cst_38 = arith.constant 1.000000e+00 : f32
    %123 = vector.broadcast %cst_38 : f32 to vector<2x32xf32>
    %124 = arith.addf %123, %122 : vector<2x32xf32>
    %125 = arith.divf %123, %124 : vector<2x32xf32>
    %126 = vector.extract_strided_slice %113 {offsets = [0, 64], sizes = [2, 32], strides = [1, 1]} : vector<2x128xf32> to vector<2x32xf32>
    %127 = math.tanh %126 : vector<2x32xf32>
    %128 = vector.extract_strided_slice %113 {offsets = [0, 96], sizes = [2, 32], strides = [1, 1]} : vector<2x128xf32> to vector<2x32xf32>
    %129 = arith.negf %128 : vector<2x32xf32>
    %130 = math.exp %129 : vector<2x32xf32>
    %cst_39 = arith.constant 1.000000e+00 : f32
    %131 = vector.broadcast %cst_39 : f32 to vector<2x32xf32>
    %132 = arith.addf %131, %130 : vector<2x32xf32>
    %133 = arith.divf %131, %132 : vector<2x32xf32>
    %134 = arith.mulf %125, %102 : vector<2x32xf32>
    %135 = arith.mulf %119, %127 : vector<2x32xf32>
    %136 = arith.addf %134, %135 : vector<2x32xf32>
    %137 = math.tanh %136 : vector<2x32xf32>
    %138 = arith.mulf %133, %137 : vector<2x32xf32>
    %c3_40 = arith.constant 3 : index
    %c0_41 = arith.constant 0 : index
    %c0_42 = arith.constant 0 : index
    %139 = vector.load %arg10[%c3_40, %c0_41, %c0_42] : memref<8x2x64xf32, #tpu.memory_space<vmem>>, vector<1x2x32xf32>
    %140 = vector.shape_cast %139 : vector<1x2x32xf32> to vector<2x32xf32>
    %141 = vector.shape_cast %138 : vector<2x32xf32> to vector<1x2x32xf32>
    tpu.vector_store %arg10[%c3_40, %c0_41, %c0_42], %141 {strides = array<i32>} : memref<8x2x64xf32, #tpu.memory_space<vmem>>, vector<1x2x32xf32>,
    %c4 = arith.constant 4 : index
    %c0_43 = arith.constant 0 : index
    %c0_44 = arith.constant 0 : index
    %142 = vector.load %arg0[%c4, %c0_43, %c0_44] : memref<8x2x16xf32, #tpu.memory_space<vmem>>, vector<1x2x16xf32>
    %143 = vector.shape_cast %142 : vector<1x2x16xf32> to vector<2x16xf32>
    %144 = tpu.concatenate %143, %138 in 1 : vector<2x16xf32>, vector<2x32xf32> -> vector<2x48xf32>
    %cst_45 = arith.constant dense<0.000000e+00> : vector<2x128xf32>
    %145 = tpu.matmul %144, %1, %cst_45 {dimension_numbers = #tpu.dot_dimension_numbers<[1], [0], [0], [1], [0, 0, 1, 1], [], []>} : vector<2x48xf32>, vector<48x128xf32>, vector<2x128xf32> -> vector<2x128xf32>
    %146 = vector.broadcast %3 : vector<1x128xf32> to vector<2x128xf32>
    %147 = arith.addf %145, %146 : vector<2x128xf32>
    %148 = vector.extract_strided_slice %147 {offsets = [0, 0], sizes = [2, 32], strides = [1, 1]} : vector<2x128xf32> to vector<2x32xf32>
    %149 = arith.negf %148 : vector<2x32xf32>
    %150 = math.exp %149 : vector<2x32xf32>
    %cst_46 = arith.constant 1.000000e+00 : f32
    %151 = vector.broadcast %cst_46 : f32 to vector<2x32xf32>
    %152 = arith.addf %151, %150 : vector<2x32xf32>
    %153 = arith.divf %151, %152 : vector<2x32xf32>
    %154 = vector.extract_strided_slice %147 {offsets = [0, 32], sizes = [2, 32], strides = [1, 1]} : vector<2x128xf32> to vector<2x32xf32>
    %155 = arith.negf %154 : vector<2x32xf32>
    %156 = math.exp %155 : vector<2x32xf32>
    %cst_47 = arith.constant 1.000000e+00 : f32
    %157 = vector.broadcast %cst_47 : f32 to vector<2x32xf32>
    %158 = arith.addf %157, %156 : vector<2x32xf32>
    %159 = arith.divf %157, %158 : vector<2x32xf32>
    %160 = vector.extract_strided_slice %147 {offsets = [0, 64], sizes = [2, 32], strides = [1, 1]} : vector<2x128xf32> to vector<2x32xf32>
    %161 = math.tanh %160 : vector<2x32xf32>
    %162 = vector.extract_strided_slice %147 {offsets = [0, 96], sizes = [2, 32], strides = [1, 1]} : vector<2x128xf32> to vector<2x32xf32>
    %163 = arith.negf %162 : vector<2x32xf32>
    %164 = math.exp %163 : vector<2x32xf32>
    %cst_48 = arith.constant 1.000000e+00 : f32
    %165 = vector.broadcast %cst_48 : f32 to vector<2x32xf32>
    %166 = arith.addf %165, %164 : vector<2x32xf32>
    %167 = arith.divf %165, %166 : vector<2x32xf32>
    %168 = arith.mulf %159, %136 : vector<2x32xf32>
    %169 = arith.mulf %153, %161 : vector<2x32xf32>
    %170 = arith.addf %168, %169 : vector<2x32xf32>
    %171 = math.tanh %170 : vector<2x32xf32>
    %172 = arith.mulf %167, %171 : vector<2x32xf32>
    %c4_49 = arith.constant 4 : index
    %c0_50 = arith.constant 0 : index
    %c0_51 = arith.constant 0 : index
    %173 = vector.load %arg10[%c4_49, %c0_50, %c0_51] : memref<8x2x64xf32, #tpu.memory_space<vmem>>, vector<1x2x32xf32>
    %174 = vector.shape_cast %173 : vector<1x2x32xf32> to vector<2x32xf32>
    %175 = vector.shape_cast %172 : vector<2x32xf32> to vector<1x2x32xf32>
    tpu.vector_store %arg10[%c4_49, %c0_50, %c0_51], %175 {strides = array<i32>} : memref<8x2x64xf32, #tpu.memory_space<vmem>>, vector<1x2x32xf32>,
    %c5 = arith.constant 5 : index
    %c0_52 = arith.constant 0 : index
    %c0_53 = arith.constant 0 : index
    %176 = vector.load %arg0[%c5, %c0_52, %c0_53] : memref<8x2x16xf32, #tpu.memory_space<vmem>>, vector<1x2x16xf32>
    %177 = vector.shape_cast %176 : vector<1x2x16xf32> to vector<2x16xf32>
    %178 = tpu.concatenate %177, %172 in 1 : vector<2x16xf32>, vector<2x32xf32> -> vector<2x48xf32>
    %cst_54 = arith.constant dense<0.000000e+00> : vector<2x128xf32>
    %179 = tpu.matmul %178, %1, %cst_54 {dimension_numbers = #tpu.dot_dimension_numbers<[1], [0], [0], [1], [0, 0, 1, 1], [], []>} : vector<2x48xf32>, vector<48x128xf32>, vector<2x128xf32> -> vector<2x128xf32>
    %180 = vector.broadcast %3 : vector<1x128xf32> to vector<2x128xf32>
    %181 = arith.addf %179, %180 : vector<2x128xf32>
    %182 = vector.extract_strided_slice %181 {offsets = [0, 0], sizes = [2, 32], strides = [1, 1]} : vector<2x128xf32> to vector<2x32xf32>
    %183 = arith.negf %182 : vector<2x32xf32>
    %184 = math.exp %183 : vector<2x32xf32>
    %cst_55 = arith.constant 1.000000e+00 : f32
    %185 = vector.broadcast %cst_55 : f32 to vector<2x32xf32>
    %186 = arith.addf %185, %184 : vector<2x32xf32>
    %187 = arith.divf %185, %186 : vector<2x32xf32>
    %188 = vector.extract_strided_slice %181 {offsets = [0, 32], sizes = [2, 32], strides = [1, 1]} : vector<2x128xf32> to vector<2x32xf32>
    %189 = arith.negf %188 : vector<2x32xf32>
    %190 = math.exp %189 : vector<2x32xf32>
    %cst_56 = arith.constant 1.000000e+00 : f32
    %191 = vector.broadcast %cst_56 : f32 to vector<2x32xf32>
    %192 = arith.addf %191, %190 : vector<2x32xf32>
    %193 = arith.divf %191, %192 : vector<2x32xf32>
    %194 = vector.extract_strided_slice %181 {offsets = [0, 64], sizes = [2, 32], strides = [1, 1]} : vector<2x128xf32> to vector<2x32xf32>
    %195 = math.tanh %194 : vector<2x32xf32>
    %196 = vector.extract_strided_slice %181 {offsets = [0, 96], sizes = [2, 32], strides = [1, 1]} : vector<2x128xf32> to vector<2x32xf32>
    %197 = arith.negf %196 : vector<2x32xf32>
    %198 = math.exp %197 : vector<2x32xf32>
    %cst_57 = arith.constant 1.000000e+00 : f32
    %199 = vector.broadcast %cst_57 : f32 to vector<2x32xf32>
    %200 = arith.addf %199, %198 : vector<2x32xf32>
    %201 = arith.divf %199, %200 : vector<2x32xf32>
    %202 = arith.mulf %193, %170 : vector<2x32xf32>
    %203 = arith.mulf %187, %195 : vector<2x32xf32>
    %204 = arith.addf %202, %203 : vector<2x32xf32>
    %205 = math.tanh %204 : vector<2x32xf32>
    %206 = arith.mulf %201, %205 : vector<2x32xf32>
    %c5_58 = arith.constant 5 : index
    %c0_59 = arith.constant 0 : index
    %c0_60 = arith.constant 0 : index
    %207 = vector.load %arg10[%c5_58, %c0_59, %c0_60] : memref<8x2x64xf32, #tpu.memory_space<vmem>>, vector<1x2x32xf32>
    %208 = vector.shape_cast %207 : vector<1x2x32xf32> to vector<2x32xf32>
    %209 = vector.shape_cast %206 : vector<2x32xf32> to vector<1x2x32xf32>
    tpu.vector_store %arg10[%c5_58, %c0_59, %c0_60], %209 {strides = array<i32>} : memref<8x2x64xf32, #tpu.memory_space<vmem>>, vector<1x2x32xf32>,
    %c6 = arith.constant 6 : index
    %c0_61 = arith.constant 0 : index
    %c0_62 = arith.constant 0 : index
    %210 = vector.load %arg0[%c6, %c0_61, %c0_62] : memref<8x2x16xf32, #tpu.memory_space<vmem>>, vector<1x2x16xf32>
    %211 = vector.shape_cast %210 : vector<1x2x16xf32> to vector<2x16xf32>
    %212 = tpu.concatenate %211, %206 in 1 : vector<2x16xf32>, vector<2x32xf32> -> vector<2x48xf32>
    %cst_63 = arith.constant dense<0.000000e+00> : vector<2x128xf32>
    %213 = tpu.matmul %212, %1, %cst_63 {dimension_numbers = #tpu.dot_dimension_numbers<[1], [0], [0], [1], [0, 0, 1, 1], [], []>} : vector<2x48xf32>, vector<48x128xf32>, vector<2x128xf32> -> vector<2x128xf32>
    %214 = vector.broadcast %3 : vector<1x128xf32> to vector<2x128xf32>
    %215 = arith.addf %213, %214 : vector<2x128xf32>
    %216 = vector.extract_strided_slice %215 {offsets = [0, 0], sizes = [2, 32], strides = [1, 1]} : vector<2x128xf32> to vector<2x32xf32>
    %217 = arith.negf %216 : vector<2x32xf32>
    %218 = math.exp %217 : vector<2x32xf32>
    %cst_64 = arith.constant 1.000000e+00 : f32
    %219 = vector.broadcast %cst_64 : f32 to vector<2x32xf32>
    %220 = arith.addf %219, %218 : vector<2x32xf32>
    %221 = arith.divf %219, %220 : vector<2x32xf32>
    %222 = vector.extract_strided_slice %215 {offsets = [0, 32], sizes = [2, 32], strides = [1, 1]} : vector<2x128xf32> to vector<2x32xf32>
    %223 = arith.negf %222 : vector<2x32xf32>
    %224 = math.exp %223 : vector<2x32xf32>
    %cst_65 = arith.constant 1.000000e+00 : f32
    %225 = vector.broadcast %cst_65 : f32 to vector<2x32xf32>
    %226 = arith.addf %225, %224 : vector<2x32xf32>
    %227 = arith.divf %225, %226 : vector<2x32xf32>
    %228 = vector.extract_strided_slice %215 {offsets = [0, 64], sizes = [2, 32], strides = [1, 1]} : vector<2x128xf32> to vector<2x32xf32>
    %229 = math.tanh %228 : vector<2x32xf32>
    %230 = vector.extract_strided_slice %215 {offsets = [0, 96], sizes = [2, 32], strides = [1, 1]} : vector<2x128xf32> to vector<2x32xf32>
    %231 = arith.negf %230 : vector<2x32xf32>
    %232 = math.exp %231 : vector<2x32xf32>
    %cst_66 = arith.constant 1.000000e+00 : f32
    %233 = vector.broadcast %cst_66 : f32 to vector<2x32xf32>
    %234 = arith.addf %233, %232 : vector<2x32xf32>
    %235 = arith.divf %233, %234 : vector<2x32xf32>
    %236 = arith.mulf %227, %204 : vector<2x32xf32>
    %237 = arith.mulf %221, %229 : vector<2x32xf32>
    %238 = arith.addf %236, %237 : vector<2x32xf32>
    %239 = math.tanh %238 : vector<2x32xf32>
    %240 = arith.mulf %235, %239 : vector<2x32xf32>
    %c6_67 = arith.constant 6 : index
    %c0_68 = arith.constant 0 : index
    %c0_69 = arith.constant 0 : index
    %241 = vector.load %arg10[%c6_67, %c0_68, %c0_69] : memref<8x2x64xf32, #tpu.memory_space<vmem>>, vector<1x2x32xf32>
    %242 = vector.shape_cast %241 : vector<1x2x32xf32> to vector<2x32xf32>
    %243 = vector.shape_cast %240 : vector<2x32xf32> to vector<1x2x32xf32>
    tpu.vector_store %arg10[%c6_67, %c0_68, %c0_69], %243 {strides = array<i32>} : memref<8x2x64xf32, #tpu.memory_space<vmem>>, vector<1x2x32xf32>,
    %c7 = arith.constant 7 : index
    %c0_70 = arith.constant 0 : index
    %c0_71 = arith.constant 0 : index
    %244 = vector.load %arg0[%c7, %c0_70, %c0_71] : memref<8x2x16xf32, #tpu.memory_space<vmem>>, vector<1x2x16xf32>
    %245 = vector.shape_cast %244 : vector<1x2x16xf32> to vector<2x16xf32>
    %246 = tpu.concatenate %245, %240 in 1 : vector<2x16xf32>, vector<2x32xf32> -> vector<2x48xf32>
    %cst_72 = arith.constant dense<0.000000e+00> : vector<2x128xf32>
    %247 = tpu.matmul %246, %1, %cst_72 {dimension_numbers = #tpu.dot_dimension_numbers<[1], [0], [0], [1], [0, 0, 1, 1], [], []>} : vector<2x48xf32>, vector<48x128xf32>, vector<2x128xf32> -> vector<2x128xf32>
    %248 = vector.broadcast %3 : vector<1x128xf32> to vector<2x128xf32>
    %249 = arith.addf %247, %248 : vector<2x128xf32>
    %250 = vector.extract_strided_slice %249 {offsets = [0, 0], sizes = [2, 32], strides = [1, 1]} : vector<2x128xf32> to vector<2x32xf32>
    %251 = arith.negf %250 : vector<2x32xf32>
    %252 = math.exp %251 : vector<2x32xf32>
    %cst_73 = arith.constant 1.000000e+00 : f32
    %253 = vector.broadcast %cst_73 : f32 to vector<2x32xf32>
    %254 = arith.addf %253, %252 : vector<2x32xf32>
    %255 = arith.divf %253, %254 : vector<2x32xf32>
    %256 = vector.extract_strided_slice %249 {offsets = [0, 32], sizes = [2, 32], strides = [1, 1]} : vector<2x128xf32> to vector<2x32xf32>
    %257 = arith.negf %256 : vector<2x32xf32>
    %258 = math.exp %257 : vector<2x32xf32>
    %cst_74 = arith.constant 1.000000e+00 : f32
    %259 = vector.broadcast %cst_74 : f32 to vector<2x32xf32>
    %260 = arith.addf %259, %258 : vector<2x32xf32>
    %261 = arith.divf %259, %260 : vector<2x32xf32>
    %262 = vector.extract_strided_slice %249 {offsets = [0, 64], sizes = [2, 32], strides = [1, 1]} : vector<2x128xf32> to vector<2x32xf32>
    %263 = math.tanh %262 : vector<2x32xf32>
    %264 = vector.extract_strided_slice %249 {offsets = [0, 96], sizes = [2, 32], strides = [1, 1]} : vector<2x128xf32> to vector<2x32xf32>
    %265 = arith.negf %264 : vector<2x32xf32>
    %266 = math.exp %265 : vector<2x32xf32>
    %cst_75 = arith.constant 1.000000e+00 : f32
    %267 = vector.broadcast %cst_75 : f32 to vector<2x32xf32>
    %268 = arith.addf %267, %266 : vector<2x32xf32>
    %269 = arith.divf %267, %268 : vector<2x32xf32>
    %270 = arith.mulf %261, %238 : vector<2x32xf32>
    %271 = arith.mulf %255, %263 : vector<2x32xf32>
    %272 = arith.addf %270, %271 : vector<2x32xf32>
    %273 = math.tanh %272 : vector<2x32xf32>
    %274 = arith.mulf %269, %273 : vector<2x32xf32>
    %c7_76 = arith.constant 7 : index
    %c0_77 = arith.constant 0 : index
    %c0_78 = arith.constant 0 : index
    %275 = vector.load %arg10[%c7_76, %c0_77, %c0_78] : memref<8x2x64xf32, #tpu.memory_space<vmem>>, vector<1x2x32xf32>
    %276 = vector.shape_cast %275 : vector<1x2x32xf32> to vector<2x32xf32>
    %277 = vector.shape_cast %274 : vector<2x32xf32> to vector<1x2x32xf32>
    tpu.vector_store %arg10[%c7_76, %c0_77, %c0_78], %277 {strides = array<i32>} : memref<8x2x64xf32, #tpu.memory_space<vmem>>, vector<1x2x32xf32>,
    %c1_79 = arith.constant 1 : index
    %c0_80 = arith.constant 0 : index
    %c0_81 = arith.constant 0 : index
    %278 = vector.load %arg1[%c1_79, %c0_80, %c0_81] : memref<2x48x128xf32, #tpu.memory_space<vmem>>, vector<1x48x128xf32>
    %279 = vector.shape_cast %278 : vector<1x48x128xf32> to vector<48x128xf32>
    %c1_82 = arith.constant 1 : index
    %c0_83 = arith.constant 0 : index
    %c0_84 = arith.constant 0 : index
    %280 = vector.load %arg4[%c1_82, %c0_83, %c0_84] : memref<2x1x128xf32, #tpu.memory_space<vmem>>, vector<1x1x128xf32>
    %281 = vector.shape_cast %280 : vector<1x1x128xf32> to vector<1x128xf32>
    %cst_85 = arith.constant 0.000000e+00 : f32
    %282 = vector.broadcast %cst_85 : f32 to vector<2x32xf32>
    %cst_86 = arith.constant 0.000000e+00 : f32
    %283 = vector.broadcast %cst_86 : f32 to vector<2x32xf32>
    %c7_87 = arith.constant 7 : index
    %c0_88 = arith.constant 0 : index
    %c0_89 = arith.constant 0 : index
    %284 = vector.load %arg0[%c7_87, %c0_88, %c0_89] : memref<8x2x16xf32, #tpu.memory_space<vmem>>, vector<1x2x16xf32>
    %285 = vector.shape_cast %284 : vector<1x2x16xf32> to vector<2x16xf32>
    %286 = tpu.concatenate %285, %282 in 1 : vector<2x16xf32>, vector<2x32xf32> -> vector<2x48xf32>
    %cst_90 = arith.constant dense<0.000000e+00> : vector<2x128xf32>
    %287 = tpu.matmul %286, %279, %cst_90 {dimension_numbers = #tpu.dot_dimension_numbers<[1], [0], [0], [1], [0, 0, 1, 1], [], []>} : vector<2x48xf32>, vector<48x128xf32>, vector<2x128xf32> -> vector<2x128xf32>
    %288 = vector.broadcast %281 : vector<1x128xf32> to vector<2x128xf32>
    %289 = arith.addf %287, %288 : vector<2x128xf32>
    %290 = vector.extract_strided_slice %289 {offsets = [0, 0], sizes = [2, 32], strides = [1, 1]} : vector<2x128xf32> to vector<2x32xf32>
    %291 = arith.negf %290 : vector<2x32xf32>
    %292 = math.exp %291 : vector<2x32xf32>
    %cst_91 = arith.constant 1.000000e+00 : f32
    %293 = vector.broadcast %cst_91 : f32 to vector<2x32xf32>
    %294 = arith.addf %293, %292 : vector<2x32xf32>
    %295 = arith.divf %293, %294 : vector<2x32xf32>
    %296 = vector.extract_strided_slice %289 {offsets = [0, 32], sizes = [2, 32], strides = [1, 1]} : vector<2x128xf32> to vector<2x32xf32>
    %297 = arith.negf %296 : vector<2x32xf32>
    %298 = math.exp %297 : vector<2x32xf32>
    %cst_92 = arith.constant 1.000000e+00 : f32
    %299 = vector.broadcast %cst_92 : f32 to vector<2x32xf32>
    %300 = arith.addf %299, %298 : vector<2x32xf32>
    %301 = arith.divf %299, %300 : vector<2x32xf32>
    %302 = vector.extract_strided_slice %289 {offsets = [0, 64], sizes = [2, 32], strides = [1, 1]} : vector<2x128xf32> to vector<2x32xf32>
    %303 = math.tanh %302 : vector<2x32xf32>
    %304 = vector.extract_strided_slice %289 {offsets = [0, 96], sizes = [2, 32], strides = [1, 1]} : vector<2x128xf32> to vector<2x32xf32>
    %305 = arith.negf %304 : vector<2x32xf32>
    %306 = math.exp %305 : vector<2x32xf32>
    %cst_93 = arith.constant 1.000000e+00 : f32
    %307 = vector.broadcast %cst_93 : f32 to vector<2x32xf32>
    %308 = arith.addf %307, %306 : vector<2x32xf32>
    %309 = arith.divf %307, %308 : vector<2x32xf32>
    %310 = arith.mulf %301, %283 : vector<2x32xf32>
    %311 = arith.mulf %295, %303 : vector<2x32xf32>
    %312 = arith.addf %310, %311 : vector<2x32xf32>
    %313 = math.tanh %312 : vector<2x32xf32>
    %314 = arith.mulf %309, %313 : vector<2x32xf32>
    %c7_94 = arith.constant 7 : index
    %c0_95 = arith.constant 0 : index
    %c32 = arith.constant 32 : index
    %315 = vector.load %arg10[%c7_94, %c0_95, %c32] : memref<8x2x64xf32, #tpu.memory_space<vmem>>, vector<1x2x32xf32>
    %316 = vector.shape_cast %315 : vector<1x2x32xf32> to vector<2x32xf32>
    %317 = vector.shape_cast %314 : vector<2x32xf32> to vector<1x2x32xf32>
    tpu.vector_store %arg10[%c7_94, %c0_95, %c32], %317 {strides = array<i32>} : memref<8x2x64xf32, #tpu.memory_space<vmem>>, vector<1x2x32xf32>,
    %c6_96 = arith.constant 6 : index
    %c0_97 = arith.constant 0 : index
    %c0_98 = arith.constant 0 : index
    %318 = vector.load %arg0[%c6_96, %c0_97, %c0_98] : memref<8x2x16xf32, #tpu.memory_space<vmem>>, vector<1x2x16xf32>
    %319 = vector.shape_cast %318 : vector<1x2x16xf32> to vector<2x16xf32>
    %320 = tpu.concatenate %319, %314 in 1 : vector<2x16xf32>, vector<2x32xf32> -> vector<2x48xf32>
    %cst_99 = arith.constant dense<0.000000e+00> : vector<2x128xf32>
    %321 = tpu.matmul %320, %279, %cst_99 {dimension_numbers = #tpu.dot_dimension_numbers<[1], [0], [0], [1], [0, 0, 1, 1], [], []>} : vector<2x48xf32>, vector<48x128xf32>, vector<2x128xf32> -> vector<2x128xf32>
    %322 = vector.broadcast %281 : vector<1x128xf32> to vector<2x128xf32>
    %323 = arith.addf %321, %322 : vector<2x128xf32>
    %324 = vector.extract_strided_slice %323 {offsets = [0, 0], sizes = [2, 32], strides = [1, 1]} : vector<2x128xf32> to vector<2x32xf32>
    %325 = arith.negf %324 : vector<2x32xf32>
    %326 = math.exp %325 : vector<2x32xf32>
    %cst_100 = arith.constant 1.000000e+00 : f32
    %327 = vector.broadcast %cst_100 : f32 to vector<2x32xf32>
    %328 = arith.addf %327, %326 : vector<2x32xf32>
    %329 = arith.divf %327, %328 : vector<2x32xf32>
    %330 = vector.extract_strided_slice %323 {offsets = [0, 32], sizes = [2, 32], strides = [1, 1]} : vector<2x128xf32> to vector<2x32xf32>
    %331 = arith.negf %330 : vector<2x32xf32>
    %332 = math.exp %331 : vector<2x32xf32>
    %cst_101 = arith.constant 1.000000e+00 : f32
    %333 = vector.broadcast %cst_101 : f32 to vector<2x32xf32>
    %334 = arith.addf %333, %332 : vector<2x32xf32>
    %335 = arith.divf %333, %334 : vector<2x32xf32>
    %336 = vector.extract_strided_slice %323 {offsets = [0, 64], sizes = [2, 32], strides = [1, 1]} : vector<2x128xf32> to vector<2x32xf32>
    %337 = math.tanh %336 : vector<2x32xf32>
    %338 = vector.extract_strided_slice %323 {offsets = [0, 96], sizes = [2, 32], strides = [1, 1]} : vector<2x128xf32> to vector<2x32xf32>
    %339 = arith.negf %338 : vector<2x32xf32>
    %340 = math.exp %339 : vector<2x32xf32>
    %cst_102 = arith.constant 1.000000e+00 : f32
    %341 = vector.broadcast %cst_102 : f32 to vector<2x32xf32>
    %342 = arith.addf %341, %340 : vector<2x32xf32>
    %343 = arith.divf %341, %342 : vector<2x32xf32>
    %344 = arith.mulf %335, %312 : vector<2x32xf32>
    %345 = arith.mulf %329, %337 : vector<2x32xf32>
    %346 = arith.addf %344, %345 : vector<2x32xf32>
    %347 = math.tanh %346 : vector<2x32xf32>
    %348 = arith.mulf %343, %347 : vector<2x32xf32>
    %c6_103 = arith.constant 6 : index
    %c0_104 = arith.constant 0 : index
    %c32_105 = arith.constant 32 : index
    %349 = vector.load %arg10[%c6_103, %c0_104, %c32_105] : memref<8x2x64xf32, #tpu.memory_space<vmem>>, vector<1x2x32xf32>
    %350 = vector.shape_cast %349 : vector<1x2x32xf32> to vector<2x32xf32>
    %351 = vector.shape_cast %348 : vector<2x32xf32> to vector<1x2x32xf32>
    tpu.vector_store %arg10[%c6_103, %c0_104, %c32_105], %351 {strides = array<i32>} : memref<8x2x64xf32, #tpu.memory_space<vmem>>, vector<1x2x32xf32>,
    %c5_106 = arith.constant 5 : index
    %c0_107 = arith.constant 0 : index
    %c0_108 = arith.constant 0 : index
    %352 = vector.load %arg0[%c5_106, %c0_107, %c0_108] : memref<8x2x16xf32, #tpu.memory_space<vmem>>, vector<1x2x16xf32>
    %353 = vector.shape_cast %352 : vector<1x2x16xf32> to vector<2x16xf32>
    %354 = tpu.concatenate %353, %348 in 1 : vector<2x16xf32>, vector<2x32xf32> -> vector<2x48xf32>
    %cst_109 = arith.constant dense<0.000000e+00> : vector<2x128xf32>
    %355 = tpu.matmul %354, %279, %cst_109 {dimension_numbers = #tpu.dot_dimension_numbers<[1], [0], [0], [1], [0, 0, 1, 1], [], []>} : vector<2x48xf32>, vector<48x128xf32>, vector<2x128xf32> -> vector<2x128xf32>
    %356 = vector.broadcast %281 : vector<1x128xf32> to vector<2x128xf32>
    %357 = arith.addf %355, %356 : vector<2x128xf32>
    %358 = vector.extract_strided_slice %357 {offsets = [0, 0], sizes = [2, 32], strides = [1, 1]} : vector<2x128xf32> to vector<2x32xf32>
    %359 = arith.negf %358 : vector<2x32xf32>
    %360 = math.exp %359 : vector<2x32xf32>
    %cst_110 = arith.constant 1.000000e+00 : f32
    %361 = vector.broadcast %cst_110 : f32 to vector<2x32xf32>
    %362 = arith.addf %361, %360 : vector<2x32xf32>
    %363 = arith.divf %361, %362 : vector<2x32xf32>
    %364 = vector.extract_strided_slice %357 {offsets = [0, 32], sizes = [2, 32], strides = [1, 1]} : vector<2x128xf32> to vector<2x32xf32>
    %365 = arith.negf %364 : vector<2x32xf32>
    %366 = math.exp %365 : vector<2x32xf32>
    %cst_111 = arith.constant 1.000000e+00 : f32
    %367 = vector.broadcast %cst_111 : f32 to vector<2x32xf32>
    %368 = arith.addf %367, %366 : vector<2x32xf32>
    %369 = arith.divf %367, %368 : vector<2x32xf32>
    %370 = vector.extract_strided_slice %357 {offsets = [0, 64], sizes = [2, 32], strides = [1, 1]} : vector<2x128xf32> to vector<2x32xf32>
    %371 = math.tanh %370 : vector<2x32xf32>
    %372 = vector.extract_strided_slice %357 {offsets = [0, 96], sizes = [2, 32], strides = [1, 1]} : vector<2x128xf32> to vector<2x32xf32>
    %373 = arith.negf %372 : vector<2x32xf32>
    %374 = math.exp %373 : vector<2x32xf32>
    %cst_112 = arith.constant 1.000000e+00 : f32
    %375 = vector.broadcast %cst_112 : f32 to vector<2x32xf32>
    %376 = arith.addf %375, %374 : vector<2x32xf32>
    %377 = arith.divf %375, %376 : vector<2x32xf32>
    %378 = arith.mulf %369, %346 : vector<2x32xf32>
    %379 = arith.mulf %363, %371 : vector<2x32xf32>
    %380 = arith.addf %378, %379 : vector<2x32xf32>
    %381 = math.tanh %380 : vector<2x32xf32>
    %382 = arith.mulf %377, %381 : vector<2x32xf32>
    %c5_113 = arith.constant 5 : index
    %c0_114 = arith.constant 0 : index
    %c32_115 = arith.constant 32 : index
    %383 = vector.load %arg10[%c5_113, %c0_114, %c32_115] : memref<8x2x64xf32, #tpu.memory_space<vmem>>, vector<1x2x32xf32>
    %384 = vector.shape_cast %383 : vector<1x2x32xf32> to vector<2x32xf32>
    %385 = vector.shape_cast %382 : vector<2x32xf32> to vector<1x2x32xf32>
    tpu.vector_store %arg10[%c5_113, %c0_114, %c32_115], %385 {strides = array<i32>} : memref<8x2x64xf32, #tpu.memory_space<vmem>>, vector<1x2x32xf32>,
    %c4_116 = arith.constant 4 : index
    %c0_117 = arith.constant 0 : index
    %c0_118 = arith.constant 0 : index
    %386 = vector.load %arg0[%c4_116, %c0_117, %c0_118] : memref<8x2x16xf32, #tpu.memory_space<vmem>>, vector<1x2x16xf32>
    %387 = vector.shape_cast %386 : vector<1x2x16xf32> to vector<2x16xf32>
    %388 = tpu.concatenate %387, %382 in 1 : vector<2x16xf32>, vector<2x32xf32> -> vector<2x48xf32>
    %cst_119 = arith.constant dense<0.000000e+00> : vector<2x128xf32>
    %389 = tpu.matmul %388, %279, %cst_119 {dimension_numbers = #tpu.dot_dimension_numbers<[1], [0], [0], [1], [0, 0, 1, 1], [], []>} : vector<2x48xf32>, vector<48x128xf32>, vector<2x128xf32> -> vector<2x128xf32>
    %390 = vector.broadcast %281 : vector<1x128xf32> to vector<2x128xf32>
    %391 = arith.addf %389, %390 : vector<2x128xf32>
    %392 = vector.extract_strided_slice %391 {offsets = [0, 0], sizes = [2, 32], strides = [1, 1]} : vector<2x128xf32> to vector<2x32xf32>
    %393 = arith.negf %392 : vector<2x32xf32>
    %394 = math.exp %393 : vector<2x32xf32>
    %cst_120 = arith.constant 1.000000e+00 : f32
    %395 = vector.broadcast %cst_120 : f32 to vector<2x32xf32>
    %396 = arith.addf %395, %394 : vector<2x32xf32>
    %397 = arith.divf %395, %396 : vector<2x32xf32>
    %398 = vector.extract_strided_slice %391 {offsets = [0, 32], sizes = [2, 32], strides = [1, 1]} : vector<2x128xf32> to vector<2x32xf32>
    %399 = arith.negf %398 : vector<2x32xf32>
    %400 = math.exp %399 : vector<2x32xf32>
    %cst_121 = arith.constant 1.000000e+00 : f32
    %401 = vector.broadcast %cst_121 : f32 to vector<2x32xf32>
    %402 = arith.addf %401, %400 : vector<2x32xf32>
    %403 = arith.divf %401, %402 : vector<2x32xf32>
    %404 = vector.extract_strided_slice %391 {offsets = [0, 64], sizes = [2, 32], strides = [1, 1]} : vector<2x128xf32> to vector<2x32xf32>
    %405 = math.tanh %404 : vector<2x32xf32>
    %406 = vector.extract_strided_slice %391 {offsets = [0, 96], sizes = [2, 32], strides = [1, 1]} : vector<2x128xf32> to vector<2x32xf32>
    %407 = arith.negf %406 : vector<2x32xf32>
    %408 = math.exp %407 : vector<2x32xf32>
    %cst_122 = arith.constant 1.000000e+00 : f32
    %409 = vector.broadcast %cst_122 : f32 to vector<2x32xf32>
    %410 = arith.addf %409, %408 : vector<2x32xf32>
    %411 = arith.divf %409, %410 : vector<2x32xf32>
    %412 = arith.mulf %403, %380 : vector<2x32xf32>
    %413 = arith.mulf %397, %405 : vector<2x32xf32>
    %414 = arith.addf %412, %413 : vector<2x32xf32>
    %415 = math.tanh %414 : vector<2x32xf32>
    %416 = arith.mulf %411, %415 : vector<2x32xf32>
    %c4_123 = arith.constant 4 : index
    %c0_124 = arith.constant 0 : index
    %c32_125 = arith.constant 32 : index
    %417 = vector.load %arg10[%c4_123, %c0_124, %c32_125] : memref<8x2x64xf32, #tpu.memory_space<vmem>>, vector<1x2x32xf32>
    %418 = vector.shape_cast %417 : vector<1x2x32xf32> to vector<2x32xf32>
    %419 = vector.shape_cast %416 : vector<2x32xf32> to vector<1x2x32xf32>
    tpu.vector_store %arg10[%c4_123, %c0_124, %c32_125], %419 {strides = array<i32>} : memref<8x2x64xf32, #tpu.memory_space<vmem>>, vector<1x2x32xf32>,
    %c3_126 = arith.constant 3 : index
    %c0_127 = arith.constant 0 : index
    %c0_128 = arith.constant 0 : index
    %420 = vector.load %arg0[%c3_126, %c0_127, %c0_128] : memref<8x2x16xf32, #tpu.memory_space<vmem>>, vector<1x2x16xf32>
    %421 = vector.shape_cast %420 : vector<1x2x16xf32> to vector<2x16xf32>
    %422 = tpu.concatenate %421, %416 in 1 : vector<2x16xf32>, vector<2x32xf32> -> vector<2x48xf32>
    %cst_129 = arith.constant dense<0.000000e+00> : vector<2x128xf32>
    %423 = tpu.matmul %422, %279, %cst_129 {dimension_numbers = #tpu.dot_dimension_numbers<[1], [0], [0], [1], [0, 0, 1, 1], [], []>} : vector<2x48xf32>, vector<48x128xf32>, vector<2x128xf32> -> vector<2x128xf32>
    %424 = vector.broadcast %281 : vector<1x128xf32> to vector<2x128xf32>
    %425 = arith.addf %423, %424 : vector<2x128xf32>
    %426 = vector.extract_strided_slice %425 {offsets = [0, 0], sizes = [2, 32], strides = [1, 1]} : vector<2x128xf32> to vector<2x32xf32>
    %427 = arith.negf %426 : vector<2x32xf32>
    %428 = math.exp %427 : vector<2x32xf32>
    %cst_130 = arith.constant 1.000000e+00 : f32
    %429 = vector.broadcast %cst_130 : f32 to vector<2x32xf32>
    %430 = arith.addf %429, %428 : vector<2x32xf32>
    %431 = arith.divf %429, %430 : vector<2x32xf32>
    %432 = vector.extract_strided_slice %425 {offsets = [0, 32], sizes = [2, 32], strides = [1, 1]} : vector<2x128xf32> to vector<2x32xf32>
    %433 = arith.negf %432 : vector<2x32xf32>
    %434 = math.exp %433 : vector<2x32xf32>
    %cst_131 = arith.constant 1.000000e+00 : f32
    %435 = vector.broadcast %cst_131 : f32 to vector<2x32xf32>
    %436 = arith.addf %435, %434 : vector<2x32xf32>
    %437 = arith.divf %435, %436 : vector<2x32xf32>
    %438 = vector.extract_strided_slice %425 {offsets = [0, 64], sizes = [2, 32], strides = [1, 1]} : vector<2x128xf32> to vector<2x32xf32>
    %439 = math.tanh %438 : vector<2x32xf32>
    %440 = vector.extract_strided_slice %425 {offsets = [0, 96], sizes = [2, 32], strides = [1, 1]} : vector<2x128xf32> to vector<2x32xf32>
    %441 = arith.negf %440 : vector<2x32xf32>
    %442 = math.exp %441 : vector<2x32xf32>
    %cst_132 = arith.constant 1.000000e+00 : f32
    %443 = vector.broadcast %cst_132 : f32 to vector<2x32xf32>
    %444 = arith.addf %443, %442 : vector<2x32xf32>
    %445 = arith.divf %443, %444 : vector<2x32xf32>
    %446 = arith.mulf %437, %414 : vector<2x32xf32>
    %447 = arith.mulf %431, %439 : vector<2x32xf32>
    %448 = arith.addf %446, %447 : vector<2x32xf32>
    %449 = math.tanh %448 : vector<2x32xf32>
    %450 = arith.mulf %445, %449 : vector<2x32xf32>
    %c3_133 = arith.constant 3 : index
    %c0_134 = arith.constant 0 : index
    %c32_135 = arith.constant 32 : index
    %451 = vector.load %arg10[%c3_133, %c0_134, %c32_135] : memref<8x2x64xf32, #tpu.memory_space<vmem>>, vector<1x2x32xf32>
    %452 = vector.shape_cast %451 : vector<1x2x32xf32> to vector<2x32xf32>
    %453 = vector.shape_cast %450 : vector<2x32xf32> to vector<1x2x32xf32>
    tpu.vector_store %arg10[%c3_133, %c0_134, %c32_135], %453 {strides = array<i32>} : memref<8x2x64xf32, #tpu.memory_space<vmem>>, vector<1x2x32xf32>,
    %c2_136 = arith.constant 2 : index
    %c0_137 = arith.constant 0 : index
    %c0_138 = arith.constant 0 : index
    %454 = vector.load %arg0[%c2_136, %c0_137, %c0_138] : memref<8x2x16xf32, #tpu.memory_space<vmem>>, vector<1x2x16xf32>
    %455 = vector.shape_cast %454 : vector<1x2x16xf32> to vector<2x16xf32>
    %456 = tpu.concatenate %455, %450 in 1 : vector<2x16xf32>, vector<2x32xf32> -> vector<2x48xf32>
    %cst_139 = arith.constant dense<0.000000e+00> : vector<2x128xf32>
    %457 = tpu.matmul %456, %279, %cst_139 {dimension_numbers = #tpu.dot_dimension_numbers<[1], [0], [0], [1], [0, 0, 1, 1], [], []>} : vector<2x48xf32>, vector<48x128xf32>, vector<2x128xf32> -> vector<2x128xf32>
    %458 = vector.broadcast %281 : vector<1x128xf32> to vector<2x128xf32>
    %459 = arith.addf %457, %458 : vector<2x128xf32>
    %460 = vector.extract_strided_slice %459 {offsets = [0, 0], sizes = [2, 32], strides = [1, 1]} : vector<2x128xf32> to vector<2x32xf32>
    %461 = arith.negf %460 : vector<2x32xf32>
    %462 = math.exp %461 : vector<2x32xf32>
    %cst_140 = arith.constant 1.000000e+00 : f32
    %463 = vector.broadcast %cst_140 : f32 to vector<2x32xf32>
    %464 = arith.addf %463, %462 : vector<2x32xf32>
    %465 = arith.divf %463, %464 : vector<2x32xf32>
    %466 = vector.extract_strided_slice %459 {offsets = [0, 32], sizes = [2, 32], strides = [1, 1]} : vector<2x128xf32> to vector<2x32xf32>
    %467 = arith.negf %466 : vector<2x32xf32>
    %468 = math.exp %467 : vector<2x32xf32>
    %cst_141 = arith.constant 1.000000e+00 : f32
    %469 = vector.broadcast %cst_141 : f32 to vector<2x32xf32>
    %470 = arith.addf %469, %468 : vector<2x32xf32>
    %471 = arith.divf %469, %470 : vector<2x32xf32>
    %472 = vector.extract_strided_slice %459 {offsets = [0, 64], sizes = [2, 32], strides = [1, 1]} : vector<2x128xf32> to vector<2x32xf32>
    %473 = math.tanh %472 : vector<2x32xf32>
    %474 = vector.extract_strided_slice %459 {offsets = [0, 96], sizes = [2, 32], strides = [1, 1]} : vector<2x128xf32> to vector<2x32xf32>
    %475 = arith.negf %474 : vector<2x32xf32>
    %476 = math.exp %475 : vector<2x32xf32>
    %cst_142 = arith.constant 1.000000e+00 : f32
    %477 = vector.broadcast %cst_142 : f32 to vector<2x32xf32>
    %478 = arith.addf %477, %476 : vector<2x32xf32>
    %479 = arith.divf %477, %478 : vector<2x32xf32>
    %480 = arith.mulf %471, %448 : vector<2x32xf32>
    %481 = arith.mulf %465, %473 : vector<2x32xf32>
    %482 = arith.addf %480, %481 : vector<2x32xf32>
    %483 = math.tanh %482 : vector<2x32xf32>
    %484 = arith.mulf %479, %483 : vector<2x32xf32>
    %c2_143 = arith.constant 2 : index
    %c0_144 = arith.constant 0 : index
    %c32_145 = arith.constant 32 : index
    %485 = vector.load %arg10[%c2_143, %c0_144, %c32_145] : memref<8x2x64xf32, #tpu.memory_space<vmem>>, vector<1x2x32xf32>
    %486 = vector.shape_cast %485 : vector<1x2x32xf32> to vector<2x32xf32>
    %487 = vector.shape_cast %484 : vector<2x32xf32> to vector<1x2x32xf32>
    tpu.vector_store %arg10[%c2_143, %c0_144, %c32_145], %487 {strides = array<i32>} : memref<8x2x64xf32, #tpu.memory_space<vmem>>, vector<1x2x32xf32>,
    %c1_146 = arith.constant 1 : index
    %c0_147 = arith.constant 0 : index
    %c0_148 = arith.constant 0 : index
    %488 = vector.load %arg0[%c1_146, %c0_147, %c0_148] : memref<8x2x16xf32, #tpu.memory_space<vmem>>, vector<1x2x16xf32>
    %489 = vector.shape_cast %488 : vector<1x2x16xf32> to vector<2x16xf32>
    %490 = tpu.concatenate %489, %484 in 1 : vector<2x16xf32>, vector<2x32xf32> -> vector<2x48xf32>
    %cst_149 = arith.constant dense<0.000000e+00> : vector<2x128xf32>
    %491 = tpu.matmul %490, %279, %cst_149 {dimension_numbers = #tpu.dot_dimension_numbers<[1], [0], [0], [1], [0, 0, 1, 1], [], []>} : vector<2x48xf32>, vector<48x128xf32>, vector<2x128xf32> -> vector<2x128xf32>
    %492 = vector.broadcast %281 : vector<1x128xf32> to vector<2x128xf32>
    %493 = arith.addf %491, %492 : vector<2x128xf32>
    %494 = vector.extract_strided_slice %493 {offsets = [0, 0], sizes = [2, 32], strides = [1, 1]} : vector<2x128xf32> to vector<2x32xf32>
    %495 = arith.negf %494 : vector<2x32xf32>
    %496 = math.exp %495 : vector<2x32xf32>
    %cst_150 = arith.constant 1.000000e+00 : f32
    %497 = vector.broadcast %cst_150 : f32 to vector<2x32xf32>
    %498 = arith.addf %497, %496 : vector<2x32xf32>
    %499 = arith.divf %497, %498 : vector<2x32xf32>
    %500 = vector.extract_strided_slice %493 {offsets = [0, 32], sizes = [2, 32], strides = [1, 1]} : vector<2x128xf32> to vector<2x32xf32>
    %501 = arith.negf %500 : vector<2x32xf32>
    %502 = math.exp %501 : vector<2x32xf32>
    %cst_151 = arith.constant 1.000000e+00 : f32
    %503 = vector.broadcast %cst_151 : f32 to vector<2x32xf32>
    %504 = arith.addf %503, %502 : vector<2x32xf32>
    %505 = arith.divf %503, %504 : vector<2x32xf32>
    %506 = vector.extract_strided_slice %493 {offsets = [0, 64], sizes = [2, 32], strides = [1, 1]} : vector<2x128xf32> to vector<2x32xf32>
    %507 = math.tanh %506 : vector<2x32xf32>
    %508 = vector.extract_strided_slice %493 {offsets = [0, 96], sizes = [2, 32], strides = [1, 1]} : vector<2x128xf32> to vector<2x32xf32>
    %509 = arith.negf %508 : vector<2x32xf32>
    %510 = math.exp %509 : vector<2x32xf32>
    %cst_152 = arith.constant 1.000000e+00 : f32
    %511 = vector.broadcast %cst_152 : f32 to vector<2x32xf32>
    %512 = arith.addf %511, %510 : vector<2x32xf32>
    %513 = arith.divf %511, %512 : vector<2x32xf32>
    %514 = arith.mulf %505, %482 : vector<2x32xf32>
    %515 = arith.mulf %499, %507 : vector<2x32xf32>
    %516 = arith.addf %514, %515 : vector<2x32xf32>
    %517 = math.tanh %516 : vector<2x32xf32>
    %518 = arith.mulf %513, %517 : vector<2x32xf32>
    %c1_153 = arith.constant 1 : index
    %c0_154 = arith.constant 0 : index
    %c32_155 = arith.constant 32 : index
    %519 = vector.load %arg10[%c1_153, %c0_154, %c32_155] : memref<8x2x64xf32, #tpu.memory_space<vmem>>, vector<1x2x32xf32>
    %520 = vector.shape_cast %519 : vector<1x2x32xf32> to vector<2x32xf32>
    %521 = vector.shape_cast %518 : vector<2x32xf32> to vector<1x2x32xf32>
    tpu.vector_store %arg10[%c1_153, %c0_154, %c32_155], %521 {strides = array<i32>} : memref<8x2x64xf32, #tpu.memory_space<vmem>>, vector<1x2x32xf32>,
    %c0_156 = arith.constant 0 : index
    %c0_157 = arith.constant 0 : index
    %c0_158 = arith.constant 0 : index
    %522 = vector.load %arg0[%c0_156, %c0_157, %c0_158] : memref<8x2x16xf32, #tpu.memory_space<vmem>>, vector<1x2x16xf32>
    %523 = vector.shape_cast %522 : vector<1x2x16xf32> to vector<2x16xf32>
    %524 = tpu.concatenate %523, %518 in 1 : vector<2x16xf32>, vector<2x32xf32> -> vector<2x48xf32>
    %cst_159 = arith.constant dense<0.000000e+00> : vector<2x128xf32>
    %525 = tpu.matmul %524, %279, %cst_159 {dimension_numbers = #tpu.dot_dimension_numbers<[1], [0], [0], [1], [0, 0, 1, 1], [], []>} : vector<2x48xf32>, vector<48x128xf32>, vector<2x128xf32> -> vector<2x128xf32>
    %526 = vector.broadcast %281 : vector<1x128xf32> to vector<2x128xf32>
    %527 = arith.addf %525, %526 : vector<2x128xf32>
    %528 = vector.extract_strided_slice %527 {offsets = [0, 0], sizes = [2, 32], strides = [1, 1]} : vector<2x128xf32> to vector<2x32xf32>
    %529 = arith.negf %528 : vector<2x32xf32>
    %530 = math.exp %529 : vector<2x32xf32>
    %cst_160 = arith.constant 1.000000e+00 : f32
    %531 = vector.broadcast %cst_160 : f32 to vector<2x32xf32>
    %532 = arith.addf %531, %530 : vector<2x32xf32>
    %533 = arith.divf %531, %532 : vector<2x32xf32>
    %534 = vector.extract_strided_slice %527 {offsets = [0, 32], sizes = [2, 32], strides = [1, 1]} : vector<2x128xf32> to vector<2x32xf32>
    %535 = arith.negf %534 : vector<2x32xf32>
    %536 = math.exp %535 : vector<2x32xf32>
    %cst_161 = arith.constant 1.000000e+00 : f32
    %537 = vector.broadcast %cst_161 : f32 to vector<2x32xf32>
    %538 = arith.addf %537, %536 : vector<2x32xf32>
    %539 = arith.divf %537, %538 : vector<2x32xf32>
    %540 = vector.extract_strided_slice %527 {offsets = [0, 64], sizes = [2, 32], strides = [1, 1]} : vector<2x128xf32> to vector<2x32xf32>
    %541 = math.tanh %540 : vector<2x32xf32>
    %542 = vector.extract_strided_slice %527 {offsets = [0, 96], sizes = [2, 32], strides = [1, 1]} : vector<2x128xf32> to vector<2x32xf32>
    %543 = arith.negf %542 : vector<2x32xf32>
    %544 = math.exp %543 : vector<2x32xf32>
    %cst_162 = arith.constant 1.000000e+00 : f32
    %545 = vector.broadcast %cst_162 : f32 to vector<2x32xf32>
    %546 = arith.addf %545, %544 : vector<2x32xf32>
    %547 = arith.divf %545, %546 : vector<2x32xf32>
    %548 = arith.mulf %539, %516 : vector<2x32xf32>
    %549 = arith.mulf %533, %541 : vector<2x32xf32>
    %550 = arith.addf %548, %549 : vector<2x32xf32>
    %551 = math.tanh %550 : vector<2x32xf32>
    %552 = arith.mulf %547, %551 : vector<2x32xf32>
    %c0_163 = arith.constant 0 : index
    %c0_164 = arith.constant 0 : index
    %c32_165 = arith.constant 32 : index
    %553 = vector.load %arg10[%c0_163, %c0_164, %c32_165] : memref<8x2x64xf32, #tpu.memory_space<vmem>>, vector<1x2x32xf32>
    %554 = vector.shape_cast %553 : vector<1x2x32xf32> to vector<2x32xf32>
    %555 = vector.shape_cast %552 : vector<2x32xf32> to vector<1x2x32xf32>
    tpu.vector_store %arg10[%c0_163, %c0_164, %c32_165], %555 {strides = array<i32>} : memref<8x2x64xf32, #tpu.memory_space<vmem>>, vector<1x2x32xf32>,
    %c0_166 = arith.constant 0 : index
    %c0_167 = arith.constant 0 : index
    %c0_168 = arith.constant 0 : index
    %556 = vector.load %arg2[%c0_166, %c0_167, %c0_168] : memref<2x96x128xf32, #tpu.memory_space<vmem>>, vector<1x96x128xf32>
    %557 = vector.shape_cast %556 : vector<1x96x128xf32> to vector<96x128xf32>
    %c0_169 = arith.constant 0 : index
    %c0_170 = arith.constant 0 : index
    %c0_171 = arith.constant 0 : index
    %558 = vector.load %arg5[%c0_169, %c0_170, %c0_171] : memref<2x1x128xf32, #tpu.memory_space<vmem>>, vector<1x1x128xf32>
    %559 = vector.shape_cast %558 : vector<1x1x128xf32> to vector<1x128xf32>
    %cst_172 = arith.constant 0.000000e+00 : f32
    %560 = vector.broadcast %cst_172 : f32 to vector<2x32xf32>
    %cst_173 = arith.constant 0.000000e+00 : f32
    %561 = vector.broadcast %cst_173 : f32 to vector<2x32xf32>
    %c0_174 = arith.constant 0 : index
    %c0_175 = arith.constant 0 : index
    %c0_176 = arith.constant 0 : index
    %562 = vector.load %arg10[%c0_174, %c0_175, %c0_176] : memref<8x2x64xf32, #tpu.memory_space<vmem>>, vector<1x2x64xf32>
    %563 = vector.shape_cast %562 : vector<1x2x64xf32> to vector<2x64xf32>
    %564 = tpu.concatenate %563, %560 in 1 : vector<2x64xf32>, vector<2x32xf32> -> vector<2x96xf32>
    %cst_177 = arith.constant dense<0.000000e+00> : vector<2x128xf32>
    %565 = tpu.matmul %564, %557, %cst_177 {dimension_numbers = #tpu.dot_dimension_numbers<[1], [0], [0], [1], [0, 0, 1, 1], [], []>} : vector<2x96xf32>, vector<96x128xf32>, vector<2x128xf32> -> vector<2x128xf32>
    %566 = vector.broadcast %559 : vector<1x128xf32> to vector<2x128xf32>
    %567 = arith.addf %565, %566 : vector<2x128xf32>
    %568 = vector.extract_strided_slice %567 {offsets = [0, 0], sizes = [2, 32], strides = [1, 1]} : vector<2x128xf32> to vector<2x32xf32>
    %569 = arith.negf %568 : vector<2x32xf32>
    %570 = math.exp %569 : vector<2x32xf32>
    %cst_178 = arith.constant 1.000000e+00 : f32
    %571 = vector.broadcast %cst_178 : f32 to vector<2x32xf32>
    %572 = arith.addf %571, %570 : vector<2x32xf32>
    %573 = arith.divf %571, %572 : vector<2x32xf32>
    %574 = vector.extract_strided_slice %567 {offsets = [0, 32], sizes = [2, 32], strides = [1, 1]} : vector<2x128xf32> to vector<2x32xf32>
    %575 = arith.negf %574 : vector<2x32xf32>
    %576 = math.exp %575 : vector<2x32xf32>
    %cst_179 = arith.constant 1.000000e+00 : f32
    %577 = vector.broadcast %cst_179 : f32 to vector<2x32xf32>
    %578 = arith.addf %577, %576 : vector<2x32xf32>
    %579 = arith.divf %577, %578 : vector<2x32xf32>
    %580 = vector.extract_strided_slice %567 {offsets = [0, 64], sizes = [2, 32], strides = [1, 1]} : vector<2x128xf32> to vector<2x32xf32>
    %581 = math.tanh %580 : vector<2x32xf32>
    %582 = vector.extract_strided_slice %567 {offsets = [0, 96], sizes = [2, 32], strides = [1, 1]} : vector<2x128xf32> to vector<2x32xf32>
    %583 = arith.negf %582 : vector<2x32xf32>
    %584 = math.exp %583 : vector<2x32xf32>
    %cst_180 = arith.constant 1.000000e+00 : f32
    %585 = vector.broadcast %cst_180 : f32 to vector<2x32xf32>
    %586 = arith.addf %585, %584 : vector<2x32xf32>
    %587 = arith.divf %585, %586 : vector<2x32xf32>
    %588 = arith.mulf %579, %561 : vector<2x32xf32>
    %589 = arith.mulf %573, %581 : vector<2x32xf32>
    %590 = arith.addf %588, %589 : vector<2x32xf32>
    %591 = math.tanh %590 : vector<2x32xf32>
    %592 = arith.mulf %587, %591 : vector<2x32xf32>
    %c0_181 = arith.constant 0 : index
    %c0_182 = arith.constant 0 : index
    %c0_183 = arith.constant 0 : index
    %593 = vector.load %arg11[%c0_181, %c0_182, %c0_183] : memref<8x2x64xf32, #tpu.memory_space<vmem>>, vector<1x2x32xf32>
    %594 = vector.shape_cast %593 : vector<1x2x32xf32> to vector<2x32xf32>
    %595 = vector.shape_cast %592 : vector<2x32xf32> to vector<1x2x32xf32>
    tpu.vector_store %arg11[%c0_181, %c0_182, %c0_183], %595 {strides = array<i32>} : memref<8x2x64xf32, #tpu.memory_space<vmem>>, vector<1x2x32xf32>,
    %c1_184 = arith.constant 1 : index
    %c0_185 = arith.constant 0 : index
    %c0_186 = arith.constant 0 : index
    %596 = vector.load %arg10[%c1_184, %c0_185, %c0_186] : memref<8x2x64xf32, #tpu.memory_space<vmem>>, vector<1x2x64xf32>
    %597 = vector.shape_cast %596 : vector<1x2x64xf32> to vector<2x64xf32>
    %598 = tpu.concatenate %597, %592 in 1 : vector<2x64xf32>, vector<2x32xf32> -> vector<2x96xf32>
    %cst_187 = arith.constant dense<0.000000e+00> : vector<2x128xf32>
    %599 = tpu.matmul %598, %557, %cst_187 {dimension_numbers = #tpu.dot_dimension_numbers<[1], [0], [0], [1], [0, 0, 1, 1], [], []>} : vector<2x96xf32>, vector<96x128xf32>, vector<2x128xf32> -> vector<2x128xf32>
    %600 = vector.broadcast %559 : vector<1x128xf32> to vector<2x128xf32>
    %601 = arith.addf %599, %600 : vector<2x128xf32>
    %602 = vector.extract_strided_slice %601 {offsets = [0, 0], sizes = [2, 32], strides = [1, 1]} : vector<2x128xf32> to vector<2x32xf32>
    %603 = arith.negf %602 : vector<2x32xf32>
    %604 = math.exp %603 : vector<2x32xf32>
    %cst_188 = arith.constant 1.000000e+00 : f32
    %605 = vector.broadcast %cst_188 : f32 to vector<2x32xf32>
    %606 = arith.addf %605, %604 : vector<2x32xf32>
    %607 = arith.divf %605, %606 : vector<2x32xf32>
    %608 = vector.extract_strided_slice %601 {offsets = [0, 32], sizes = [2, 32], strides = [1, 1]} : vector<2x128xf32> to vector<2x32xf32>
    %609 = arith.negf %608 : vector<2x32xf32>
    %610 = math.exp %609 : vector<2x32xf32>
    %cst_189 = arith.constant 1.000000e+00 : f32
    %611 = vector.broadcast %cst_189 : f32 to vector<2x32xf32>
    %612 = arith.addf %611, %610 : vector<2x32xf32>
    %613 = arith.divf %611, %612 : vector<2x32xf32>
    %614 = vector.extract_strided_slice %601 {offsets = [0, 64], sizes = [2, 32], strides = [1, 1]} : vector<2x128xf32> to vector<2x32xf32>
    %615 = math.tanh %614 : vector<2x32xf32>
    %616 = vector.extract_strided_slice %601 {offsets = [0, 96], sizes = [2, 32], strides = [1, 1]} : vector<2x128xf32> to vector<2x32xf32>
    %617 = arith.negf %616 : vector<2x32xf32>
    %618 = math.exp %617 : vector<2x32xf32>
    %cst_190 = arith.constant 1.000000e+00 : f32
    %619 = vector.broadcast %cst_190 : f32 to vector<2x32xf32>
    %620 = arith.addf %619, %618 : vector<2x32xf32>
    %621 = arith.divf %619, %620 : vector<2x32xf32>
    %622 = arith.mulf %613, %590 : vector<2x32xf32>
    %623 = arith.mulf %607, %615 : vector<2x32xf32>
    %624 = arith.addf %622, %623 : vector<2x32xf32>
    %625 = math.tanh %624 : vector<2x32xf32>
    %626 = arith.mulf %621, %625 : vector<2x32xf32>
    %c1_191 = arith.constant 1 : index
    %c0_192 = arith.constant 0 : index
    %c0_193 = arith.constant 0 : index
    %627 = vector.load %arg11[%c1_191, %c0_192, %c0_193] : memref<8x2x64xf32, #tpu.memory_space<vmem>>, vector<1x2x32xf32>
    %628 = vector.shape_cast %627 : vector<1x2x32xf32> to vector<2x32xf32>
    %629 = vector.shape_cast %626 : vector<2x32xf32> to vector<1x2x32xf32>
    tpu.vector_store %arg11[%c1_191, %c0_192, %c0_193], %629 {strides = array<i32>} : memref<8x2x64xf32, #tpu.memory_space<vmem>>, vector<1x2x32xf32>,
    %c2_194 = arith.constant 2 : index
    %c0_195 = arith.constant 0 : index
    %c0_196 = arith.constant 0 : index
    %630 = vector.load %arg10[%c2_194, %c0_195, %c0_196] : memref<8x2x64xf32, #tpu.memory_space<vmem>>, vector<1x2x64xf32>
    %631 = vector.shape_cast %630 : vector<1x2x64xf32> to vector<2x64xf32>
    %632 = tpu.concatenate %631, %626 in 1 : vector<2x64xf32>, vector<2x32xf32> -> vector<2x96xf32>
    %cst_197 = arith.constant dense<0.000000e+00> : vector<2x128xf32>
    %633 = tpu.matmul %632, %557, %cst_197 {dimension_numbers = #tpu.dot_dimension_numbers<[1], [0], [0], [1], [0, 0, 1, 1], [], []>} : vector<2x96xf32>, vector<96x128xf32>, vector<2x128xf32> -> vector<2x128xf32>
    %634 = vector.broadcast %559 : vector<1x128xf32> to vector<2x128xf32>
    %635 = arith.addf %633, %634 : vector<2x128xf32>
    %636 = vector.extract_strided_slice %635 {offsets = [0, 0], sizes = [2, 32], strides = [1, 1]} : vector<2x128xf32> to vector<2x32xf32>
    %637 = arith.negf %636 : vector<2x32xf32>
    %638 = math.exp %637 : vector<2x32xf32>
    %cst_198 = arith.constant 1.000000e+00 : f32
    %639 = vector.broadcast %cst_198 : f32 to vector<2x32xf32>
    %640 = arith.addf %639, %638 : vector<2x32xf32>
    %641 = arith.divf %639, %640 : vector<2x32xf32>
    %642 = vector.extract_strided_slice %635 {offsets = [0, 32], sizes = [2, 32], strides = [1, 1]} : vector<2x128xf32> to vector<2x32xf32>
    %643 = arith.negf %642 : vector<2x32xf32>
    %644 = math.exp %643 : vector<2x32xf32>
    %cst_199 = arith.constant 1.000000e+00 : f32
    %645 = vector.broadcast %cst_199 : f32 to vector<2x32xf32>
    %646 = arith.addf %645, %644 : vector<2x32xf32>
    %647 = arith.divf %645, %646 : vector<2x32xf32>
    %648 = vector.extract_strided_slice %635 {offsets = [0, 64], sizes = [2, 32], strides = [1, 1]} : vector<2x128xf32> to vector<2x32xf32>
    %649 = math.tanh %648 : vector<2x32xf32>
    %650 = vector.extract_strided_slice %635 {offsets = [0, 96], sizes = [2, 32], strides = [1, 1]} : vector<2x128xf32> to vector<2x32xf32>
    %651 = arith.negf %650 : vector<2x32xf32>
    %652 = math.exp %651 : vector<2x32xf32>
    %cst_200 = arith.constant 1.000000e+00 : f32
    %653 = vector.broadcast %cst_200 : f32 to vector<2x32xf32>
    %654 = arith.addf %653, %652 : vector<2x32xf32>
    %655 = arith.divf %653, %654 : vector<2x32xf32>
    %656 = arith.mulf %647, %624 : vector<2x32xf32>
    %657 = arith.mulf %641, %649 : vector<2x32xf32>
    %658 = arith.addf %656, %657 : vector<2x32xf32>
    %659 = math.tanh %658 : vector<2x32xf32>
    %660 = arith.mulf %655, %659 : vector<2x32xf32>
    %c2_201 = arith.constant 2 : index
    %c0_202 = arith.constant 0 : index
    %c0_203 = arith.constant 0 : index
    %661 = vector.load %arg11[%c2_201, %c0_202, %c0_203] : memref<8x2x64xf32, #tpu.memory_space<vmem>>, vector<1x2x32xf32>
    %662 = vector.shape_cast %661 : vector<1x2x32xf32> to vector<2x32xf32>
    %663 = vector.shape_cast %660 : vector<2x32xf32> to vector<1x2x32xf32>
    tpu.vector_store %arg11[%c2_201, %c0_202, %c0_203], %663 {strides = array<i32>} : memref<8x2x64xf32, #tpu.memory_space<vmem>>, vector<1x2x32xf32>,
    %c3_204 = arith.constant 3 : index
    %c0_205 = arith.constant 0 : index
    %c0_206 = arith.constant 0 : index
    %664 = vector.load %arg10[%c3_204, %c0_205, %c0_206] : memref<8x2x64xf32, #tpu.memory_space<vmem>>, vector<1x2x64xf32>
    %665 = vector.shape_cast %664 : vector<1x2x64xf32> to vector<2x64xf32>
    %666 = tpu.concatenate %665, %660 in 1 : vector<2x64xf32>, vector<2x32xf32> -> vector<2x96xf32>
    %cst_207 = arith.constant dense<0.000000e+00> : vector<2x128xf32>
    %667 = tpu.matmul %666, %557, %cst_207 {dimension_numbers = #tpu.dot_dimension_numbers<[1], [0], [0], [1], [0, 0, 1, 1], [], []>} : vector<2x96xf32>, vector<96x128xf32>, vector<2x128xf32> -> vector<2x128xf32>
    %668 = vector.broadcast %559 : vector<1x128xf32> to vector<2x128xf32>
    %669 = arith.addf %667, %668 : vector<2x128xf32>
    %670 = vector.extract_strided_slice %669 {offsets = [0, 0], sizes = [2, 32], strides = [1, 1]} : vector<2x128xf32> to vector<2x32xf32>
    %671 = arith.negf %670 : vector<2x32xf32>
    %672 = math.exp %671 : vector<2x32xf32>
    %cst_208 = arith.constant 1.000000e+00 : f32
    %673 = vector.broadcast %cst_208 : f32 to vector<2x32xf32>
    %674 = arith.addf %673, %672 : vector<2x32xf32>
    %675 = arith.divf %673, %674 : vector<2x32xf32>
    %676 = vector.extract_strided_slice %669 {offsets = [0, 32], sizes = [2, 32], strides = [1, 1]} : vector<2x128xf32> to vector<2x32xf32>
    %677 = arith.negf %676 : vector<2x32xf32>
    %678 = math.exp %677 : vector<2x32xf32>
    %cst_209 = arith.constant 1.000000e+00 : f32
    %679 = vector.broadcast %cst_209 : f32 to vector<2x32xf32>
    %680 = arith.addf %679, %678 : vector<2x32xf32>
    %681 = arith.divf %679, %680 : vector<2x32xf32>
    %682 = vector.extract_strided_slice %669 {offsets = [0, 64], sizes = [2, 32], strides = [1, 1]} : vector<2x128xf32> to vector<2x32xf32>
    %683 = math.tanh %682 : vector<2x32xf32>
    %684 = vector.extract_strided_slice %669 {offsets = [0, 96], sizes = [2, 32], strides = [1, 1]} : vector<2x128xf32> to vector<2x32xf32>
    %685 = arith.negf %684 : vector<2x32xf32>
    %686 = math.exp %685 : vector<2x32xf32>
    %cst_210 = arith.constant 1.000000e+00 : f32
    %687 = vector.broadcast %cst_210 : f32 to vector<2x32xf32>
    %688 = arith.addf %687, %686 : vector<2x32xf32>
    %689 = arith.divf %687, %688 : vector<2x32xf32>
    %690 = arith.mulf %681, %658 : vector<2x32xf32>
    %691 = arith.mulf %675, %683 : vector<2x32xf32>
    %692 = arith.addf %690, %691 : vector<2x32xf32>
    %693 = math.tanh %692 : vector<2x32xf32>
    %694 = arith.mulf %689, %693 : vector<2x32xf32>
    %c3_211 = arith.constant 3 : index
    %c0_212 = arith.constant 0 : index
    %c0_213 = arith.constant 0 : index
    %695 = vector.load %arg11[%c3_211, %c0_212, %c0_213] : memref<8x2x64xf32, #tpu.memory_space<vmem>>, vector<1x2x32xf32>
    %696 = vector.shape_cast %695 : vector<1x2x32xf32> to vector<2x32xf32>
    %697 = vector.shape_cast %694 : vector<2x32xf32> to vector<1x2x32xf32>
    tpu.vector_store %arg11[%c3_211, %c0_212, %c0_213], %697 {strides = array<i32>} : memref<8x2x64xf32, #tpu.memory_space<vmem>>, vector<1x2x32xf32>,
    %c4_214 = arith.constant 4 : index
    %c0_215 = arith.constant 0 : index
    %c0_216 = arith.constant 0 : index
    %698 = vector.load %arg10[%c4_214, %c0_215, %c0_216] : memref<8x2x64xf32, #tpu.memory_space<vmem>>, vector<1x2x64xf32>
    %699 = vector.shape_cast %698 : vector<1x2x64xf32> to vector<2x64xf32>
    %700 = tpu.concatenate %699, %694 in 1 : vector<2x64xf32>, vector<2x32xf32> -> vector<2x96xf32>
    %cst_217 = arith.constant dense<0.000000e+00> : vector<2x128xf32>
    %701 = tpu.matmul %700, %557, %cst_217 {dimension_numbers = #tpu.dot_dimension_numbers<[1], [0], [0], [1], [0, 0, 1, 1], [], []>} : vector<2x96xf32>, vector<96x128xf32>, vector<2x128xf32> -> vector<2x128xf32>
    %702 = vector.broadcast %559 : vector<1x128xf32> to vector<2x128xf32>
    %703 = arith.addf %701, %702 : vector<2x128xf32>
    %704 = vector.extract_strided_slice %703 {offsets = [0, 0], sizes = [2, 32], strides = [1, 1]} : vector<2x128xf32> to vector<2x32xf32>
    %705 = arith.negf %704 : vector<2x32xf32>
    %706 = math.exp %705 : vector<2x32xf32>
    %cst_218 = arith.constant 1.000000e+00 : f32
    %707 = vector.broadcast %cst_218 : f32 to vector<2x32xf32>
    %708 = arith.addf %707, %706 : vector<2x32xf32>
    %709 = arith.divf %707, %708 : vector<2x32xf32>
    %710 = vector.extract_strided_slice %703 {offsets = [0, 32], sizes = [2, 32], strides = [1, 1]} : vector<2x128xf32> to vector<2x32xf32>
    %711 = arith.negf %710 : vector<2x32xf32>
    %712 = math.exp %711 : vector<2x32xf32>
    %cst_219 = arith.constant 1.000000e+00 : f32
    %713 = vector.broadcast %cst_219 : f32 to vector<2x32xf32>
    %714 = arith.addf %713, %712 : vector<2x32xf32>
    %715 = arith.divf %713, %714 : vector<2x32xf32>
    %716 = vector.extract_strided_slice %703 {offsets = [0, 64], sizes = [2, 32], strides = [1, 1]} : vector<2x128xf32> to vector<2x32xf32>
    %717 = math.tanh %716 : vector<2x32xf32>
    %718 = vector.extract_strided_slice %703 {offsets = [0, 96], sizes = [2, 32], strides = [1, 1]} : vector<2x128xf32> to vector<2x32xf32>
    %719 = arith.negf %718 : vector<2x32xf32>
    %720 = math.exp %719 : vector<2x32xf32>
    %cst_220 = arith.constant 1.000000e+00 : f32
    %721 = vector.broadcast %cst_220 : f32 to vector<2x32xf32>
    %722 = arith.addf %721, %720 : vector<2x32xf32>
    %723 = arith.divf %721, %722 : vector<2x32xf32>
    %724 = arith.mulf %715, %692 : vector<2x32xf32>
    %725 = arith.mulf %709, %717 : vector<2x32xf32>
    %726 = arith.addf %724, %725 : vector<2x32xf32>
    %727 = math.tanh %726 : vector<2x32xf32>
    %728 = arith.mulf %723, %727 : vector<2x32xf32>
    %c4_221 = arith.constant 4 : index
    %c0_222 = arith.constant 0 : index
    %c0_223 = arith.constant 0 : index
    %729 = vector.load %arg11[%c4_221, %c0_222, %c0_223] : memref<8x2x64xf32, #tpu.memory_space<vmem>>, vector<1x2x32xf32>
    %730 = vector.shape_cast %729 : vector<1x2x32xf32> to vector<2x32xf32>
    %731 = vector.shape_cast %728 : vector<2x32xf32> to vector<1x2x32xf32>
    tpu.vector_store %arg11[%c4_221, %c0_222, %c0_223], %731 {strides = array<i32>} : memref<8x2x64xf32, #tpu.memory_space<vmem>>, vector<1x2x32xf32>,
    %c5_224 = arith.constant 5 : index
    %c0_225 = arith.constant 0 : index
    %c0_226 = arith.constant 0 : index
    %732 = vector.load %arg10[%c5_224, %c0_225, %c0_226] : memref<8x2x64xf32, #tpu.memory_space<vmem>>, vector<1x2x64xf32>
    %733 = vector.shape_cast %732 : vector<1x2x64xf32> to vector<2x64xf32>
    %734 = tpu.concatenate %733, %728 in 1 : vector<2x64xf32>, vector<2x32xf32> -> vector<2x96xf32>
    %cst_227 = arith.constant dense<0.000000e+00> : vector<2x128xf32>
    %735 = tpu.matmul %734, %557, %cst_227 {dimension_numbers = #tpu.dot_dimension_numbers<[1], [0], [0], [1], [0, 0, 1, 1], [], []>} : vector<2x96xf32>, vector<96x128xf32>, vector<2x128xf32> -> vector<2x128xf32>
    %736 = vector.broadcast %559 : vector<1x128xf32> to vector<2x128xf32>
    %737 = arith.addf %735, %736 : vector<2x128xf32>
    %738 = vector.extract_strided_slice %737 {offsets = [0, 0], sizes = [2, 32], strides = [1, 1]} : vector<2x128xf32> to vector<2x32xf32>
    %739 = arith.negf %738 : vector<2x32xf32>
    %740 = math.exp %739 : vector<2x32xf32>
    %cst_228 = arith.constant 1.000000e+00 : f32
    %741 = vector.broadcast %cst_228 : f32 to vector<2x32xf32>
    %742 = arith.addf %741, %740 : vector<2x32xf32>
    %743 = arith.divf %741, %742 : vector<2x32xf32>
    %744 = vector.extract_strided_slice %737 {offsets = [0, 32], sizes = [2, 32], strides = [1, 1]} : vector<2x128xf32> to vector<2x32xf32>
    %745 = arith.negf %744 : vector<2x32xf32>
    %746 = math.exp %745 : vector<2x32xf32>
    %cst_229 = arith.constant 1.000000e+00 : f32
    %747 = vector.broadcast %cst_229 : f32 to vector<2x32xf32>
    %748 = arith.addf %747, %746 : vector<2x32xf32>
    %749 = arith.divf %747, %748 : vector<2x32xf32>
    %750 = vector.extract_strided_slice %737 {offsets = [0, 64], sizes = [2, 32], strides = [1, 1]} : vector<2x128xf32> to vector<2x32xf32>
    %751 = math.tanh %750 : vector<2x32xf32>
    %752 = vector.extract_strided_slice %737 {offsets = [0, 96], sizes = [2, 32], strides = [1, 1]} : vector<2x128xf32> to vector<2x32xf32>
    %753 = arith.negf %752 : vector<2x32xf32>
    %754 = math.exp %753 : vector<2x32xf32>
    %cst_230 = arith.constant 1.000000e+00 : f32
    %755 = vector.broadcast %cst_230 : f32 to vector<2x32xf32>
    %756 = arith.addf %755, %754 : vector<2x32xf32>
    %757 = arith.divf %755, %756 : vector<2x32xf32>
    %758 = arith.mulf %749, %726 : vector<2x32xf32>
    %759 = arith.mulf %743, %751 : vector<2x32xf32>
    %760 = arith.addf %758, %759 : vector<2x32xf32>
    %761 = math.tanh %760 : vector<2x32xf32>
    %762 = arith.mulf %757, %761 : vector<2x32xf32>
    %c5_231 = arith.constant 5 : index
    %c0_232 = arith.constant 0 : index
    %c0_233 = arith.constant 0 : index
    %763 = vector.load %arg11[%c5_231, %c0_232, %c0_233] : memref<8x2x64xf32, #tpu.memory_space<vmem>>, vector<1x2x32xf32>
    %764 = vector.shape_cast %763 : vector<1x2x32xf32> to vector<2x32xf32>
    %765 = vector.shape_cast %762 : vector<2x32xf32> to vector<1x2x32xf32>
    tpu.vector_store %arg11[%c5_231, %c0_232, %c0_233], %765 {strides = array<i32>} : memref<8x2x64xf32, #tpu.memory_space<vmem>>, vector<1x2x32xf32>,
    %c6_234 = arith.constant 6 : index
    %c0_235 = arith.constant 0 : index
    %c0_236 = arith.constant 0 : index
    %766 = vector.load %arg10[%c6_234, %c0_235, %c0_236] : memref<8x2x64xf32, #tpu.memory_space<vmem>>, vector<1x2x64xf32>
    %767 = vector.shape_cast %766 : vector<1x2x64xf32> to vector<2x64xf32>
    %768 = tpu.concatenate %767, %762 in 1 : vector<2x64xf32>, vector<2x32xf32> -> vector<2x96xf32>
    %cst_237 = arith.constant dense<0.000000e+00> : vector<2x128xf32>
    %769 = tpu.matmul %768, %557, %cst_237 {dimension_numbers = #tpu.dot_dimension_numbers<[1], [0], [0], [1], [0, 0, 1, 1], [], []>} : vector<2x96xf32>, vector<96x128xf32>, vector<2x128xf32> -> vector<2x128xf32>
    %770 = vector.broadcast %559 : vector<1x128xf32> to vector<2x128xf32>
    %771 = arith.addf %769, %770 : vector<2x128xf32>
    %772 = vector.extract_strided_slice %771 {offsets = [0, 0], sizes = [2, 32], strides = [1, 1]} : vector<2x128xf32> to vector<2x32xf32>
    %773 = arith.negf %772 : vector<2x32xf32>
    %774 = math.exp %773 : vector<2x32xf32>
    %cst_238 = arith.constant 1.000000e+00 : f32
    %775 = vector.broadcast %cst_238 : f32 to vector<2x32xf32>
    %776 = arith.addf %775, %774 : vector<2x32xf32>
    %777 = arith.divf %775, %776 : vector<2x32xf32>
    %778 = vector.extract_strided_slice %771 {offsets = [0, 32], sizes = [2, 32], strides = [1, 1]} : vector<2x128xf32> to vector<2x32xf32>
    %779 = arith.negf %778 : vector<2x32xf32>
    %780 = math.exp %779 : vector<2x32xf32>
    %cst_239 = arith.constant 1.000000e+00 : f32
    %781 = vector.broadcast %cst_239 : f32 to vector<2x32xf32>
    %782 = arith.addf %781, %780 : vector<2x32xf32>
    %783 = arith.divf %781, %782 : vector<2x32xf32>
    %784 = vector.extract_strided_slice %771 {offsets = [0, 64], sizes = [2, 32], strides = [1, 1]} : vector<2x128xf32> to vector<2x32xf32>
    %785 = math.tanh %784 : vector<2x32xf32>
    %786 = vector.extract_strided_slice %771 {offsets = [0, 96], sizes = [2, 32], strides = [1, 1]} : vector<2x128xf32> to vector<2x32xf32>
    %787 = arith.negf %786 : vector<2x32xf32>
    %788 = math.exp %787 : vector<2x32xf32>
    %cst_240 = arith.constant 1.000000e+00 : f32
    %789 = vector.broadcast %cst_240 : f32 to vector<2x32xf32>
    %790 = arith.addf %789, %788 : vector<2x32xf32>
    %791 = arith.divf %789, %790 : vector<2x32xf32>
    %792 = arith.mulf %783, %760 : vector<2x32xf32>
    %793 = arith.mulf %777, %785 : vector<2x32xf32>
    %794 = arith.addf %792, %793 : vector<2x32xf32>
    %795 = math.tanh %794 : vector<2x32xf32>
    %796 = arith.mulf %791, %795 : vector<2x32xf32>
    %c6_241 = arith.constant 6 : index
    %c0_242 = arith.constant 0 : index
    %c0_243 = arith.constant 0 : index
    %797 = vector.load %arg11[%c6_241, %c0_242, %c0_243] : memref<8x2x64xf32, #tpu.memory_space<vmem>>, vector<1x2x32xf32>
    %798 = vector.shape_cast %797 : vector<1x2x32xf32> to vector<2x32xf32>
    %799 = vector.shape_cast %796 : vector<2x32xf32> to vector<1x2x32xf32>
    tpu.vector_store %arg11[%c6_241, %c0_242, %c0_243], %799 {strides = array<i32>} : memref<8x2x64xf32, #tpu.memory_space<vmem>>, vector<1x2x32xf32>,
    %c7_244 = arith.constant 7 : index
    %c0_245 = arith.constant 0 : index
    %c0_246 = arith.constant 0 : index
    %800 = vector.load %arg10[%c7_244, %c0_245, %c0_246] : memref<8x2x64xf32, #tpu.memory_space<vmem>>, vector<1x2x64xf32>
    %801 = vector.shape_cast %800 : vector<1x2x64xf32> to vector<2x64xf32>
    %802 = tpu.concatenate %801, %796 in 1 : vector<2x64xf32>, vector<2x32xf32> -> vector<2x96xf32>
    %cst_247 = arith.constant dense<0.000000e+00> : vector<2x128xf32>
    %803 = tpu.matmul %802, %557, %cst_247 {dimension_numbers = #tpu.dot_dimension_numbers<[1], [0], [0], [1], [0, 0, 1, 1], [], []>} : vector<2x96xf32>, vector<96x128xf32>, vector<2x128xf32> -> vector<2x128xf32>
    %804 = vector.broadcast %559 : vector<1x128xf32> to vector<2x128xf32>
    %805 = arith.addf %803, %804 : vector<2x128xf32>
    %806 = vector.extract_strided_slice %805 {offsets = [0, 0], sizes = [2, 32], strides = [1, 1]} : vector<2x128xf32> to vector<2x32xf32>
    %807 = arith.negf %806 : vector<2x32xf32>
    %808 = math.exp %807 : vector<2x32xf32>
    %cst_248 = arith.constant 1.000000e+00 : f32
    %809 = vector.broadcast %cst_248 : f32 to vector<2x32xf32>
    %810 = arith.addf %809, %808 : vector<2x32xf32>
    %811 = arith.divf %809, %810 : vector<2x32xf32>
    %812 = vector.extract_strided_slice %805 {offsets = [0, 32], sizes = [2, 32], strides = [1, 1]} : vector<2x128xf32> to vector<2x32xf32>
    %813 = arith.negf %812 : vector<2x32xf32>
    %814 = math.exp %813 : vector<2x32xf32>
    %cst_249 = arith.constant 1.000000e+00 : f32
    %815 = vector.broadcast %cst_249 : f32 to vector<2x32xf32>
    %816 = arith.addf %815, %814 : vector<2x32xf32>
    %817 = arith.divf %815, %816 : vector<2x32xf32>
    %818 = vector.extract_strided_slice %805 {offsets = [0, 64], sizes = [2, 32], strides = [1, 1]} : vector<2x128xf32> to vector<2x32xf32>
    %819 = math.tanh %818 : vector<2x32xf32>
    %820 = vector.extract_strided_slice %805 {offsets = [0, 96], sizes = [2, 32], strides = [1, 1]} : vector<2x128xf32> to vector<2x32xf32>
    %821 = arith.negf %820 : vector<2x32xf32>
    %822 = math.exp %821 : vector<2x32xf32>
    %cst_250 = arith.constant 1.000000e+00 : f32
    %823 = vector.broadcast %cst_250 : f32 to vector<2x32xf32>
    %824 = arith.addf %823, %822 : vector<2x32xf32>
    %825 = arith.divf %823, %824 : vector<2x32xf32>
    %826 = arith.mulf %817, %794 : vector<2x32xf32>
    %827 = arith.mulf %811, %819 : vector<2x32xf32>
    %828 = arith.addf %826, %827 : vector<2x32xf32>
    %829 = math.tanh %828 : vector<2x32xf32>
    %830 = arith.mulf %825, %829 : vector<2x32xf32>
    %c7_251 = arith.constant 7 : index
    %c0_252 = arith.constant 0 : index
    %c0_253 = arith.constant 0 : index
    %831 = vector.load %arg11[%c7_251, %c0_252, %c0_253] : memref<8x2x64xf32, #tpu.memory_space<vmem>>, vector<1x2x32xf32>
    %832 = vector.shape_cast %831 : vector<1x2x32xf32> to vector<2x32xf32>
    %833 = vector.shape_cast %830 : vector<2x32xf32> to vector<1x2x32xf32>
    tpu.vector_store %arg11[%c7_251, %c0_252, %c0_253], %833 {strides = array<i32>} : memref<8x2x64xf32, #tpu.memory_space<vmem>>, vector<1x2x32xf32>,
    %c1_254 = arith.constant 1 : index
    %c0_255 = arith.constant 0 : index
    %c0_256 = arith.constant 0 : index
    %834 = vector.load %arg2[%c1_254, %c0_255, %c0_256] : memref<2x96x128xf32, #tpu.memory_space<vmem>>, vector<1x96x128xf32>
    %835 = vector.shape_cast %834 : vector<1x96x128xf32> to vector<96x128xf32>
    %c1_257 = arith.constant 1 : index
    %c0_258 = arith.constant 0 : index
    %c0_259 = arith.constant 0 : index
    %836 = vector.load %arg5[%c1_257, %c0_258, %c0_259] : memref<2x1x128xf32, #tpu.memory_space<vmem>>, vector<1x1x128xf32>
    %837 = vector.shape_cast %836 : vector<1x1x128xf32> to vector<1x128xf32>
    %cst_260 = arith.constant 0.000000e+00 : f32
    %838 = vector.broadcast %cst_260 : f32 to vector<2x32xf32>
    %cst_261 = arith.constant 0.000000e+00 : f32
    %839 = vector.broadcast %cst_261 : f32 to vector<2x32xf32>
    %c7_262 = arith.constant 7 : index
    %c0_263 = arith.constant 0 : index
    %c0_264 = arith.constant 0 : index
    %840 = vector.load %arg10[%c7_262, %c0_263, %c0_264] : memref<8x2x64xf32, #tpu.memory_space<vmem>>, vector<1x2x64xf32>
    %841 = vector.shape_cast %840 : vector<1x2x64xf32> to vector<2x64xf32>
    %842 = tpu.concatenate %841, %838 in 1 : vector<2x64xf32>, vector<2x32xf32> -> vector<2x96xf32>
    %cst_265 = arith.constant dense<0.000000e+00> : vector<2x128xf32>
    %843 = tpu.matmul %842, %835, %cst_265 {dimension_numbers = #tpu.dot_dimension_numbers<[1], [0], [0], [1], [0, 0, 1, 1], [], []>} : vector<2x96xf32>, vector<96x128xf32>, vector<2x128xf32> -> vector<2x128xf32>
    %844 = vector.broadcast %837 : vector<1x128xf32> to vector<2x128xf32>
    %845 = arith.addf %843, %844 : vector<2x128xf32>
    %846 = vector.extract_strided_slice %845 {offsets = [0, 0], sizes = [2, 32], strides = [1, 1]} : vector<2x128xf32> to vector<2x32xf32>
    %847 = arith.negf %846 : vector<2x32xf32>
    %848 = math.exp %847 : vector<2x32xf32>
    %cst_266 = arith.constant 1.000000e+00 : f32
    %849 = vector.broadcast %cst_266 : f32 to vector<2x32xf32>
    %850 = arith.addf %849, %848 : vector<2x32xf32>
    %851 = arith.divf %849, %850 : vector<2x32xf32>
    %852 = vector.extract_strided_slice %845 {offsets = [0, 32], sizes = [2, 32], strides = [1, 1]} : vector<2x128xf32> to vector<2x32xf32>
    %853 = arith.negf %852 : vector<2x32xf32>
    %854 = math.exp %853 : vector<2x32xf32>
    %cst_267 = arith.constant 1.000000e+00 : f32
    %855 = vector.broadcast %cst_267 : f32 to vector<2x32xf32>
    %856 = arith.addf %855, %854 : vector<2x32xf32>
    %857 = arith.divf %855, %856 : vector<2x32xf32>
    %858 = vector.extract_strided_slice %845 {offsets = [0, 64], sizes = [2, 32], strides = [1, 1]} : vector<2x128xf32> to vector<2x32xf32>
    %859 = math.tanh %858 : vector<2x32xf32>
    %860 = vector.extract_strided_slice %845 {offsets = [0, 96], sizes = [2, 32], strides = [1, 1]} : vector<2x128xf32> to vector<2x32xf32>
    %861 = arith.negf %860 : vector<2x32xf32>
    %862 = math.exp %861 : vector<2x32xf32>
    %cst_268 = arith.constant 1.000000e+00 : f32
    %863 = vector.broadcast %cst_268 : f32 to vector<2x32xf32>
    %864 = arith.addf %863, %862 : vector<2x32xf32>
    %865 = arith.divf %863, %864 : vector<2x32xf32>
    %866 = arith.mulf %857, %839 : vector<2x32xf32>
    %867 = arith.mulf %851, %859 : vector<2x32xf32>
    %868 = arith.addf %866, %867 : vector<2x32xf32>
    %869 = math.tanh %868 : vector<2x32xf32>
    %870 = arith.mulf %865, %869 : vector<2x32xf32>
    %c7_269 = arith.constant 7 : index
    %c0_270 = arith.constant 0 : index
    %c32_271 = arith.constant 32 : index
    %871 = vector.load %arg11[%c7_269, %c0_270, %c32_271] : memref<8x2x64xf32, #tpu.memory_space<vmem>>, vector<1x2x32xf32>
    %872 = vector.shape_cast %871 : vector<1x2x32xf32> to vector<2x32xf32>
    %873 = vector.shape_cast %870 : vector<2x32xf32> to vector<1x2x32xf32>
    tpu.vector_store %arg11[%c7_269, %c0_270, %c32_271], %873 {strides = array<i32>} : memref<8x2x64xf32, #tpu.memory_space<vmem>>, vector<1x2x32xf32>,
    %c6_272 = arith.constant 6 : index
    %c0_273 = arith.constant 0 : index
    %c0_274 = arith.constant 0 : index
    %874 = vector.load %arg10[%c6_272, %c0_273, %c0_274] : memref<8x2x64xf32, #tpu.memory_space<vmem>>, vector<1x2x64xf32>
    %875 = vector.shape_cast %874 : vector<1x2x64xf32> to vector<2x64xf32>
    %876 = tpu.concatenate %875, %870 in 1 : vector<2x64xf32>, vector<2x32xf32> -> vector<2x96xf32>
    %cst_275 = arith.constant dense<0.000000e+00> : vector<2x128xf32>
    %877 = tpu.matmul %876, %835, %cst_275 {dimension_numbers = #tpu.dot_dimension_numbers<[1], [0], [0], [1], [0, 0, 1, 1], [], []>} : vector<2x96xf32>, vector<96x128xf32>, vector<2x128xf32> -> vector<2x128xf32>
    %878 = vector.broadcast %837 : vector<1x128xf32> to vector<2x128xf32>
    %879 = arith.addf %877, %878 : vector<2x128xf32>
    %880 = vector.extract_strided_slice %879 {offsets = [0, 0], sizes = [2, 32], strides = [1, 1]} : vector<2x128xf32> to vector<2x32xf32>
    %881 = arith.negf %880 : vector<2x32xf32>
    %882 = math.exp %881 : vector<2x32xf32>
    %cst_276 = arith.constant 1.000000e+00 : f32
    %883 = vector.broadcast %cst_276 : f32 to vector<2x32xf32>
    %884 = arith.addf %883, %882 : vector<2x32xf32>
    %885 = arith.divf %883, %884 : vector<2x32xf32>
    %886 = vector.extract_strided_slice %879 {offsets = [0, 32], sizes = [2, 32], strides = [1, 1]} : vector<2x128xf32> to vector<2x32xf32>
    %887 = arith.negf %886 : vector<2x32xf32>
    %888 = math.exp %887 : vector<2x32xf32>
    %cst_277 = arith.constant 1.000000e+00 : f32
    %889 = vector.broadcast %cst_277 : f32 to vector<2x32xf32>
    %890 = arith.addf %889, %888 : vector<2x32xf32>
    %891 = arith.divf %889, %890 : vector<2x32xf32>
    %892 = vector.extract_strided_slice %879 {offsets = [0, 64], sizes = [2, 32], strides = [1, 1]} : vector<2x128xf32> to vector<2x32xf32>
    %893 = math.tanh %892 : vector<2x32xf32>
    %894 = vector.extract_strided_slice %879 {offsets = [0, 96], sizes = [2, 32], strides = [1, 1]} : vector<2x128xf32> to vector<2x32xf32>
    %895 = arith.negf %894 : vector<2x32xf32>
    %896 = math.exp %895 : vector<2x32xf32>
    %cst_278 = arith.constant 1.000000e+00 : f32
    %897 = vector.broadcast %cst_278 : f32 to vector<2x32xf32>
    %898 = arith.addf %897, %896 : vector<2x32xf32>
    %899 = arith.divf %897, %898 : vector<2x32xf32>
    %900 = arith.mulf %891, %868 : vector<2x32xf32>
    %901 = arith.mulf %885, %893 : vector<2x32xf32>
    %902 = arith.addf %900, %901 : vector<2x32xf32>
    %903 = math.tanh %902 : vector<2x32xf32>
    %904 = arith.mulf %899, %903 : vector<2x32xf32>
    %c6_279 = arith.constant 6 : index
    %c0_280 = arith.constant 0 : index
    %c32_281 = arith.constant 32 : index
    %905 = vector.load %arg11[%c6_279, %c0_280, %c32_281] : memref<8x2x64xf32, #tpu.memory_space<vmem>>, vector<1x2x32xf32>
    %906 = vector.shape_cast %905 : vector<1x2x32xf32> to vector<2x32xf32>
    %907 = vector.shape_cast %904 : vector<2x32xf32> to vector<1x2x32xf32>
    tpu.vector_store %arg11[%c6_279, %c0_280, %c32_281], %907 {strides = array<i32>} : memref<8x2x64xf32, #tpu.memory_space<vmem>>, vector<1x2x32xf32>,
    %c5_282 = arith.constant 5 : index
    %c0_283 = arith.constant 0 : index
    %c0_284 = arith.constant 0 : index
    %908 = vector.load %arg10[%c5_282, %c0_283, %c0_284] : memref<8x2x64xf32, #tpu.memory_space<vmem>>, vector<1x2x64xf32>
    %909 = vector.shape_cast %908 : vector<1x2x64xf32> to vector<2x64xf32>
    %910 = tpu.concatenate %909, %904 in 1 : vector<2x64xf32>, vector<2x32xf32> -> vector<2x96xf32>
    %cst_285 = arith.constant dense<0.000000e+00> : vector<2x128xf32>
    %911 = tpu.matmul %910, %835, %cst_285 {dimension_numbers = #tpu.dot_dimension_numbers<[1], [0], [0], [1], [0, 0, 1, 1], [], []>} : vector<2x96xf32>, vector<96x128xf32>, vector<2x128xf32> -> vector<2x128xf32>
    %912 = vector.broadcast %837 : vector<1x128xf32> to vector<2x128xf32>
    %913 = arith.addf %911, %912 : vector<2x128xf32>
    %914 = vector.extract_strided_slice %913 {offsets = [0, 0], sizes = [2, 32], strides = [1, 1]} : vector<2x128xf32> to vector<2x32xf32>
    %915 = arith.negf %914 : vector<2x32xf32>
    %916 = math.exp %915 : vector<2x32xf32>
    %cst_286 = arith.constant 1.000000e+00 : f32
    %917 = vector.broadcast %cst_286 : f32 to vector<2x32xf32>
    %918 = arith.addf %917, %916 : vector<2x32xf32>
    %919 = arith.divf %917, %918 : vector<2x32xf32>
    %920 = vector.extract_strided_slice %913 {offsets = [0, 32], sizes = [2, 32], strides = [1, 1]} : vector<2x128xf32> to vector<2x32xf32>
    %921 = arith.negf %920 : vector<2x32xf32>
    %922 = math.exp %921 : vector<2x32xf32>
    %cst_287 = arith.constant 1.000000e+00 : f32
    %923 = vector.broadcast %cst_287 : f32 to vector<2x32xf32>
    %924 = arith.addf %923, %922 : vector<2x32xf32>
    %925 = arith.divf %923, %924 : vector<2x32xf32>
    %926 = vector.extract_strided_slice %913 {offsets = [0, 64], sizes = [2, 32], strides = [1, 1]} : vector<2x128xf32> to vector<2x32xf32>
    %927 = math.tanh %926 : vector<2x32xf32>
    %928 = vector.extract_strided_slice %913 {offsets = [0, 96], sizes = [2, 32], strides = [1, 1]} : vector<2x128xf32> to vector<2x32xf32>
    %929 = arith.negf %928 : vector<2x32xf32>
    %930 = math.exp %929 : vector<2x32xf32>
    %cst_288 = arith.constant 1.000000e+00 : f32
    %931 = vector.broadcast %cst_288 : f32 to vector<2x32xf32>
    %932 = arith.addf %931, %930 : vector<2x32xf32>
    %933 = arith.divf %931, %932 : vector<2x32xf32>
    %934 = arith.mulf %925, %902 : vector<2x32xf32>
    %935 = arith.mulf %919, %927 : vector<2x32xf32>
    %936 = arith.addf %934, %935 : vector<2x32xf32>
    %937 = math.tanh %936 : vector<2x32xf32>
    %938 = arith.mulf %933, %937 : vector<2x32xf32>
    %c5_289 = arith.constant 5 : index
    %c0_290 = arith.constant 0 : index
    %c32_291 = arith.constant 32 : index
    %939 = vector.load %arg11[%c5_289, %c0_290, %c32_291] : memref<8x2x64xf32, #tpu.memory_space<vmem>>, vector<1x2x32xf32>
    %940 = vector.shape_cast %939 : vector<1x2x32xf32> to vector<2x32xf32>
    %941 = vector.shape_cast %938 : vector<2x32xf32> to vector<1x2x32xf32>
    tpu.vector_store %arg11[%c5_289, %c0_290, %c32_291], %941 {strides = array<i32>} : memref<8x2x64xf32, #tpu.memory_space<vmem>>, vector<1x2x32xf32>,
    %c4_292 = arith.constant 4 : index
    %c0_293 = arith.constant 0 : index
    %c0_294 = arith.constant 0 : index
    %942 = vector.load %arg10[%c4_292, %c0_293, %c0_294] : memref<8x2x64xf32, #tpu.memory_space<vmem>>, vector<1x2x64xf32>
    %943 = vector.shape_cast %942 : vector<1x2x64xf32> to vector<2x64xf32>
    %944 = tpu.concatenate %943, %938 in 1 : vector<2x64xf32>, vector<2x32xf32> -> vector<2x96xf32>
    %cst_295 = arith.constant dense<0.000000e+00> : vector<2x128xf32>
    %945 = tpu.matmul %944, %835, %cst_295 {dimension_numbers = #tpu.dot_dimension_numbers<[1], [0], [0], [1], [0, 0, 1, 1], [], []>} : vector<2x96xf32>, vector<96x128xf32>, vector<2x128xf32> -> vector<2x128xf32>
    %946 = vector.broadcast %837 : vector<1x128xf32> to vector<2x128xf32>
    %947 = arith.addf %945, %946 : vector<2x128xf32>
    %948 = vector.extract_strided_slice %947 {offsets = [0, 0], sizes = [2, 32], strides = [1, 1]} : vector<2x128xf32> to vector<2x32xf32>
    %949 = arith.negf %948 : vector<2x32xf32>
    %950 = math.exp %949 : vector<2x32xf32>
    %cst_296 = arith.constant 1.000000e+00 : f32
    %951 = vector.broadcast %cst_296 : f32 to vector<2x32xf32>
    %952 = arith.addf %951, %950 : vector<2x32xf32>
    %953 = arith.divf %951, %952 : vector<2x32xf32>
    %954 = vector.extract_strided_slice %947 {offsets = [0, 32], sizes = [2, 32], strides = [1, 1]} : vector<2x128xf32> to vector<2x32xf32>
    %955 = arith.negf %954 : vector<2x32xf32>
    %956 = math.exp %955 : vector<2x32xf32>
    %cst_297 = arith.constant 1.000000e+00 : f32
    %957 = vector.broadcast %cst_297 : f32 to vector<2x32xf32>
    %958 = arith.addf %957, %956 : vector<2x32xf32>
    %959 = arith.divf %957, %958 : vector<2x32xf32>
    %960 = vector.extract_strided_slice %947 {offsets = [0, 64], sizes = [2, 32], strides = [1, 1]} : vector<2x128xf32> to vector<2x32xf32>
    %961 = math.tanh %960 : vector<2x32xf32>
    %962 = vector.extract_strided_slice %947 {offsets = [0, 96], sizes = [2, 32], strides = [1, 1]} : vector<2x128xf32> to vector<2x32xf32>
    %963 = arith.negf %962 : vector<2x32xf32>
    %964 = math.exp %963 : vector<2x32xf32>
    %cst_298 = arith.constant 1.000000e+00 : f32
    %965 = vector.broadcast %cst_298 : f32 to vector<2x32xf32>
    %966 = arith.addf %965, %964 : vector<2x32xf32>
    %967 = arith.divf %965, %966 : vector<2x32xf32>
    %968 = arith.mulf %959, %936 : vector<2x32xf32>
    %969 = arith.mulf %953, %961 : vector<2x32xf32>
    %970 = arith.addf %968, %969 : vector<2x32xf32>
    %971 = math.tanh %970 : vector<2x32xf32>
    %972 = arith.mulf %967, %971 : vector<2x32xf32>
    %c4_299 = arith.constant 4 : index
    %c0_300 = arith.constant 0 : index
    %c32_301 = arith.constant 32 : index
    %973 = vector.load %arg11[%c4_299, %c0_300, %c32_301] : memref<8x2x64xf32, #tpu.memory_space<vmem>>, vector<1x2x32xf32>
    %974 = vector.shape_cast %973 : vector<1x2x32xf32> to vector<2x32xf32>
    %975 = vector.shape_cast %972 : vector<2x32xf32> to vector<1x2x32xf32>
    tpu.vector_store %arg11[%c4_299, %c0_300, %c32_301], %975 {strides = array<i32>} : memref<8x2x64xf32, #tpu.memory_space<vmem>>, vector<1x2x32xf32>,
    %c3_302 = arith.constant 3 : index
    %c0_303 = arith.constant 0 : index
    %c0_304 = arith.constant 0 : index
    %976 = vector.load %arg10[%c3_302, %c0_303, %c0_304] : memref<8x2x64xf32, #tpu.memory_space<vmem>>, vector<1x2x64xf32>
    %977 = vector.shape_cast %976 : vector<1x2x64xf32> to vector<2x64xf32>
    %978 = tpu.concatenate %977, %972 in 1 : vector<2x64xf32>, vector<2x32xf32> -> vector<2x96xf32>
    %cst_305 = arith.constant dense<0.000000e+00> : vector<2x128xf32>
    %979 = tpu.matmul %978, %835, %cst_305 {dimension_numbers = #tpu.dot_dimension_numbers<[1], [0], [0], [1], [0, 0, 1, 1], [], []>} : vector<2x96xf32>, vector<96x128xf32>, vector<2x128xf32> -> vector<2x128xf32>
    %980 = vector.broadcast %837 : vector<1x128xf32> to vector<2x128xf32>
    %981 = arith.addf %979, %980 : vector<2x128xf32>
    %982 = vector.extract_strided_slice %981 {offsets = [0, 0], sizes = [2, 32], strides = [1, 1]} : vector<2x128xf32> to vector<2x32xf32>
    %983 = arith.negf %982 : vector<2x32xf32>
    %984 = math.exp %983 : vector<2x32xf32>
    %cst_306 = arith.constant 1.000000e+00 : f32
    %985 = vector.broadcast %cst_306 : f32 to vector<2x32xf32>
    %986 = arith.addf %985, %984 : vector<2x32xf32>
    %987 = arith.divf %985, %986 : vector<2x32xf32>
    %988 = vector.extract_strided_slice %981 {offsets = [0, 32], sizes = [2, 32], strides = [1, 1]} : vector<2x128xf32> to vector<2x32xf32>
    %989 = arith.negf %988 : vector<2x32xf32>
    %990 = math.exp %989 : vector<2x32xf32>
    %cst_307 = arith.constant 1.000000e+00 : f32
    %991 = vector.broadcast %cst_307 : f32 to vector<2x32xf32>
    %992 = arith.addf %991, %990 : vector<2x32xf32>
    %993 = arith.divf %991, %992 : vector<2x32xf32>
    %994 = vector.extract_strided_slice %981 {offsets = [0, 64], sizes = [2, 32], strides = [1, 1]} : vector<2x128xf32> to vector<2x32xf32>
    %995 = math.tanh %994 : vector<2x32xf32>
    %996 = vector.extract_strided_slice %981 {offsets = [0, 96], sizes = [2, 32], strides = [1, 1]} : vector<2x128xf32> to vector<2x32xf32>
    %997 = arith.negf %996 : vector<2x32xf32>
    %998 = math.exp %997 : vector<2x32xf32>
    %cst_308 = arith.constant 1.000000e+00 : f32
    %999 = vector.broadcast %cst_308 : f32 to vector<2x32xf32>
    %1000 = arith.addf %999, %998 : vector<2x32xf32>
    %1001 = arith.divf %999, %1000 : vector<2x32xf32>
    %1002 = arith.mulf %993, %970 : vector<2x32xf32>
    %1003 = arith.mulf %987, %995 : vector<2x32xf32>
    %1004 = arith.addf %1002, %1003 : vector<2x32xf32>
    %1005 = math.tanh %1004 : vector<2x32xf32>
    %1006 = arith.mulf %1001, %1005 : vector<2x32xf32>
    %c3_309 = arith.constant 3 : index
    %c0_310 = arith.constant 0 : index
    %c32_311 = arith.constant 32 : index
    %1007 = vector.load %arg11[%c3_309, %c0_310, %c32_311] : memref<8x2x64xf32, #tpu.memory_space<vmem>>, vector<1x2x32xf32>
    %1008 = vector.shape_cast %1007 : vector<1x2x32xf32> to vector<2x32xf32>
    %1009 = vector.shape_cast %1006 : vector<2x32xf32> to vector<1x2x32xf32>
    tpu.vector_store %arg11[%c3_309, %c0_310, %c32_311], %1009 {strides = array<i32>} : memref<8x2x64xf32, #tpu.memory_space<vmem>>, vector<1x2x32xf32>,
    %c2_312 = arith.constant 2 : index
    %c0_313 = arith.constant 0 : index
    %c0_314 = arith.constant 0 : index
    %1010 = vector.load %arg10[%c2_312, %c0_313, %c0_314] : memref<8x2x64xf32, #tpu.memory_space<vmem>>, vector<1x2x64xf32>
    %1011 = vector.shape_cast %1010 : vector<1x2x64xf32> to vector<2x64xf32>
    %1012 = tpu.concatenate %1011, %1006 in 1 : vector<2x64xf32>, vector<2x32xf32> -> vector<2x96xf32>
    %cst_315 = arith.constant dense<0.000000e+00> : vector<2x128xf32>
    %1013 = tpu.matmul %1012, %835, %cst_315 {dimension_numbers = #tpu.dot_dimension_numbers<[1], [0], [0], [1], [0, 0, 1, 1], [], []>} : vector<2x96xf32>, vector<96x128xf32>, vector<2x128xf32> -> vector<2x128xf32>
    %1014 = vector.broadcast %837 : vector<1x128xf32> to vector<2x128xf32>
    %1015 = arith.addf %1013, %1014 : vector<2x128xf32>
    %1016 = vector.extract_strided_slice %1015 {offsets = [0, 0], sizes = [2, 32], strides = [1, 1]} : vector<2x128xf32> to vector<2x32xf32>
    %1017 = arith.negf %1016 : vector<2x32xf32>
    %1018 = math.exp %1017 : vector<2x32xf32>
    %cst_316 = arith.constant 1.000000e+00 : f32
    %1019 = vector.broadcast %cst_316 : f32 to vector<2x32xf32>
    %1020 = arith.addf %1019, %1018 : vector<2x32xf32>
    %1021 = arith.divf %1019, %1020 : vector<2x32xf32>
    %1022 = vector.extract_strided_slice %1015 {offsets = [0, 32], sizes = [2, 32], strides = [1, 1]} : vector<2x128xf32> to vector<2x32xf32>
    %1023 = arith.negf %1022 : vector<2x32xf32>
    %1024 = math.exp %1023 : vector<2x32xf32>
    %cst_317 = arith.constant 1.000000e+00 : f32
    %1025 = vector.broadcast %cst_317 : f32 to vector<2x32xf32>
    %1026 = arith.addf %1025, %1024 : vector<2x32xf32>
    %1027 = arith.divf %1025, %1026 : vector<2x32xf32>
    %1028 = vector.extract_strided_slice %1015 {offsets = [0, 64], sizes = [2, 32], strides = [1, 1]} : vector<2x128xf32> to vector<2x32xf32>
    %1029 = math.tanh %1028 : vector<2x32xf32>
    %1030 = vector.extract_strided_slice %1015 {offsets = [0, 96], sizes = [2, 32], strides = [1, 1]} : vector<2x128xf32> to vector<2x32xf32>
    %1031 = arith.negf %1030 : vector<2x32xf32>
    %1032 = math.exp %1031 : vector<2x32xf32>
    %cst_318 = arith.constant 1.000000e+00 : f32
    %1033 = vector.broadcast %cst_318 : f32 to vector<2x32xf32>
    %1034 = arith.addf %1033, %1032 : vector<2x32xf32>
    %1035 = arith.divf %1033, %1034 : vector<2x32xf32>
    %1036 = arith.mulf %1027, %1004 : vector<2x32xf32>
    %1037 = arith.mulf %1021, %1029 : vector<2x32xf32>
    %1038 = arith.addf %1036, %1037 : vector<2x32xf32>
    %1039 = math.tanh %1038 : vector<2x32xf32>
    %1040 = arith.mulf %1035, %1039 : vector<2x32xf32>
    %c2_319 = arith.constant 2 : index
    %c0_320 = arith.constant 0 : index
    %c32_321 = arith.constant 32 : index
    %1041 = vector.load %arg11[%c2_319, %c0_320, %c32_321] : memref<8x2x64xf32, #tpu.memory_space<vmem>>, vector<1x2x32xf32>
    %1042 = vector.shape_cast %1041 : vector<1x2x32xf32> to vector<2x32xf32>
    %1043 = vector.shape_cast %1040 : vector<2x32xf32> to vector<1x2x32xf32>
    tpu.vector_store %arg11[%c2_319, %c0_320, %c32_321], %1043 {strides = array<i32>} : memref<8x2x64xf32, #tpu.memory_space<vmem>>, vector<1x2x32xf32>,
    %c1_322 = arith.constant 1 : index
    %c0_323 = arith.constant 0 : index
    %c0_324 = arith.constant 0 : index
    %1044 = vector.load %arg10[%c1_322, %c0_323, %c0_324] : memref<8x2x64xf32, #tpu.memory_space<vmem>>, vector<1x2x64xf32>
    %1045 = vector.shape_cast %1044 : vector<1x2x64xf32> to vector<2x64xf32>
    %1046 = tpu.concatenate %1045, %1040 in 1 : vector<2x64xf32>, vector<2x32xf32> -> vector<2x96xf32>
    %cst_325 = arith.constant dense<0.000000e+00> : vector<2x128xf32>
    %1047 = tpu.matmul %1046, %835, %cst_325 {dimension_numbers = #tpu.dot_dimension_numbers<[1], [0], [0], [1], [0, 0, 1, 1], [], []>} : vector<2x96xf32>, vector<96x128xf32>, vector<2x128xf32> -> vector<2x128xf32>
    %1048 = vector.broadcast %837 : vector<1x128xf32> to vector<2x128xf32>
    %1049 = arith.addf %1047, %1048 : vector<2x128xf32>
    %1050 = vector.extract_strided_slice %1049 {offsets = [0, 0], sizes = [2, 32], strides = [1, 1]} : vector<2x128xf32> to vector<2x32xf32>
    %1051 = arith.negf %1050 : vector<2x32xf32>
    %1052 = math.exp %1051 : vector<2x32xf32>
    %cst_326 = arith.constant 1.000000e+00 : f32
    %1053 = vector.broadcast %cst_326 : f32 to vector<2x32xf32>
    %1054 = arith.addf %1053, %1052 : vector<2x32xf32>
    %1055 = arith.divf %1053, %1054 : vector<2x32xf32>
    %1056 = vector.extract_strided_slice %1049 {offsets = [0, 32], sizes = [2, 32], strides = [1, 1]} : vector<2x128xf32> to vector<2x32xf32>
    %1057 = arith.negf %1056 : vector<2x32xf32>
    %1058 = math.exp %1057 : vector<2x32xf32>
    %cst_327 = arith.constant 1.000000e+00 : f32
    %1059 = vector.broadcast %cst_327 : f32 to vector<2x32xf32>
    %1060 = arith.addf %1059, %1058 : vector<2x32xf32>
    %1061 = arith.divf %1059, %1060 : vector<2x32xf32>
    %1062 = vector.extract_strided_slice %1049 {offsets = [0, 64], sizes = [2, 32], strides = [1, 1]} : vector<2x128xf32> to vector<2x32xf32>
    %1063 = math.tanh %1062 : vector<2x32xf32>
    %1064 = vector.extract_strided_slice %1049 {offsets = [0, 96], sizes = [2, 32], strides = [1, 1]} : vector<2x128xf32> to vector<2x32xf32>
    %1065 = arith.negf %1064 : vector<2x32xf32>
    %1066 = math.exp %1065 : vector<2x32xf32>
    %cst_328 = arith.constant 1.000000e+00 : f32
    %1067 = vector.broadcast %cst_328 : f32 to vector<2x32xf32>
    %1068 = arith.addf %1067, %1066 : vector<2x32xf32>
    %1069 = arith.divf %1067, %1068 : vector<2x32xf32>
    %1070 = arith.mulf %1061, %1038 : vector<2x32xf32>
    %1071 = arith.mulf %1055, %1063 : vector<2x32xf32>
    %1072 = arith.addf %1070, %1071 : vector<2x32xf32>
    %1073 = math.tanh %1072 : vector<2x32xf32>
    %1074 = arith.mulf %1069, %1073 : vector<2x32xf32>
    %c1_329 = arith.constant 1 : index
    %c0_330 = arith.constant 0 : index
    %c32_331 = arith.constant 32 : index
    %1075 = vector.load %arg11[%c1_329, %c0_330, %c32_331] : memref<8x2x64xf32, #tpu.memory_space<vmem>>, vector<1x2x32xf32>
    %1076 = vector.shape_cast %1075 : vector<1x2x32xf32> to vector<2x32xf32>
    %1077 = vector.shape_cast %1074 : vector<2x32xf32> to vector<1x2x32xf32>
    tpu.vector_store %arg11[%c1_329, %c0_330, %c32_331], %1077 {strides = array<i32>} : memref<8x2x64xf32, #tpu.memory_space<vmem>>, vector<1x2x32xf32>,
    %c0_332 = arith.constant 0 : index
    %c0_333 = arith.constant 0 : index
    %c0_334 = arith.constant 0 : index
    %1078 = vector.load %arg10[%c0_332, %c0_333, %c0_334] : memref<8x2x64xf32, #tpu.memory_space<vmem>>, vector<1x2x64xf32>
    %1079 = vector.shape_cast %1078 : vector<1x2x64xf32> to vector<2x64xf32>
    %1080 = tpu.concatenate %1079, %1074 in 1 : vector<2x64xf32>, vector<2x32xf32> -> vector<2x96xf32>
    %cst_335 = arith.constant dense<0.000000e+00> : vector<2x128xf32>
    %1081 = tpu.matmul %1080, %835, %cst_335 {dimension_numbers = #tpu.dot_dimension_numbers<[1], [0], [0], [1], [0, 0, 1, 1], [], []>} : vector<2x96xf32>, vector<96x128xf32>, vector<2x128xf32> -> vector<2x128xf32>
    %1082 = vector.broadcast %837 : vector<1x128xf32> to vector<2x128xf32>
    %1083 = arith.addf %1081, %1082 : vector<2x128xf32>
    %1084 = vector.extract_strided_slice %1083 {offsets = [0, 0], sizes = [2, 32], strides = [1, 1]} : vector<2x128xf32> to vector<2x32xf32>
    %1085 = arith.negf %1084 : vector<2x32xf32>
    %1086 = math.exp %1085 : vector<2x32xf32>
    %cst_336 = arith.constant 1.000000e+00 : f32
    %1087 = vector.broadcast %cst_336 : f32 to vector<2x32xf32>
    %1088 = arith.addf %1087, %1086 : vector<2x32xf32>
    %1089 = arith.divf %1087, %1088 : vector<2x32xf32>
    %1090 = vector.extract_strided_slice %1083 {offsets = [0, 32], sizes = [2, 32], strides = [1, 1]} : vector<2x128xf32> to vector<2x32xf32>
    %1091 = arith.negf %1090 : vector<2x32xf32>
    %1092 = math.exp %1091 : vector<2x32xf32>
    %cst_337 = arith.constant 1.000000e+00 : f32
    %1093 = vector.broadcast %cst_337 : f32 to vector<2x32xf32>
    %1094 = arith.addf %1093, %1092 : vector<2x32xf32>
    %1095 = arith.divf %1093, %1094 : vector<2x32xf32>
    %1096 = vector.extract_strided_slice %1083 {offsets = [0, 64], sizes = [2, 32], strides = [1, 1]} : vector<2x128xf32> to vector<2x32xf32>
    %1097 = math.tanh %1096 : vector<2x32xf32>
    %1098 = vector.extract_strided_slice %1083 {offsets = [0, 96], sizes = [2, 32], strides = [1, 1]} : vector<2x128xf32> to vector<2x32xf32>
    %1099 = arith.negf %1098 : vector<2x32xf32>
    %1100 = math.exp %1099 : vector<2x32xf32>
    %cst_338 = arith.constant 1.000000e+00 : f32
    %1101 = vector.broadcast %cst_338 : f32 to vector<2x32xf32>
    %1102 = arith.addf %1101, %1100 : vector<2x32xf32>
    %1103 = arith.divf %1101, %1102 : vector<2x32xf32>
    %1104 = arith.mulf %1095, %1072 : vector<2x32xf32>
    %1105 = arith.mulf %1089, %1097 : vector<2x32xf32>
    %1106 = arith.addf %1104, %1105 : vector<2x32xf32>
    %1107 = math.tanh %1106 : vector<2x32xf32>
    %1108 = arith.mulf %1103, %1107 : vector<2x32xf32>
    %c0_339 = arith.constant 0 : index
    %c0_340 = arith.constant 0 : index
    %c32_341 = arith.constant 32 : index
    %1109 = vector.load %arg11[%c0_339, %c0_340, %c32_341] : memref<8x2x64xf32, #tpu.memory_space<vmem>>, vector<1x2x32xf32>
    %1110 = vector.shape_cast %1109 : vector<1x2x32xf32> to vector<2x32xf32>
    %1111 = vector.shape_cast %1108 : vector<2x32xf32> to vector<1x2x32xf32>
    tpu.vector_store %arg11[%c0_339, %c0_340, %c32_341], %1111 {strides = array<i32>} : memref<8x2x64xf32, #tpu.memory_space<vmem>>, vector<1x2x32xf32>,
    %c0_342 = arith.constant 0 : index
    %c0_343 = arith.constant 0 : index
    %c0_344 = arith.constant 0 : index
    %1112 = vector.load %arg3[%c0_342, %c0_343, %c0_344] : memref<2x96x128xf32, #tpu.memory_space<vmem>>, vector<1x96x128xf32>
    %1113 = vector.shape_cast %1112 : vector<1x96x128xf32> to vector<96x128xf32>
    %c0_345 = arith.constant 0 : index
    %c0_346 = arith.constant 0 : index
    %c0_347 = arith.constant 0 : index
    %1114 = vector.load %arg6[%c0_345, %c0_346, %c0_347] : memref<2x1x128xf32, #tpu.memory_space<vmem>>, vector<1x1x128xf32>
    %1115 = vector.shape_cast %1114 : vector<1x1x128xf32> to vector<1x128xf32>
    %cst_348 = arith.constant 0.000000e+00 : f32
    %1116 = vector.broadcast %cst_348 : f32 to vector<2x32xf32>
    %cst_349 = arith.constant 0.000000e+00 : f32
    %1117 = vector.broadcast %cst_349 : f32 to vector<2x32xf32>
    %c0_350 = arith.constant 0 : index
    %c0_351 = arith.constant 0 : index
    %c0_352 = arith.constant 0 : index
    %1118 = vector.load %arg11[%c0_350, %c0_351, %c0_352] : memref<8x2x64xf32, #tpu.memory_space<vmem>>, vector<1x2x64xf32>
    %1119 = vector.shape_cast %1118 : vector<1x2x64xf32> to vector<2x64xf32>
    %1120 = tpu.concatenate %1119, %1116 in 1 : vector<2x64xf32>, vector<2x32xf32> -> vector<2x96xf32>
    %cst_353 = arith.constant dense<0.000000e+00> : vector<2x128xf32>
    %1121 = tpu.matmul %1120, %1113, %cst_353 {dimension_numbers = #tpu.dot_dimension_numbers<[1], [0], [0], [1], [0, 0, 1, 1], [], []>} : vector<2x96xf32>, vector<96x128xf32>, vector<2x128xf32> -> vector<2x128xf32>
    %1122 = vector.broadcast %1115 : vector<1x128xf32> to vector<2x128xf32>
    %1123 = arith.addf %1121, %1122 : vector<2x128xf32>
    %1124 = vector.extract_strided_slice %1123 {offsets = [0, 0], sizes = [2, 32], strides = [1, 1]} : vector<2x128xf32> to vector<2x32xf32>
    %1125 = arith.negf %1124 : vector<2x32xf32>
    %1126 = math.exp %1125 : vector<2x32xf32>
    %cst_354 = arith.constant 1.000000e+00 : f32
    %1127 = vector.broadcast %cst_354 : f32 to vector<2x32xf32>
    %1128 = arith.addf %1127, %1126 : vector<2x32xf32>
    %1129 = arith.divf %1127, %1128 : vector<2x32xf32>
    %1130 = vector.extract_strided_slice %1123 {offsets = [0, 32], sizes = [2, 32], strides = [1, 1]} : vector<2x128xf32> to vector<2x32xf32>
    %1131 = arith.negf %1130 : vector<2x32xf32>
    %1132 = math.exp %1131 : vector<2x32xf32>
    %cst_355 = arith.constant 1.000000e+00 : f32
    %1133 = vector.broadcast %cst_355 : f32 to vector<2x32xf32>
    %1134 = arith.addf %1133, %1132 : vector<2x32xf32>
    %1135 = arith.divf %1133, %1134 : vector<2x32xf32>
    %1136 = vector.extract_strided_slice %1123 {offsets = [0, 64], sizes = [2, 32], strides = [1, 1]} : vector<2x128xf32> to vector<2x32xf32>
    %1137 = math.tanh %1136 : vector<2x32xf32>
    %1138 = vector.extract_strided_slice %1123 {offsets = [0, 96], sizes = [2, 32], strides = [1, 1]} : vector<2x128xf32> to vector<2x32xf32>
    %1139 = arith.negf %1138 : vector<2x32xf32>
    %1140 = math.exp %1139 : vector<2x32xf32>
    %cst_356 = arith.constant 1.000000e+00 : f32
    %1141 = vector.broadcast %cst_356 : f32 to vector<2x32xf32>
    %1142 = arith.addf %1141, %1140 : vector<2x32xf32>
    %1143 = arith.divf %1141, %1142 : vector<2x32xf32>
    %1144 = arith.mulf %1135, %1117 : vector<2x32xf32>
    %1145 = arith.mulf %1129, %1137 : vector<2x32xf32>
    %1146 = arith.addf %1144, %1145 : vector<2x32xf32>
    %1147 = math.tanh %1146 : vector<2x32xf32>
    %1148 = arith.mulf %1143, %1147 : vector<2x32xf32>
    %c0_357 = arith.constant 0 : index
    %c0_358 = arith.constant 0 : index
    %c0_359 = arith.constant 0 : index
    %1149 = vector.load %arg10[%c0_357, %c0_358, %c0_359] : memref<8x2x64xf32, #tpu.memory_space<vmem>>, vector<1x2x32xf32>
    %1150 = vector.shape_cast %1149 : vector<1x2x32xf32> to vector<2x32xf32>
    %1151 = vector.shape_cast %1148 : vector<2x32xf32> to vector<1x2x32xf32>
    tpu.vector_store %arg10[%c0_357, %c0_358, %c0_359], %1151 {strides = array<i32>} : memref<8x2x64xf32, #tpu.memory_space<vmem>>, vector<1x2x32xf32>,
    %c1_360 = arith.constant 1 : index
    %c0_361 = arith.constant 0 : index
    %c0_362 = arith.constant 0 : index
    %1152 = vector.load %arg11[%c1_360, %c0_361, %c0_362] : memref<8x2x64xf32, #tpu.memory_space<vmem>>, vector<1x2x64xf32>
    %1153 = vector.shape_cast %1152 : vector<1x2x64xf32> to vector<2x64xf32>
    %1154 = tpu.concatenate %1153, %1148 in 1 : vector<2x64xf32>, vector<2x32xf32> -> vector<2x96xf32>
    %cst_363 = arith.constant dense<0.000000e+00> : vector<2x128xf32>
    %1155 = tpu.matmul %1154, %1113, %cst_363 {dimension_numbers = #tpu.dot_dimension_numbers<[1], [0], [0], [1], [0, 0, 1, 1], [], []>} : vector<2x96xf32>, vector<96x128xf32>, vector<2x128xf32> -> vector<2x128xf32>
    %1156 = vector.broadcast %1115 : vector<1x128xf32> to vector<2x128xf32>
    %1157 = arith.addf %1155, %1156 : vector<2x128xf32>
    %1158 = vector.extract_strided_slice %1157 {offsets = [0, 0], sizes = [2, 32], strides = [1, 1]} : vector<2x128xf32> to vector<2x32xf32>
    %1159 = arith.negf %1158 : vector<2x32xf32>
    %1160 = math.exp %1159 : vector<2x32xf32>
    %cst_364 = arith.constant 1.000000e+00 : f32
    %1161 = vector.broadcast %cst_364 : f32 to vector<2x32xf32>
    %1162 = arith.addf %1161, %1160 : vector<2x32xf32>
    %1163 = arith.divf %1161, %1162 : vector<2x32xf32>
    %1164 = vector.extract_strided_slice %1157 {offsets = [0, 32], sizes = [2, 32], strides = [1, 1]} : vector<2x128xf32> to vector<2x32xf32>
    %1165 = arith.negf %1164 : vector<2x32xf32>
    %1166 = math.exp %1165 : vector<2x32xf32>
    %cst_365 = arith.constant 1.000000e+00 : f32
    %1167 = vector.broadcast %cst_365 : f32 to vector<2x32xf32>
    %1168 = arith.addf %1167, %1166 : vector<2x32xf32>
    %1169 = arith.divf %1167, %1168 : vector<2x32xf32>
    %1170 = vector.extract_strided_slice %1157 {offsets = [0, 64], sizes = [2, 32], strides = [1, 1]} : vector<2x128xf32> to vector<2x32xf32>
    %1171 = math.tanh %1170 : vector<2x32xf32>
    %1172 = vector.extract_strided_slice %1157 {offsets = [0, 96], sizes = [2, 32], strides = [1, 1]} : vector<2x128xf32> to vector<2x32xf32>
    %1173 = arith.negf %1172 : vector<2x32xf32>
    %1174 = math.exp %1173 : vector<2x32xf32>
    %cst_366 = arith.constant 1.000000e+00 : f32
    %1175 = vector.broadcast %cst_366 : f32 to vector<2x32xf32>
    %1176 = arith.addf %1175, %1174 : vector<2x32xf32>
    %1177 = arith.divf %1175, %1176 : vector<2x32xf32>
    %1178 = arith.mulf %1169, %1146 : vector<2x32xf32>
    %1179 = arith.mulf %1163, %1171 : vector<2x32xf32>
    %1180 = arith.addf %1178, %1179 : vector<2x32xf32>
    %1181 = math.tanh %1180 : vector<2x32xf32>
    %1182 = arith.mulf %1177, %1181 : vector<2x32xf32>
    %c1_367 = arith.constant 1 : index
    %c0_368 = arith.constant 0 : index
    %c0_369 = arith.constant 0 : index
    %1183 = vector.load %arg10[%c1_367, %c0_368, %c0_369] : memref<8x2x64xf32, #tpu.memory_space<vmem>>, vector<1x2x32xf32>
    %1184 = vector.shape_cast %1183 : vector<1x2x32xf32> to vector<2x32xf32>
    %1185 = vector.shape_cast %1182 : vector<2x32xf32> to vector<1x2x32xf32>
    tpu.vector_store %arg10[%c1_367, %c0_368, %c0_369], %1185 {strides = array<i32>} : memref<8x2x64xf32, #tpu.memory_space<vmem>>, vector<1x2x32xf32>,
    %c2_370 = arith.constant 2 : index
    %c0_371 = arith.constant 0 : index
    %c0_372 = arith.constant 0 : index
    %1186 = vector.load %arg11[%c2_370, %c0_371, %c0_372] : memref<8x2x64xf32, #tpu.memory_space<vmem>>, vector<1x2x64xf32>
    %1187 = vector.shape_cast %1186 : vector<1x2x64xf32> to vector<2x64xf32>
    %1188 = tpu.concatenate %1187, %1182 in 1 : vector<2x64xf32>, vector<2x32xf32> -> vector<2x96xf32>
    %cst_373 = arith.constant dense<0.000000e+00> : vector<2x128xf32>
    %1189 = tpu.matmul %1188, %1113, %cst_373 {dimension_numbers = #tpu.dot_dimension_numbers<[1], [0], [0], [1], [0, 0, 1, 1], [], []>} : vector<2x96xf32>, vector<96x128xf32>, vector<2x128xf32> -> vector<2x128xf32>
    %1190 = vector.broadcast %1115 : vector<1x128xf32> to vector<2x128xf32>
    %1191 = arith.addf %1189, %1190 : vector<2x128xf32>
    %1192 = vector.extract_strided_slice %1191 {offsets = [0, 0], sizes = [2, 32], strides = [1, 1]} : vector<2x128xf32> to vector<2x32xf32>
    %1193 = arith.negf %1192 : vector<2x32xf32>
    %1194 = math.exp %1193 : vector<2x32xf32>
    %cst_374 = arith.constant 1.000000e+00 : f32
    %1195 = vector.broadcast %cst_374 : f32 to vector<2x32xf32>
    %1196 = arith.addf %1195, %1194 : vector<2x32xf32>
    %1197 = arith.divf %1195, %1196 : vector<2x32xf32>
    %1198 = vector.extract_strided_slice %1191 {offsets = [0, 32], sizes = [2, 32], strides = [1, 1]} : vector<2x128xf32> to vector<2x32xf32>
    %1199 = arith.negf %1198 : vector<2x32xf32>
    %1200 = math.exp %1199 : vector<2x32xf32>
    %cst_375 = arith.constant 1.000000e+00 : f32
    %1201 = vector.broadcast %cst_375 : f32 to vector<2x32xf32>
    %1202 = arith.addf %1201, %1200 : vector<2x32xf32>
    %1203 = arith.divf %1201, %1202 : vector<2x32xf32>
    %1204 = vector.extract_strided_slice %1191 {offsets = [0, 64], sizes = [2, 32], strides = [1, 1]} : vector<2x128xf32> to vector<2x32xf32>
    %1205 = math.tanh %1204 : vector<2x32xf32>
    %1206 = vector.extract_strided_slice %1191 {offsets = [0, 96], sizes = [2, 32], strides = [1, 1]} : vector<2x128xf32> to vector<2x32xf32>
    %1207 = arith.negf %1206 : vector<2x32xf32>
    %1208 = math.exp %1207 : vector<2x32xf32>
    %cst_376 = arith.constant 1.000000e+00 : f32
    %1209 = vector.broadcast %cst_376 : f32 to vector<2x32xf32>
    %1210 = arith.addf %1209, %1208 : vector<2x32xf32>
    %1211 = arith.divf %1209, %1210 : vector<2x32xf32>
    %1212 = arith.mulf %1203, %1180 : vector<2x32xf32>
    %1213 = arith.mulf %1197, %1205 : vector<2x32xf32>
    %1214 = arith.addf %1212, %1213 : vector<2x32xf32>
    %1215 = math.tanh %1214 : vector<2x32xf32>
    %1216 = arith.mulf %1211, %1215 : vector<2x32xf32>
    %c2_377 = arith.constant 2 : index
    %c0_378 = arith.constant 0 : index
    %c0_379 = arith.constant 0 : index
    %1217 = vector.load %arg10[%c2_377, %c0_378, %c0_379] : memref<8x2x64xf32, #tpu.memory_space<vmem>>, vector<1x2x32xf32>
    %1218 = vector.shape_cast %1217 : vector<1x2x32xf32> to vector<2x32xf32>
    %1219 = vector.shape_cast %1216 : vector<2x32xf32> to vector<1x2x32xf32>
    tpu.vector_store %arg10[%c2_377, %c0_378, %c0_379], %1219 {strides = array<i32>} : memref<8x2x64xf32, #tpu.memory_space<vmem>>, vector<1x2x32xf32>,
    %c3_380 = arith.constant 3 : index
    %c0_381 = arith.constant 0 : index
    %c0_382 = arith.constant 0 : index
    %1220 = vector.load %arg11[%c3_380, %c0_381, %c0_382] : memref<8x2x64xf32, #tpu.memory_space<vmem>>, vector<1x2x64xf32>
    %1221 = vector.shape_cast %1220 : vector<1x2x64xf32> to vector<2x64xf32>
    %1222 = tpu.concatenate %1221, %1216 in 1 : vector<2x64xf32>, vector<2x32xf32> -> vector<2x96xf32>
    %cst_383 = arith.constant dense<0.000000e+00> : vector<2x128xf32>
    %1223 = tpu.matmul %1222, %1113, %cst_383 {dimension_numbers = #tpu.dot_dimension_numbers<[1], [0], [0], [1], [0, 0, 1, 1], [], []>} : vector<2x96xf32>, vector<96x128xf32>, vector<2x128xf32> -> vector<2x128xf32>
    %1224 = vector.broadcast %1115 : vector<1x128xf32> to vector<2x128xf32>
    %1225 = arith.addf %1223, %1224 : vector<2x128xf32>
    %1226 = vector.extract_strided_slice %1225 {offsets = [0, 0], sizes = [2, 32], strides = [1, 1]} : vector<2x128xf32> to vector<2x32xf32>
    %1227 = arith.negf %1226 : vector<2x32xf32>
    %1228 = math.exp %1227 : vector<2x32xf32>
    %cst_384 = arith.constant 1.000000e+00 : f32
    %1229 = vector.broadcast %cst_384 : f32 to vector<2x32xf32>
    %1230 = arith.addf %1229, %1228 : vector<2x32xf32>
    %1231 = arith.divf %1229, %1230 : vector<2x32xf32>
    %1232 = vector.extract_strided_slice %1225 {offsets = [0, 32], sizes = [2, 32], strides = [1, 1]} : vector<2x128xf32> to vector<2x32xf32>
    %1233 = arith.negf %1232 : vector<2x32xf32>
    %1234 = math.exp %1233 : vector<2x32xf32>
    %cst_385 = arith.constant 1.000000e+00 : f32
    %1235 = vector.broadcast %cst_385 : f32 to vector<2x32xf32>
    %1236 = arith.addf %1235, %1234 : vector<2x32xf32>
    %1237 = arith.divf %1235, %1236 : vector<2x32xf32>
    %1238 = vector.extract_strided_slice %1225 {offsets = [0, 64], sizes = [2, 32], strides = [1, 1]} : vector<2x128xf32> to vector<2x32xf32>
    %1239 = math.tanh %1238 : vector<2x32xf32>
    %1240 = vector.extract_strided_slice %1225 {offsets = [0, 96], sizes = [2, 32], strides = [1, 1]} : vector<2x128xf32> to vector<2x32xf32>
    %1241 = arith.negf %1240 : vector<2x32xf32>
    %1242 = math.exp %1241 : vector<2x32xf32>
    %cst_386 = arith.constant 1.000000e+00 : f32
    %1243 = vector.broadcast %cst_386 : f32 to vector<2x32xf32>
    %1244 = arith.addf %1243, %1242 : vector<2x32xf32>
    %1245 = arith.divf %1243, %1244 : vector<2x32xf32>
    %1246 = arith.mulf %1237, %1214 : vector<2x32xf32>
    %1247 = arith.mulf %1231, %1239 : vector<2x32xf32>
    %1248 = arith.addf %1246, %1247 : vector<2x32xf32>
    %1249 = math.tanh %1248 : vector<2x32xf32>
    %1250 = arith.mulf %1245, %1249 : vector<2x32xf32>
    %c3_387 = arith.constant 3 : index
    %c0_388 = arith.constant 0 : index
    %c0_389 = arith.constant 0 : index
    %1251 = vector.load %arg10[%c3_387, %c0_388, %c0_389] : memref<8x2x64xf32, #tpu.memory_space<vmem>>, vector<1x2x32xf32>
    %1252 = vector.shape_cast %1251 : vector<1x2x32xf32> to vector<2x32xf32>
    %1253 = vector.shape_cast %1250 : vector<2x32xf32> to vector<1x2x32xf32>
    tpu.vector_store %arg10[%c3_387, %c0_388, %c0_389], %1253 {strides = array<i32>} : memref<8x2x64xf32, #tpu.memory_space<vmem>>, vector<1x2x32xf32>,
    %c4_390 = arith.constant 4 : index
    %c0_391 = arith.constant 0 : index
    %c0_392 = arith.constant 0 : index
    %1254 = vector.load %arg11[%c4_390, %c0_391, %c0_392] : memref<8x2x64xf32, #tpu.memory_space<vmem>>, vector<1x2x64xf32>
    %1255 = vector.shape_cast %1254 : vector<1x2x64xf32> to vector<2x64xf32>
    %1256 = tpu.concatenate %1255, %1250 in 1 : vector<2x64xf32>, vector<2x32xf32> -> vector<2x96xf32>
    %cst_393 = arith.constant dense<0.000000e+00> : vector<2x128xf32>
    %1257 = tpu.matmul %1256, %1113, %cst_393 {dimension_numbers = #tpu.dot_dimension_numbers<[1], [0], [0], [1], [0, 0, 1, 1], [], []>} : vector<2x96xf32>, vector<96x128xf32>, vector<2x128xf32> -> vector<2x128xf32>
    %1258 = vector.broadcast %1115 : vector<1x128xf32> to vector<2x128xf32>
    %1259 = arith.addf %1257, %1258 : vector<2x128xf32>
    %1260 = vector.extract_strided_slice %1259 {offsets = [0, 0], sizes = [2, 32], strides = [1, 1]} : vector<2x128xf32> to vector<2x32xf32>
    %1261 = arith.negf %1260 : vector<2x32xf32>
    %1262 = math.exp %1261 : vector<2x32xf32>
    %cst_394 = arith.constant 1.000000e+00 : f32
    %1263 = vector.broadcast %cst_394 : f32 to vector<2x32xf32>
    %1264 = arith.addf %1263, %1262 : vector<2x32xf32>
    %1265 = arith.divf %1263, %1264 : vector<2x32xf32>
    %1266 = vector.extract_strided_slice %1259 {offsets = [0, 32], sizes = [2, 32], strides = [1, 1]} : vector<2x128xf32> to vector<2x32xf32>
    %1267 = arith.negf %1266 : vector<2x32xf32>
    %1268 = math.exp %1267 : vector<2x32xf32>
    %cst_395 = arith.constant 1.000000e+00 : f32
    %1269 = vector.broadcast %cst_395 : f32 to vector<2x32xf32>
    %1270 = arith.addf %1269, %1268 : vector<2x32xf32>
    %1271 = arith.divf %1269, %1270 : vector<2x32xf32>
    %1272 = vector.extract_strided_slice %1259 {offsets = [0, 64], sizes = [2, 32], strides = [1, 1]} : vector<2x128xf32> to vector<2x32xf32>
    %1273 = math.tanh %1272 : vector<2x32xf32>
    %1274 = vector.extract_strided_slice %1259 {offsets = [0, 96], sizes = [2, 32], strides = [1, 1]} : vector<2x128xf32> to vector<2x32xf32>
    %1275 = arith.negf %1274 : vector<2x32xf32>
    %1276 = math.exp %1275 : vector<2x32xf32>
    %cst_396 = arith.constant 1.000000e+00 : f32
    %1277 = vector.broadcast %cst_396 : f32 to vector<2x32xf32>
    %1278 = arith.addf %1277, %1276 : vector<2x32xf32>
    %1279 = arith.divf %1277, %1278 : vector<2x32xf32>
    %1280 = arith.mulf %1271, %1248 : vector<2x32xf32>
    %1281 = arith.mulf %1265, %1273 : vector<2x32xf32>
    %1282 = arith.addf %1280, %1281 : vector<2x32xf32>
    %1283 = math.tanh %1282 : vector<2x32xf32>
    %1284 = arith.mulf %1279, %1283 : vector<2x32xf32>
    %c4_397 = arith.constant 4 : index
    %c0_398 = arith.constant 0 : index
    %c0_399 = arith.constant 0 : index
    %1285 = vector.load %arg10[%c4_397, %c0_398, %c0_399] : memref<8x2x64xf32, #tpu.memory_space<vmem>>, vector<1x2x32xf32>
    %1286 = vector.shape_cast %1285 : vector<1x2x32xf32> to vector<2x32xf32>
    %1287 = vector.shape_cast %1284 : vector<2x32xf32> to vector<1x2x32xf32>
    tpu.vector_store %arg10[%c4_397, %c0_398, %c0_399], %1287 {strides = array<i32>} : memref<8x2x64xf32, #tpu.memory_space<vmem>>, vector<1x2x32xf32>,
    %c5_400 = arith.constant 5 : index
    %c0_401 = arith.constant 0 : index
    %c0_402 = arith.constant 0 : index
    %1288 = vector.load %arg11[%c5_400, %c0_401, %c0_402] : memref<8x2x64xf32, #tpu.memory_space<vmem>>, vector<1x2x64xf32>
    %1289 = vector.shape_cast %1288 : vector<1x2x64xf32> to vector<2x64xf32>
    %1290 = tpu.concatenate %1289, %1284 in 1 : vector<2x64xf32>, vector<2x32xf32> -> vector<2x96xf32>
    %cst_403 = arith.constant dense<0.000000e+00> : vector<2x128xf32>
    %1291 = tpu.matmul %1290, %1113, %cst_403 {dimension_numbers = #tpu.dot_dimension_numbers<[1], [0], [0], [1], [0, 0, 1, 1], [], []>} : vector<2x96xf32>, vector<96x128xf32>, vector<2x128xf32> -> vector<2x128xf32>
    %1292 = vector.broadcast %1115 : vector<1x128xf32> to vector<2x128xf32>
    %1293 = arith.addf %1291, %1292 : vector<2x128xf32>
    %1294 = vector.extract_strided_slice %1293 {offsets = [0, 0], sizes = [2, 32], strides = [1, 1]} : vector<2x128xf32> to vector<2x32xf32>
    %1295 = arith.negf %1294 : vector<2x32xf32>
    %1296 = math.exp %1295 : vector<2x32xf32>
    %cst_404 = arith.constant 1.000000e+00 : f32
    %1297 = vector.broadcast %cst_404 : f32 to vector<2x32xf32>
    %1298 = arith.addf %1297, %1296 : vector<2x32xf32>
    %1299 = arith.divf %1297, %1298 : vector<2x32xf32>
    %1300 = vector.extract_strided_slice %1293 {offsets = [0, 32], sizes = [2, 32], strides = [1, 1]} : vector<2x128xf32> to vector<2x32xf32>
    %1301 = arith.negf %1300 : vector<2x32xf32>
    %1302 = math.exp %1301 : vector<2x32xf32>
    %cst_405 = arith.constant 1.000000e+00 : f32
    %1303 = vector.broadcast %cst_405 : f32 to vector<2x32xf32>
    %1304 = arith.addf %1303, %1302 : vector<2x32xf32>
    %1305 = arith.divf %1303, %1304 : vector<2x32xf32>
    %1306 = vector.extract_strided_slice %1293 {offsets = [0, 64], sizes = [2, 32], strides = [1, 1]} : vector<2x128xf32> to vector<2x32xf32>
    %1307 = math.tanh %1306 : vector<2x32xf32>
    %1308 = vector.extract_strided_slice %1293 {offsets = [0, 96], sizes = [2, 32], strides = [1, 1]} : vector<2x128xf32> to vector<2x32xf32>
    %1309 = arith.negf %1308 : vector<2x32xf32>
    %1310 = math.exp %1309 : vector<2x32xf32>
    %cst_406 = arith.constant 1.000000e+00 : f32
    %1311 = vector.broadcast %cst_406 : f32 to vector<2x32xf32>
    %1312 = arith.addf %1311, %1310 : vector<2x32xf32>
    %1313 = arith.divf %1311, %1312 : vector<2x32xf32>
    %1314 = arith.mulf %1305, %1282 : vector<2x32xf32>
    %1315 = arith.mulf %1299, %1307 : vector<2x32xf32>
    %1316 = arith.addf %1314, %1315 : vector<2x32xf32>
    %1317 = math.tanh %1316 : vector<2x32xf32>
    %1318 = arith.mulf %1313, %1317 : vector<2x32xf32>
    %c5_407 = arith.constant 5 : index
    %c0_408 = arith.constant 0 : index
    %c0_409 = arith.constant 0 : index
    %1319 = vector.load %arg10[%c5_407, %c0_408, %c0_409] : memref<8x2x64xf32, #tpu.memory_space<vmem>>, vector<1x2x32xf32>
    %1320 = vector.shape_cast %1319 : vector<1x2x32xf32> to vector<2x32xf32>
    %1321 = vector.shape_cast %1318 : vector<2x32xf32> to vector<1x2x32xf32>
    tpu.vector_store %arg10[%c5_407, %c0_408, %c0_409], %1321 {strides = array<i32>} : memref<8x2x64xf32, #tpu.memory_space<vmem>>, vector<1x2x32xf32>,
    %c6_410 = arith.constant 6 : index
    %c0_411 = arith.constant 0 : index
    %c0_412 = arith.constant 0 : index
    %1322 = vector.load %arg11[%c6_410, %c0_411, %c0_412] : memref<8x2x64xf32, #tpu.memory_space<vmem>>, vector<1x2x64xf32>
    %1323 = vector.shape_cast %1322 : vector<1x2x64xf32> to vector<2x64xf32>
    %1324 = tpu.concatenate %1323, %1318 in 1 : vector<2x64xf32>, vector<2x32xf32> -> vector<2x96xf32>
    %cst_413 = arith.constant dense<0.000000e+00> : vector<2x128xf32>
    %1325 = tpu.matmul %1324, %1113, %cst_413 {dimension_numbers = #tpu.dot_dimension_numbers<[1], [0], [0], [1], [0, 0, 1, 1], [], []>} : vector<2x96xf32>, vector<96x128xf32>, vector<2x128xf32> -> vector<2x128xf32>
    %1326 = vector.broadcast %1115 : vector<1x128xf32> to vector<2x128xf32>
    %1327 = arith.addf %1325, %1326 : vector<2x128xf32>
    %1328 = vector.extract_strided_slice %1327 {offsets = [0, 0], sizes = [2, 32], strides = [1, 1]} : vector<2x128xf32> to vector<2x32xf32>
    %1329 = arith.negf %1328 : vector<2x32xf32>
    %1330 = math.exp %1329 : vector<2x32xf32>
    %cst_414 = arith.constant 1.000000e+00 : f32
    %1331 = vector.broadcast %cst_414 : f32 to vector<2x32xf32>
    %1332 = arith.addf %1331, %1330 : vector<2x32xf32>
    %1333 = arith.divf %1331, %1332 : vector<2x32xf32>
    %1334 = vector.extract_strided_slice %1327 {offsets = [0, 32], sizes = [2, 32], strides = [1, 1]} : vector<2x128xf32> to vector<2x32xf32>
    %1335 = arith.negf %1334 : vector<2x32xf32>
    %1336 = math.exp %1335 : vector<2x32xf32>
    %cst_415 = arith.constant 1.000000e+00 : f32
    %1337 = vector.broadcast %cst_415 : f32 to vector<2x32xf32>
    %1338 = arith.addf %1337, %1336 : vector<2x32xf32>
    %1339 = arith.divf %1337, %1338 : vector<2x32xf32>
    %1340 = vector.extract_strided_slice %1327 {offsets = [0, 64], sizes = [2, 32], strides = [1, 1]} : vector<2x128xf32> to vector<2x32xf32>
    %1341 = math.tanh %1340 : vector<2x32xf32>
    %1342 = vector.extract_strided_slice %1327 {offsets = [0, 96], sizes = [2, 32], strides = [1, 1]} : vector<2x128xf32> to vector<2x32xf32>
    %1343 = arith.negf %1342 : vector<2x32xf32>
    %1344 = math.exp %1343 : vector<2x32xf32>
    %cst_416 = arith.constant 1.000000e+00 : f32
    %1345 = vector.broadcast %cst_416 : f32 to vector<2x32xf32>
    %1346 = arith.addf %1345, %1344 : vector<2x32xf32>
    %1347 = arith.divf %1345, %1346 : vector<2x32xf32>
    %1348 = arith.mulf %1339, %1316 : vector<2x32xf32>
    %1349 = arith.mulf %1333, %1341 : vector<2x32xf32>
    %1350 = arith.addf %1348, %1349 : vector<2x32xf32>
    %1351 = math.tanh %1350 : vector<2x32xf32>
    %1352 = arith.mulf %1347, %1351 : vector<2x32xf32>
    %c6_417 = arith.constant 6 : index
    %c0_418 = arith.constant 0 : index
    %c0_419 = arith.constant 0 : index
    %1353 = vector.load %arg10[%c6_417, %c0_418, %c0_419] : memref<8x2x64xf32, #tpu.memory_space<vmem>>, vector<1x2x32xf32>
    %1354 = vector.shape_cast %1353 : vector<1x2x32xf32> to vector<2x32xf32>
    %1355 = vector.shape_cast %1352 : vector<2x32xf32> to vector<1x2x32xf32>
    tpu.vector_store %arg10[%c6_417, %c0_418, %c0_419], %1355 {strides = array<i32>} : memref<8x2x64xf32, #tpu.memory_space<vmem>>, vector<1x2x32xf32>,
    %c7_420 = arith.constant 7 : index
    %c0_421 = arith.constant 0 : index
    %c0_422 = arith.constant 0 : index
    %1356 = vector.load %arg11[%c7_420, %c0_421, %c0_422] : memref<8x2x64xf32, #tpu.memory_space<vmem>>, vector<1x2x64xf32>
    %1357 = vector.shape_cast %1356 : vector<1x2x64xf32> to vector<2x64xf32>
    %1358 = tpu.concatenate %1357, %1352 in 1 : vector<2x64xf32>, vector<2x32xf32> -> vector<2x96xf32>
    %cst_423 = arith.constant dense<0.000000e+00> : vector<2x128xf32>
    %1359 = tpu.matmul %1358, %1113, %cst_423 {dimension_numbers = #tpu.dot_dimension_numbers<[1], [0], [0], [1], [0, 0, 1, 1], [], []>} : vector<2x96xf32>, vector<96x128xf32>, vector<2x128xf32> -> vector<2x128xf32>
    %1360 = vector.broadcast %1115 : vector<1x128xf32> to vector<2x128xf32>
    %1361 = arith.addf %1359, %1360 : vector<2x128xf32>
    %1362 = vector.extract_strided_slice %1361 {offsets = [0, 0], sizes = [2, 32], strides = [1, 1]} : vector<2x128xf32> to vector<2x32xf32>
    %1363 = arith.negf %1362 : vector<2x32xf32>
    %1364 = math.exp %1363 : vector<2x32xf32>
    %cst_424 = arith.constant 1.000000e+00 : f32
    %1365 = vector.broadcast %cst_424 : f32 to vector<2x32xf32>
    %1366 = arith.addf %1365, %1364 : vector<2x32xf32>
    %1367 = arith.divf %1365, %1366 : vector<2x32xf32>
    %1368 = vector.extract_strided_slice %1361 {offsets = [0, 32], sizes = [2, 32], strides = [1, 1]} : vector<2x128xf32> to vector<2x32xf32>
    %1369 = arith.negf %1368 : vector<2x32xf32>
    %1370 = math.exp %1369 : vector<2x32xf32>
    %cst_425 = arith.constant 1.000000e+00 : f32
    %1371 = vector.broadcast %cst_425 : f32 to vector<2x32xf32>
    %1372 = arith.addf %1371, %1370 : vector<2x32xf32>
    %1373 = arith.divf %1371, %1372 : vector<2x32xf32>
    %1374 = vector.extract_strided_slice %1361 {offsets = [0, 64], sizes = [2, 32], strides = [1, 1]} : vector<2x128xf32> to vector<2x32xf32>
    %1375 = math.tanh %1374 : vector<2x32xf32>
    %1376 = vector.extract_strided_slice %1361 {offsets = [0, 96], sizes = [2, 32], strides = [1, 1]} : vector<2x128xf32> to vector<2x32xf32>
    %1377 = arith.negf %1376 : vector<2x32xf32>
    %1378 = math.exp %1377 : vector<2x32xf32>
    %cst_426 = arith.constant 1.000000e+00 : f32
    %1379 = vector.broadcast %cst_426 : f32 to vector<2x32xf32>
    %1380 = arith.addf %1379, %1378 : vector<2x32xf32>
    %1381 = arith.divf %1379, %1380 : vector<2x32xf32>
    %1382 = arith.mulf %1373, %1350 : vector<2x32xf32>
    %1383 = arith.mulf %1367, %1375 : vector<2x32xf32>
    %1384 = arith.addf %1382, %1383 : vector<2x32xf32>
    %1385 = math.tanh %1384 : vector<2x32xf32>
    %1386 = arith.mulf %1381, %1385 : vector<2x32xf32>
    %c7_427 = arith.constant 7 : index
    %c0_428 = arith.constant 0 : index
    %c0_429 = arith.constant 0 : index
    %1387 = vector.load %arg10[%c7_427, %c0_428, %c0_429] : memref<8x2x64xf32, #tpu.memory_space<vmem>>, vector<1x2x32xf32>
    %1388 = vector.shape_cast %1387 : vector<1x2x32xf32> to vector<2x32xf32>
    %1389 = vector.shape_cast %1386 : vector<2x32xf32> to vector<1x2x32xf32>
    tpu.vector_store %arg10[%c7_427, %c0_428, %c0_429], %1389 {strides = array<i32>} : memref<8x2x64xf32, #tpu.memory_space<vmem>>, vector<1x2x32xf32>,
    %c1_430 = arith.constant 1 : index
    %c0_431 = arith.constant 0 : index
    %c0_432 = arith.constant 0 : index
    %1390 = vector.load %arg3[%c1_430, %c0_431, %c0_432] : memref<2x96x128xf32, #tpu.memory_space<vmem>>, vector<1x96x128xf32>
    %1391 = vector.shape_cast %1390 : vector<1x96x128xf32> to vector<96x128xf32>
    %c1_433 = arith.constant 1 : index
    %c0_434 = arith.constant 0 : index
    %c0_435 = arith.constant 0 : index
    %1392 = vector.load %arg6[%c1_433, %c0_434, %c0_435] : memref<2x1x128xf32, #tpu.memory_space<vmem>>, vector<1x1x128xf32>
    %1393 = vector.shape_cast %1392 : vector<1x1x128xf32> to vector<1x128xf32>
    %cst_436 = arith.constant 0.000000e+00 : f32
    %1394 = vector.broadcast %cst_436 : f32 to vector<2x32xf32>
    %cst_437 = arith.constant 0.000000e+00 : f32
    %1395 = vector.broadcast %cst_437 : f32 to vector<2x32xf32>
    %c7_438 = arith.constant 7 : index
    %c0_439 = arith.constant 0 : index
    %c0_440 = arith.constant 0 : index
    %1396 = vector.load %arg11[%c7_438, %c0_439, %c0_440] : memref<8x2x64xf32, #tpu.memory_space<vmem>>, vector<1x2x64xf32>
    %1397 = vector.shape_cast %1396 : vector<1x2x64xf32> to vector<2x64xf32>
    %1398 = tpu.concatenate %1397, %1394 in 1 : vector<2x64xf32>, vector<2x32xf32> -> vector<2x96xf32>
    %cst_441 = arith.constant dense<0.000000e+00> : vector<2x128xf32>
    %1399 = tpu.matmul %1398, %1391, %cst_441 {dimension_numbers = #tpu.dot_dimension_numbers<[1], [0], [0], [1], [0, 0, 1, 1], [], []>} : vector<2x96xf32>, vector<96x128xf32>, vector<2x128xf32> -> vector<2x128xf32>
    %1400 = vector.broadcast %1393 : vector<1x128xf32> to vector<2x128xf32>
    %1401 = arith.addf %1399, %1400 : vector<2x128xf32>
    %1402 = vector.extract_strided_slice %1401 {offsets = [0, 0], sizes = [2, 32], strides = [1, 1]} : vector<2x128xf32> to vector<2x32xf32>
    %1403 = arith.negf %1402 : vector<2x32xf32>
    %1404 = math.exp %1403 : vector<2x32xf32>
    %cst_442 = arith.constant 1.000000e+00 : f32
    %1405 = vector.broadcast %cst_442 : f32 to vector<2x32xf32>
    %1406 = arith.addf %1405, %1404 : vector<2x32xf32>
    %1407 = arith.divf %1405, %1406 : vector<2x32xf32>
    %1408 = vector.extract_strided_slice %1401 {offsets = [0, 32], sizes = [2, 32], strides = [1, 1]} : vector<2x128xf32> to vector<2x32xf32>
    %1409 = arith.negf %1408 : vector<2x32xf32>
    %1410 = math.exp %1409 : vector<2x32xf32>
    %cst_443 = arith.constant 1.000000e+00 : f32
    %1411 = vector.broadcast %cst_443 : f32 to vector<2x32xf32>
    %1412 = arith.addf %1411, %1410 : vector<2x32xf32>
    %1413 = arith.divf %1411, %1412 : vector<2x32xf32>
    %1414 = vector.extract_strided_slice %1401 {offsets = [0, 64], sizes = [2, 32], strides = [1, 1]} : vector<2x128xf32> to vector<2x32xf32>
    %1415 = math.tanh %1414 : vector<2x32xf32>
    %1416 = vector.extract_strided_slice %1401 {offsets = [0, 96], sizes = [2, 32], strides = [1, 1]} : vector<2x128xf32> to vector<2x32xf32>
    %1417 = arith.negf %1416 : vector<2x32xf32>
    %1418 = math.exp %1417 : vector<2x32xf32>
    %cst_444 = arith.constant 1.000000e+00 : f32
    %1419 = vector.broadcast %cst_444 : f32 to vector<2x32xf32>
    %1420 = arith.addf %1419, %1418 : vector<2x32xf32>
    %1421 = arith.divf %1419, %1420 : vector<2x32xf32>
    %1422 = arith.mulf %1413, %1395 : vector<2x32xf32>
    %1423 = arith.mulf %1407, %1415 : vector<2x32xf32>
    %1424 = arith.addf %1422, %1423 : vector<2x32xf32>
    %1425 = math.tanh %1424 : vector<2x32xf32>
    %1426 = arith.mulf %1421, %1425 : vector<2x32xf32>
    %c7_445 = arith.constant 7 : index
    %c0_446 = arith.constant 0 : index
    %c32_447 = arith.constant 32 : index
    %1427 = vector.load %arg10[%c7_445, %c0_446, %c32_447] : memref<8x2x64xf32, #tpu.memory_space<vmem>>, vector<1x2x32xf32>
    %1428 = vector.shape_cast %1427 : vector<1x2x32xf32> to vector<2x32xf32>
    %1429 = vector.shape_cast %1426 : vector<2x32xf32> to vector<1x2x32xf32>
    tpu.vector_store %arg10[%c7_445, %c0_446, %c32_447], %1429 {strides = array<i32>} : memref<8x2x64xf32, #tpu.memory_space<vmem>>, vector<1x2x32xf32>,
    %c6_448 = arith.constant 6 : index
    %c0_449 = arith.constant 0 : index
    %c0_450 = arith.constant 0 : index
    %1430 = vector.load %arg11[%c6_448, %c0_449, %c0_450] : memref<8x2x64xf32, #tpu.memory_space<vmem>>, vector<1x2x64xf32>
    %1431 = vector.shape_cast %1430 : vector<1x2x64xf32> to vector<2x64xf32>
    %1432 = tpu.concatenate %1431, %1426 in 1 : vector<2x64xf32>, vector<2x32xf32> -> vector<2x96xf32>
    %cst_451 = arith.constant dense<0.000000e+00> : vector<2x128xf32>
    %1433 = tpu.matmul %1432, %1391, %cst_451 {dimension_numbers = #tpu.dot_dimension_numbers<[1], [0], [0], [1], [0, 0, 1, 1], [], []>} : vector<2x96xf32>, vector<96x128xf32>, vector<2x128xf32> -> vector<2x128xf32>
    %1434 = vector.broadcast %1393 : vector<1x128xf32> to vector<2x128xf32>
    %1435 = arith.addf %1433, %1434 : vector<2x128xf32>
    %1436 = vector.extract_strided_slice %1435 {offsets = [0, 0], sizes = [2, 32], strides = [1, 1]} : vector<2x128xf32> to vector<2x32xf32>
    %1437 = arith.negf %1436 : vector<2x32xf32>
    %1438 = math.exp %1437 : vector<2x32xf32>
    %cst_452 = arith.constant 1.000000e+00 : f32
    %1439 = vector.broadcast %cst_452 : f32 to vector<2x32xf32>
    %1440 = arith.addf %1439, %1438 : vector<2x32xf32>
    %1441 = arith.divf %1439, %1440 : vector<2x32xf32>
    %1442 = vector.extract_strided_slice %1435 {offsets = [0, 32], sizes = [2, 32], strides = [1, 1]} : vector<2x128xf32> to vector<2x32xf32>
    %1443 = arith.negf %1442 : vector<2x32xf32>
    %1444 = math.exp %1443 : vector<2x32xf32>
    %cst_453 = arith.constant 1.000000e+00 : f32
    %1445 = vector.broadcast %cst_453 : f32 to vector<2x32xf32>
    %1446 = arith.addf %1445, %1444 : vector<2x32xf32>
    %1447 = arith.divf %1445, %1446 : vector<2x32xf32>
    %1448 = vector.extract_strided_slice %1435 {offsets = [0, 64], sizes = [2, 32], strides = [1, 1]} : vector<2x128xf32> to vector<2x32xf32>
    %1449 = math.tanh %1448 : vector<2x32xf32>
    %1450 = vector.extract_strided_slice %1435 {offsets = [0, 96], sizes = [2, 32], strides = [1, 1]} : vector<2x128xf32> to vector<2x32xf32>
    %1451 = arith.negf %1450 : vector<2x32xf32>
    %1452 = math.exp %1451 : vector<2x32xf32>
    %cst_454 = arith.constant 1.000000e+00 : f32
    %1453 = vector.broadcast %cst_454 : f32 to vector<2x32xf32>
    %1454 = arith.addf %1453, %1452 : vector<2x32xf32>
    %1455 = arith.divf %1453, %1454 : vector<2x32xf32>
    %1456 = arith.mulf %1447, %1424 : vector<2x32xf32>
    %1457 = arith.mulf %1441, %1449 : vector<2x32xf32>
    %1458 = arith.addf %1456, %1457 : vector<2x32xf32>
    %1459 = math.tanh %1458 : vector<2x32xf32>
    %1460 = arith.mulf %1455, %1459 : vector<2x32xf32>
    %c6_455 = arith.constant 6 : index
    %c0_456 = arith.constant 0 : index
    %c32_457 = arith.constant 32 : index
    %1461 = vector.load %arg10[%c6_455, %c0_456, %c32_457] : memref<8x2x64xf32, #tpu.memory_space<vmem>>, vector<1x2x32xf32>
    %1462 = vector.shape_cast %1461 : vector<1x2x32xf32> to vector<2x32xf32>
    %1463 = vector.shape_cast %1460 : vector<2x32xf32> to vector<1x2x32xf32>
    tpu.vector_store %arg10[%c6_455, %c0_456, %c32_457], %1463 {strides = array<i32>} : memref<8x2x64xf32, #tpu.memory_space<vmem>>, vector<1x2x32xf32>,
    %c5_458 = arith.constant 5 : index
    %c0_459 = arith.constant 0 : index
    %c0_460 = arith.constant 0 : index
    %1464 = vector.load %arg11[%c5_458, %c0_459, %c0_460] : memref<8x2x64xf32, #tpu.memory_space<vmem>>, vector<1x2x64xf32>
    %1465 = vector.shape_cast %1464 : vector<1x2x64xf32> to vector<2x64xf32>
    %1466 = tpu.concatenate %1465, %1460 in 1 : vector<2x64xf32>, vector<2x32xf32> -> vector<2x96xf32>
    %cst_461 = arith.constant dense<0.000000e+00> : vector<2x128xf32>
    %1467 = tpu.matmul %1466, %1391, %cst_461 {dimension_numbers = #tpu.dot_dimension_numbers<[1], [0], [0], [1], [0, 0, 1, 1], [], []>} : vector<2x96xf32>, vector<96x128xf32>, vector<2x128xf32> -> vector<2x128xf32>
    %1468 = vector.broadcast %1393 : vector<1x128xf32> to vector<2x128xf32>
    %1469 = arith.addf %1467, %1468 : vector<2x128xf32>
    %1470 = vector.extract_strided_slice %1469 {offsets = [0, 0], sizes = [2, 32], strides = [1, 1]} : vector<2x128xf32> to vector<2x32xf32>
    %1471 = arith.negf %1470 : vector<2x32xf32>
    %1472 = math.exp %1471 : vector<2x32xf32>
    %cst_462 = arith.constant 1.000000e+00 : f32
    %1473 = vector.broadcast %cst_462 : f32 to vector<2x32xf32>
    %1474 = arith.addf %1473, %1472 : vector<2x32xf32>
    %1475 = arith.divf %1473, %1474 : vector<2x32xf32>
    %1476 = vector.extract_strided_slice %1469 {offsets = [0, 32], sizes = [2, 32], strides = [1, 1]} : vector<2x128xf32> to vector<2x32xf32>
    %1477 = arith.negf %1476 : vector<2x32xf32>
    %1478 = math.exp %1477 : vector<2x32xf32>
    %cst_463 = arith.constant 1.000000e+00 : f32
    %1479 = vector.broadcast %cst_463 : f32 to vector<2x32xf32>
    %1480 = arith.addf %1479, %1478 : vector<2x32xf32>
    %1481 = arith.divf %1479, %1480 : vector<2x32xf32>
    %1482 = vector.extract_strided_slice %1469 {offsets = [0, 64], sizes = [2, 32], strides = [1, 1]} : vector<2x128xf32> to vector<2x32xf32>
    %1483 = math.tanh %1482 : vector<2x32xf32>
    %1484 = vector.extract_strided_slice %1469 {offsets = [0, 96], sizes = [2, 32], strides = [1, 1]} : vector<2x128xf32> to vector<2x32xf32>
    %1485 = arith.negf %1484 : vector<2x32xf32>
    %1486 = math.exp %1485 : vector<2x32xf32>
    %cst_464 = arith.constant 1.000000e+00 : f32
    %1487 = vector.broadcast %cst_464 : f32 to vector<2x32xf32>
    %1488 = arith.addf %1487, %1486 : vector<2x32xf32>
    %1489 = arith.divf %1487, %1488 : vector<2x32xf32>
    %1490 = arith.mulf %1481, %1458 : vector<2x32xf32>
    %1491 = arith.mulf %1475, %1483 : vector<2x32xf32>
    %1492 = arith.addf %1490, %1491 : vector<2x32xf32>
    %1493 = math.tanh %1492 : vector<2x32xf32>
    %1494 = arith.mulf %1489, %1493 : vector<2x32xf32>
    %c5_465 = arith.constant 5 : index
    %c0_466 = arith.constant 0 : index
    %c32_467 = arith.constant 32 : index
    %1495 = vector.load %arg10[%c5_465, %c0_466, %c32_467] : memref<8x2x64xf32, #tpu.memory_space<vmem>>, vector<1x2x32xf32>
    %1496 = vector.shape_cast %1495 : vector<1x2x32xf32> to vector<2x32xf32>
    %1497 = vector.shape_cast %1494 : vector<2x32xf32> to vector<1x2x32xf32>
    tpu.vector_store %arg10[%c5_465, %c0_466, %c32_467], %1497 {strides = array<i32>} : memref<8x2x64xf32, #tpu.memory_space<vmem>>, vector<1x2x32xf32>,
    %c4_468 = arith.constant 4 : index
    %c0_469 = arith.constant 0 : index
    %c0_470 = arith.constant 0 : index
    %1498 = vector.load %arg11[%c4_468, %c0_469, %c0_470] : memref<8x2x64xf32, #tpu.memory_space<vmem>>, vector<1x2x64xf32>
    %1499 = vector.shape_cast %1498 : vector<1x2x64xf32> to vector<2x64xf32>
    %1500 = tpu.concatenate %1499, %1494 in 1 : vector<2x64xf32>, vector<2x32xf32> -> vector<2x96xf32>
    %cst_471 = arith.constant dense<0.000000e+00> : vector<2x128xf32>
    %1501 = tpu.matmul %1500, %1391, %cst_471 {dimension_numbers = #tpu.dot_dimension_numbers<[1], [0], [0], [1], [0, 0, 1, 1], [], []>} : vector<2x96xf32>, vector<96x128xf32>, vector<2x128xf32> -> vector<2x128xf32>
    %1502 = vector.broadcast %1393 : vector<1x128xf32> to vector<2x128xf32>
    %1503 = arith.addf %1501, %1502 : vector<2x128xf32>
    %1504 = vector.extract_strided_slice %1503 {offsets = [0, 0], sizes = [2, 32], strides = [1, 1]} : vector<2x128xf32> to vector<2x32xf32>
    %1505 = arith.negf %1504 : vector<2x32xf32>
    %1506 = math.exp %1505 : vector<2x32xf32>
    %cst_472 = arith.constant 1.000000e+00 : f32
    %1507 = vector.broadcast %cst_472 : f32 to vector<2x32xf32>
    %1508 = arith.addf %1507, %1506 : vector<2x32xf32>
    %1509 = arith.divf %1507, %1508 : vector<2x32xf32>
    %1510 = vector.extract_strided_slice %1503 {offsets = [0, 32], sizes = [2, 32], strides = [1, 1]} : vector<2x128xf32> to vector<2x32xf32>
    %1511 = arith.negf %1510 : vector<2x32xf32>
    %1512 = math.exp %1511 : vector<2x32xf32>
    %cst_473 = arith.constant 1.000000e+00 : f32
    %1513 = vector.broadcast %cst_473 : f32 to vector<2x32xf32>
    %1514 = arith.addf %1513, %1512 : vector<2x32xf32>
    %1515 = arith.divf %1513, %1514 : vector<2x32xf32>
    %1516 = vector.extract_strided_slice %1503 {offsets = [0, 64], sizes = [2, 32], strides = [1, 1]} : vector<2x128xf32> to vector<2x32xf32>
    %1517 = math.tanh %1516 : vector<2x32xf32>
    %1518 = vector.extract_strided_slice %1503 {offsets = [0, 96], sizes = [2, 32], strides = [1, 1]} : vector<2x128xf32> to vector<2x32xf32>
    %1519 = arith.negf %1518 : vector<2x32xf32>
    %1520 = math.exp %1519 : vector<2x32xf32>
    %cst_474 = arith.constant 1.000000e+00 : f32
    %1521 = vector.broadcast %cst_474 : f32 to vector<2x32xf32>
    %1522 = arith.addf %1521, %1520 : vector<2x32xf32>
    %1523 = arith.divf %1521, %1522 : vector<2x32xf32>
    %1524 = arith.mulf %1515, %1492 : vector<2x32xf32>
    %1525 = arith.mulf %1509, %1517 : vector<2x32xf32>
    %1526 = arith.addf %1524, %1525 : vector<2x32xf32>
    %1527 = math.tanh %1526 : vector<2x32xf32>
    %1528 = arith.mulf %1523, %1527 : vector<2x32xf32>
    %c4_475 = arith.constant 4 : index
    %c0_476 = arith.constant 0 : index
    %c32_477 = arith.constant 32 : index
    %1529 = vector.load %arg10[%c4_475, %c0_476, %c32_477] : memref<8x2x64xf32, #tpu.memory_space<vmem>>, vector<1x2x32xf32>
    %1530 = vector.shape_cast %1529 : vector<1x2x32xf32> to vector<2x32xf32>
    %1531 = vector.shape_cast %1528 : vector<2x32xf32> to vector<1x2x32xf32>
    tpu.vector_store %arg10[%c4_475, %c0_476, %c32_477], %1531 {strides = array<i32>} : memref<8x2x64xf32, #tpu.memory_space<vmem>>, vector<1x2x32xf32>,
    %c3_478 = arith.constant 3 : index
    %c0_479 = arith.constant 0 : index
    %c0_480 = arith.constant 0 : index
    %1532 = vector.load %arg11[%c3_478, %c0_479, %c0_480] : memref<8x2x64xf32, #tpu.memory_space<vmem>>, vector<1x2x64xf32>
    %1533 = vector.shape_cast %1532 : vector<1x2x64xf32> to vector<2x64xf32>
    %1534 = tpu.concatenate %1533, %1528 in 1 : vector<2x64xf32>, vector<2x32xf32> -> vector<2x96xf32>
    %cst_481 = arith.constant dense<0.000000e+00> : vector<2x128xf32>
    %1535 = tpu.matmul %1534, %1391, %cst_481 {dimension_numbers = #tpu.dot_dimension_numbers<[1], [0], [0], [1], [0, 0, 1, 1], [], []>} : vector<2x96xf32>, vector<96x128xf32>, vector<2x128xf32> -> vector<2x128xf32>
    %1536 = vector.broadcast %1393 : vector<1x128xf32> to vector<2x128xf32>
    %1537 = arith.addf %1535, %1536 : vector<2x128xf32>
    %1538 = vector.extract_strided_slice %1537 {offsets = [0, 0], sizes = [2, 32], strides = [1, 1]} : vector<2x128xf32> to vector<2x32xf32>
    %1539 = arith.negf %1538 : vector<2x32xf32>
    %1540 = math.exp %1539 : vector<2x32xf32>
    %cst_482 = arith.constant 1.000000e+00 : f32
    %1541 = vector.broadcast %cst_482 : f32 to vector<2x32xf32>
    %1542 = arith.addf %1541, %1540 : vector<2x32xf32>
    %1543 = arith.divf %1541, %1542 : vector<2x32xf32>
    %1544 = vector.extract_strided_slice %1537 {offsets = [0, 32], sizes = [2, 32], strides = [1, 1]} : vector<2x128xf32> to vector<2x32xf32>
    %1545 = arith.negf %1544 : vector<2x32xf32>
    %1546 = math.exp %1545 : vector<2x32xf32>
    %cst_483 = arith.constant 1.000000e+00 : f32
    %1547 = vector.broadcast %cst_483 : f32 to vector<2x32xf32>
    %1548 = arith.addf %1547, %1546 : vector<2x32xf32>
    %1549 = arith.divf %1547, %1548 : vector<2x32xf32>
    %1550 = vector.extract_strided_slice %1537 {offsets = [0, 64], sizes = [2, 32], strides = [1, 1]} : vector<2x128xf32> to vector<2x32xf32>
    %1551 = math.tanh %1550 : vector<2x32xf32>
    %1552 = vector.extract_strided_slice %1537 {offsets = [0, 96], sizes = [2, 32], strides = [1, 1]} : vector<2x128xf32> to vector<2x32xf32>
    %1553 = arith.negf %1552 : vector<2x32xf32>
    %1554 = math.exp %1553 : vector<2x32xf32>
    %cst_484 = arith.constant 1.000000e+00 : f32
    %1555 = vector.broadcast %cst_484 : f32 to vector<2x32xf32>
    %1556 = arith.addf %1555, %1554 : vector<2x32xf32>
    %1557 = arith.divf %1555, %1556 : vector<2x32xf32>
    %1558 = arith.mulf %1549, %1526 : vector<2x32xf32>
    %1559 = arith.mulf %1543, %1551 : vector<2x32xf32>
    %1560 = arith.addf %1558, %1559 : vector<2x32xf32>
    %1561 = math.tanh %1560 : vector<2x32xf32>
    %1562 = arith.mulf %1557, %1561 : vector<2x32xf32>
    %c3_485 = arith.constant 3 : index
    %c0_486 = arith.constant 0 : index
    %c32_487 = arith.constant 32 : index
    %1563 = vector.load %arg10[%c3_485, %c0_486, %c32_487] : memref<8x2x64xf32, #tpu.memory_space<vmem>>, vector<1x2x32xf32>
    %1564 = vector.shape_cast %1563 : vector<1x2x32xf32> to vector<2x32xf32>
    %1565 = vector.shape_cast %1562 : vector<2x32xf32> to vector<1x2x32xf32>
    tpu.vector_store %arg10[%c3_485, %c0_486, %c32_487], %1565 {strides = array<i32>} : memref<8x2x64xf32, #tpu.memory_space<vmem>>, vector<1x2x32xf32>,
    %c2_488 = arith.constant 2 : index
    %c0_489 = arith.constant 0 : index
    %c0_490 = arith.constant 0 : index
    %1566 = vector.load %arg11[%c2_488, %c0_489, %c0_490] : memref<8x2x64xf32, #tpu.memory_space<vmem>>, vector<1x2x64xf32>
    %1567 = vector.shape_cast %1566 : vector<1x2x64xf32> to vector<2x64xf32>
    %1568 = tpu.concatenate %1567, %1562 in 1 : vector<2x64xf32>, vector<2x32xf32> -> vector<2x96xf32>
    %cst_491 = arith.constant dense<0.000000e+00> : vector<2x128xf32>
    %1569 = tpu.matmul %1568, %1391, %cst_491 {dimension_numbers = #tpu.dot_dimension_numbers<[1], [0], [0], [1], [0, 0, 1, 1], [], []>} : vector<2x96xf32>, vector<96x128xf32>, vector<2x128xf32> -> vector<2x128xf32>
    %1570 = vector.broadcast %1393 : vector<1x128xf32> to vector<2x128xf32>
    %1571 = arith.addf %1569, %1570 : vector<2x128xf32>
    %1572 = vector.extract_strided_slice %1571 {offsets = [0, 0], sizes = [2, 32], strides = [1, 1]} : vector<2x128xf32> to vector<2x32xf32>
    %1573 = arith.negf %1572 : vector<2x32xf32>
    %1574 = math.exp %1573 : vector<2x32xf32>
    %cst_492 = arith.constant 1.000000e+00 : f32
    %1575 = vector.broadcast %cst_492 : f32 to vector<2x32xf32>
    %1576 = arith.addf %1575, %1574 : vector<2x32xf32>
    %1577 = arith.divf %1575, %1576 : vector<2x32xf32>
    %1578 = vector.extract_strided_slice %1571 {offsets = [0, 32], sizes = [2, 32], strides = [1, 1]} : vector<2x128xf32> to vector<2x32xf32>
    %1579 = arith.negf %1578 : vector<2x32xf32>
    %1580 = math.exp %1579 : vector<2x32xf32>
    %cst_493 = arith.constant 1.000000e+00 : f32
    %1581 = vector.broadcast %cst_493 : f32 to vector<2x32xf32>
    %1582 = arith.addf %1581, %1580 : vector<2x32xf32>
    %1583 = arith.divf %1581, %1582 : vector<2x32xf32>
    %1584 = vector.extract_strided_slice %1571 {offsets = [0, 64], sizes = [2, 32], strides = [1, 1]} : vector<2x128xf32> to vector<2x32xf32>
    %1585 = math.tanh %1584 : vector<2x32xf32>
    %1586 = vector.extract_strided_slice %1571 {offsets = [0, 96], sizes = [2, 32], strides = [1, 1]} : vector<2x128xf32> to vector<2x32xf32>
    %1587 = arith.negf %1586 : vector<2x32xf32>
    %1588 = math.exp %1587 : vector<2x32xf32>
    %cst_494 = arith.constant 1.000000e+00 : f32
    %1589 = vector.broadcast %cst_494 : f32 to vector<2x32xf32>
    %1590 = arith.addf %1589, %1588 : vector<2x32xf32>
    %1591 = arith.divf %1589, %1590 : vector<2x32xf32>
    %1592 = arith.mulf %1583, %1560 : vector<2x32xf32>
    %1593 = arith.mulf %1577, %1585 : vector<2x32xf32>
    %1594 = arith.addf %1592, %1593 : vector<2x32xf32>
    %1595 = math.tanh %1594 : vector<2x32xf32>
    %1596 = arith.mulf %1591, %1595 : vector<2x32xf32>
    %c2_495 = arith.constant 2 : index
    %c0_496 = arith.constant 0 : index
    %c32_497 = arith.constant 32 : index
    %1597 = vector.load %arg10[%c2_495, %c0_496, %c32_497] : memref<8x2x64xf32, #tpu.memory_space<vmem>>, vector<1x2x32xf32>
    %1598 = vector.shape_cast %1597 : vector<1x2x32xf32> to vector<2x32xf32>
    %1599 = vector.shape_cast %1596 : vector<2x32xf32> to vector<1x2x32xf32>
    tpu.vector_store %arg10[%c2_495, %c0_496, %c32_497], %1599 {strides = array<i32>} : memref<8x2x64xf32, #tpu.memory_space<vmem>>, vector<1x2x32xf32>,
    %c1_498 = arith.constant 1 : index
    %c0_499 = arith.constant 0 : index
    %c0_500 = arith.constant 0 : index
    %1600 = vector.load %arg11[%c1_498, %c0_499, %c0_500] : memref<8x2x64xf32, #tpu.memory_space<vmem>>, vector<1x2x64xf32>
    %1601 = vector.shape_cast %1600 : vector<1x2x64xf32> to vector<2x64xf32>
    %1602 = tpu.concatenate %1601, %1596 in 1 : vector<2x64xf32>, vector<2x32xf32> -> vector<2x96xf32>
    %cst_501 = arith.constant dense<0.000000e+00> : vector<2x128xf32>
    %1603 = tpu.matmul %1602, %1391, %cst_501 {dimension_numbers = #tpu.dot_dimension_numbers<[1], [0], [0], [1], [0, 0, 1, 1], [], []>} : vector<2x96xf32>, vector<96x128xf32>, vector<2x128xf32> -> vector<2x128xf32>
    %1604 = vector.broadcast %1393 : vector<1x128xf32> to vector<2x128xf32>
    %1605 = arith.addf %1603, %1604 : vector<2x128xf32>
    %1606 = vector.extract_strided_slice %1605 {offsets = [0, 0], sizes = [2, 32], strides = [1, 1]} : vector<2x128xf32> to vector<2x32xf32>
    %1607 = arith.negf %1606 : vector<2x32xf32>
    %1608 = math.exp %1607 : vector<2x32xf32>
    %cst_502 = arith.constant 1.000000e+00 : f32
    %1609 = vector.broadcast %cst_502 : f32 to vector<2x32xf32>
    %1610 = arith.addf %1609, %1608 : vector<2x32xf32>
    %1611 = arith.divf %1609, %1610 : vector<2x32xf32>
    %1612 = vector.extract_strided_slice %1605 {offsets = [0, 32], sizes = [2, 32], strides = [1, 1]} : vector<2x128xf32> to vector<2x32xf32>
    %1613 = arith.negf %1612 : vector<2x32xf32>
    %1614 = math.exp %1613 : vector<2x32xf32>
    %cst_503 = arith.constant 1.000000e+00 : f32
    %1615 = vector.broadcast %cst_503 : f32 to vector<2x32xf32>
    %1616 = arith.addf %1615, %1614 : vector<2x32xf32>
    %1617 = arith.divf %1615, %1616 : vector<2x32xf32>
    %1618 = vector.extract_strided_slice %1605 {offsets = [0, 64], sizes = [2, 32], strides = [1, 1]} : vector<2x128xf32> to vector<2x32xf32>
    %1619 = math.tanh %1618 : vector<2x32xf32>
    %1620 = vector.extract_strided_slice %1605 {offsets = [0, 96], sizes = [2, 32], strides = [1, 1]} : vector<2x128xf32> to vector<2x32xf32>
    %1621 = arith.negf %1620 : vector<2x32xf32>
    %1622 = math.exp %1621 : vector<2x32xf32>
    %cst_504 = arith.constant 1.000000e+00 : f32
    %1623 = vector.broadcast %cst_504 : f32 to vector<2x32xf32>
    %1624 = arith.addf %1623, %1622 : vector<2x32xf32>
    %1625 = arith.divf %1623, %1624 : vector<2x32xf32>
    %1626 = arith.mulf %1617, %1594 : vector<2x32xf32>
    %1627 = arith.mulf %1611, %1619 : vector<2x32xf32>
    %1628 = arith.addf %1626, %1627 : vector<2x32xf32>
    %1629 = math.tanh %1628 : vector<2x32xf32>
    %1630 = arith.mulf %1625, %1629 : vector<2x32xf32>
    %c1_505 = arith.constant 1 : index
    %c0_506 = arith.constant 0 : index
    %c32_507 = arith.constant 32 : index
    %1631 = vector.load %arg10[%c1_505, %c0_506, %c32_507] : memref<8x2x64xf32, #tpu.memory_space<vmem>>, vector<1x2x32xf32>
    %1632 = vector.shape_cast %1631 : vector<1x2x32xf32> to vector<2x32xf32>
    %1633 = vector.shape_cast %1630 : vector<2x32xf32> to vector<1x2x32xf32>
    tpu.vector_store %arg10[%c1_505, %c0_506, %c32_507], %1633 {strides = array<i32>} : memref<8x2x64xf32, #tpu.memory_space<vmem>>, vector<1x2x32xf32>,
    %c0_508 = arith.constant 0 : index
    %c0_509 = arith.constant 0 : index
    %c0_510 = arith.constant 0 : index
    %1634 = vector.load %arg11[%c0_508, %c0_509, %c0_510] : memref<8x2x64xf32, #tpu.memory_space<vmem>>, vector<1x2x64xf32>
    %1635 = vector.shape_cast %1634 : vector<1x2x64xf32> to vector<2x64xf32>
    %1636 = tpu.concatenate %1635, %1630 in 1 : vector<2x64xf32>, vector<2x32xf32> -> vector<2x96xf32>
    %cst_511 = arith.constant dense<0.000000e+00> : vector<2x128xf32>
    %1637 = tpu.matmul %1636, %1391, %cst_511 {dimension_numbers = #tpu.dot_dimension_numbers<[1], [0], [0], [1], [0, 0, 1, 1], [], []>} : vector<2x96xf32>, vector<96x128xf32>, vector<2x128xf32> -> vector<2x128xf32>
    %1638 = vector.broadcast %1393 : vector<1x128xf32> to vector<2x128xf32>
    %1639 = arith.addf %1637, %1638 : vector<2x128xf32>
    %1640 = vector.extract_strided_slice %1639 {offsets = [0, 0], sizes = [2, 32], strides = [1, 1]} : vector<2x128xf32> to vector<2x32xf32>
    %1641 = arith.negf %1640 : vector<2x32xf32>
    %1642 = math.exp %1641 : vector<2x32xf32>
    %cst_512 = arith.constant 1.000000e+00 : f32
    %1643 = vector.broadcast %cst_512 : f32 to vector<2x32xf32>
    %1644 = arith.addf %1643, %1642 : vector<2x32xf32>
    %1645 = arith.divf %1643, %1644 : vector<2x32xf32>
    %1646 = vector.extract_strided_slice %1639 {offsets = [0, 32], sizes = [2, 32], strides = [1, 1]} : vector<2x128xf32> to vector<2x32xf32>
    %1647 = arith.negf %1646 : vector<2x32xf32>
    %1648 = math.exp %1647 : vector<2x32xf32>
    %cst_513 = arith.constant 1.000000e+00 : f32
    %1649 = vector.broadcast %cst_513 : f32 to vector<2x32xf32>
    %1650 = arith.addf %1649, %1648 : vector<2x32xf32>
    %1651 = arith.divf %1649, %1650 : vector<2x32xf32>
    %1652 = vector.extract_strided_slice %1639 {offsets = [0, 64], sizes = [2, 32], strides = [1, 1]} : vector<2x128xf32> to vector<2x32xf32>
    %1653 = math.tanh %1652 : vector<2x32xf32>
    %1654 = vector.extract_strided_slice %1639 {offsets = [0, 96], sizes = [2, 32], strides = [1, 1]} : vector<2x128xf32> to vector<2x32xf32>
    %1655 = arith.negf %1654 : vector<2x32xf32>
    %1656 = math.exp %1655 : vector<2x32xf32>
    %cst_514 = arith.constant 1.000000e+00 : f32
    %1657 = vector.broadcast %cst_514 : f32 to vector<2x32xf32>
    %1658 = arith.addf %1657, %1656 : vector<2x32xf32>
    %1659 = arith.divf %1657, %1658 : vector<2x32xf32>
    %1660 = arith.mulf %1651, %1628 : vector<2x32xf32>
    %1661 = arith.mulf %1645, %1653 : vector<2x32xf32>
    %1662 = arith.addf %1660, %1661 : vector<2x32xf32>
    %1663 = math.tanh %1662 : vector<2x32xf32>
    %1664 = arith.mulf %1659, %1663 : vector<2x32xf32>
    %c0_515 = arith.constant 0 : index
    %c0_516 = arith.constant 0 : index
    %c32_517 = arith.constant 32 : index
    %1665 = vector.load %arg10[%c0_515, %c0_516, %c32_517] : memref<8x2x64xf32, #tpu.memory_space<vmem>>, vector<1x2x32xf32>
    %1666 = vector.shape_cast %1665 : vector<1x2x32xf32> to vector<2x32xf32>
    %1667 = vector.shape_cast %1664 : vector<2x32xf32> to vector<1x2x32xf32>
    tpu.vector_store %arg10[%c0_515, %c0_516, %c32_517], %1667 {strides = array<i32>} : memref<8x2x64xf32, #tpu.memory_space<vmem>>, vector<1x2x32xf32>,
    %c7_518 = arith.constant 7 : index
    %c0_519 = arith.constant 0 : index
    %c0_520 = arith.constant 0 : index
    %1668 = vector.load %arg10[%c7_518, %c0_519, %c0_520] : memref<8x2x64xf32, #tpu.memory_space<vmem>>, vector<1x2x64xf32>
    %1669 = vector.shape_cast %1668 : vector<1x2x64xf32> to vector<2x64xf32>
    %c0_521 = arith.constant 0 : index
    %c0_522 = arith.constant 0 : index
    %1670 = vector.load %arg7[%c0_521, %c0_522] : memref<64x1xf32, #tpu.memory_space<vmem>>, vector<64x1xf32>
    %cst_523 = arith.constant dense<0.000000e+00> : vector<2x1xf32>
    %1671 = tpu.matmul %1669, %1670, %cst_523 {dimension_numbers = #tpu.dot_dimension_numbers<[1], [0], [0], [1], [0, 0, 1, 1], [], []>} : vector<2x64xf32>, vector<64x1xf32>, vector<2x1xf32> -> vector<2x1xf32>
    %c0_524 = arith.constant 0 : index
    %c0_525 = arith.constant 0 : index
    %1672 = vector.load %arg8[%c0_524, %c0_525] : memref<1x1xf32, #tpu.memory_space<vmem>>, vector<1x1xf32>
    %1673 = vector.broadcast %1672 : vector<1x1xf32> to vector<2x1xf32>
    %1674 = arith.addf %1671, %1673 : vector<2x1xf32>
    %1675 = arith.negf %1674 : vector<2x1xf32>
    %1676 = math.exp %1675 : vector<2x1xf32>
    %cst_526 = arith.constant 1.000000e+00 : f32
    %1677 = vector.broadcast %cst_526 : f32 to vector<2x1xf32>
    %1678 = arith.addf %1677, %1676 : vector<2x1xf32>
    %1679 = arith.divf %1677, %1678 : vector<2x1xf32>
    %c0_527 = arith.constant 0 : index
    %c0_528 = arith.constant 0 : index
    %1680 = vector.load %arg9[%c0_527, %c0_528] : memref<2x1xf32, #tpu.memory_space<vmem>>, vector<2x1xf32>
    tpu.vector_store %arg9[%c0_527, %c0_528], %1679 {strides = array<i32>} : memref<2x1xf32, #tpu.memory_space<vmem>>, vector<2x1xf32>,
    return
  }
}

</mosaic_0001>

<bundles_post_ra>
// kernel: rnn_model_forward.1
= control target key start
LH: loop header
LB: loop body
LE: loop exit
PB: predicated region body
PF: predicated region fallthrough
CT: control target
= control target key end

     0   :  { %s9715_s0 = inlined_call_operand.vmem [shape: f32[8,2,16], index: 0, kind: input, shape index: {}]   ;;  %s9716_s1 = inlined_call_operand.vmem [shape: f32[2,48,128], index: 1, kind: input, shape index: {}]   ;;  %s9717_s2 = inlined_call_operand.hbm [shape: f32[2,96,128], index: 2, kind: input, shape index: {}]   ;;  %s9718_s3 = inlined_call_operand.hbm [shape: f32[2,96,128], index: 3, kind: input, shape index: {}]   ;;  %s9719_s4 = inlined_call_operand.vmem [shape: f32[2,1,128], index: 4, kind: input, shape index: {}]   ;;  %s9720_s5 = inlined_call_operand.vmem [shape: f32[2,1,128], index: 5, kind: input, shape index: {}]   ;;  %s9721_s6 = inlined_call_operand.vmem [shape: f32[2,1,128], index: 6, kind: input, shape index: {}]   ;;  %s9722_s7 = inlined_call_operand.vmem [shape: f32[64,1], index: 7, kind: input, shape index: {}]   ;;  %s9723_s8 = inlined_call_operand.<no memory space> [shape: f32[1,1], index: 8, kind: input, shape index: {}]   ;;  %s9724_s9 = inlined_call_operand.vmem [shape: f32[2,1], index: 9, kind: output, shape index: {}]  }
   0x1   :  { %v14_v0 = vstv %s9723_s8 }
   0x2   :  { %15 = vst [vmem:[#allocation4] sm:$0x1] %v14_v0 }
   0x3   :  { %16 = vsyncpa [#allocation6], 0 }
   0x4   :  { %17 = vsyncpa [#allocation8], 0  ;;  %s7651_s11 = smov [#allocation5]  }
   0x5   :  { %s27_s12 = sshll.u32 %s7651_s11, 4  ;;  %s28_s12 = int_to_ptr.vmem [resolvable:$true] %s27_s12 }
   0x6   :  { %s7615_s13 = scalar_lea.vmem %s28_s12, 3072  ;;  %p7620_p1 = scmp.lt.s32.totalorder %s28_s12, %s28_s12 }
   0x7   :  { %p7616_p0 = scmp.ne.s32.totalorder %s28_s12, %s7615_s13  ;;  %p7621_p2 = scmp.lt.s32.totalorder %s7615_s13, %s7615_s13 }
   0x9   :  { %p7622_p3 = por %p7621_p2, %p7620_p1 }
   0xb   :  { %p7623_p4 = pnand %p7622_p3, %p7616_p0 }
   0xd   :  { %7626 = shalt.err (!%p7623_p4)
}
   0xe   :  { %s7652_s14 = smov 128   ;;  %s7653_s15 = smov 8  }
   0xf   :  { %33 = dma.hbm_to_vmem [thread:$0]  %s9717_s2, 3072, %s28_s12, [#allocation6], %s7652_s14, %s7652_s14, %s7653_s15  }
  0x10   :  { %s7654_s8 = smov [#allocation7]  }
  0x11   :  { %s39_s18 = sshll.u32 %s7654_s8, 4  ;;  %s40_s18 = int_to_ptr.vmem [resolvable:$true] %s39_s18 }
  0x12   :  { %s7635_s19 = scalar_lea.vmem %s40_s18, 3072  ;;  %p7640_p6 = scmp.lt.s32.totalorder %s40_s18, %s40_s18 }
  0x13   :  { %p7636_p5 = scmp.ne.s32.totalorder %s40_s18, %s7635_s19  ;;  %p7641_p7 = scmp.lt.s32.totalorder %s7635_s19, %s7635_s19 }
  0x15   :  { %p7642_p8 = por %p7641_p7, %p7640_p6 }
  0x17   :  { %p7643_p9 = pnand %p7642_p8, %p7636_p5 }
  0x19   :  { %7646 = shalt.err (!%p7643_p9)
}
  0x1a   :  { %45 = dma.hbm_to_vmem [thread:$0]  %s9718_s3, 3072, %s40_s18, [#allocation8], %s7652_s14, %s7652_s14, %s7653_s15  }
  0x1b   :  { %7647 = dma.done.wait [#allocation6], 3072  }
  0x1c   :  { %7648 = vsyncadd [#allocation6], 4294964224 }
  0x1d   :  { %7649 = dma.done.wait [#allocation8], 3072  }
  0x1e   :  { %7650 = vsyncadd [#allocation8], 4294964224  ;;  %v7655_v1 = vmov 0.0   ;;  %vm7656_vm0 = vmmov 0   ;;  %v7729_v2 = vld [vmem:[%s9716_s1 + $0x28] sm:$0xff]  ;;  %v7734_v3 = vld [vmem:[%s9716_s1 + $0x20] sm:$0xff] }
  0x1f   :  { %6083 = vmatprep.subr.mxu1 %v7655_v1  ;;  %6095 = vmatprep.mubr.msk.f32.mxu1 %vm7656_vm0, %v7655_v1  ;;  %v7742_v4 = vld [vmem:[%s9716_s1 + $0x18] sm:$0xff]  ;;  %v7751_v5 = vld [vmem:[%s9716_s1 + $0x10] sm:$0xff]  ;;  %v7760_v6 = vld [vmem:[%s9716_s1 + $0x8] sm:$0xff]  ;;  %vm70_vm1 = vcmask 130048   ;;  %vm78_vm2 = vcmask 392192   ;;  %s7657_s15 = smov 64  }
  0x20   :  { %6113 = vmatprep.subr.mxu0 %v7655_v1  ;;  %6125 = vmatprep.mubr.msk.f32.mxu0 %vm7656_vm0, %v7655_v1  ;;  %v69_v7 = vld [vmem:[%s9715_s0] sm:$0x3]  ;;  %s7658_s16 = smov 32   ;;  %s7659_s17 = smov 48   ;;  %v5421_v27 = vld [vmem:[%s9715_s0 + $0x2] sm:$0x3] }
  0x21   :  { %6084 = vmatpush3.msra.mxu1 %v7729_v2  ;;  %6114 = vmatpush3.msra.mxu0 %v7729_v2  ;;  %v7772_v8 = vld [vmem:[%s9716_s1] sm:$0xff]  ;;  %v71_v9 = vsel %vm70_vm1, %v69_v7, 0.0  ;;  %vm180_vm3 = vcmask 254976   ;;  %vm1063_vm4 = vcmask 517376   ;;  %vm1828_vm5 = vcmask 523264   ;;  %s7660_s18 = smov 96  }
  0x22   :  { %6085 = vmatprep.subr.mxu1 %v7655_v1  ;;  %6115 = vmatprep.subr.mxu0 %v7655_v1  ;;  %v7802_v10 = vld [vmem:[%s9719_s4] ss:$0 sm:$0xff]  ;;  %v5424_v46 = vld [vmem:[%s9715_s0 + $0x4] sm:$0x3]  ;;  %v5427_v7 = vld [vmem:[%s9715_s0 + $0x6] sm:$0x3] }
  0x23   :  { %6086 = vmatpush3.msra.mxu1 %v7734_v3  ;;  %6116 = vmatpush3.msra.mxu0 %v7734_v3  ;;  %vm1836_vm6 = vcmask 785408   ;;  %vm5410_vm7 = vcmask 1024  }
  0x24   :  { %6087 = vmatprep.subr.mxu1 %v7655_v1  ;;  %6117 = vmatprep.subr.mxu0 %v7655_v1 }
  0x25   :  { %6088 = vmatpush3.msra.mxu1 %v7742_v4  ;;  %6118 = vmatpush3.msra.mxu0 %v7742_v4 }
  0x26   :  { %6089 = vmatprep.subr.mxu1 %v7655_v1  ;;  %6119 = vmatprep.subr.mxu0 %v7655_v1 }
  0x27   :  { %6090 = vmatpush3.msra.mxu1 %v7751_v5  ;;  %6120 = vmatpush3.msra.mxu0 %v7751_v5 }
  0x28   :  { %6091 = vmatprep.subr.mxu1 %v7655_v1  ;;  %6121 = vmatprep.subr.mxu0 %v7655_v1 }
  0x29   :  { %6092 = vmatpush3.msra.mxu1 %v7760_v6  ;;  %6122 = vmatpush3.msra.mxu0 %v7760_v6 }
  0x2a   :  { %6093 = vmatprep.subr.mxu1 %v7655_v1  ;;  %6123 = vmatprep.subr.mxu0 %v7655_v1 }
  0x2b   :  { %6094 = vmatpush3.msra.mxu1 %v7772_v8  ;;  %6124 = vmatpush3.msra.mxu0 %v7772_v8 }
  0x2c   :  { %6096 = vmatmul.mubr.msk.f32.vlgmr.msra.gmra.mxu1 %vm78_vm2, %v71_v9  ;;  %6098 = vmatprep.subr.mxu1 %v7655_v1 }
  0x2d   :  { %6099 = vmatpush3.msra.mxu1 %v7729_v2  ;;  %6110 = vmatprep.mubr.msk.f32.mxu1 %vm7656_vm0, %v7655_v1 }
  0x2e   :  { %6100 = vmatprep.subr.mxu1 %v7655_v1  ;;  %6143 = vmatprep.subr.mxu0 %v7655_v1 }
  0x2f   :  { %6101 = vmatpush3.msra.mxu1 %v7734_v3 }
  0x30   :  { %6102 = vmatprep.subr.mxu1 %v7655_v1 }
  0x31   :  { %6103 = vmatpush3.msra.mxu1 %v7742_v4 }
  0x32   :  { %6104 = vmatprep.subr.mxu1 %v7655_v1 }
  0x33   :  { %6105 = vmatpush3.msra.mxu1 %v7751_v5 }
  0x34   :  { %6106 = vmatprep.subr.mxu1 %v7655_v1 }
  0x35   :  { %6107 = vmatpush3.msra.mxu1 %v7760_v6 }
  0x36   :  { %6108 = vmatprep.subr.mxu1 %v7655_v1 }
  0x37   :  { %6109 = vmatpush3.msra.mxu1 %v7772_v8 }
  0x38   :  { %6128 = vmatprep.subr.mxu1 %v7655_v1 }
  0xec   :  { %v148_v11 = vpop.f32.mrf.mxu1 }
  0xed   :  { %v149_v12 = vadd.f32 %v7802_v10, %v148_v11 }
  0xee   :  { %v6097_v13 = vpop.f32.mrf.mxu1 }
  0xef   :  { %7216 = vtanh.f32 %v149_v12  ;;  %v5420_v15 = vmul.f32 -1.442695, %v149_v12 }
  0xf1   :  { %7218 = vpow2.f32 %v5420_v15 }
  0xfc   :  { %v7217_v14 = vpop.eup %7216 }
  0xfd   :  { %161 = vrot.lane.b32.xlu0 %v7217_v14, %s7657_s15 }
  0xfe   :  { %v7219_v16 = vpop.eup %7218 }
  0xff   :  { %v155_v17 = vadd.f32 1.0, %v7219_v16 }
 0x101   :  { %7220 = vrcp.f32 %v155_v17 }
 0x10e   :  { %v7221_v18 = vpop.eup %7220 }
 0x10f   :  { %v159_v21 = vmul.f32 0.0, %v7221_v18 }
 0x16f   :  { %v162_v19 = vpop.permute.xlu0 %161 }
 0x170   :  { %v164_v20 = vmul.f32 %v7221_v18, %v162_v19 }
 0x172   :  { %166 = vrot.lane.b32.xlu0 %v164_v20, %s7658_s16 }
 0x1e4   :  { %v167_v22 = vpop.permute.xlu0 %166 }
 0x1e5   :  { %v169_v23 = vadd.f32 %v167_v22, %v159_v21 }
 0x1e7   :  { %7222 = vtanh.f32 %v169_v23 }
 0x1f4   :  { %v7223_v24 = vpop.eup %7222 }
 0x1f5   :  { %172 = vrot.lane.b32.xlu1 %v7223_v24, %s7657_s15 }
 0x267   :  { %v173_v25 = vpop.permute.xlu1 %172 }
 0x268   :  { %v7808_v26 = vmul.f32 %v7221_v18, %v173_v25 }
 0x26a   :  { %184 = vrot.lane.b32.xlu1 %v7808_v26, %s7659_s17 }
 0x2dc   :  { %v185_v28 = vpop.permute.xlu1 %184 }
 0x2dd   :  { %v187_v29 = vsel %vm70_vm1, %v5421_v27, %v185_v28 }
 0x2de   :  { %6111 = vmatmul.mubr.msk.f32.vlgmr.msra.gmra.mxu1 %vm78_vm2, %v187_v29  ;;  %v5430_v29 = vld [vmem:[%s9715_s0 + $0x8] sm:$0x3] }
 0x2df   :  { %6129 = vmatpush3.msra.mxu1 %v7729_v2  ;;  %6140 = vmatprep.mubr.msk.f32.mxu1 %vm7656_vm0, %v7655_v1 }
 0x2e0   :  { %6130 = vmatprep.subr.mxu1 %v7655_v1 }
 0x2e1   :  { %6131 = vmatpush3.msra.mxu1 %v7734_v3 }
 0x2e2   :  { %6132 = vmatprep.subr.mxu1 %v7655_v1 }
 0x2e3   :  { %6133 = vmatpush3.msra.mxu1 %v7742_v4 }
 0x2e4   :  { %6134 = vmatprep.subr.mxu1 %v7655_v1 }
 0x2e5   :  { %6135 = vmatpush3.msra.mxu1 %v7751_v5 }
 0x2e6   :  { %6136 = vmatprep.subr.mxu1 %v7655_v1 }
 0x2e7   :  { %6137 = vmatpush3.msra.mxu1 %v7760_v6 }
 0x2e8   :  { %6138 = vmatprep.subr.mxu1 %v7655_v1 }
 0x2e9   :  { %6139 = vmatpush3.msra.mxu1 %v7772_v8 }
 0x2ea   :  { %6158 = vmatprep.subr.mxu1 %v7655_v1 }
 0x39e   :  { %v257_v30 = vpop.f32.mrf.mxu1 }
 0x39f   :  { %v258_v31 = vadd.f32 %v7802_v10, %v257_v30 }
 0x3a0   :  { %v6112_v32 = vpop.f32.mrf.mxu1 }
 0x3a1   :  { %7224 = vtanh.f32 %v258_v31  ;;  %v5423_v34 = vmul.f32 -1.442695, %v258_v31 }
 0x3a3   :  { %7226 = vpow2.f32 %v5423_v34 }
 0x3ae   :  { %v7225_v33 = vpop.eup %7224 }
 0x3af   :  { %270 = vrot.lane.b32.xlu0 %v7225_v33, %s7657_s15 }
 0x3b0   :  { %v7227_v35 = vpop.eup %7226 }
 0x3b1   :  { %v264_v36 = vadd.f32 1.0, %v7227_v35 }
 0x3b3   :  { %7228 = vrcp.f32 %v264_v36 }
 0x3c0   :  { %v7229_v37 = vpop.eup %7228 }
 0x3c1   :  { %v268_v40 = vmul.f32 %v7229_v37, %v169_v23 }
 0x421   :  { %v271_v38 = vpop.permute.xlu0 %270 }
 0x422   :  { %v273_v39 = vmul.f32 %v7229_v37, %v271_v38 }
 0x424   :  { %275 = vrot.lane.b32.xlu1 %v273_v39, %s7658_s16 }
 0x496   :  { %v276_v41 = vpop.permute.xlu1 %275 }
 0x497   :  { %v278_v42 = vadd.f32 %v276_v41, %v268_v40 }
 0x499   :  { %7230 = vtanh.f32 %v278_v42 }
 0x4a6   :  { %v7231_v43 = vpop.eup %7230 }
 0x4a7   :  { %281 = vrot.lane.b32.xlu0 %v7231_v43, %s7657_s15 }
 0x519   :  { %v282_v44 = vpop.permute.xlu0 %281 }
 0x51a   :  { %v7835_v45 = vmul.f32 %v7229_v37, %v282_v44 }
 0x51c   :  { %293 = vrot.lane.b32.xlu1 %v7835_v45, %s7659_s17 }
 0x58e   :  { %v294_v47 = vpop.permute.xlu1 %293 }
 0x58f   :  { %v296_v48 = vsel %vm70_vm1, %v5424_v46, %v294_v47 }
 0x590   :  { %6126 = vmatmul.mubr.msk.f32.vlgmr.msra.gmra.mxu0 %vm78_vm2, %v296_v48 }
 0x591   :  { %6144 = vmatpush3.msra.mxu0 %v7729_v2  ;;  %6155 = vmatprep.mubr.msk.f32.mxu0 %vm7656_vm0, %v7655_v1 }
 0x592   :  { %6145 = vmatprep.subr.mxu0 %v7655_v1 }
 0x593   :  { %6146 = vmatpush3.msra.mxu0 %v7734_v3 }
 0x594   :  { %6147 = vmatprep.subr.mxu0 %v7655_v1 }
 0x595   :  { %6148 = vmatpush3.msra.mxu0 %v7742_v4 }
 0x596   :  { %6149 = vmatprep.subr.mxu0 %v7655_v1 }
 0x597   :  { %6150 = vmatpush3.msra.mxu0 %v7751_v5 }
 0x598   :  { %6151 = vmatprep.subr.mxu0 %v7655_v1 }
 0x599   :  { %6152 = vmatpush3.msra.mxu0 %v7760_v6 }
 0x59a   :  { %6153 = vmatprep.subr.mxu0 %v7655_v1 }
 0x59b   :  { %6154 = vmatpush3.msra.mxu0 %v7772_v8 }
 0x59c   :  { %6173 = vmatprep.subr.mxu0 %v7655_v1 }
 0x650   :  { %v366_v49 = vpop.f32.mrf.mxu0 }
 0x651   :  { %v367_v50 = vadd.f32 %v7802_v10, %v366_v49  ;;  %v5433_v49 = vld [vmem:[%s9715_s0 + $0xa] sm:$0x3] }
 0x652   :  { %v6127_v51 = vpop.f32.mrf.mxu0 }
 0x653   :  { %7232 = vtanh.f32 %v367_v50  ;;  %v5426_v53 = vmul.f32 -1.442695, %v367_v50 }
 0x655   :  { %7234 = vpow2.f32 %v5426_v53 }
 0x660   :  { %v7233_v52 = vpop.eup %7232 }
 0x661   :  { %379 = vrot.lane.b32.xlu0 %v7233_v52, %s7657_s15 }
 0x662   :  { %v7235_v54 = vpop.eup %7234 }
 0x663   :  { %v373_v55 = vadd.f32 1.0, %v7235_v54 }
 0x665   :  { %7236 = vrcp.f32 %v373_v55 }
 0x672   :  { %v7237_v56 = vpop.eup %7236 }
 0x673   :  { %v377_v59 = vmul.f32 %v7237_v56, %v278_v42 }
 0x6d3   :  { %v380_v57 = vpop.permute.xlu0 %379 }
 0x6d4   :  { %v382_v58 = vmul.f32 %v7237_v56, %v380_v57 }
 0x6d6   :  { %384 = vrot.lane.b32.xlu1 %v382_v58, %s7658_s16 }
 0x748   :  { %v385_v60 = vpop.permute.xlu1 %384 }
 0x749   :  { %v387_v61 = vadd.f32 %v385_v60, %v377_v59 }
 0x74b   :  { %7238 = vtanh.f32 %v387_v61 }
 0x758   :  { %v7239_v62 = vpop.eup %7238 }
 0x759   :  { %390 = vrot.lane.b32.xlu0 %v7239_v62, %s7657_s15  ;;  %v5436_v62 = vld [vmem:[%s9715_s0 + $0xc] sm:$0x3] }
 0x7cb   :  { %v391_v63 = vpop.permute.xlu0 %390 }
 0x7cc   :  { %v7862_v0 = vmul.f32 %v7237_v56, %v391_v63 }
 0x7ce   :  { %402 = vrot.lane.b32.xlu1 %v7862_v0, %s7659_s17 }
 0x840   :  { %v403_v9 = vpop.permute.xlu1 %402 }
 0x841   :  { %v405_v11 = vsel %vm70_vm1, %v5427_v7, %v403_v9  ;;  %v7956_v7 = vld [vmem:[%s9716_s1 + $0x58] sm:$0xff] }
 0x842   :  { %6141 = vmatmul.mubr.msk.f32.vlgmr.msra.gmra.mxu1 %vm78_vm2, %v405_v11  ;;  %v7963_v11 = vld [vmem:[%s9716_s1 + $0x50] sm:$0xff] }
 0x843   :  { %6159 = vmatpush3.msra.mxu1 %v7729_v2  ;;  %6170 = vmatprep.mubr.msk.f32.mxu1 %vm7656_vm0, %v7655_v1 }
 0x844   :  { %6160 = vmatprep.subr.mxu1 %v7655_v1 }
 0x845   :  { %6161 = vmatpush3.msra.mxu1 %v7734_v3 }
 0x846   :  { %6162 = vmatprep.subr.mxu1 %v7655_v1 }
 0x847   :  { %6163 = vmatpush3.msra.mxu1 %v7742_v4 }
 0x848   :  { %6164 = vmatprep.subr.mxu1 %v7655_v1 }
 0x849   :  { %6165 = vmatpush3.msra.mxu1 %v7751_v5 }
 0x84a   :  { %6166 = vmatprep.subr.mxu1 %v7655_v1 }
 0x84b   :  { %6167 = vmatpush3.msra.mxu1 %v7760_v6 }
 0x84c   :  { %6168 = vmatprep.subr.mxu1 %v7655_v1 }
 0x84d   :  { %6169 = vmatpush3.msra.mxu1 %v7772_v8 }
 0x84e   :  { %6188 = vmatprep.subr.mxu1 %v7655_v1 }
 0x902   :  { %v475_v12 = vpop.f32.mrf.mxu1 }
 0x903   :  { %v476_v13 = vadd.f32 %v7802_v10, %v475_v12  ;;  %v7972_v12 = vld [vmem:[%s9716_s1 + $0x48] sm:$0xff] }
 0x904   :  { %v6142_v14 = vpop.f32.mrf.mxu1 }
 0x905   :  { %7240 = vtanh.f32 %v476_v13  ;;  %v5429_v16 = vmul.f32 -1.442695, %v476_v13  ;;  %v7979_v13 = vld [vmem:[%s9716_s1 + $0x40] sm:$0xff]  ;;  %v7986_v14 = vld [vmem:[%s9716_s1 + $0x38] sm:$0xff] }
 0x907   :  { %7242 = vpow2.f32 %v5429_v16  ;;  %v7996_v16 = vld [vmem:[%s9716_s1 + $0x30] sm:$0xff] }
 0x912   :  { %v7241_v15 = vpop.eup %7240 }
 0x913   :  { %488 = vrot.lane.b32.xlu0 %v7241_v15, %s7657_s15  ;;  %v5449_v15 = vld [vmem:[%s9715_s0 + $0xe] sm:$0x3] }
 0x914   :  { %v7243_v17 = vpop.eup %7242 }
 0x915   :  { %v482_v18 = vadd.f32 1.0, %v7243_v17  ;;  %v955_v17 = vsel %vm70_vm1, %v5449_v15, 0.0 }
 0x917   :  { %7244 = vrcp.f32 %v482_v18 }
 0x924   :  { %v7245_v19 = vpop.eup %7244 }
 0x925   :  { %v486_v22 = vmul.f32 %v7245_v19, %v387_v61 }
 0x985   :  { %v489_v20 = vpop.permute.xlu0 %488 }
 0x986   :  { %v491_v21 = vmul.f32 %v7245_v19, %v489_v20 }
 0x988   :  { %493 = vrot.lane.b32.xlu1 %v491_v21, %s7658_s16  ;;  %v8022_v21 = vld [vmem:[%s9719_s4 + $0x1] ss:$0 sm:$0xff] }
 0x9fa   :  { %v494_v23 = vpop.permute.xlu1 %493 }
 0x9fb   :  { %v496_v24 = vadd.f32 %v494_v23, %v486_v22 }
 0x9fd   :  { %7246 = vtanh.f32 %v496_v24 }
 0xa0a   :  { %v7247_v25 = vpop.eup %7246 }
 0xa0b   :  { %499 = vrot.lane.b32.xlu0 %v7247_v25, %s7657_s15 }
 0xa7d   :  { %v500_v27 = vpop.permute.xlu0 %499 }
 0xa7e   :  { %v7889_v28 = vmul.f32 %v7245_v19, %v500_v27 }
 0xa80   :  { %511 = vrot.lane.b32.xlu1 %v7889_v28, %s7659_s17 }
 0xaf2   :  { %v512_v30 = vpop.permute.xlu1 %511 }
 0xaf3   :  { %v514_v31 = vsel %vm70_vm1, %v5430_v29, %v512_v30 }
 0xaf4   :  { %6156 = vmatmul.mubr.msk.f32.vlgmr.msra.gmra.mxu0 %vm78_vm2, %v514_v31 }
 0xaf5   :  { %6174 = vmatpush3.msra.mxu0 %v7729_v2  ;;  %6185 = vmatprep.mubr.msk.f32.mxu0 %vm7656_vm0, %v7655_v1 }
 0xaf6   :  { %6175 = vmatprep.subr.mxu0 %v7655_v1 }
 0xaf7   :  { %6176 = vmatpush3.msra.mxu0 %v7734_v3 }
 0xaf8   :  { %6177 = vmatprep.subr.mxu0 %v7655_v1 }
 0xaf9   :  { %6178 = vmatpush3.msra.mxu0 %v7742_v4 }
 0xafa   :  { %6179 = vmatprep.subr.mxu0 %v7655_v1 }
 0xafb   :  { %6180 = vmatpush3.msra.mxu0 %v7751_v5 }
 0xafc   :  { %6181 = vmatprep.subr.mxu0 %v7655_v1 }
 0xafd   :  { %6182 = vmatpush3.msra.mxu0 %v7760_v6 }
 0xafe   :  { %6183 = vmatprep.subr.mxu0 %v7655_v1 }
 0xaff   :  { %6184 = vmatpush3.msra.mxu0 %v7772_v8 }
 0xb00   :  { %6203 = vmatprep.subr.mxu0 %v7655_v1 }
 0xbb4   :  { %v584_v32 = vpop.f32.mrf.mxu0 }
 0xbb5   :  { %v585_v33 = vadd.f32 %v7802_v10, %v584_v32 }
 0xbb6   :  { %v6157_v34 = vpop.f32.mrf.mxu0 }
 0xbb7   :  { %7248 = vtanh.f32 %v585_v33  ;;  %v5432_v36 = vmul.f32 -1.442695, %v585_v33 }
 0xbb9   :  { %7250 = vpow2.f32 %v5432_v36 }
 0xbc4   :  { %v7249_v35 = vpop.eup %7248 }
 0xbc5   :  { %597 = vrot.lane.b32.xlu0 %v7249_v35, %s7657_s15 }
 0xbc6   :  { %v7251_v37 = vpop.eup %7250 }
 0xbc7   :  { %v591_v38 = vadd.f32 1.0, %v7251_v37 }
 0xbc9   :  { %7252 = vrcp.f32 %v591_v38 }
 0xbd6   :  { %v7253_v39 = vpop.eup %7252 }
 0xbd7   :  { %v595_v42 = vmul.f32 %v7253_v39, %v496_v24 }
 0xc37   :  { %v598_v40 = vpop.permute.xlu0 %597 }
 0xc38   :  { %v600_v41 = vmul.f32 %v7253_v39, %v598_v40 }
 0xc3a   :  { %602 = vrot.lane.b32.xlu1 %v600_v41, %s7658_s16 }
 0xcac   :  { %v603_v43 = vpop.permute.xlu1 %602 }
 0xcad   :  { %v605_v44 = vadd.f32 %v603_v43, %v595_v42 }
 0xcaf   :  { %7254 = vtanh.f32 %v605_v44 }
 0xcbc   :  { %v7255_v46 = vpop.eup %7254 }
 0xcbd   :  { %608 = vrot.lane.b32.xlu0 %v7255_v46, %s7657_s15 }
 0xd2f   :  { %v609_v47 = vpop.permute.xlu0 %608 }
 0xd30   :  { %v7916_v48 = vmul.f32 %v7253_v39, %v609_v47 }
 0xd32   :  { %620 = vrot.lane.b32.xlu1 %v7916_v48, %s7659_s17 }
 0xda4   :  { %v621_v50 = vpop.permute.xlu1 %620 }
 0xda5   :  { %v623_v51 = vsel %vm70_vm1, %v5433_v49, %v621_v50 }
 0xda6   :  { %6171 = vmatmul.mubr.msk.f32.vlgmr.msra.gmra.mxu1 %vm78_vm2, %v623_v51 }
 0xda7   :  { %6189 = vmatpush3.msra.mxu1 %v7729_v2  ;;  %6200 = vmatprep.mubr.msk.f32.mxu1 %vm7656_vm0, %v7655_v1 }
 0xda8   :  { %6190 = vmatprep.subr.mxu1 %v7655_v1 }
 0xda9   :  { %6191 = vmatpush3.msra.mxu1 %v7734_v3 }
 0xdaa   :  { %6192 = vmatprep.subr.mxu1 %v7655_v1 }
 0xdab   :  { %6193 = vmatpush3.msra.mxu1 %v7742_v4 }
 0xdac   :  { %6194 = vmatprep.subr.mxu1 %v7655_v1 }
 0xdad   :  { %6195 = vmatpush3.msra.mxu1 %v7751_v5 }
 0xdae   :  { %6196 = vmatprep.subr.mxu1 %v7655_v1 }
 0xdaf   :  { %6197 = vmatpush3.msra.mxu1 %v7760_v6 }
 0xdb0   :  { %6198 = vmatprep.subr.mxu1 %v7655_v1 }
 0xdb1   :  { %6199 = vmatpush3.msra.mxu1 %v7772_v8 }
 0xdb2   :  { %6218 = vmatprep.subr.mxu1 %v7655_v1 }
 0xe66   :  { %v693_v2 = vpop.f32.mrf.mxu1 }
 0xe67   :  { %v694_v3 = vadd.f32 %v7802_v10, %v693_v2 }
 0xe68   :  { %v6172_v52 = vpop.f32.mrf.mxu1 }
 0xe69   :  { %7256 = vtanh.f32 %v694_v3  ;;  %v5435_v53 = vmul.f32 -1.442695, %v694_v3  ;;  %v5439_v52 = vld [vmem:[%s9715_s0 + $0xe] sm:$0x3] }
 0xe6b   :  { %7258 = vpow2.f32 %v5435_v53 }
 0xe76   :  { %v7257_v4 = vpop.eup %7256 }
 0xe77   :  { %706 = vrot.lane.b32.xlu0 %v7257_v4, %s7657_s15 }
 0xe78   :  { %v7259_v5 = vpop.eup %7258 }
 0xe79   :  { %v700_v54 = vadd.f32 1.0, %v7259_v5  ;;  %v5453_v5 = vld [vmem:[%s9715_s0 + $0xc] sm:$0x3] }
 0xe7b   :  { %7260 = vrcp.f32 %v700_v54 }
 0xe88   :  { %v7261_v6 = vpop.eup %7260 }
 0xe89   :  { %v704_v8 = vmul.f32 %v7261_v6, %v605_v44 }
 0xee9   :  { %v707_v55 = vpop.permute.xlu0 %706 }
 0xeea   :  { %v709_v56 = vmul.f32 %v7261_v6, %v707_v55 }
 0xeec   :  { %711 = vrot.lane.b32.xlu1 %v709_v56, %s7658_s16 }
 0xf5e   :  { %v712_v57 = vpop.permute.xlu1 %711 }
 0xf5f   :  { %v7942_v58 = vadd.f32 %v712_v57, %v704_v8 }
 0xf61   :  { %7262 = vtanh.f32 %v7942_v58 }
 0xf6e   :  { %v7263_v59 = vpop.eup %7262 }
 0xf6f   :  { %717 = vrot.lane.b32.xlu0 %v7263_v59, %s7657_s15 }
 0xfe1   :  { %v718_v60 = vpop.permute.xlu0 %717 }
 0xfe2   :  { %v7946_v61 = vmul.f32 %v7261_v6, %v718_v60 }
 0xfe4   :  { %729 = vrot.lane.b32.xlu1 %v7946_v61, %s7659_s17 }
0x1056   :  { %v730_v63 = vpop.permute.xlu1 %729 }
0x1057   :  { %v732_v9 = vsel %vm70_vm1, %v5436_v62, %v730_v63 }
0x1058   :  { %6186 = vmatmul.mubr.msk.f32.vlgmr.msra.gmra.mxu0 %vm78_vm2, %v732_v9 }
0x1059   :  { %6204 = vmatpush3.msra.mxu0 %v7956_v7  ;;  %6215 = vmatprep.mubr.msk.f32.mxu0 %vm7656_vm0, %v7655_v1 }
0x105a   :  { %6205 = vmatprep.subr.mxu0 %v7655_v1 }
0x105b   :  { %6206 = vmatpush3.msra.mxu0 %v7963_v11 }
0x105c   :  { %6207 = vmatprep.subr.mxu0 %v7655_v1 }
0x105d   :  { %6208 = vmatpush3.msra.mxu0 %v7972_v12 }
0x105e   :  { %6209 = vmatprep.subr.mxu0 %v7655_v1 }
0x105f   :  { %6210 = vmatpush3.msra.mxu0 %v7979_v13 }
0x1060   :  { %6211 = vmatprep.subr.mxu0 %v7655_v1 }
0x1061   :  { %6212 = vmatpush3.msra.mxu0 %v7986_v14 }
0x1062   :  { %6213 = vmatprep.subr.mxu0 %v7655_v1 }
0x1063   :  { %6214 = vmatpush3.msra.mxu0 %v7996_v16 }
0x1064   :  { %6216 = vmatmul.mubr.msk.f32.vlgmr.msra.gmra.mxu0 %vm78_vm2, %v955_v17  ;;  %6233 = vmatprep.subr.mxu0 %v7655_v1 }
0x1065   :  { %6234 = vmatpush3.msra.mxu0 %v7956_v7  ;;  %6245 = vmatprep.mubr.msk.f32.mxu0 %vm7656_vm0, %v7655_v1 }
0x1066   :  { %6235 = vmatprep.subr.mxu0 %v7655_v1 }
0x1067   :  { %6236 = vmatpush3.msra.mxu0 %v7963_v11 }
0x1068   :  { %6237 = vmatprep.subr.mxu0 %v7655_v1 }
0x1069   :  { %6238 = vmatpush3.msra.mxu0 %v7972_v12 }
0x106a   :  { %6239 = vmatprep.subr.mxu0 %v7655_v1 }
0x106b   :  { %6240 = vmatpush3.msra.mxu0 %v7979_v13 }
0x106c   :  { %6241 = vmatprep.subr.mxu0 %v7655_v1 }
0x106d   :  { %6242 = vmatpush3.msra.mxu0 %v7986_v14 }
0x106e   :  { %6243 = vmatprep.subr.mxu0 %v7655_v1 }
0x106f   :  { %6244 = vmatpush3.msra.mxu0 %v7996_v16 }
0x1070   :  { %6263 = vmatprep.subr.mxu0 %v7655_v1 }
0x1118   :  { %v802_v18 = vpop.f32.mrf.mxu0 }
0x1119   :  { %v803_v19 = vadd.f32 %v7802_v10, %v802_v18 }
0x111a   :  { %v6187_v20 = vpop.f32.mrf.mxu0 }
0x111b   :  { %7264 = vtanh.f32 %v803_v19  ;;  %v5438_v29 = vmul.f32 -1.442695, %v803_v19 }
0x1124   :  { %v1031_v22 = vpop.f32.mrf.mxu0 }
0x1125   :  { %v1032_v23 = vadd.f32 %v8022_v21, %v1031_v22 }
0x1126   :  { %v6217_v24 = vpop.f32.mrf.mxu0 }
0x1127   :  { %7266 = vtanh.f32 %v1032_v23  ;;  %v5452_v10 = vmul.f32 -1.442695, %v1032_v23 }
0x1128   :  { %v7265_v25 = vpop.eup %7264  ;;  %7268 = vpow2.f32 %v5438_v29 }
0x1129   :  { %815 = vrot.lane.b32.xlu0 %v7265_v25, %s7657_s15  ;;  %7270 = vpow2.f32 %v5452_v10  ;;  %v5456_v25 = vld [vmem:[%s9715_s0 + $0xa] sm:$0x3] }
0x1134   :  { %v7267_v27 = vpop.eup %7266 }
0x1135   :  { %1044 = vrot.lane.b32.xlu1 %v7267_v27, %s7657_s15  ;;  %v7269_v30 = vpop.eup %7268 }
0x1136   :  { %v809_v31 = vadd.f32 1.0, %v7269_v30  ;;  %v7271_v32 = vpop.eup %7270 }
0x1137   :  { %v1038_v33 = vadd.f32 1.0, %v7271_v32 }
0x1138   :  { %7272 = vrcp.f32 %v809_v31 }
0x1139   :  { %7274 = vrcp.f32 %v1038_v33 }
0x1145   :  { %v7273_v34 = vpop.eup %7272 }
0x1146   :  { %v7275_v37 = vpop.eup %7274  ;;  %v813_v40 = vmul.f32 %v7273_v34, %v7942_v58 }
0x1147   :  { %v1042_v43 = vmul.f32 0.0, %v7275_v37 }
0x119b   :  { %v816_v35 = vpop.permute.xlu0 %815 }
0x119c   :  { %v818_v36 = vmul.f32 %v7273_v34, %v816_v35 }
0x119e   :  { %820 = vrot.lane.b32.xlu0 %v818_v36, %s7658_s16 }
0x11a7   :  { %v1045_v38 = vpop.permute.xlu1 %1044 }
0x11a8   :  { %v1047_v39 = vmul.f32 %v7275_v37, %v1045_v38 }
0x11aa   :  { %1049 = vrot.lane.b32.xlu1 %v1047_v39, %s7658_s16 }
0x1210   :  { %v821_v41 = vpop.permute.xlu0 %820 }
0x1211   :  { %v8030_v42 = vadd.f32 %v821_v41, %v813_v40 }
0x1213   :  { %7276 = vtanh.f32 %v8030_v42 }
0x121c   :  { %v1050_v44 = vpop.permute.xlu1 %1049 }
0x121d   :  { %v8033_v46 = vadd.f32 %v1050_v44, %v1042_v43 }
0x121f   :  { %7278 = vtanh.f32 %v8033_v46 }
0x1220   :  { %v7277_v47 = vpop.eup %7276 }
0x1221   :  { %826 = vrot.lane.b32.xlu0 %v7277_v47, %s7657_s15  ;;  %v5459_v47 = vld [vmem:[%s9715_s0 + $0x8] sm:$0x3] }
0x122c   :  { %v7279_v49 = vpop.eup %7278 }
0x122d   :  { %1055 = vrot.lane.b32.xlu1 %v7279_v49, %s7657_s15 }
0x1293   :  { %v827_v50 = vpop.permute.xlu0 %826 }
0x1294   :  { %v8038_v51 = vmul.f32 %v7273_v34, %v827_v50 }
0x1296   :  { %838 = vrot.lane.b32.xlu0 %v8038_v51, %s7659_s17 }
0x129f   :  { %v1056_v2 = vpop.permute.xlu1 %1055 }
0x12a0   :  { %v8042_v3 = vmul.f32 %v7275_v37, %v1056_v2 }
0x12a2   :  { %1066 = vrot.lane.b32.xlu1 %v8042_v3, %s7659_s17 }
0x1308   :  { %v839_v4 = vpop.permute.xlu0 %838 }
0x1309   :  { %v841_v53 = vsel %vm70_vm1, %v5439_v52, %v839_v4 }
0x130a   :  { %6201 = vmatmul.mubr.msk.f32.vlgmr.msra.gmra.mxu1 %vm78_vm2, %v841_v53 }
0x130b   :  { %6219 = vmatpush3.msra.mxu1 %v7956_v7  ;;  %6230 = vmatprep.mubr.msk.f32.mxu1 %vm7656_vm0, %v7655_v1 }
0x130c   :  { %6220 = vmatprep.subr.mxu1 %v7655_v1 }
0x130d   :  { %6221 = vmatpush3.msra.mxu1 %v7963_v11 }
0x130e   :  { %6222 = vmatprep.subr.mxu1 %v7655_v1 }
0x130f   :  { %6223 = vmatpush3.msra.mxu1 %v7972_v12 }
0x1310   :  { %6224 = vmatprep.subr.mxu1 %v7655_v1 }
0x1311   :  { %6225 = vmatpush3.msra.mxu1 %v7979_v13 }
0x1312   :  { %6226 = vmatprep.subr.mxu1 %v7655_v1 }
0x1313   :  { %6227 = vmatpush3.msra.mxu1 %v7986_v14 }
0x1314   :  { %6228 = vmatprep.subr.mxu1 %v7655_v1  ;;  %v1067_v54 = vpop.permute.xlu1 %1066 }
0x1315   :  { %v1069_v6 = vsel %vm70_vm1, %v5453_v5, %v1067_v54  ;;  %6229 = vmatpush3.msra.mxu1 %v7996_v16 }
0x1316   :  { %6231 = vmatmul.mubr.msk.f32.vlgmr.msra.gmra.mxu1 %vm78_vm2, %v1069_v6  ;;  %6248 = vmatprep.subr.mxu1 %v7655_v1 }
0x1317   :  { %6249 = vmatpush3.msra.mxu1 %v7956_v7  ;;  %6260 = vmatprep.mubr.msk.f32.mxu1 %vm7656_vm0, %v7655_v1 }
0x1318   :  { %6250 = vmatprep.subr.mxu1 %v7655_v1 }
0x1319   :  { %6251 = vmatpush3.msra.mxu1 %v7963_v11 }
0x131a   :  { %6252 = vmatprep.subr.mxu1 %v7655_v1 }
0x131b   :  { %6253 = vmatpush3.msra.mxu1 %v7972_v12 }
0x131c   :  { %6254 = vmatprep.subr.mxu1 %v7655_v1 }
0x131d   :  { %6255 = vmatpush3.msra.mxu1 %v7979_v13 }
0x131e   :  { %6256 = vmatprep.subr.mxu1 %v7655_v1 }
0x131f   :  { %6257 = vmatpush3.msra.mxu1 %v7986_v14 }
0x1320   :  { %6258 = vmatprep.subr.mxu1 %v7655_v1 }
0x1321   :  { %6259 = vmatpush3.msra.mxu1 %v7996_v16 }
0x1322   :  { %6278 = vmatprep.subr.mxu1 %v7655_v1 }
0x13ca   :  { %v8084_v55 = vpop.f32.mrf.mxu1 }
0x13cc   :  { %v6202_v56 = vpop.f32.mrf.mxu1 }
0x13d6   :  { %v1139_v8 = vpop.f32.mrf.mxu1 }
0x13d7   :  { %v1140_v57 = vadd.f32 %v8022_v21, %v1139_v8 }
0x13d8   :  { %v6232_v58 = vpop.f32.mrf.mxu1 }
0x13d9   :  { %7280 = vtanh.f32 %v1140_v57  ;;  %v5455_v60 = vmul.f32 -1.442695, %v1140_v57 }
0x13db   :  { %7282 = vpow2.f32 %v5455_v60 }
0x13e6   :  { %v7281_v59 = vpop.eup %7280 }
0x13e7   :  { %1152 = vrot.lane.b32.xlu0 %v7281_v59, %s7657_s15 }
0x13e8   :  { %v7283_v62 = vpop.eup %7282 }
0x13e9   :  { %v1146_v63 = vadd.f32 1.0, %v7283_v62 }
0x13eb   :  { %7284 = vrcp.f32 %v1146_v63 }
0x13f8   :  { %v7285_v9 = vpop.eup %7284 }
0x13f9   :  { %v1150_v18 = vmul.f32 %v7285_v9, %v8033_v46 }
0x1459   :  { %v1153_v15 = vpop.permute.xlu0 %1152 }
0x145a   :  { %v1155_v17 = vmul.f32 %v7285_v9, %v1153_v15  ;;  %v5462_v15 = vld [vmem:[%s9715_s0 + $0x6] sm:$0x3] }
0x145c   :  { %1157 = vrot.lane.b32.xlu1 %v1155_v17, %s7658_s16 }
0x14ce   :  { %v1158_v19 = vpop.permute.xlu1 %1157 }
0x14cf   :  { %v1160_v20 = vadd.f32 %v1158_v19, %v1150_v18 }
0x14d1   :  { %7286 = vtanh.f32 %v1160_v20 }
0x14de   :  { %v7287_v22 = vpop.eup %7286 }
0x14df   :  { %1163 = vrot.lane.b32.xlu0 %v7287_v22, %s7657_s15 }
0x1551   :  { %v1164_v23 = vpop.permute.xlu0 %1163 }
0x1552   :  { %v8091_v24 = vmul.f32 %v7285_v9, %v1164_v23 }
0x1554   :  { %1173 = vrot.lane.b32.xlu1 %v8091_v24, %s7659_s17 }
0x15c6   :  { %v1174_v27 = vpop.permute.xlu1 %1173 }
0x15c7   :  { %v1176_v29 = vsel %vm70_vm1, %v5456_v25, %v1174_v27 }
0x15c8   :  { %6246 = vmatmul.mubr.msk.f32.vlgmr.msra.gmra.mxu0 %vm78_vm2, %v1176_v29 }
0x15c9   :  { %6264 = vmatpush3.msra.mxu0 %v7956_v7  ;;  %6275 = vmatprep.mubr.msk.f32.mxu0 %vm7656_vm0, %v7655_v1 }
0x15ca   :  { %6265 = vmatprep.subr.mxu0 %v7655_v1 }
0x15cb   :  { %6266 = vmatpush3.msra.mxu0 %v7963_v11 }
0x15cc   :  { %6267 = vmatprep.subr.mxu0 %v7655_v1 }
0x15cd   :  { %6268 = vmatpush3.msra.mxu0 %v7972_v12 }
0x15ce   :  { %6269 = vmatprep.subr.mxu0 %v7655_v1 }
0x15cf   :  { %6270 = vmatpush3.msra.mxu0 %v7979_v13 }
0x15d0   :  { %6271 = vmatprep.subr.mxu0 %v7655_v1 }
0x15d1   :  { %6272 = vmatpush3.msra.mxu0 %v7986_v14 }
0x15d2   :  { %6273 = vmatprep.subr.mxu0 %v7655_v1 }
0x15d3   :  { %6274 = vmatpush3.msra.mxu0 %v7996_v16 }
0x15d4   :  { %6293 = vmatprep.subr.mxu0 %v7655_v1 }
0x1688   :  { %v1246_v10 = vpop.f32.mrf.mxu0 }
0x1689   :  { %v1247_v30 = vadd.f32 %v8022_v21, %v1246_v10 }
0x168a   :  { %v6247_v31 = vpop.f32.mrf.mxu0 }
0x168b   :  { %7288 = vtanh.f32 %v1247_v30  ;;  %v5458_v33 = vmul.f32 -1.442695, %v1247_v30 }
0x168d   :  { %7290 = vpow2.f32 %v5458_v33 }
0x1698   :  { %v7289_v32 = vpop.eup %7288 }
0x1699   :  { %1259 = vrot.lane.b32.xlu0 %v7289_v32, %s7657_s15 }
0x169a   :  { %v7291_v34 = vpop.eup %7290 }
0x169b   :  { %v1253_v35 = vadd.f32 1.0, %v7291_v34 }
0x169d   :  { %7292 = vrcp.f32 %v1253_v35 }
0x16aa   :  { %v7293_v36 = vpop.eup %7292 }
0x16ab   :  { %v1257_v39 = vmul.f32 %v7293_v36, %v1160_v20 }
0x170b   :  { %v1260_v37 = vpop.permute.xlu0 %1259 }
0x170c   :  { %v1262_v38 = vmul.f32 %v7293_v36, %v1260_v37 }
0x170e   :  { %1264 = vrot.lane.b32.xlu1 %v1262_v38, %s7658_s16  ;;  %v5465_v38 = vld [vmem:[%s9715_s0 + $0x4] sm:$0x3] }
0x1780   :  { %v1265_v40 = vpop.permute.xlu1 %1264 }
0x1781   :  { %v1267_v41 = vadd.f32 %v1265_v40, %v1257_v39 }
0x1783   :  { %7294 = vtanh.f32 %v1267_v41 }
0x1790   :  { %v7295_v43 = vpop.eup %7294 }
0x1791   :  { %1270 = vrot.lane.b32.xlu0 %v7295_v43, %s7657_s15 }
0x1803   :  { %v1271_v44 = vpop.permute.xlu0 %1270 }
0x1804   :  { %v8118_v46 = vmul.f32 %v7293_v36, %v1271_v44 }
0x1806   :  { %1280 = vrot.lane.b32.xlu1 %v8118_v46, %s7659_s17 }
0x1878   :  { %v1281_v49 = vpop.permute.xlu1 %1280 }
0x1879   :  { %v1283_v50 = vsel %vm70_vm1, %v5459_v47, %v1281_v49 }
0x187a   :  { %6261 = vmatmul.mubr.msk.f32.vlgmr.msra.gmra.mxu1 %vm78_vm2, %v1283_v50 }
0x187b   :  { %6279 = vmatpush3.msra.mxu1 %v7956_v7  ;;  %6290 = vmatprep.mubr.msk.f32.mxu1 %vm7656_vm0, %v7655_v1 }
0x187c   :  { %6280 = vmatprep.subr.mxu1 %v7655_v1 }
0x187d   :  { %6281 = vmatpush3.msra.mxu1 %v7963_v11 }
0x187e   :  { %6282 = vmatprep.subr.mxu1 %v7655_v1 }
0x187f   :  { %6283 = vmatpush3.msra.mxu1 %v7972_v12 }
0x1880   :  { %6284 = vmatprep.subr.mxu1 %v7655_v1 }
0x1881   :  { %6285 = vmatpush3.msra.mxu1 %v7979_v13 }
0x1882   :  { %6286 = vmatprep.subr.mxu1 %v7655_v1 }
0x1883   :  { %6287 = vmatpush3.msra.mxu1 %v7986_v14 }
0x1884   :  { %6288 = vmatprep.subr.mxu1 %v7655_v1 }
0x1885   :  { %6289 = vmatpush3.msra.mxu1 %v7996_v16 }
0x1886   :  { %6308 = vmatprep.subr.mxu1 %v7655_v1 }
0x193a   :  { %v1353_v2 = vpop.f32.mrf.mxu1 }
0x193b   :  { %v1354_v52 = vadd.f32 %v8022_v21, %v1353_v2 }
0x193c   :  { %v6262_v4 = vpop.f32.mrf.mxu1 }
0x193d   :  { %7296 = vtanh.f32 %v1354_v52  ;;  %v5461_v5 = vmul.f32 -1.442695, %v1354_v52 }
0x193f   :  { %7298 = vpow2.f32 %v5461_v5  ;;  %v5468_v5 = vld [vmem:[%s9715_s0 + $0x2] sm:$0x3] }
0x194a   :  { %v7297_v53 = vpop.eup %7296 }
0x194b   :  { %1366 = vrot.lane.b32.xlu0 %v7297_v53, %s7657_s15 }
0x194c   :  { %v7299_v54 = vpop.eup %7298 }
0x194d   :  { %v1360_v6 = vadd.f32 1.0, %v7299_v54 }
0x194f   :  { %7300 = vrcp.f32 %v1360_v6 }
0x195c   :  { %v7301_v56 = vpop.eup %7300 }
0x195d   :  { %v1364_v58 = vmul.f32 %v7301_v56, %v1267_v41 }
0x19bd   :  { %v1367_v8 = vpop.permute.xlu0 %1366 }
0x19be   :  { %v1369_v57 = vmul.f32 %v7301_v56, %v1367_v8 }
0x19c0   :  { %1371 = vrot.lane.b32.xlu1 %v1369_v57, %s7658_s16 }
0x1a32   :  { %v1372_v59 = vpop.permute.xlu1 %1371 }
0x1a33   :  { %v1374_v60 = vadd.f32 %v1372_v59, %v1364_v58 }
0x1a35   :  { %7302 = vtanh.f32 %v1374_v60 }
0x1a42   :  { %v7303_v62 = vpop.eup %7302 }
0x1a43   :  { %1377 = vrot.lane.b32.xlu0 %v7303_v62, %s7657_s15 }
0x1ab5   :  { %v1378_v63 = vpop.permute.xlu0 %1377 }
0x1ab6   :  { %v8145_v9 = vmul.f32 %v7301_v56, %v1378_v63 }
0x1ab8   :  { %1387 = vrot.lane.b32.xlu1 %v8145_v9, %s7659_s17 }
0x1b2a   :  { %v1388_v17 = vpop.permute.xlu1 %1387 }
0x1b2b   :  { %v1390_v18 = vsel %vm70_vm1, %v5462_v15, %v1388_v17 }
0x1b2c   :  { %6276 = vmatmul.mubr.msk.f32.vlgmr.msra.gmra.mxu0 %vm78_vm2, %v1390_v18 }
0x1b2d   :  { %6294 = vmatpush3.msra.mxu0 %v7956_v7  ;;  %6305 = vmatprep.mubr.msk.f32.mxu0 %vm7656_vm0, %v7655_v1 }
0x1b2e   :  { %6295 = vmatprep.subr.mxu0 %v7655_v1 }
0x1b2f   :  { %6296 = vmatpush3.msra.mxu0 %v7963_v11 }
0x1b30   :  { %6297 = vmatprep.subr.mxu0 %v7655_v1 }
0x1b31   :  { %6298 = vmatpush3.msra.mxu0 %v7972_v12 }
0x1b32   :  { %6299 = vmatprep.subr.mxu0 %v7655_v1 }
0x1b33   :  { %6300 = vmatpush3.msra.mxu0 %v7979_v13 }
0x1b34   :  { %6301 = vmatprep.subr.mxu0 %v7655_v1 }
0x1b35   :  { %6302 = vmatpush3.msra.mxu0 %v7986_v14 }
0x1b36   :  { %6303 = vmatprep.subr.mxu0 %v7655_v1 }
0x1b37   :  { %6304 = vmatpush3.msra.mxu0 %v7996_v16 }
0x1b38   :  { %6323 = vmatprep.subr.mxu0 %v7655_v1 }
0x1bec   :  { %v1460_v19 = vpop.f32.mrf.mxu0 }
0x1bed   :  { %v1461_v20 = vadd.f32 %v8022_v21, %v1460_v19 }
0x1bee   :  { %v6277_v22 = vpop.f32.mrf.mxu0 }
0x1bef   :  { %7304 = vtanh.f32 %v1461_v20  ;;  %v5464_v25 = vmul.f32 -1.442695, %v1461_v20 }
0x1bf1   :  { %7306 = vpow2.f32 %v5464_v25 }
0x1bfc   :  { %v7305_v23 = vpop.eup %7304 }
0x1bfd   :  { %1473 = vrot.lane.b32.xlu0 %v7305_v23, %s7657_s15 }
0x1bfe   :  { %v7307_v27 = vpop.eup %7306 }
0x1bff   :  { %v1467_v29 = vadd.f32 1.0, %v7307_v27  ;;  %v1707_v27 = vld [vmem:[%s9715_s0] sm:$0x3] }
0x1c01   :  { %7308 = vrcp.f32 %v1467_v29 }
0x1c0e   :  { %v7309_v10 = vpop.eup %7308 }
0x1c0f   :  { %v1471_v32 = vmul.f32 %v7309_v10, %v1374_v60 }
0x1c6f   :  { %v1474_v30 = vpop.permute.xlu0 %1473 }
0x1c70   :  { %v1476_v31 = vmul.f32 %v7309_v10, %v1474_v30 }
0x1c72   :  { %1478 = vrot.lane.b32.xlu1 %v1476_v31, %s7658_s16 }
0x1ce4   :  { %v1479_v33 = vpop.permute.xlu1 %1478 }
0x1ce5   :  { %v1481_v34 = vadd.f32 %v1479_v33, %v1471_v32 }
0x1ce7   :  { %7310 = vtanh.f32 %v1481_v34 }
0x1cf4   :  { %v7311_v35 = vpop.eup %7310 }
0x1cf5   :  { %1484 = vrot.lane.b32.xlu0 %v7311_v35, %s7657_s15 }
0x1d67   :  { %v1485_v36 = vpop.permute.xlu0 %1484 }
0x1d68   :  { %v8172_v37 = vmul.f32 %v7309_v10, %v1485_v36 }
0x1d6a   :  { %1494 = vrot.lane.b32.xlu1 %v8172_v37, %s7659_s17 }
0x1ddc   :  { %v1495_v39 = vpop.permute.xlu1 %1494 }
0x1ddd   :  { %v1497_v40 = vsel %vm70_vm1, %v5465_v38, %v1495_v39 }
0x1dde   :  { %6291 = vmatmul.mubr.msk.f32.vlgmr.msra.gmra.mxu1 %vm78_vm2, %v1497_v40 }
0x1ddf   :  { %6309 = vmatpush3.msra.mxu1 %v7956_v7  ;;  %6320 = vmatprep.mubr.msk.f32.mxu1 %vm7656_vm0, %v7655_v1 }
0x1de0   :  { %6310 = vmatprep.subr.mxu1 %v7655_v1 }
0x1de1   :  { %6311 = vmatpush3.msra.mxu1 %v7963_v11 }
0x1de2   :  { %6312 = vmatprep.subr.mxu1 %v7655_v1 }
0x1de3   :  { %6313 = vmatpush3.msra.mxu1 %v7972_v12 }
0x1de4   :  { %6314 = vmatprep.subr.mxu1 %v7655_v1 }
0x1de5   :  { %6315 = vmatpush3.msra.mxu1 %v7979_v13 }
0x1de6   :  { %6316 = vmatprep.subr.mxu1 %v7655_v1 }
0x1de7   :  { %6317 = vmatpush3.msra.mxu1 %v7986_v14 }
0x1de8   :  { %6318 = vmatprep.subr.mxu1 %v7655_v1 }
0x1de9   :  { %6319 = vmatpush3.msra.mxu1 %v7996_v16 }
0x1dea   :  { %6350 = vmatprep.subr.mxu1 %v7655_v1 }
0x1e9e   :  { %v1567_v7 = vpop.f32.mrf.mxu1 }
0x1e9f   :  { %v1568_v11 = vadd.f32 %v8022_v21, %v1567_v7 }
0x1ea0   :  { %v6292_v41 = vpop.f32.mrf.mxu1 }
0x1ea1   :  { %7312 = vtanh.f32 %v1568_v11  ;;  %v5467_v43 = vmul.f32 -1.442695, %v1568_v11 }
0x1ea3   :  { %7314 = vpow2.f32 %v5467_v43  ;;  %v8237_v43 = vld [vmem:[#allocation5 + $0x50] sm:$0xff] }
0x1eae   :  { %v7313_v12 = vpop.eup %7312 }
0x1eaf   :  { %1580 = vrot.lane.b32.xlu0 %v7313_v12, %s7657_s15  ;;  %v8235_v12 = vld [vmem:[#allocation5 + $0x58] sm:$0xff] }
0x1eb0   :  { %v7315_v13 = vpop.eup %7314 }
0x1eb1   :  { %v1574_v44 = vadd.f32 1.0, %v7315_v13  ;;  %v8248_v13 = vld [vmem:[#allocation5 + $0x40] sm:$0xff] }
0x1eb3   :  { %7316 = vrcp.f32 %v1574_v44  ;;  %v8254_v44 = vld [vmem:[#allocation5 + $0x38] sm:$0xff] }
0x1ec0   :  { %v7317_v14 = vpop.eup %7316 }
0x1ec1   :  { %v1578_v16 = vmul.f32 %v7317_v14, %v1481_v34 }
0x1f21   :  { %v1581_v47 = vpop.permute.xlu0 %1580 }
0x1f22   :  { %v1583_v49 = vmul.f32 %v7317_v14, %v1581_v47 }
0x1f24   :  { %1585 = vrot.lane.b32.xlu1 %v1583_v49, %s7658_s16  ;;  %v8266_v49 = vld [vmem:[#allocation5 + $0x28] sm:$0xff] }
0x1f96   :  { %v1586_v50 = vpop.permute.xlu1 %1585 }
0x1f97   :  { %v1588_v2 = vadd.f32 %v1586_v50, %v1578_v16  ;;  %v8278_v16 = vld [vmem:[#allocation5 + $0x20] sm:$0xff]  ;;  %v8281_v50 = vld [vmem:[#allocation5 + $0x18] sm:$0xff] }
0x1f99   :  { %7318 = vtanh.f32 %v1588_v2 }
0x1fa6   :  { %v7319_v52 = vpop.eup %7318 }
0x1fa7   :  { %1591 = vrot.lane.b32.xlu0 %v7319_v52, %s7657_s15  ;;  %v8291_v52 = vld [vmem:[#allocation5 + $0x8] sm:$0xff] }
0x2019   :  { %v1592_v4 = vpop.permute.xlu0 %1591 }
0x201a   :  { %v8199_v53 = vmul.f32 %v7317_v14, %v1592_v4  ;;  %v8260_v14 = vld [vmem:[#allocation5 + $0x30] sm:$0xff]  ;;  %v8297_v4 = vld [vmem:[#allocation5] sm:$0xff] }
0x201c   :  { %1601 = vrot.lane.b32.xlu1 %v8199_v53, %s7659_s17 }
0x208e   :  { %v1602_v54 = vpop.permute.xlu1 %1601 }
0x208f   :  { %v1604_v6 = vsel %vm70_vm1, %v5468_v5, %v1602_v54 }
0x2090   :  { %6306 = vmatmul.mubr.msk.f32.vlgmr.msra.gmra.mxu0 %vm78_vm2, %v1604_v6 }
0x2091   :  { %6347 = vmatprep.mubr.msk.f32.mxu0 %vm7656_vm0, %v7655_v1  ;;  %6324 = vmatpush3.msra.mxu0 %v8235_v12 }
0x2092   :  { %6325 = vmatprep.subr.mxu0 %v7655_v1 }
0x2093   :  { %6326 = vmatpush3.msra.mxu0 %v8237_v43 }
0x2094   :  { %6327 = vmatprep.subr.mxu0 %v7655_v1 }
0x2150   :  { %v1674_v56 = vpop.f32.mrf.mxu0 }
0x2151   :  { %v1675_v8 = vadd.f32 %v8022_v21, %v1674_v56 }
0x2152   :  { %v6307_v57 = vpop.f32.mrf.mxu0 }
0x2153   :  { %7320 = vtanh.f32 %v1675_v8  ;;  %v5470_v59 = vmul.f32 -1.442695, %v1675_v8  ;;  %v8342_v57 = vld [vmem:[%s9720_s5] ss:$0 sm:$0xff] }
0x2155   :  { %7322 = vpow2.f32 %v5470_v59 }
0x2160   :  { %v7321_v58 = vpop.eup %7320 }
0x2161   :  { %1687 = vrot.lane.b32.xlu0 %v7321_v58, %s7657_s15 }
0x2162   :  { %v7323_v60 = vpop.eup %7322 }
0x2163   :  { %v1681_v62 = vadd.f32 1.0, %v7323_v60 }
0x2165   :  { %7324 = vrcp.f32 %v1681_v62 }
0x2172   :  { %v7325_v63 = vpop.eup %7324 }
0x2173   :  { %v1685_v18 = vmul.f32 %v7325_v63, %v1588_v2  ;;  %v8285_v2 = vld [vmem:[#allocation5 + $0x10] sm:$0xff] }
0x21d3   :  { %v1688_v15 = vpop.permute.xlu0 %1687 }
0x21d4   :  { %v1690_v17 = vmul.f32 %v7325_v63, %v1688_v15 }
0x21d6   :  { %1692 = vrot.lane.b32.xlu1 %v1690_v17, %s7658_s16 }
0x2248   :  { %v1693_v19 = vpop.permute.xlu1 %1692 }
0x2249   :  { %v1695_v20 = vadd.f32 %v1693_v19, %v1685_v18 }
0x224b   :  { %7326 = vtanh.f32 %v1695_v20 }
0x2258   :  { %v7327_v22 = vpop.eup %7326 }
0x2259   :  { %1698 = vrot.lane.b32.xlu0 %v7327_v22, %s7657_s15 }
0x22cb   :  { %v1699_v23 = vpop.permute.xlu0 %1698 }
0x22cc   :  { %v8214_v25 = vmul.f32 %v7325_v63, %v1699_v23 }
0x22ce   :  { %1708 = vrot.lane.b32.xlu1 %v8214_v25, %s7659_s17 }
0x2340   :  { %v1709_v29 = vpop.permute.xlu1 %1708 }
0x2341   :  { %v1711_v10 = vsel %vm70_vm1, %v1707_v27, %v1709_v29 }
0x2342   :  { %6321 = vmatmul.mubr.msk.f32.vlgmr.msra.gmra.mxu1 %vm78_vm2, %v1711_v10 }
0x2343   :  { %6374 = vmatprep.mubr.msk.f32.mxu1 %vm7656_vm0, %v7655_v1  ;;  %6351 = vmatpush3.msra.mxu1 %v8235_v12 }
0x2344   :  { %6352 = vmatprep.subr.mxu1 %v7655_v1 }
0x2345   :  { %6353 = vmatpush3.msra.mxu1 %v8237_v43 }
0x2346   :  { %6354 = vmatprep.subr.mxu1 %v7655_v1 }
0x2402   :  { %v1781_v30 = vpop.f32.mrf.mxu1 }
0x2403   :  { %v1782_v31 = vadd.f32 %v8022_v21, %v1781_v30 }
0x2404   :  { %v6322_v32 = vpop.f32.mrf.mxu1 }
0x2405   :  { %7328 = vtanh.f32 %v1782_v31  ;;  %v5472_v34 = vmul.f32 -1.442695, %v1782_v31 }
0x2407   :  { %7330 = vpow2.f32 %v5472_v34 }
0x2412   :  { %v7329_v33 = vpop.eup %7328 }
0x2413   :  { %1794 = vrot.lane.b32.xlu0 %v7329_v33, %s7657_s15 }
0x2414   :  { %v7331_v35 = vpop.eup %7330 }
0x2415   :  { %v1788_v36 = vadd.f32 1.0, %v7331_v35 }
0x2417   :  { %7332 = vrcp.f32 %v1788_v36 }
0x2424   :  { %v8227_v38 = vpop.eup %7332 }
0x2425   :  { %v1792_v21 = vmul.f32 %v8227_v38, %v1695_v20 }
0x2485   :  { %v1795_v39 = vpop.permute.xlu0 %1794 }
0x2486   :  { %v1797_v40 = vmul.f32 %v8227_v38, %v1795_v39 }
0x2488   :  { %1799 = vrot.lane.b32.xlu1 %v1797_v40, %s7658_s16 }
0x248c   :  { %177 = vrot.lane.b32.xlu1 %v7808_v26, %s7658_s16  ;;  %v8242_v26 = vld [vmem:[#allocation5 + $0x48] sm:$0xff] }
0x248d   :  { %6328 = vmatpush3.msra.mxu0 %v8242_v26  ;;  %6355 = vmatpush3.msra.mxu1 %v8242_v26 }
0x248e   :  { %6329 = vmatprep.subr.mxu0 %v7655_v1  ;;  %6356 = vmatprep.subr.mxu1 %v7655_v1 }
0x248f   :  { %6330 = vmatpush3.msra.mxu0 %v8248_v13  ;;  %6357 = vmatpush3.msra.mxu1 %v8248_v13 }
0x2490   :  { %6331 = vmatprep.subr.mxu0 %v7655_v1  ;;  %6358 = vmatprep.subr.mxu1 %v7655_v1 }
0x2491   :  { %6332 = vmatpush3.msra.mxu0 %v8254_v44  ;;  %6359 = vmatpush3.msra.mxu1 %v8254_v44 }
0x2492   :  { %6333 = vmatprep.subr.mxu0 %v7655_v1  ;;  %6360 = vmatprep.subr.mxu1 %v7655_v1 }
0x2493   :  { %6334 = vmatpush3.msra.mxu0 %v8260_v14  ;;  %6361 = vmatpush3.msra.mxu1 %v8260_v14 }
0x2494   :  { %6335 = vmatprep.subr.mxu0 %v7655_v1  ;;  %6362 = vmatprep.subr.mxu1 %v7655_v1 }
0x2495   :  { %6336 = vmatpush3.msra.mxu0 %v8266_v49  ;;  %6363 = vmatpush3.msra.mxu1 %v8266_v49 }
0x2496   :  { %6337 = vmatprep.subr.mxu0 %v7655_v1  ;;  %6364 = vmatprep.subr.mxu1 %v7655_v1 }
0x2497   :  { %6338 = vmatpush3.msra.mxu0 %v8278_v16  ;;  %6365 = vmatpush3.msra.mxu1 %v8278_v16 }
0x2498   :  { %6339 = vmatprep.subr.mxu0 %v7655_v1  ;;  %6366 = vmatprep.subr.mxu1 %v7655_v1 }
0x2499   :  { %6340 = vmatpush3.msra.mxu0 %v8281_v50  ;;  %6367 = vmatpush3.msra.mxu1 %v8281_v50 }
0x249a   :  { %6341 = vmatprep.subr.mxu0 %v7655_v1  ;;  %6368 = vmatprep.subr.mxu1 %v7655_v1 }
0x249b   :  { %6342 = vmatpush3.msra.mxu0 %v8285_v2  ;;  %6369 = vmatpush3.msra.mxu1 %v8285_v2 }
0x249c   :  { %6343 = vmatprep.subr.mxu0 %v7655_v1  ;;  %6370 = vmatprep.subr.mxu1 %v7655_v1 }
0x249d   :  { %6344 = vmatpush3.msra.mxu0 %v8291_v52  ;;  %6371 = vmatpush3.msra.mxu1 %v8291_v52 }
0x249e   :  { %6345 = vmatprep.subr.mxu0 %v7655_v1  ;;  %6372 = vmatprep.subr.mxu1 %v7655_v1 }
0x249f   :  { %6346 = vmatpush3.msra.mxu0 %v8297_v4  ;;  %6373 = vmatpush3.msra.mxu1 %v8297_v4 }
0x24a0   :  { %6377 = vmatprep.subr.mxu0 %v7655_v1  ;;  %6404 = vmatprep.subr.mxu1 %v7655_v1 }
0x24fa   :  { %v1800_v7 = vpop.permute.xlu1 %1799 }
0x24fb   :  { %v1802_v11 = vadd.f32 %v1800_v7, %v1792_v21 }
0x24fd   :  { %7334 = vtanh.f32 %v1802_v11 }
0x24fe   :  { %v178_v41 = vpop.permute.xlu1 %177 }
0x24ff   :  { %181 = vst.msk [vmem:[#allocation2] sm:$0x3] %vm180_vm3, %v178_v41 }
0x250a   :  { %v7335_v47 = vpop.eup %7334 }
0x250b   :  { %1805 = vrot.lane.b32.xlu0 %v7335_v47, %s7657_s15 }
0x257d   :  { %v1806_v5 = vpop.permute.xlu0 %1805 }
0x257e   :  { %v1808_v54 = vmul.f32 %v8227_v38, %v1806_v5 }
0x2580   :  { %1810 = vrot.lane.b32.xlu0 %v1808_v54, %s7657_s15 }
0x25f2   :  { %v1811_v6 = vpop.permute.xlu0 %1810 }
0x25f3   :  { %1813 = vst.msk [vmem:[#allocation2] sm:$0x3] %vm1063_vm4, %v1811_v6 }
0x25fa   :  { %v1827_v56 = vld [vmem:[#allocation2] sm:$0x3] }
0x25fb   :  { %v1829_v8 = vsel %vm1828_vm5, %v1827_v56, 0.0 }
0x25fc   :  { %6348 = vmatmul.mubr.msk.f32.vlgmr.msra.gmra.mxu0 %vm1836_vm6, %v1829_v8 }
0x25fd   :  { %6378 = vmatpush3.msra.mxu0 %v8235_v12  ;;  %6401 = vmatprep.mubr.msk.f32.mxu0 %vm7656_vm0, %v7655_v1 }
0x25fe   :  { %6379 = vmatprep.subr.mxu0 %v7655_v1 }
0x25ff   :  { %6380 = vmatpush3.msra.mxu0 %v8237_v43 }
0x2600   :  { %6381 = vmatprep.subr.mxu0 %v7655_v1 }
0x2601   :  { %6382 = vmatpush3.msra.mxu0 %v8242_v26 }
0x2602   :  { %6383 = vmatprep.subr.mxu0 %v7655_v1 }
0x2603   :  { %6384 = vmatpush3.msra.mxu0 %v8248_v13 }
0x2604   :  { %6385 = vmatprep.subr.mxu0 %v7655_v1 }
0x2605   :  { %6386 = vmatpush3.msra.mxu0 %v8254_v44 }
0x2606   :  { %6387 = vmatprep.subr.mxu0 %v7655_v1 }
0x2607   :  { %6388 = vmatpush3.msra.mxu0 %v8260_v14 }
0x2608   :  { %6389 = vmatprep.subr.mxu0 %v7655_v1 }
0x2609   :  { %6390 = vmatpush3.msra.mxu0 %v8266_v49 }
0x260a   :  { %6391 = vmatprep.subr.mxu0 %v7655_v1 }
0x260b   :  { %6392 = vmatpush3.msra.mxu0 %v8278_v16 }
0x260c   :  { %6393 = vmatprep.subr.mxu0 %v7655_v1 }
0x260d   :  { %6394 = vmatpush3.msra.mxu0 %v8281_v50 }
0x260e   :  { %6395 = vmatprep.subr.mxu0 %v7655_v1 }
0x260f   :  { %6396 = vmatpush3.msra.mxu0 %v8285_v2 }
0x2610   :  { %6397 = vmatprep.subr.mxu0 %v7655_v1 }
0x2611   :  { %6398 = vmatpush3.msra.mxu0 %v8291_v52 }
0x2612   :  { %6399 = vmatprep.subr.mxu0 %v7655_v1 }
0x2613   :  { %6400 = vmatpush3.msra.mxu0 %v8297_v4 }
0x2614   :  { %6431 = vmatprep.subr.mxu0 %v7655_v1 }
0x26bc   :  { %v1906_v58 = vpop.f32.mrf.mxu0 }
0x26bd   :  { %v1907_v59 = vadd.f32 %v8342_v57, %v1906_v58 }
0x26be   :  { %v6349_v60 = vpop.f32.mrf.mxu0 }
0x26bf   :  { %7336 = vtanh.f32 %v1907_v59  ;;  %v5475_v63 = vmul.f32 -1.442695, %v1907_v59 }
0x26c1   :  { %7338 = vpow2.f32 %v5475_v63 }
0x26cc   :  { %v7337_v62 = vpop.eup %7336 }
0x26cd   :  { %1919 = vrot.lane.b32.xlu1 %v7337_v62, %s7657_s15 }
0x26ce   :  { %v7339_v15 = vpop.eup %7338 }
0x26cf   :  { %v1913_v17 = vadd.f32 1.0, %v7339_v15 }
0x26d1   :  { %7340 = vrcp.f32 %v1913_v17 }
0x26de   :  { %v7341_v18 = vpop.eup %7340 }
0x26df   :  { %v1917_v22 = vmul.f32 0.0, %v7341_v18 }
0x273f   :  { %v1920_v19 = vpop.permute.xlu1 %1919 }
0x2740   :  { %v1922_v20 = vmul.f32 %v7341_v18, %v1920_v19 }
0x2742   :  { %1924 = vrot.lane.b32.xlu0 %v1922_v20, %s7658_s16 }
0x2746   :  { %286 = vrot.lane.b32.xlu0 %v7835_v45, %s7658_s16 }
0x27b4   :  { %v1925_v23 = vpop.permute.xlu0 %1924 }
0x27b5   :  { %v1927_v27 = vadd.f32 %v1925_v23, %v1917_v22 }
0x27b7   :  { %7342 = vtanh.f32 %v1927_v27 }
0x27b8   :  { %v287_v29 = vpop.permute.xlu0 %286 }
0x27b9   :  { %290 = vst.msk [vmem:[#allocation2 + $0x2] sm:$0x3] %vm180_vm3, %v287_v29 }
0x27c4   :  { %v7343_v10 = vpop.eup %7342 }
0x27c5   :  { %1930 = vrot.lane.b32.xlu1 %v7343_v10, %s7657_s15 }
0x27c9   :  { %1703 = vrot.lane.b32.xlu1 %v8214_v25, %s7657_s15 }
0x2837   :  { %v1931_v30 = vpop.permute.xlu1 %1930 }
0x2838   :  { %v8353_v31 = vmul.f32 %v7341_v18, %v1931_v30 }
0x283a   :  { %1940 = vrot.lane.b32.xlu0 %v8353_v31, %s7660_s18 }
0x283b   :  { %v1704_v45 = vpop.permute.xlu1 %1703 }
0x283c   :  { %1706 = vst.msk [vmem:[#allocation2 + $0x2] sm:$0x3] %vm1063_vm4, %v1704_v45 }
0x2843   :  { %v1939_v33 = vld [vmem:[#allocation2 + $0x2] sm:$0x3] }
0x28ac   :  { %v1941_v32 = vpop.permute.xlu0 %1940 }
0x28ad   :  { %v1943_v34 = vsel %vm1828_vm5, %v1939_v33, %v1941_v32 }
0x28ae   :  { %6375 = vmatmul.mubr.msk.f32.vlgmr.msra.gmra.mxu1 %vm1836_vm6, %v1943_v34 }
0x28af   :  { %6405 = vmatpush3.msra.mxu1 %v8235_v12  ;;  %6428 = vmatprep.mubr.msk.f32.mxu1 %vm7656_vm0, %v7655_v1 }
0x28b0   :  { %6406 = vmatprep.subr.mxu1 %v7655_v1 }
0x28b1   :  { %6407 = vmatpush3.msra.mxu1 %v8237_v43 }
0x28b2   :  { %6408 = vmatprep.subr.mxu1 %v7655_v1 }
0x28b3   :  { %6409 = vmatpush3.msra.mxu1 %v8242_v26 }
0x28b4   :  { %6410 = vmatprep.subr.mxu1 %v7655_v1 }
0x28b5   :  { %6411 = vmatpush3.msra.mxu1 %v8248_v13 }
0x28b6   :  { %6412 = vmatprep.subr.mxu1 %v7655_v1 }
0x28b7   :  { %6413 = vmatpush3.msra.mxu1 %v8254_v44 }
0x28b8   :  { %6414 = vmatprep.subr.mxu1 %v7655_v1 }
0x28b9   :  { %6415 = vmatpush3.msra.mxu1 %v8260_v14 }
0x28ba   :  { %6416 = vmatprep.subr.mxu1 %v7655_v1 }
0x28bb   :  { %6417 = vmatpush3.msra.mxu1 %v8266_v49 }
0x28bc   :  { %6418 = vmatprep.subr.mxu1 %v7655_v1 }
0x28bd   :  { %6419 = vmatpush3.msra.mxu1 %v8278_v16 }
0x28be   :  { %6420 = vmatprep.subr.mxu1 %v7655_v1 }
0x28bf   :  { %6421 = vmatpush3.msra.mxu1 %v8281_v50 }
0x28c0   :  { %6422 = vmatprep.subr.mxu1 %v7655_v1 }
0x28c1   :  { %6423 = vmatpush3.msra.mxu1 %v8285_v2 }
0x28c2   :  { %6424 = vmatprep.subr.mxu1 %v7655_v1 }
0x28c3   :  { %6425 = vmatpush3.msra.mxu1 %v8291_v52 }
0x28c4   :  { %6426 = vmatprep.subr.mxu1 %v7655_v1 }
0x28c5   :  { %6427 = vmatpush3.msra.mxu1 %v8297_v4 }
0x28c6   :  { %6458 = vmatprep.subr.mxu1 %v7655_v1 }
0x296e   :  { %v2013_v25 = vpop.f32.mrf.mxu1 }
0x296f   :  { %v2014_v35 = vadd.f32 %v8342_v57, %v2013_v25 }
0x2970   :  { %v6376_v36 = vpop.f32.mrf.mxu1 }
0x2971   :  { %7344 = vtanh.f32 %v2014_v35  ;;  %v5477_v39 = vmul.f32 -1.442695, %v2014_v35 }
0x2973   :  { %7346 = vpow2.f32 %v5477_v39 }
0x297e   :  { %v7345_v38 = vpop.eup %7344 }
0x297f   :  { %2026 = vrot.lane.b32.xlu1 %v7345_v38, %s7657_s15 }
0x2980   :  { %v7347_v40 = vpop.eup %7346 }
0x2981   :  { %v2020_v21 = vadd.f32 1.0, %v7347_v40 }
0x2983   :  { %7348 = vrcp.f32 %v2020_v21 }
0x2990   :  { %v7349_v7 = vpop.eup %7348 }
0x2991   :  { %v2024_v47 = vmul.f32 %v7349_v7, %v1927_v27 }
0x29f1   :  { %v2027_v11 = vpop.permute.xlu1 %2026 }
0x29f2   :  { %v2029_v41 = vmul.f32 %v7349_v7, %v2027_v11 }
0x29f4   :  { %2031 = vrot.lane.b32.xlu0 %v2029_v41, %s7658_s16 }
0x29f8   :  { %395 = vrot.lane.b32.xlu0 %v7862_v0, %s7658_s16 }
0x2a66   :  { %v2032_v5 = vpop.permute.xlu0 %2031 }
0x2a67   :  { %v2034_v54 = vadd.f32 %v2032_v5, %v2024_v47 }
0x2a69   :  { %7350 = vtanh.f32 %v2034_v54 }
0x2a6a   :  { %v396_v6 = vpop.permute.xlu0 %395 }
0x2a6b   :  { %399 = vst.msk [vmem:[#allocation2 + $0x4] sm:$0x3] %vm180_vm3, %v396_v6 }
0x2a76   :  { %v7351_v56 = vpop.eup %7350 }
0x2a77   :  { %2037 = vrot.lane.b32.xlu1 %v7351_v56, %s7657_s15 }
0x2a7b   :  { %1596 = vrot.lane.b32.xlu1 %v8199_v53, %s7657_s15 }
0x2ae9   :  { %v2038_v8 = vpop.permute.xlu1 %2037 }
0x2aea   :  { %v8395_v58 = vmul.f32 %v7349_v7, %v2038_v8 }
0x2aec   :  { %2048 = vrot.lane.b32.xlu0 %v8395_v58, %s7660_s18 }
0x2aed   :  { %v1597_v0 = vpop.permute.xlu1 %1596 }
0x2aee   :  { %1599 = vst.msk [vmem:[#allocation2 + $0x4] sm:$0x3] %vm1063_vm4, %v1597_v0 }
0x2af5   :  { %v2047_v60 = vld [vmem:[#allocation2 + $0x4] sm:$0x3] }
0x2b5e   :  { %v2049_v59 = vpop.permute.xlu0 %2048 }
0x2b5f   :  { %v2051_v62 = vsel %vm1828_vm5, %v2047_v60, %v2049_v59 }
0x2b60   :  { %6402 = vmatmul.mubr.msk.f32.vlgmr.msra.gmra.mxu0 %vm1836_vm6, %v2051_v62 }
0x2b61   :  { %6432 = vmatpush3.msra.mxu0 %v8235_v12  ;;  %6455 = vmatprep.mubr.msk.f32.mxu0 %vm7656_vm0, %v7655_v1 }
0x2b62   :  { %6433 = vmatprep.subr.mxu0 %v7655_v1 }
0x2b63   :  { %6434 = vmatpush3.msra.mxu0 %v8237_v43 }
0x2b64   :  { %6435 = vmatprep.subr.mxu0 %v7655_v1 }
0x2b65   :  { %6436 = vmatpush3.msra.mxu0 %v8242_v26 }
0x2b66   :  { %6437 = vmatprep.subr.mxu0 %v7655_v1 }
0x2b67   :  { %6438 = vmatpush3.msra.mxu0 %v8248_v13 }
0x2b68   :  { %6439 = vmatprep.subr.mxu0 %v7655_v1 }
0x2b69   :  { %6440 = vmatpush3.msra.mxu0 %v8254_v44 }
0x2b6a   :  { %6441 = vmatprep.subr.mxu0 %v7655_v1 }
0x2b6b   :  { %6442 = vmatpush3.msra.mxu0 %v8260_v14 }
0x2b6c   :  { %6443 = vmatprep.subr.mxu0 %v7655_v1 }
0x2b6d   :  { %6444 = vmatpush3.msra.mxu0 %v8266_v49 }
0x2b6e   :  { %6445 = vmatprep.subr.mxu0 %v7655_v1 }
0x2b6f   :  { %6446 = vmatpush3.msra.mxu0 %v8278_v16 }
0x2b70   :  { %6447 = vmatprep.subr.mxu0 %v7655_v1 }
0x2b71   :  { %6448 = vmatpush3.msra.mxu0 %v8281_v50 }
0x2b72   :  { %6449 = vmatprep.subr.mxu0 %v7655_v1 }
0x2b73   :  { %6450 = vmatpush3.msra.mxu0 %v8285_v2 }
0x2b74   :  { %6451 = vmatprep.subr.mxu0 %v7655_v1 }
0x2b75   :  { %6452 = vmatpush3.msra.mxu0 %v8291_v52 }
0x2b76   :  { %6453 = vmatprep.subr.mxu0 %v7655_v1 }
0x2b77   :  { %6454 = vmatpush3.msra.mxu0 %v8297_v4 }
0x2b78   :  { %6485 = vmatprep.subr.mxu0 %v7655_v1 }
0x2c20   :  { %v2121_v53 = vpop.f32.mrf.mxu0 }
0x2c21   :  { %v2122_v63 = vadd.f32 %v8342_v57, %v2121_v53 }
0x2c22   :  { %v6403_v15 = vpop.f32.mrf.mxu0 }
0x2c23   :  { %7352 = vtanh.f32 %v2122_v63  ;;  %v5479_v18 = vmul.f32 -1.442695, %v2122_v63 }
0x2c25   :  { %7354 = vpow2.f32 %v5479_v18 }
0x2c30   :  { %v7353_v17 = vpop.eup %7352 }
0x2c31   :  { %2134 = vrot.lane.b32.xlu1 %v7353_v17, %s7657_s15 }
0x2c32   :  { %v7355_v19 = vpop.eup %7354 }
0x2c33   :  { %v2128_v20 = vadd.f32 1.0, %v7355_v19 }
0x2c35   :  { %7356 = vrcp.f32 %v2128_v20 }
0x2c42   :  { %v7357_v22 = vpop.eup %7356 }
0x2c43   :  { %v2132_v29 = vmul.f32 %v7357_v22, %v2034_v54 }
0x2ca3   :  { %v2135_v23 = vpop.permute.xlu1 %2134 }
0x2ca4   :  { %v2137_v27 = vmul.f32 %v7357_v22, %v2135_v23 }
0x2ca6   :  { %2139 = vrot.lane.b32.xlu0 %v2137_v27, %s7658_s16 }
0x2caa   :  { %504 = vrot.lane.b32.xlu0 %v7889_v28, %s7658_s16 }
0x2d18   :  { %v2140_v10 = vpop.permute.xlu0 %2139 }
0x2d19   :  { %v2142_v30 = vadd.f32 %v2140_v10, %v2132_v29 }
0x2d1b   :  { %7358 = vtanh.f32 %v2142_v30 }
0x2d1c   :  { %v505_v45 = vpop.permute.xlu0 %504 }
0x2d1d   :  { %508 = vst.msk [vmem:[#allocation2 + $0x6] sm:$0x3] %vm180_vm3, %v505_v45 }
0x2d28   :  { %v7359_v32 = vpop.eup %7358 }
0x2d29   :  { %2145 = vrot.lane.b32.xlu1 %v7359_v32, %s7657_s15 }
0x2d2d   :  { %1489 = vrot.lane.b32.xlu1 %v8172_v37, %s7657_s15 }
0x2d9b   :  { %v2146_v33 = vpop.permute.xlu1 %2145 }
0x2d9c   :  { %v8437_v34 = vmul.f32 %v7357_v22, %v2146_v33 }
0x2d9e   :  { %2156 = vrot.lane.b32.xlu0 %v8437_v34, %s7660_s18 }
0x2d9f   :  { %v1490_v28 = vpop.permute.xlu1 %1489 }
0x2da0   :  { %1492 = vst.msk [vmem:[#allocation2 + $0x6] sm:$0x3] %vm1063_vm4, %v1490_v28  ;;  %v7604_v28 = vld [vmem:[%s9719_s4] ss:$0 sm:$0xff] }
0x2da7   :  { %v2155_v35 = vld [vmem:[#allocation2 + $0x6] sm:$0x3] }
0x2e10   :  { %v2157_v25 = vpop.permute.xlu0 %2156 }
0x2e11   :  { %v2159_v36 = vsel %vm1828_vm5, %v2155_v35, %v2157_v25 }
0x2e12   :  { %6429 = vmatmul.mubr.msk.f32.vlgmr.msra.gmra.mxu1 %vm1836_vm6, %v2159_v36 }
0x2e13   :  { %6459 = vmatpush3.msra.mxu1 %v8235_v12  ;;  %6482 = vmatprep.mubr.msk.f32.mxu1 %vm7656_vm0, %v7655_v1 }
0x2e14   :  { %6460 = vmatprep.subr.mxu1 %v7655_v1 }
0x2e15   :  { %6461 = vmatpush3.msra.mxu1 %v8237_v43 }
0x2e16   :  { %6462 = vmatprep.subr.mxu1 %v7655_v1 }
0x2e17   :  { %6463 = vmatpush3.msra.mxu1 %v8242_v26 }
0x2e18   :  { %6464 = vmatprep.subr.mxu1 %v7655_v1 }
0x2e19   :  { %6465 = vmatpush3.msra.mxu1 %v8248_v13 }
0x2e1a   :  { %6466 = vmatprep.subr.mxu1 %v7655_v1 }
0x2e1b   :  { %6467 = vmatpush3.msra.mxu1 %v8254_v44 }
0x2e1c   :  { %6468 = vmatprep.subr.mxu1 %v7655_v1 }
0x2e1d   :  { %6469 = vmatpush3.msra.mxu1 %v8260_v14 }
0x2e1e   :  { %6470 = vmatprep.subr.mxu1 %v7655_v1 }
0x2e1f   :  { %6471 = vmatpush3.msra.mxu1 %v8266_v49 }
0x2e20   :  { %6472 = vmatprep.subr.mxu1 %v7655_v1 }
0x2e21   :  { %6473 = vmatpush3.msra.mxu1 %v8278_v16 }
0x2e22   :  { %6474 = vmatprep.subr.mxu1 %v7655_v1 }
0x2e23   :  { %6475 = vmatpush3.msra.mxu1 %v8281_v50 }
0x2e24   :  { %6476 = vmatprep.subr.mxu1 %v7655_v1 }
0x2e25   :  { %6477 = vmatpush3.msra.mxu1 %v8285_v2 }
0x2e26   :  { %6478 = vmatprep.subr.mxu1 %v7655_v1 }
0x2e27   :  { %6479 = vmatpush3.msra.mxu1 %v8291_v52 }
0x2e28   :  { %6480 = vmatprep.subr.mxu1 %v7655_v1 }
0x2e29   :  { %6481 = vmatpush3.msra.mxu1 %v8297_v4 }
0x2e2a   :  { %6512 = vmatprep.subr.mxu1 %v7655_v1 }
0x2ed2   :  { %v2229_v37 = vpop.f32.mrf.mxu1 }
0x2ed3   :  { %v2230_v38 = vadd.f32 %v8342_v57, %v2229_v37 }
0x2ed4   :  { %v6430_v39 = vpop.f32.mrf.mxu1 }
0x2ed5   :  { %7360 = vtanh.f32 %v2230_v38  ;;  %v5481_v21 = vmul.f32 -1.442695, %v2230_v38 }
0x2ed7   :  { %7362 = vpow2.f32 %v5481_v21 }
0x2ee2   :  { %v7361_v40 = vpop.eup %7360 }
0x2ee3   :  { %2242 = vrot.lane.b32.xlu1 %v7361_v40, %s7657_s15 }
0x2ee4   :  { %v7363_v7 = vpop.eup %7362 }
0x2ee5   :  { %v2236_v11 = vadd.f32 1.0, %v7363_v7 }
0x2ee7   :  { %7364 = vrcp.f32 %v2236_v11 }
0x2ef4   :  { %v7365_v41 = vpop.eup %7364 }
0x2ef5   :  { %v2240_v54 = vmul.f32 %v7365_v41, %v2142_v30 }
0x2f55   :  { %v2243_v47 = vpop.permute.xlu1 %2242 }
0x2f56   :  { %v2245_v5 = vmul.f32 %v7365_v41, %v2243_v47 }
0x2f58   :  { %2247 = vrot.lane.b32.xlu0 %v2245_v5, %s7658_s16 }
0x2f5c   :  { %613 = vrot.lane.b32.xlu0 %v7916_v48, %s7658_s16 }
0x2fca   :  { %v2248_v6 = vpop.permute.xlu0 %2247 }
0x2fcb   :  { %v2250_v56 = vadd.f32 %v2248_v6, %v2240_v54 }
0x2fcd   :  { %7366 = vtanh.f32 %v2250_v56 }
0x2fce   :  { %v614_v8 = vpop.permute.xlu0 %613 }
0x2fcf   :  { %617 = vst.msk [vmem:[#allocation2 + $0x8] sm:$0x3] %vm180_vm3, %v614_v8 }
0x2fda   :  { %v7367_v0 = vpop.eup %7366 }
0x2fdb   :  { %2253 = vrot.lane.b32.xlu1 %v7367_v0, %s7657_s15 }
0x2fdf   :  { %1382 = vrot.lane.b32.xlu1 %v8145_v9, %s7657_s15 }
0x304d   :  { %v2254_v59 = vpop.permute.xlu1 %2253 }
0x304e   :  { %v8479_v60 = vmul.f32 %v7365_v41, %v2254_v59 }
0x3050   :  { %2264 = vrot.lane.b32.xlu0 %v8479_v60, %s7660_s18 }
0x3051   :  { %v1383_v48 = vpop.permute.xlu1 %1382 }
0x3052   :  { %1385 = vst.msk [vmem:[#allocation2 + $0x8] sm:$0x3] %vm1063_vm4, %v1383_v48 }
0x3059   :  { %v2263_v53 = vld [vmem:[#allocation2 + $0x8] sm:$0x3] }
0x30c2   :  { %v2265_v62 = vpop.permute.xlu0 %2264 }
0x30c3   :  { %v2267_v63 = vsel %vm1828_vm5, %v2263_v53, %v2265_v62 }
0x30c4   :  { %6456 = vmatmul.mubr.msk.f32.vlgmr.msra.gmra.mxu0 %vm1836_vm6, %v2267_v63 }
0x30c5   :  { %6486 = vmatpush3.msra.mxu0 %v8235_v12  ;;  %6509 = vmatprep.mubr.msk.f32.mxu0 %vm7656_vm0, %v7655_v1 }
0x30c6   :  { %6487 = vmatprep.subr.mxu0 %v7655_v1 }
0x30c7   :  { %6488 = vmatpush3.msra.mxu0 %v8237_v43 }
0x30c8   :  { %6489 = vmatprep.subr.mxu0 %v7655_v1 }
0x30c9   :  { %6490 = vmatpush3.msra.mxu0 %v8242_v26 }
0x30ca   :  { %6491 = vmatprep.subr.mxu0 %v7655_v1 }
0x30cb   :  { %6492 = vmatpush3.msra.mxu0 %v8248_v13 }
0x30cc   :  { %6493 = vmatprep.subr.mxu0 %v7655_v1 }
0x30cd   :  { %6494 = vmatpush3.msra.mxu0 %v8254_v44 }
0x30ce   :  { %6495 = vmatprep.subr.mxu0 %v7655_v1 }
0x30cf   :  { %6496 = vmatpush3.msra.mxu0 %v8260_v14 }
0x30d0   :  { %6497 = vmatprep.subr.mxu0 %v7655_v1 }
0x30d1   :  { %6498 = vmatpush3.msra.mxu0 %v8266_v49 }
0x30d2   :  { %6499 = vmatprep.subr.mxu0 %v7655_v1 }
0x30d3   :  { %6500 = vmatpush3.msra.mxu0 %v8278_v16 }
0x30d4   :  { %6501 = vmatprep.subr.mxu0 %v7655_v1 }
0x30d5   :  { %6502 = vmatpush3.msra.mxu0 %v8281_v50 }
0x30d6   :  { %6503 = vmatprep.subr.mxu0 %v7655_v1 }
0x30d7   :  { %6504 = vmatpush3.msra.mxu0 %v8285_v2 }
0x30d8   :  { %6505 = vmatprep.subr.mxu0 %v7655_v1 }
0x30d9   :  { %6506 = vmatpush3.msra.mxu0 %v8291_v52 }
0x30da   :  { %6507 = vmatprep.subr.mxu0 %v7655_v1 }
0x30db   :  { %6508 = vmatpush3.msra.mxu0 %v8297_v4 }
0x30dc   :  { %6539 = vmatprep.subr.mxu0 %v7655_v1 }
0x3184   :  { %v2337_v9 = vpop.f32.mrf.mxu0 }
0x3185   :  { %v2338_v15 = vadd.f32 %v8342_v57, %v2337_v9 }
0x3186   :  { %v6457_v17 = vpop.f32.mrf.mxu0 }
0x3187   :  { %7368 = vtanh.f32 %v2338_v15  ;;  %v5483_v19 = vmul.f32 -1.442695, %v2338_v15  ;;  %v8587_v15 = vld [vmem:[#allocation5 + $0xb8] sm:$0xff]  ;;  %v8591_v17 = vld [vmem:[#allocation5 + $0xb0] sm:$0xff] }
0x3189   :  { %7370 = vpow2.f32 %v5483_v19  ;;  %v8597_v19 = vld [vmem:[#allocation5 + $0xa8] sm:$0xff] }
0x3194   :  { %v7369_v18 = vpop.eup %7368 }
0x3195   :  { %2350 = vrot.lane.b32.xlu1 %v7369_v18, %s7657_s15 }
0x3196   :  { %v7371_v20 = vpop.eup %7370 }
0x3197   :  { %v2344_v22 = vadd.f32 1.0, %v7371_v20  ;;  %v8606_v20 = vld [vmem:[#allocation5 + $0x98] sm:$0xff] }
0x3199   :  { %7372 = vrcp.f32 %v2344_v22  ;;  %v8610_v22 = vld [vmem:[#allocation5 + $0x90] sm:$0xff] }
0x31a6   :  { %v7373_v23 = vpop.eup %7372 }
0x31a7   :  { %v2348_v10 = vmul.f32 %v7373_v23, %v2250_v56 }
0x3207   :  { %v2351_v27 = vpop.permute.xlu1 %2350 }
0x3208   :  { %v2353_v29 = vmul.f32 %v7373_v23, %v2351_v27  ;;  %v8618_v27 = vld [vmem:[#allocation5 + $0x80] sm:$0xff] }
0x320a   :  { %2355 = vrot.lane.b32.xlu0 %v2353_v29, %s7658_s16  ;;  %v8622_v29 = vld [vmem:[#allocation5 + $0x78] sm:$0xff] }
0x320e   :  { %722 = vrot.lane.b32.xlu0 %v7946_v61, %s7658_s16  ;;  %v912_v61 = vadd.f32 %v7604_v28, %v8084_v55 }
0x327c   :  { %v2356_v30 = vpop.permute.xlu0 %2355 }
0x327d   :  { %v8517_v45 = vadd.f32 %v2356_v30, %v2348_v10  ;;  %v8626_v10 = vld [vmem:[#allocation5 + $0x70] sm:$0xff]  ;;  %v8630_v30 = vld [vmem:[#allocation5 + $0x68] sm:$0xff] }
0x327f   :  { %7374 = vtanh.f32 %v8517_v45 }
0x3280   :  { %v723_v32 = vpop.permute.xlu0 %722  ;;  %7376 = vtanh.f32 %v912_v61 }
0x3281   :  { %726 = vst.msk [vmem:[#allocation2 + $0xa] sm:$0x3] %vm180_vm3, %v723_v32 }
0x328c   :  { %v7375_v33 = vpop.eup %7374 }
0x328d   :  { %2361 = vrot.lane.b32.xlu1 %v7375_v33, %s7657_s15  ;;  %v7377_v37 = vpop.eup %7376 }
0x3291   :  { %1275 = vrot.lane.b32.xlu1 %v8118_v46, %s7657_s15  ;;  %v5441_v46 = vmul.f32 -1.442695, %v912_v61 }
0x3293   :  { %7378 = vpow2.f32 %v5441_v46 }
0x32a0   :  { %v7379_v38 = vpop.eup %7378 }
0x32a1   :  { %v918_v39 = vadd.f32 1.0, %v7379_v38 }
0x32a3   :  { %7380 = vrcp.f32 %v918_v39 }
0x32b0   :  { %v7381_v7 = vpop.eup %7380 }
0x32ff   :  { %v2362_v25 = vpop.permute.xlu1 %2361 }
0x3300   :  { %v8528_v35 = vmul.f32 %v7373_v23, %v2362_v25  ;;  %v8614_v23 = vld [vmem:[#allocation5 + $0x88] sm:$0xff] }
0x3302   :  { %2372 = vrot.lane.b32.xlu0 %v8528_v35, %s7660_s18 }
0x3303   :  { %v1276_v36 = vpop.permute.xlu1 %1275 }
0x3304   :  { %1278 = vst.msk [vmem:[#allocation2 + $0xa] sm:$0x3] %vm1063_vm4, %v1276_v36 }
0x3306   :  { %924 = vrot.lane.b32.xlu0 %v7377_v37, %s7657_s15  ;;  %v8673_v37 = vld [vmem:[%s9720_s5 + $0x1] ss:$0 sm:$0xff] }
0x330b   :  { %v2371_v55 = vld [vmem:[#allocation2 + $0xa] sm:$0x3] }
0x3374   :  { %v2373_v40 = vpop.permute.xlu0 %2372 }
0x3375   :  { %v2375_v21 = vsel %vm1828_vm5, %v2371_v55, %v2373_v40 }
0x3376   :  { %6483 = vmatmul.mubr.msk.f32.vlgmr.msra.gmra.mxu1 %vm1836_vm6, %v2375_v21 }
0x3377   :  { %6513 = vmatpush3.msra.mxu1 %v8235_v12  ;;  %6536 = vmatprep.mubr.msk.f32.mxu1 %vm7656_vm0, %v7655_v1  ;;  %v922_v12 = vmul.f32 %v7381_v7, %v8030_v42 }
0x3378   :  { %v925_v11 = vpop.permute.xlu0 %924  ;;  %6514 = vmatprep.subr.mxu1 %v7655_v1 }
0x3379   :  { %v927_v41 = vmul.f32 %v7381_v7, %v925_v11  ;;  %6515 = vmatpush3.msra.mxu1 %v8237_v43 }
0x337a   :  { %6516 = vmatprep.subr.mxu1 %v7655_v1 }
0x337b   :  { %929 = vrot.lane.b32.xlu0 %v927_v41, %s7658_s16  ;;  %6517 = vmatpush3.msra.mxu1 %v8242_v26 }
0x337c   :  { %6518 = vmatprep.subr.mxu1 %v7655_v1 }
0x337d   :  { %6519 = vmatpush3.msra.mxu1 %v8248_v13 }
0x337e   :  { %6520 = vmatprep.subr.mxu1 %v7655_v1 }
0x337f   :  { %6521 = vmatpush3.msra.mxu1 %v8254_v44 }
0x3380   :  { %6522 = vmatprep.subr.mxu1 %v7655_v1 }
0x3381   :  { %6523 = vmatpush3.msra.mxu1 %v8260_v14 }
0x3382   :  { %6524 = vmatprep.subr.mxu1 %v7655_v1 }
0x3383   :  { %6525 = vmatpush3.msra.mxu1 %v8266_v49 }
0x3384   :  { %6526 = vmatprep.subr.mxu1 %v7655_v1 }
0x3385   :  { %6527 = vmatpush3.msra.mxu1 %v8278_v16 }
0x3386   :  { %6528 = vmatprep.subr.mxu1 %v7655_v1 }
0x3387   :  { %6529 = vmatpush3.msra.mxu1 %v8281_v50 }
0x3388   :  { %6530 = vmatprep.subr.mxu1 %v7655_v1 }
0x3389   :  { %6531 = vmatpush3.msra.mxu1 %v8285_v2 }
0x338a   :  { %6532 = vmatprep.subr.mxu1 %v7655_v1 }
0x338b   :  { %6533 = vmatpush3.msra.mxu1 %v8291_v52 }
0x338c   :  { %6534 = vmatprep.subr.mxu1 %v7655_v1 }
0x338d   :  { %6535 = vmatpush3.msra.mxu1 %v8297_v4 }
0x338e   :  { %6566 = vmatprep.subr.mxu1 %v7655_v1 }
0x33ed   :  { %v930_v43 = vpop.permute.xlu0 %929 }
0x33ee   :  { %v932_v26 = vadd.f32 %v930_v43, %v922_v12 }
0x33f0   :  { %7382 = vtanh.f32 %v932_v26 }
0x33fd   :  { %v7383_v13 = vpop.eup %7382 }
0x33fe   :  { %935 = vrot.lane.b32.xlu0 %v7383_v13, %s7657_s15 }
0x3402   :  { %1168 = vrot.lane.b32.xlu0 %v8091_v24, %s7657_s15 }
0x3436   :  { %v2445_v44 = vpop.f32.mrf.mxu1 }
0x3437   :  { %v2446_v14 = vadd.f32 %v8342_v57, %v2445_v44 }
0x3438   :  { %v6484_v49 = vpop.f32.mrf.mxu1 }
0x3439   :  { %7384 = vtanh.f32 %v2446_v14  ;;  %v5485_v42 = vmul.f32 -1.442695, %v2446_v14 }
0x343b   :  { %7386 = vpow2.f32 %v5485_v42 }
0x3446   :  { %v7385_v16 = vpop.eup %7384 }
0x3447   :  { %2458 = vrot.lane.b32.xlu1 %v7385_v16, %s7657_s15 }
0x3448   :  { %v7387_v52 = vpop.eup %7386 }
0x3449   :  { %v2452_v4 = vadd.f32 1.0, %v7387_v52 }
0x344b   :  { %7388 = vrcp.f32 %v2452_v4 }
0x3458   :  { %v7389_v47 = vpop.eup %7388 }
0x3459   :  { %v2456_v56 = vmul.f32 %v7389_v47, %v8517_v45  ;;  %v8634_v45 = vld [vmem:[#allocation5 + $0x60] sm:$0xff] }
0x3470   :  { %v936_v50 = vpop.permute.xlu0 %935 }
0x3471   :  { %v938_v2 = vmul.f32 %v7381_v7, %v936_v50 }
0x3473   :  { %940 = vrot.lane.b32.xlu0 %v938_v2, %s7658_s16 }
0x3474   :  { %v1169_v54 = vpop.permute.xlu0 %1168 }
0x34b9   :  { %v2459_v5 = vpop.permute.xlu1 %2458 }
0x34ba   :  { %v2461_v24 = vmul.f32 %v7389_v47, %v2459_v5 }
0x34bc   :  { %2463 = vrot.lane.b32.xlu1 %v2461_v24, %s7658_s16 }
0x34e5   :  { %v941_v6 = vpop.permute.xlu0 %940 }
0x34e6   :  { %944 = vst.msk [vmem:[#allocation2 + $0xe] sm:$0x3] %vm180_vm3, %v941_v6 }
0x352e   :  { %v2464_v8 = vpop.permute.xlu1 %2463 }
0x352f   :  { %v8573_v0 = vadd.f32 %v2464_v8, %v2456_v56 }
0x3531   :  { %7390 = vtanh.f32 %v8573_v0 }
0x353e   :  { %v7391_v59 = vpop.eup %7390 }
0x353f   :  { %2469 = vrot.lane.b32.xlu1 %v7391_v59, %s7657_s15 }
0x3543   :  { %831 = vrot.lane.b32.xlu1 %v8038_v51, %s7658_s16 }
0x35b1   :  { %v2470_v48 = vpop.permute.xlu1 %2469 }
0x35b2   :  { %v8579_v62 = vmul.f32 %v7389_v47, %v2470_v48 }
0x35b4   :  { %2480 = vrot.lane.b32.xlu1 %v8579_v62, %s7660_s18 }
0x35b5   :  { %v832_v53 = vpop.permute.xlu1 %831 }
0x35b6   :  { %835 = vst.msk [vmem:[#allocation2 + $0xc] sm:$0x3] %vm180_vm3, %v832_v53 }
0x35b7   :  { %1171 = vst.msk [vmem:[#allocation2 + $0xc] sm:$0x3] %vm1063_vm4, %v1169_v54 }
0x35b8   :  { %1060 = vrot.lane.b32.xlu1 %v8042_v3, %s7657_s15  ;;  %v8602_v3 = vld [vmem:[#allocation5 + $0xa0] sm:$0xff] }
0x35be   :  { %v2479_v63 = vld [vmem:[#allocation2 + $0xc] sm:$0x3] }
0x35bf   :  { %v2820_v59 = vld [vmem:[#allocation2 + $0xc] sm:$0x3] }
0x3626   :  { %v2481_v9 = vpop.permute.xlu1 %2480 }
0x3627   :  { %v2483_v51 = vsel %vm1828_vm5, %v2479_v63, %v2481_v9 }
0x3628   :  { %6510 = vmatmul.mubr.msk.f32.vlgmr.msra.gmra.mxu0 %vm1836_vm6, %v2483_v51 }
0x3629   :  { %6540 = vmatpush3.msra.mxu0 %v8587_v15  ;;  %6563 = vmatprep.mubr.msk.f32.mxu0 %vm7656_vm0, %v7655_v1 }
0x362a   :  { %6541 = vmatprep.subr.mxu0 %v7655_v1  ;;  %v1061_v18 = vpop.permute.xlu1 %1060 }
0x362b   :  { %6542 = vmatpush3.msra.mxu0 %v8591_v17  ;;  %1064 = vst.msk [vmem:[#allocation2 + $0xe] sm:$0x3] %vm1063_vm4, %v1061_v18 }
0x362c   :  { %6543 = vmatprep.subr.mxu0 %v7655_v1 }
0x362d   :  { %6544 = vmatpush3.msra.mxu0 %v8597_v19 }
0x362e   :  { %6545 = vmatprep.subr.mxu0 %v7655_v1 }
0x362f   :  { %6546 = vmatpush3.msra.mxu0 %v8602_v3 }
0x3630   :  { %6547 = vmatprep.subr.mxu0 %v7655_v1 }
0x3631   :  { %6548 = vmatpush3.msra.mxu0 %v8606_v20 }
0x3632   :  { %6549 = vmatprep.subr.mxu0 %v7655_v1  ;;  %v2710_v32 = vld [vmem:[#allocation2 + $0xe] sm:$0x3] }
0x3633   :  { %6550 = vmatpush3.msra.mxu0 %v8610_v22  ;;  %v2711_v33 = vsel %vm1828_vm5, %v2710_v32, 0.0  ;;  %v2587_v8 = vld [vmem:[#allocation2 + $0xe] sm:$0x3] }
0x3634   :  { %6551 = vmatprep.subr.mxu0 %v7655_v1 }
0x3635   :  { %6552 = vmatpush3.msra.mxu0 %v8614_v23 }
0x3636   :  { %6553 = vmatprep.subr.mxu0 %v7655_v1 }
0x3637   :  { %6554 = vmatpush3.msra.mxu0 %v8618_v27 }
0x3638   :  { %6555 = vmatprep.subr.mxu0 %v7655_v1 }
0x3639   :  { %6556 = vmatpush3.msra.mxu0 %v8622_v29 }
0x363a   :  { %6557 = vmatprep.subr.mxu0 %v7655_v1 }
0x363b   :  { %6558 = vmatpush3.msra.mxu0 %v8626_v10 }
0x363c   :  { %6559 = vmatprep.subr.mxu0 %v7655_v1 }
0x363d   :  { %6560 = vmatpush3.msra.mxu0 %v8630_v30 }
0x363e   :  { %6561 = vmatprep.subr.mxu0 %v7655_v1 }
0x363f   :  { %6562 = vmatpush3.msra.mxu0 %v8634_v45 }
0x3640   :  { %6564 = vmatmul.mubr.msk.f32.vlgmr.msra.gmra.mxu0 %vm1836_vm6, %v2711_v33  ;;  %6593 = vmatprep.subr.mxu0 %v7655_v1 }
0x3641   :  { %6594 = vmatpush3.msra.mxu0 %v8587_v15  ;;  %6617 = vmatprep.mubr.msk.f32.mxu0 %vm7656_vm0, %v7655_v1 }
0x3642   :  { %6595 = vmatprep.subr.mxu0 %v7655_v1 }
0x3643   :  { %6596 = vmatpush3.msra.mxu0 %v8591_v17 }
0x3644   :  { %6597 = vmatprep.subr.mxu0 %v7655_v1 }
0x3645   :  { %6598 = vmatpush3.msra.mxu0 %v8597_v19 }
0x3646   :  { %6599 = vmatprep.subr.mxu0 %v7655_v1 }
0x3647   :  { %6600 = vmatpush3.msra.mxu0 %v8602_v3 }
0x3648   :  { %6601 = vmatprep.subr.mxu0 %v7655_v1 }
0x3649   :  { %6602 = vmatpush3.msra.mxu0 %v8606_v20 }
0x364a   :  { %6603 = vmatprep.subr.mxu0 %v7655_v1 }
0x364b   :  { %6604 = vmatpush3.msra.mxu0 %v8610_v22 }
0x364c   :  { %6605 = vmatprep.subr.mxu0 %v7655_v1 }
0x364d   :  { %6606 = vmatpush3.msra.mxu0 %v8614_v23 }
0x364e   :  { %6607 = vmatprep.subr.mxu0 %v7655_v1 }
0x364f   :  { %6608 = vmatpush3.msra.mxu0 %v8618_v27 }
0x3650   :  { %6609 = vmatprep.subr.mxu0 %v7655_v1 }
0x3651   :  { %6610 = vmatpush3.msra.mxu0 %v8622_v29 }
0x3652   :  { %6611 = vmatprep.subr.mxu0 %v7655_v1 }
0x3653   :  { %6612 = vmatpush3.msra.mxu0 %v8626_v10 }
0x3654   :  { %6613 = vmatprep.subr.mxu0 %v7655_v1 }
0x3655   :  { %6614 = vmatpush3.msra.mxu0 %v8630_v30 }
0x3656   :  { %6615 = vmatprep.subr.mxu0 %v7655_v1 }
0x3657   :  { %6616 = vmatpush3.msra.mxu0 %v8634_v45 }
0x3658   :  { %6647 = vmatprep.subr.mxu0 %v7655_v1 }
0x36e8   :  { %v2553_v28 = vpop.f32.mrf.mxu0 }
0x36e9   :  { %v2554_v61 = vadd.f32 %v8342_v57, %v2553_v28 }
0x36ea   :  { %v6511_v25 = vpop.f32.mrf.mxu0 }
0x36eb   :  { %7392 = vtanh.f32 %v2554_v61  ;;  %v5487_v55 = vmul.f32 -1.442695, %v2554_v61 }
0x36f8   :  { %v7393_v36 = vpop.eup %7392 }
0x36f9   :  { %2566 = vrot.lane.b32.xlu0 %v7393_v36, %s7657_s15 }
0x3700   :  { %v2787_v46 = vpop.f32.mrf.mxu0 }
0x3701   :  { %v2788_v38 = vadd.f32 %v8673_v37, %v2787_v46 }
0x3702   :  { %v6565_v39 = vpop.f32.mrf.mxu0 }
0x3703   :  { %7394 = vtanh.f32 %v2788_v38  ;;  %v5493_v7 = vmul.f32 -1.442695, %v2788_v38 }
0x3704   :  { %7396 = vpow2.f32 %v5487_v55 }
0x3710   :  { %v7395_v40 = vpop.eup %7394 }
0x3711   :  { %2800 = vrot.lane.b32.xlu1 %v7395_v40, %s7657_s15  ;;  %v7397_v57 = vpop.eup %7396 }
0x3712   :  { %v2560_v21 = vadd.f32 1.0, %v7397_v57 }
0x3714   :  { %7398 = vrcp.f32 %v2560_v21 }
0x3715   :  { %7400 = vpow2.f32 %v5493_v7 }
0x3721   :  { %v7399_v11 = vpop.eup %7398 }
0x3722   :  { %v7401_v43 = vpop.eup %7400  ;;  %v2564_v49 = vmul.f32 %v7399_v11, %v8573_v0 }
0x3723   :  { %v2794_v26 = vadd.f32 1.0, %v7401_v43 }
0x3725   :  { %7402 = vrcp.f32 %v2794_v26 }
0x3732   :  { %v7403_v13 = vpop.eup %7402 }
0x3733   :  { %v2798_v42 = vmul.f32 0.0, %v7403_v13 }
0x376b   :  { %v2567_v41 = vpop.permute.xlu0 %2566 }
0x376c   :  { %v2569_v12 = vmul.f32 %v7399_v11, %v2567_v41 }
0x376e   :  { %2571 = vrot.lane.b32.xlu0 %v2569_v12, %s7658_s16 }
0x3783   :  { %v2801_v44 = vpop.permute.xlu1 %2800 }
0x3784   :  { %v2803_v14 = vmul.f32 %v7403_v13, %v2801_v44 }
0x3786   :  { %2805 = vrot.lane.b32.xlu1 %v2803_v14, %s7658_s16 }
0x37e0   :  { %v2572_v16 = vpop.permute.xlu0 %2571 }
0x37e1   :  { %v8680_v50 = vadd.f32 %v2572_v16, %v2564_v49 }
0x37e3   :  { %7404 = vtanh.f32 %v8680_v50 }
0x37f0   :  { %v7405_v2 = vpop.eup %7404 }
0x37f1   :  { %2577 = vrot.lane.b32.xlu0 %v7405_v2, %s7657_s15 }
0x37f8   :  { %v2806_v52 = vpop.permute.xlu1 %2805 }
0x37f9   :  { %v8684_v4 = vadd.f32 %v2806_v52, %v2798_v42 }
0x37fb   :  { %7406 = vtanh.f32 %v8684_v4 }
0x3808   :  { %v7407_v47 = vpop.eup %7406 }
0x3809   :  { %2811 = vrot.lane.b32.xlu1 %v7407_v47, %s7657_s15 }
0x3863   :  { %v2578_v5 = vpop.permute.xlu0 %2577 }
0x3864   :  { %v8688_v24 = vmul.f32 %v7399_v11, %v2578_v5  ;;  %v2927_v11 = vld [vmem:[#allocation2 + $0xa] sm:$0x3] }
0x3866   :  { %2588 = vrot.lane.b32.xlu0 %v8688_v24, %s7660_s18 }
0x387b   :  { %v2812_v54 = vpop.permute.xlu1 %2811 }
0x387c   :  { %v8692_v6 = vmul.f32 %v7403_v13, %v2812_v54 }
0x387e   :  { %2821 = vrot.lane.b32.xlu1 %v8692_v6, %s7660_s18 }
0x38d8   :  { %v2589_v56 = vpop.permute.xlu0 %2588 }
0x38d9   :  { %v2591_v0 = vsel %vm1828_vm5, %v2587_v8, %v2589_v56 }
0x38da   :  { %6537 = vmatmul.mubr.msk.f32.vlgmr.msra.gmra.mxu1 %vm1836_vm6, %v2591_v0  ;;  %v3034_v0 = vld [vmem:[#allocation2 + $0x8] sm:$0x3] }
0x38db   :  { %6567 = vmatpush3.msra.mxu1 %v8587_v15  ;;  %6590 = vmatprep.mubr.msk.f32.mxu1 %vm7656_vm0, %v7655_v1 }
0x38dc   :  { %6568 = vmatprep.subr.mxu1 %v7655_v1 }
0x38dd   :  { %6569 = vmatpush3.msra.mxu1 %v8591_v17 }
0x38de   :  { %6570 = vmatprep.subr.mxu1 %v7655_v1 }
0x38df   :  { %6571 = vmatpush3.msra.mxu1 %v8597_v19 }
0x38e0   :  { %6572 = vmatprep.subr.mxu1 %v7655_v1 }
0x38e1   :  { %6573 = vmatpush3.msra.mxu1 %v8602_v3 }
0x38e2   :  { %6574 = vmatprep.subr.mxu1 %v7655_v1 }
0x38e3   :  { %6575 = vmatpush3.msra.mxu1 %v8606_v20 }
0x38e4   :  { %6576 = vmatprep.subr.mxu1 %v7655_v1 }
0x38e5   :  { %6577 = vmatpush3.msra.mxu1 %v8610_v22 }
0x38e6   :  { %6578 = vmatprep.subr.mxu1 %v7655_v1 }
0x38e7   :  { %6579 = vmatpush3.msra.mxu1 %v8614_v23 }
0x38e8   :  { %6580 = vmatprep.subr.mxu1 %v7655_v1 }
0x38e9   :  { %6581 = vmatpush3.msra.mxu1 %v8618_v27 }
0x38ea   :  { %6582 = vmatprep.subr.mxu1 %v7655_v1 }
0x38eb   :  { %6583 = vmatpush3.msra.mxu1 %v8622_v29 }
0x38ec   :  { %6584 = vmatprep.subr.mxu1 %v7655_v1 }
0x38ed   :  { %6585 = vmatpush3.msra.mxu1 %v8626_v10 }
0x38ee   :  { %6586 = vmatprep.subr.mxu1 %v7655_v1 }
0x38ef   :  { %6587 = vmatpush3.msra.mxu1 %v8630_v30 }
0x38f0   :  { %v2822_v48 = vpop.permute.xlu1 %2821  ;;  %6588 = vmatprep.subr.mxu1 %v7655_v1 }
0x38f1   :  { %v2824_v53 = vsel %vm1828_vm5, %v2820_v59, %v2822_v48  ;;  %6589 = vmatpush3.msra.mxu1 %v8634_v45 }
0x38f2   :  { %6591 = vmatmul.mubr.msk.f32.vlgmr.msra.gmra.mxu1 %vm1836_vm6, %v2824_v53  ;;  %6620 = vmatprep.subr.mxu1 %v7655_v1 }
0x38f3   :  { %6621 = vmatpush3.msra.mxu1 %v8587_v15  ;;  %6644 = vmatprep.mubr.msk.f32.mxu1 %vm7656_vm0, %v7655_v1 }
0x38f4   :  { %6622 = vmatprep.subr.mxu1 %v7655_v1 }
0x38f5   :  { %6623 = vmatpush3.msra.mxu1 %v8591_v17 }
0x38f6   :  { %6624 = vmatprep.subr.mxu1 %v7655_v1 }
0x38f7   :  { %6625 = vmatpush3.msra.mxu1 %v8597_v19 }
0x38f8   :  { %6626 = vmatprep.subr.mxu1 %v7655_v1 }
0x38f9   :  { %6627 = vmatpush3.msra.mxu1 %v8602_v3 }
0x38fa   :  { %6628 = vmatprep.subr.mxu1 %v7655_v1 }
0x38fb   :  { %6629 = vmatpush3.msra.mxu1 %v8606_v20 }
0x38fc   :  { %6630 = vmatprep.subr.mxu1 %v7655_v1 }
0x38fd   :  { %6631 = vmatpush3.msra.mxu1 %v8610_v22 }
0x38fe   :  { %6632 = vmatprep.subr.mxu1 %v7655_v1 }
0x38ff   :  { %6633 = vmatpush3.msra.mxu1 %v8614_v23 }
0x3900   :  { %6634 = vmatprep.subr.mxu1 %v7655_v1 }
0x3901   :  { %6635 = vmatpush3.msra.mxu1 %v8618_v27 }
0x3902   :  { %6636 = vmatprep.subr.mxu1 %v7655_v1 }
0x3903   :  { %6637 = vmatpush3.msra.mxu1 %v8622_v29 }
0x3904   :  { %6638 = vmatprep.subr.mxu1 %v7655_v1 }
0x3905   :  { %6639 = vmatpush3.msra.mxu1 %v8626_v10 }
0x3906   :  { %6640 = vmatprep.subr.mxu1 %v7655_v1 }
0x3907   :  { %6641 = vmatpush3.msra.mxu1 %v8630_v30 }
0x3908   :  { %6642 = vmatprep.subr.mxu1 %v7655_v1 }
0x3909   :  { %6643 = vmatpush3.msra.mxu1 %v8634_v45 }
0x390a   :  { %6674 = vmatprep.subr.mxu1 %v7655_v1 }
0x399a   :  { %v8752_v63 = vpop.f32.mrf.mxu1 }
0x399c   :  { %v6538_v9 = vpop.f32.mrf.mxu1 }
0x39b2   :  { %v2894_v51 = vpop.f32.mrf.mxu1 }
0x39b3   :  { %v2895_v18 = vadd.f32 %v8673_v37, %v2894_v51 }
0x39b4   :  { %v6592_v32 = vpop.f32.mrf.mxu1 }
0x39b5   :  { %7408 = vtanh.f32 %v2895_v18  ;;  %v5495_v28 = vmul.f32 -1.442695, %v2895_v18 }
0x39b7   :  { %7410 = vpow2.f32 %v5495_v28 }
0x39c2   :  { %v7409_v33 = vpop.eup %7408 }
0x39c3   :  { %2907 = vrot.lane.b32.xlu0 %v7409_v33, %s7657_s15 }
0x39c4   :  { %v7411_v61 = vpop.eup %7410 }
0x39c5   :  { %v2901_v25 = vadd.f32 1.0, %v7411_v61 }
0x39c7   :  { %7412 = vrcp.f32 %v2901_v25 }
0x39d4   :  { %v7413_v36 = vpop.eup %7412 }
0x39d5   :  { %v2905_v39 = vmul.f32 %v7413_v36, %v8684_v4 }
0x3a35   :  { %v2908_v46 = vpop.permute.xlu0 %2907 }
0x3a36   :  { %v2910_v38 = vmul.f32 %v7413_v36, %v2908_v46 }
0x3a38   :  { %2912 = vrot.lane.b32.xlu1 %v2910_v38, %s7658_s16 }
0x3aaa   :  { %v2913_v40 = vpop.permute.xlu1 %2912 }
0x3aab   :  { %v2915_v55 = vadd.f32 %v2913_v40, %v2905_v39 }
0x3aad   :  { %7414 = vtanh.f32 %v2915_v55 }
0x3aba   :  { %v7415_v57 = vpop.eup %7414 }
0x3abb   :  { %2918 = vrot.lane.b32.xlu0 %v7415_v57, %s7657_s15 }
0x3b2d   :  { %v2919_v21 = vpop.permute.xlu0 %2918 }
0x3b2e   :  { %v8759_v7 = vmul.f32 %v7413_v36, %v2919_v21  ;;  %v3141_v21 = vld [vmem:[#allocation2 + $0x6] sm:$0x3] }
0x3b30   :  { %2928 = vrot.lane.b32.xlu1 %v8759_v7, %s7660_s18 }
0x3ba2   :  { %v2929_v41 = vpop.permute.xlu1 %2928 }
0x3ba3   :  { %v2931_v12 = vsel %vm1828_vm5, %v2927_v11, %v2929_v41 }
0x3ba4   :  { %6618 = vmatmul.mubr.msk.f32.vlgmr.msra.gmra.mxu0 %vm1836_vm6, %v2931_v12 }
0x3ba5   :  { %6648 = vmatpush3.msra.mxu0 %v8587_v15  ;;  %6671 = vmatprep.mubr.msk.f32.mxu0 %vm7656_vm0, %v7655_v1 }
0x3ba6   :  { %6649 = vmatprep.subr.mxu0 %v7655_v1 }
0x3ba7   :  { %6650 = vmatpush3.msra.mxu0 %v8591_v17 }
0x3ba8   :  { %6651 = vmatprep.subr.mxu0 %v7655_v1 }
0x3ba9   :  { %6652 = vmatpush3.msra.mxu0 %v8597_v19 }
0x3baa   :  { %6653 = vmatprep.subr.mxu0 %v7655_v1 }
0x3bab   :  { %6654 = vmatpush3.msra.mxu0 %v8602_v3 }
0x3bac   :  { %6655 = vmatprep.subr.mxu0 %v7655_v1 }
0x3bad   :  { %6656 = vmatpush3.msra.mxu0 %v8606_v20 }
0x3bae   :  { %6657 = vmatprep.subr.mxu0 %v7655_v1 }
0x3baf   :  { %6658 = vmatpush3.msra.mxu0 %v8610_v22 }
0x3bb0   :  { %6659 = vmatprep.subr.mxu0 %v7655_v1 }
0x3bb1   :  { %6660 = vmatpush3.msra.mxu0 %v8614_v23 }
0x3bb2   :  { %6661 = vmatprep.subr.mxu0 %v7655_v1 }
0x3bb3   :  { %6662 = vmatpush3.msra.mxu0 %v8618_v27 }
0x3bb4   :  { %6663 = vmatprep.subr.mxu0 %v7655_v1 }
0x3bb5   :  { %6664 = vmatpush3.msra.mxu0 %v8622_v29 }
0x3bb6   :  { %6665 = vmatprep.subr.mxu0 %v7655_v1 }
0x3bb7   :  { %6666 = vmatpush3.msra.mxu0 %v8626_v10 }
0x3bb8   :  { %6667 = vmatprep.subr.mxu0 %v7655_v1 }
0x3bb9   :  { %6668 = vmatpush3.msra.mxu0 %v8630_v30 }
0x3bba   :  { %6669 = vmatprep.subr.mxu0 %v7655_v1 }
0x3bbb   :  { %6670 = vmatpush3.msra.mxu0 %v8634_v45 }
0x3bbc   :  { %6701 = vmatprep.subr.mxu0 %v7655_v1 }
0x3c64   :  { %v3001_v43 = vpop.f32.mrf.mxu0 }
0x3c65   :  { %v3002_v26 = vadd.f32 %v8673_v37, %v3001_v43 }
0x3c66   :  { %v6619_v13 = vpop.f32.mrf.mxu0 }
0x3c67   :  { %7416 = vtanh.f32 %v3002_v26  ;;  %v5497_v14 = vmul.f32 -1.442695, %v3002_v26 }
0x3c69   :  { %7418 = vpow2.f32 %v5497_v14 }
0x3c74   :  { %v7417_v44 = vpop.eup %7416 }
0x3c75   :  { %3014 = vrot.lane.b32.xlu0 %v7417_v44, %s7657_s15 }
0x3c76   :  { %v7419_v49 = vpop.eup %7418 }
0x3c77   :  { %v3008_v16 = vadd.f32 1.0, %v7419_v49 }
0x3c79   :  { %7420 = vrcp.f32 %v3008_v16 }
0x3c86   :  { %v7421_v2 = vpop.eup %7420 }
0x3c87   :  { %v3012_v4 = vmul.f32 %v7421_v2, %v2915_v55 }
0x3ce7   :  { %v3015_v42 = vpop.permute.xlu0 %3014 }
0x3ce8   :  { %v3017_v52 = vmul.f32 %v7421_v2, %v3015_v42 }
0x3cea   :  { %3019 = vrot.lane.b32.xlu1 %v3017_v52, %s7658_s16 }
0x3d5c   :  { %v3020_v47 = vpop.permute.xlu1 %3019 }
0x3d5d   :  { %v3022_v5 = vadd.f32 %v3020_v47, %v3012_v4 }
0x3d5f   :  { %7422 = vtanh.f32 %v3022_v5 }
0x3d6c   :  { %v7423_v54 = vpop.eup %7422 }
0x3d6d   :  { %3025 = vrot.lane.b32.xlu0 %v7423_v54, %s7657_s15 }
0x3ddf   :  { %v3026_v56 = vpop.permute.xlu0 %3025 }
0x3de0   :  { %v8795_v8 = vmul.f32 %v7421_v2, %v3026_v56 }
0x3de2   :  { %3035 = vrot.lane.b32.xlu1 %v8795_v8, %s7660_s18 }
0x3e54   :  { %v3036_v59 = vpop.permute.xlu1 %3035 }
0x3e55   :  { %v3038_v48 = vsel %vm1828_vm5, %v3034_v0, %v3036_v59  ;;  %v3248_v0 = vld [vmem:[#allocation2 + $0x4] sm:$0x3] }
0x3e56   :  { %6645 = vmatmul.mubr.msk.f32.vlgmr.msra.gmra.mxu1 %vm1836_vm6, %v3038_v48 }
0x3e57   :  { %6675 = vmatpush3.msra.mxu1 %v8587_v15  ;;  %6698 = vmatprep.mubr.msk.f32.mxu1 %vm7656_vm0, %v7655_v1 }
0x3e58   :  { %6676 = vmatprep.subr.mxu1 %v7655_v1 }
0x3e59   :  { %6677 = vmatpush3.msra.mxu1 %v8591_v17 }
0x3e5a   :  { %6678 = vmatprep.subr.mxu1 %v7655_v1 }
0x3e5b   :  { %6679 = vmatpush3.msra.mxu1 %v8597_v19 }
0x3e5c   :  { %6680 = vmatprep.subr.mxu1 %v7655_v1 }
0x3e5d   :  { %6681 = vmatpush3.msra.mxu1 %v8602_v3 }
0x3e5e   :  { %6682 = vmatprep.subr.mxu1 %v7655_v1 }
0x3e5f   :  { %6683 = vmatpush3.msra.mxu1 %v8606_v20 }
0x3e60   :  { %6684 = vmatprep.subr.mxu1 %v7655_v1 }
0x3e61   :  { %6685 = vmatpush3.msra.mxu1 %v8610_v22 }
0x3e62   :  { %6686 = vmatprep.subr.mxu1 %v7655_v1 }
0x3e63   :  { %6687 = vmatpush3.msra.mxu1 %v8614_v23 }
0x3e64   :  { %6688 = vmatprep.subr.mxu1 %v7655_v1 }
0x3e65   :  { %6689 = vmatpush3.msra.mxu1 %v8618_v27 }
0x3e66   :  { %6690 = vmatprep.subr.mxu1 %v7655_v1 }
0x3e67   :  { %6691 = vmatpush3.msra.mxu1 %v8622_v29 }
0x3e68   :  { %6692 = vmatprep.subr.mxu1 %v7655_v1 }
0x3e69   :  { %6693 = vmatpush3.msra.mxu1 %v8626_v10 }
0x3e6a   :  { %6694 = vmatprep.subr.mxu1 %v7655_v1 }
0x3e6b   :  { %6695 = vmatpush3.msra.mxu1 %v8630_v30 }
0x3e6c   :  { %6696 = vmatprep.subr.mxu1 %v7655_v1 }
0x3e6d   :  { %6697 = vmatpush3.msra.mxu1 %v8634_v45 }
0x3e6e   :  { %6728 = vmatprep.subr.mxu1 %v7655_v1 }
0x3f16   :  { %v3108_v53 = vpop.f32.mrf.mxu1 }
0x3f17   :  { %v3109_v9 = vadd.f32 %v8673_v37, %v3108_v53 }
0x3f18   :  { %v6646_v51 = vpop.f32.mrf.mxu1 }
0x3f19   :  { %7424 = vtanh.f32 %v3109_v9  ;;  %v5499_v32 = vmul.f32 -1.442695, %v3109_v9 }
0x3f1b   :  { %7426 = vpow2.f32 %v5499_v32  ;;  %v3355_v32 = vld [vmem:[#allocation2 + $0x2] sm:$0x3] }
0x3f26   :  { %v7425_v18 = vpop.eup %7424 }
0x3f27   :  { %3121 = vrot.lane.b32.xlu0 %v7425_v18, %s7657_s15 }
0x3f28   :  { %v7427_v33 = vpop.eup %7426 }
0x3f29   :  { %v3115_v28 = vadd.f32 1.0, %v7427_v33 }
0x3f2b   :  { %7428 = vrcp.f32 %v3115_v28 }
0x3f38   :  { %v7429_v61 = vpop.eup %7428 }
0x3f39   :  { %v3119_v46 = vmul.f32 %v7429_v61, %v3022_v5 }
0x3f99   :  { %v3122_v25 = vpop.permute.xlu0 %3121 }
0x3f9a   :  { %v3124_v36 = vmul.f32 %v7429_v61, %v3122_v25 }
0x3f9c   :  { %3126 = vrot.lane.b32.xlu1 %v3124_v36, %s7658_s16 }
0x400e   :  { %v3127_v38 = vpop.permute.xlu1 %3126 }
0x400f   :  { %v3129_v39 = vadd.f32 %v3127_v38, %v3119_v46 }
0x4011   :  { %7430 = vtanh.f32 %v3129_v39 }
0x401e   :  { %v7431_v40 = vpop.eup %7430 }
0x401f   :  { %3132 = vrot.lane.b32.xlu0 %v7431_v40, %s7657_s15 }
0x4091   :  { %v3133_v55 = vpop.permute.xlu0 %3132 }
0x4092   :  { %v8831_v57 = vmul.f32 %v7429_v61, %v3133_v55 }
0x4094   :  { %3142 = vrot.lane.b32.xlu1 %v8831_v57, %s7660_s18 }
0x4106   :  { %v3143_v11 = vpop.permute.xlu1 %3142 }
0x4107   :  { %v3145_v41 = vsel %vm1828_vm5, %v3141_v21, %v3143_v11 }
0x4108   :  { %6672 = vmatmul.mubr.msk.f32.vlgmr.msra.gmra.mxu0 %vm1836_vm6, %v3145_v41 }
0x4109   :  { %6702 = vmatpush3.msra.mxu0 %v8587_v15  ;;  %6725 = vmatprep.mubr.msk.f32.mxu0 %vm7656_vm0, %v7655_v1 }
0x410a   :  { %6703 = vmatprep.subr.mxu0 %v7655_v1 }
0x410b   :  { %6704 = vmatpush3.msra.mxu0 %v8591_v17 }
0x410c   :  { %6705 = vmatprep.subr.mxu0 %v7655_v1 }
0x410d   :  { %6706 = vmatpush3.msra.mxu0 %v8597_v19 }
0x410e   :  { %6707 = vmatprep.subr.mxu0 %v7655_v1 }
0x410f   :  { %6708 = vmatpush3.msra.mxu0 %v8602_v3 }
0x4110   :  { %6709 = vmatprep.subr.mxu0 %v7655_v1 }
0x4111   :  { %6710 = vmatpush3.msra.mxu0 %v8606_v20 }
0x4112   :  { %6711 = vmatprep.subr.mxu0 %v7655_v1 }
0x4113   :  { %6712 = vmatpush3.msra.mxu0 %v8610_v22 }
0x4114   :  { %6713 = vmatprep.subr.mxu0 %v7655_v1 }
0x4115   :  { %6714 = vmatpush3.msra.mxu0 %v8614_v23 }
0x4116   :  { %6715 = vmatprep.subr.mxu0 %v7655_v1 }
0x4117   :  { %6716 = vmatpush3.msra.mxu0 %v8618_v27 }
0x4118   :  { %6717 = vmatprep.subr.mxu0 %v7655_v1 }
0x4119   :  { %6718 = vmatpush3.msra.mxu0 %v8622_v29 }
0x411a   :  { %6719 = vmatprep.subr.mxu0 %v7655_v1 }
0x411b   :  { %6720 = vmatpush3.msra.mxu0 %v8626_v10 }
0x411c   :  { %6721 = vmatprep.subr.mxu0 %v7655_v1 }
0x411d   :  { %6722 = vmatpush3.msra.mxu0 %v8630_v30 }
0x411e   :  { %6723 = vmatprep.subr.mxu0 %v7655_v1 }
0x411f   :  { %6724 = vmatpush3.msra.mxu0 %v8634_v45 }
0x4120   :  { %6755 = vmatprep.subr.mxu0 %v7655_v1 }
0x41c8   :  { %v3215_v12 = vpop.f32.mrf.mxu0 }
0x41c9   :  { %v3216_v43 = vadd.f32 %v8673_v37, %v3215_v12 }
0x41ca   :  { %v6673_v26 = vpop.f32.mrf.mxu0 }
0x41cb   :  { %7432 = vtanh.f32 %v3216_v43  ;;  %v5501_v44 = vmul.f32 -1.442695, %v3216_v43 }
0x41cd   :  { %7434 = vpow2.f32 %v5501_v44 }
0x41d8   :  { %v7433_v13 = vpop.eup %7432 }
0x41d9   :  { %3228 = vrot.lane.b32.xlu0 %v7433_v13, %s7657_s15 }
0x41da   :  { %v7435_v14 = vpop.eup %7434 }
0x41db   :  { %v3222_v49 = vadd.f32 1.0, %v7435_v14  ;;  %v3462_v14 = vld [vmem:[#allocation2] sm:$0x3] }
0x41dd   :  { %7436 = vrcp.f32 %v3222_v49 }
0x41ea   :  { %v7437_v16 = vpop.eup %7436 }
0x41eb   :  { %v3226_v52 = vmul.f32 %v7437_v16, %v3129_v39 }
0x424b   :  { %v3229_v2 = vpop.permute.xlu0 %3228 }
0x424c   :  { %v3231_v42 = vmul.f32 %v7437_v16, %v3229_v2 }
0x424e   :  { %3233 = vrot.lane.b32.xlu1 %v3231_v42, %s7658_s16 }
0x42c0   :  { %v3234_v4 = vpop.permute.xlu1 %3233 }
0x42c1   :  { %v3236_v47 = vadd.f32 %v3234_v4, %v3226_v52 }
0x42c3   :  { %7438 = vtanh.f32 %v3236_v47 }
0x42d0   :  { %v7439_v5 = vpop.eup %7438 }
0x42d1   :  { %3239 = vrot.lane.b32.xlu0 %v7439_v5, %s7657_s15 }
0x4343   :  { %v3240_v54 = vpop.permute.xlu0 %3239 }
0x4344   :  { %v8867_v56 = vmul.f32 %v7437_v16, %v3240_v54 }
0x4346   :  { %3249 = vrot.lane.b32.xlu1 %v8867_v56, %s7660_s18 }
0x43b8   :  { %v3250_v59 = vpop.permute.xlu1 %3249 }
0x43b9   :  { %v3252_v48 = vsel %vm1828_vm5, %v3248_v0, %v3250_v59 }
0x43ba   :  { %6699 = vmatmul.mubr.msk.f32.vlgmr.msra.gmra.mxu1 %vm1836_vm6, %v3252_v48 }
0x43bb   :  { %6729 = vmatpush3.msra.mxu1 %v8587_v15  ;;  %6752 = vmatprep.mubr.msk.f32.mxu1 %vm7656_vm0, %v7655_v1 }
0x43bc   :  { %6730 = vmatprep.subr.mxu1 %v7655_v1 }
0x43bd   :  { %6731 = vmatpush3.msra.mxu1 %v8591_v17 }
0x43be   :  { %6732 = vmatprep.subr.mxu1 %v7655_v1 }
0x43bf   :  { %6733 = vmatpush3.msra.mxu1 %v8597_v19 }
0x43c0   :  { %6734 = vmatprep.subr.mxu1 %v7655_v1 }
0x43c1   :  { %6735 = vmatpush3.msra.mxu1 %v8602_v3 }
0x43c2   :  { %6736 = vmatprep.subr.mxu1 %v7655_v1 }
0x43c3   :  { %6737 = vmatpush3.msra.mxu1 %v8606_v20 }
0x43c4   :  { %6738 = vmatprep.subr.mxu1 %v7655_v1 }
0x43c5   :  { %6739 = vmatpush3.msra.mxu1 %v8610_v22 }
0x43c6   :  { %6740 = vmatprep.subr.mxu1 %v7655_v1 }
0x43c7   :  { %6741 = vmatpush3.msra.mxu1 %v8614_v23 }
0x43c8   :  { %6742 = vmatprep.subr.mxu1 %v7655_v1 }
0x43c9   :  { %6743 = vmatpush3.msra.mxu1 %v8618_v27 }
0x43ca   :  { %6744 = vmatprep.subr.mxu1 %v7655_v1 }
0x43cb   :  { %6745 = vmatpush3.msra.mxu1 %v8622_v29 }
0x43cc   :  { %6746 = vmatprep.subr.mxu1 %v7655_v1 }
0x43cd   :  { %6747 = vmatpush3.msra.mxu1 %v8626_v10 }
0x43ce   :  { %6748 = vmatprep.subr.mxu1 %v7655_v1 }
0x43cf   :  { %6749 = vmatpush3.msra.mxu1 %v8630_v30 }
0x43d0   :  { %6750 = vmatprep.subr.mxu1 %v7655_v1 }
0x43d1   :  { %6751 = vmatpush3.msra.mxu1 %v8634_v45 }
0x43d2   :  { %6782 = vmatprep.subr.mxu1 %v7655_v1 }
0x447a   :  { %v3322_v15 = vpop.f32.mrf.mxu1 }
0x447b   :  { %v3323_v17 = vadd.f32 %v8673_v37, %v3322_v15 }
0x447c   :  { %v6700_v19 = vpop.f32.mrf.mxu1 }
0x447d   :  { %7440 = vtanh.f32 %v3323_v17  ;;  %v5503_v20 = vmul.f32 -1.442695, %v3323_v17 }
0x447f   :  { %7442 = vpow2.f32 %v5503_v20  ;;  %v8935_v20 = vld [vmem:[#allocation7 + $0x50] sm:$0xff] }
0x448a   :  { %v7441_v3 = vpop.eup %7440 }
0x448b   :  { %3335 = vrot.lane.b32.xlu0 %v7441_v3, %s7657_s15  ;;  %v8933_v3 = vld [vmem:[#allocation7 + $0x58] sm:$0xff] }
0x448c   :  { %v7443_v22 = vpop.eup %7442 }
0x448d   :  { %v3329_v23 = vadd.f32 1.0, %v7443_v22  ;;  %v8940_v22 = vld [vmem:[#allocation7 + $0x48] sm:$0xff] }
0x448f   :  { %7444 = vrcp.f32 %v3329_v23  ;;  %v8952_v23 = vld [vmem:[#allocation7 + $0x38] sm:$0xff] }
0x449c   :  { %v7445_v27 = vpop.eup %7444 }
0x449d   :  { %v3333_v30 = vmul.f32 %v7445_v27, %v3236_v47 }
0x44fd   :  { %v3336_v29 = vpop.permute.xlu0 %3335 }
0x44fe   :  { %v3338_v10 = vmul.f32 %v7445_v27, %v3336_v29 }
0x4500   :  { %3340 = vrot.lane.b32.xlu1 %v3338_v10, %s7658_s16  ;;  %v8964_v10 = vld [vmem:[#allocation7 + $0x28] sm:$0xff] }
0x4572   :  { %v3341_v45 = vpop.permute.xlu1 %3340 }
0x4573   :  { %v3343_v53 = vadd.f32 %v3341_v45, %v3333_v30  ;;  %v8976_v30 = vld [vmem:[#allocation7 + $0x20] sm:$0xff]  ;;  %v8979_v45 = vld [vmem:[#allocation7 + $0x18] sm:$0xff] }
0x4575   :  { %7446 = vtanh.f32 %v3343_v53 }
0x4582   :  { %v7447_v9 = vpop.eup %7446 }
0x4583   :  { %3346 = vrot.lane.b32.xlu0 %v7447_v9, %s7657_s15  ;;  %v8989_v9 = vld [vmem:[#allocation7 + $0x8] sm:$0xff] }
0x45f5   :  { %v3347_v51 = vpop.permute.xlu0 %3346 }
0x45f6   :  { %v8903_v18 = vmul.f32 %v7445_v27, %v3347_v51  ;;  %v8958_v27 = vld [vmem:[#allocation7 + $0x30] sm:$0xff]  ;;  %v8995_v51 = vld [vmem:[#allocation7] sm:$0xff] }
0x45f8   :  { %3356 = vrot.lane.b32.xlu1 %v8903_v18, %s7660_s18 }
0x466a   :  { %v3357_v33 = vpop.permute.xlu1 %3356 }
0x466b   :  { %v3359_v28 = vsel %vm1828_vm5, %v3355_v32, %v3357_v33 }
0x466c   :  { %6726 = vmatmul.mubr.msk.f32.vlgmr.msra.gmra.mxu0 %vm1836_vm6, %v3359_v28 }
0x466d   :  { %6779 = vmatprep.mubr.msk.f32.mxu0 %vm7656_vm0, %v7655_v1  ;;  %6756 = vmatpush3.msra.mxu0 %v8933_v3 }
0x466e   :  { %6757 = vmatprep.subr.mxu0 %v7655_v1 }
0x466f   :  { %6758 = vmatpush3.msra.mxu0 %v8935_v20 }
0x4670   :  { %6759 = vmatprep.subr.mxu0 %v7655_v1 }
0x4671   :  { %6760 = vmatpush3.msra.mxu0 %v8940_v22 }
0x4672   :  { %6761 = vmatprep.subr.mxu0 %v7655_v1 }
0x472c   :  { %v3429_v61 = vpop.f32.mrf.mxu0 }
0x472d   :  { %v3430_v25 = vadd.f32 %v8673_v37, %v3429_v61 }
0x472e   :  { %v6727_v36 = vpop.f32.mrf.mxu0 }
0x472f   :  { %7448 = vtanh.f32 %v3430_v25  ;;  %v5505_v38 = vmul.f32 -1.442695, %v3430_v25  ;;  %v9040_v36 = vld [vmem:[%s9721_s6] ss:$0 sm:$0xff] }
0x4731   :  { %7450 = vpow2.f32 %v5505_v38 }
0x473c   :  { %v7449_v46 = vpop.eup %7448 }
0x473d   :  { %3442 = vrot.lane.b32.xlu0 %v7449_v46, %s7657_s15 }
0x473e   :  { %v7451_v39 = vpop.eup %7450 }
0x473f   :  { %v3436_v40 = vadd.f32 1.0, %v7451_v39 }
0x4741   :  { %7452 = vrcp.f32 %v3436_v40 }
0x474e   :  { %v7453_v55 = vpop.eup %7452 }
0x474f   :  { %v3440_v41 = vmul.f32 %v7453_v55, %v3343_v53  ;;  %v8983_v53 = vld [vmem:[#allocation7 + $0x10] sm:$0xff] }
0x47af   :  { %v3443_v21 = vpop.permute.xlu0 %3442 }
0x47b0   :  { %v3445_v11 = vmul.f32 %v7453_v55, %v3443_v21 }
0x47b2   :  { %3447 = vrot.lane.b32.xlu1 %v3445_v11, %s7658_s16 }
0x4824   :  { %v3448_v12 = vpop.permute.xlu1 %3447 }
0x4825   :  { %v3450_v43 = vadd.f32 %v3448_v12, %v3440_v41 }
0x4827   :  { %7454 = vtanh.f32 %v3450_v43 }
0x4834   :  { %v7455_v26 = vpop.eup %7454 }
0x4835   :  { %3453 = vrot.lane.b32.xlu0 %v7455_v26, %s7657_s15 }
0x48a7   :  { %v3454_v13 = vpop.permute.xlu0 %3453 }
0x48a8   :  { %v8915_v44 = vmul.f32 %v7453_v55, %v3454_v13 }
0x48aa   :  { %3463 = vrot.lane.b32.xlu1 %v8915_v44, %s7660_s18 }
0x491c   :  { %v3464_v49 = vpop.permute.xlu1 %3463 }
0x491d   :  { %v3466_v16 = vsel %vm1828_vm5, %v3462_v14, %v3464_v49 }
0x491e   :  { %6753 = vmatmul.mubr.msk.f32.vlgmr.msra.gmra.mxu1 %vm1836_vm6, %v3466_v16 }
0x491f   :  { %6806 = vmatprep.mubr.msk.f32.mxu1 %vm7656_vm0, %v7655_v1  ;;  %6783 = vmatpush3.msra.mxu1 %v8933_v3 }
0x4920   :  { %6784 = vmatprep.subr.mxu1 %v7655_v1 }
0x4921   :  { %6785 = vmatpush3.msra.mxu1 %v8935_v20 }
0x4922   :  { %6786 = vmatprep.subr.mxu1 %v7655_v1 }
0x4923   :  { %6787 = vmatpush3.msra.mxu1 %v8940_v22 }
0x4924   :  { %6788 = vmatprep.subr.mxu1 %v7655_v1 }
0x49de   :  { %v3536_v2 = vpop.f32.mrf.mxu1 }
0x49df   :  { %v3537_v42 = vadd.f32 %v8673_v37, %v3536_v2 }
0x49e0   :  { %v6754_v52 = vpop.f32.mrf.mxu1 }
0x49e1   :  { %7456 = vtanh.f32 %v3537_v42  ;;  %v5507_v47 = vmul.f32 -1.442695, %v3537_v42 }
0x49e3   :  { %7458 = vpow2.f32 %v5507_v47 }
0x49ee   :  { %v7457_v4 = vpop.eup %7456 }
0x49ef   :  { %3549 = vrot.lane.b32.xlu0 %v7457_v4, %s7657_s15 }
0x49f0   :  { %v7459_v5 = vpop.eup %7458 }
0x49f1   :  { %v3543_v54 = vadd.f32 1.0, %v7459_v5 }
0x49f3   :  { %7460 = vrcp.f32 %v3543_v54 }
0x4a00   :  { %v8925_v0 = vpop.eup %7460 }
0x4a01   :  { %v3547_v37 = vmul.f32 %v8925_v0, %v3450_v43 }
0x4a61   :  { %v3550_v59 = vpop.permute.xlu0 %3549 }
0x4a62   :  { %v3552_v48 = vmul.f32 %v8925_v0, %v3550_v59 }
0x4a64   :  { %3554 = vrot.lane.b32.xlu1 %v3552_v48, %s7658_s16 }
0x4a68   :  { %1935 = vrot.lane.b32.xlu1 %v8353_v31, %s7658_s16  ;;  %v8946_v31 = vld [vmem:[#allocation7 + $0x40] sm:$0xff] }
0x4a69   :  { %6762 = vmatpush3.msra.mxu0 %v8946_v31  ;;  %6789 = vmatpush3.msra.mxu1 %v8946_v31 }
0x4a6a   :  { %6763 = vmatprep.subr.mxu0 %v7655_v1  ;;  %6790 = vmatprep.subr.mxu1 %v7655_v1 }
0x4a6b   :  { %6764 = vmatpush3.msra.mxu0 %v8952_v23  ;;  %6791 = vmatpush3.msra.mxu1 %v8952_v23 }
0x4a6c   :  { %6765 = vmatprep.subr.mxu0 %v7655_v1  ;;  %6792 = vmatprep.subr.mxu1 %v7655_v1 }
0x4a6d   :  { %6766 = vmatpush3.msra.mxu0 %v8958_v27  ;;  %6793 = vmatpush3.msra.mxu1 %v8958_v27 }
0x4a6e   :  { %6767 = vmatprep.subr.mxu0 %v7655_v1  ;;  %6794 = vmatprep.subr.mxu1 %v7655_v1 }
0x4a6f   :  { %6768 = vmatpush3.msra.mxu0 %v8964_v10  ;;  %6795 = vmatpush3.msra.mxu1 %v8964_v10 }
0x4a70   :  { %6769 = vmatprep.subr.mxu0 %v7655_v1  ;;  %6796 = vmatprep.subr.mxu1 %v7655_v1 }
0x4a71   :  { %6770 = vmatpush3.msra.mxu0 %v8976_v30  ;;  %6797 = vmatpush3.msra.mxu1 %v8976_v30 }
0x4a72   :  { %6771 = vmatprep.subr.mxu0 %v7655_v1  ;;  %6798 = vmatprep.subr.mxu1 %v7655_v1 }
0x4a73   :  { %6772 = vmatpush3.msra.mxu0 %v8979_v45  ;;  %6799 = vmatpush3.msra.mxu1 %v8979_v45 }
0x4a74   :  { %6773 = vmatprep.subr.mxu0 %v7655_v1  ;;  %6800 = vmatprep.subr.mxu1 %v7655_v1 }
0x4a75   :  { %6774 = vmatpush3.msra.mxu0 %v8983_v53  ;;  %6801 = vmatpush3.msra.mxu1 %v8983_v53 }
0x4a76   :  { %6775 = vmatprep.subr.mxu0 %v7655_v1  ;;  %6802 = vmatprep.subr.mxu1 %v7655_v1 }
0x4a77   :  { %6776 = vmatpush3.msra.mxu0 %v8989_v9  ;;  %6803 = vmatpush3.msra.mxu1 %v8989_v9 }
0x4a78   :  { %6777 = vmatprep.subr.mxu0 %v7655_v1  ;;  %6804 = vmatprep.subr.mxu1 %v7655_v1 }
0x4a79   :  { %6778 = vmatpush3.msra.mxu0 %v8995_v51  ;;  %6805 = vmatpush3.msra.mxu1 %v8995_v51 }
0x4a7a   :  { %6809 = vmatprep.subr.mxu0 %v7655_v1  ;;  %6836 = vmatprep.subr.mxu1 %v7655_v1 }
0x4ad6   :  { %v3555_v15 = vpop.permute.xlu1 %3554 }
0x4ad7   :  { %v3557_v17 = vadd.f32 %v3555_v15, %v3547_v37 }
0x4ad9   :  { %7462 = vtanh.f32 %v3557_v17 }
0x4ada   :  { %v1936_v19 = vpop.permute.xlu1 %1935 }
0x4adb   :  { %1938 = vst.msk [vmem:[#allocation3] sm:$0x3] %vm180_vm3, %v1936_v19 }
0x4ae6   :  { %v7463_v29 = vpop.eup %7462 }
0x4ae7   :  { %3560 = vrot.lane.b32.xlu0 %v7463_v29, %s7657_s15 }
0x4b59   :  { %v3561_v32 = vpop.permute.xlu0 %3560 }
0x4b5a   :  { %v3563_v33 = vmul.f32 %v8925_v0, %v3561_v32 }
0x4b5c   :  { %3565 = vrot.lane.b32.xlu0 %v3563_v33, %s7657_s15 }
0x4bce   :  { %v3566_v28 = vpop.permute.xlu0 %3565 }
0x4bcf   :  { %3568 = vst.msk [vmem:[#allocation3] sm:$0x3] %vm1063_vm4, %v3566_v28 }
0x4bd6   :  { %v3582_v61 = vld [vmem:[#allocation3] sm:$0x3] }
0x4bd7   :  { %v3583_v25 = vsel %vm1828_vm5, %v3582_v61, 0.0 }
0x4bd8   :  { %6780 = vmatmul.mubr.msk.f32.vlgmr.msra.gmra.mxu0 %vm1836_vm6, %v3583_v25 }
0x4bd9   :  { %6810 = vmatpush3.msra.mxu0 %v8933_v3  ;;  %6833 = vmatprep.mubr.msk.f32.mxu0 %vm7656_vm0, %v7655_v1 }
0x4bda   :  { %6811 = vmatprep.subr.mxu0 %v7655_v1 }
0x4bdb   :  { %6812 = vmatpush3.msra.mxu0 %v8935_v20 }
0x4bdc   :  { %6813 = vmatprep.subr.mxu0 %v7655_v1 }
0x4bdd   :  { %6814 = vmatpush3.msra.mxu0 %v8940_v22 }
0x4bde   :  { %6815 = vmatprep.subr.mxu0 %v7655_v1 }
0x4bdf   :  { %6816 = vmatpush3.msra.mxu0 %v8946_v31 }
0x4be0   :  { %6817 = vmatprep.subr.mxu0 %v7655_v1 }
0x4be1   :  { %6818 = vmatpush3.msra.mxu0 %v8952_v23 }
0x4be2   :  { %6819 = vmatprep.subr.mxu0 %v7655_v1 }
0x4be3   :  { %6820 = vmatpush3.msra.mxu0 %v8958_v27 }
0x4be4   :  { %6821 = vmatprep.subr.mxu0 %v7655_v1 }
0x4be5   :  { %6822 = vmatpush3.msra.mxu0 %v8964_v10 }
0x4be6   :  { %6823 = vmatprep.subr.mxu0 %v7655_v1 }
0x4be7   :  { %6824 = vmatpush3.msra.mxu0 %v8976_v30 }
0x4be8   :  { %6825 = vmatprep.subr.mxu0 %v7655_v1 }
0x4be9   :  { %6826 = vmatpush3.msra.mxu0 %v8979_v45 }
0x4bea   :  { %6827 = vmatprep.subr.mxu0 %v7655_v1 }
0x4beb   :  { %6828 = vmatpush3.msra.mxu0 %v8983_v53 }
0x4bec   :  { %6829 = vmatprep.subr.mxu0 %v7655_v1 }
0x4bed   :  { %6830 = vmatpush3.msra.mxu0 %v8989_v9 }
0x4bee   :  { %6831 = vmatprep.subr.mxu0 %v7655_v1 }
0x4bef   :  { %6832 = vmatpush3.msra.mxu0 %v8995_v51 }
0x4bf0   :  { %6863 = vmatprep.subr.mxu0 %v7655_v1 }
0x4c98   :  { %v3659_v46 = vpop.f32.mrf.mxu0 }
0x4c99   :  { %v3660_v38 = vadd.f32 %v9040_v36, %v3659_v46 }
0x4c9a   :  { %v6781_v39 = vpop.f32.mrf.mxu0 }
0x4c9b   :  { %7464 = vtanh.f32 %v3660_v38  ;;  %v5510_v55 = vmul.f32 -1.442695, %v3660_v38 }
0x4c9d   :  { %7466 = vpow2.f32 %v5510_v55 }
0x4ca8   :  { %v7465_v40 = vpop.eup %7464 }
0x4ca9   :  { %3672 = vrot.lane.b32.xlu1 %v7465_v40, %s7657_s15 }
0x4caa   :  { %v7467_v21 = vpop.eup %7466 }
0x4cab   :  { %v3666_v11 = vadd.f32 1.0, %v7467_v21 }
0x4cad   :  { %7468 = vrcp.f32 %v3666_v11 }
0x4cba   :  { %v7469_v41 = vpop.eup %7468 }
0x4cbb   :  { %v3670_v26 = vmul.f32 0.0, %v7469_v41 }
0x4d1b   :  { %v3673_v12 = vpop.permute.xlu1 %3672 }
0x4d1c   :  { %v3675_v43 = vmul.f32 %v7469_v41, %v3673_v12 }
0x4d1e   :  { %3677 = vrot.lane.b32.xlu0 %v3675_v43, %s7658_s16 }
0x4d22   :  { %2042 = vrot.lane.b32.xlu0 %v8395_v58, %s7658_s16 }
0x4d90   :  { %v3678_v13 = vpop.permute.xlu0 %3677 }
0x4d91   :  { %v3680_v14 = vadd.f32 %v3678_v13, %v3670_v26 }
0x4d93   :  { %7470 = vtanh.f32 %v3680_v14 }
0x4d94   :  { %v2043_v49 = vpop.permute.xlu0 %2042 }
0x4d95   :  { %2046 = vst.msk [vmem:[#allocation3 + $0x2] sm:$0x3] %vm180_vm3, %v2043_v49 }
0x4da0   :  { %v7471_v16 = vpop.eup %7470 }
0x4da1   :  { %3683 = vrot.lane.b32.xlu1 %v7471_v16, %s7657_s15 }
0x4da5   :  { %3458 = vrot.lane.b32.xlu1 %v8915_v44, %s7657_s15 }
0x4e13   :  { %v3684_v2 = vpop.permute.xlu1 %3683 }
0x4e14   :  { %v9051_v42 = vmul.f32 %v7469_v41, %v3684_v2 }
0x4e16   :  { %3693 = vrot.lane.b32.xlu0 %v9051_v42, %s7660_s18 }
0x4e17   :  { %v3459_v58 = vpop.permute.xlu1 %3458 }
0x4e18   :  { %3461 = vst.msk [vmem:[#allocation3 + $0x2] sm:$0x3] %vm1063_vm4, %v3459_v58 }
0x4e1f   :  { %v3692_v4 = vld [vmem:[#allocation3 + $0x2] sm:$0x3] }
0x4e88   :  { %v3694_v52 = vpop.permute.xlu0 %3693 }
0x4e89   :  { %v3696_v47 = vsel %vm1828_vm5, %v3692_v4, %v3694_v52 }
0x4e8a   :  { %6807 = vmatmul.mubr.msk.f32.vlgmr.msra.gmra.mxu1 %vm1836_vm6, %v3696_v47 }
0x4e8b   :  { %6837 = vmatpush3.msra.mxu1 %v8933_v3  ;;  %6860 = vmatprep.mubr.msk.f32.mxu1 %vm7656_vm0, %v7655_v1 }
0x4e8c   :  { %6838 = vmatprep.subr.mxu1 %v7655_v1 }
0x4e8d   :  { %6839 = vmatpush3.msra.mxu1 %v8935_v20 }
0x4e8e   :  { %6840 = vmatprep.subr.mxu1 %v7655_v1 }
0x4e8f   :  { %6841 = vmatpush3.msra.mxu1 %v8940_v22 }
0x4e90   :  { %6842 = vmatprep.subr.mxu1 %v7655_v1 }
0x4e91   :  { %6843 = vmatpush3.msra.mxu1 %v8946_v31 }
0x4e92   :  { %6844 = vmatprep.subr.mxu1 %v7655_v1 }
0x4e93   :  { %6845 = vmatpush3.msra.mxu1 %v8952_v23 }
0x4e94   :  { %6846 = vmatprep.subr.mxu1 %v7655_v1 }
0x4e95   :  { %6847 = vmatpush3.msra.mxu1 %v8958_v27 }
0x4e96   :  { %6848 = vmatprep.subr.mxu1 %v7655_v1 }
0x4e97   :  { %6849 = vmatpush3.msra.mxu1 %v8964_v10 }
0x4e98   :  { %6850 = vmatprep.subr.mxu1 %v7655_v1 }
0x4e99   :  { %6851 = vmatpush3.msra.mxu1 %v8976_v30 }
0x4e9a   :  { %6852 = vmatprep.subr.mxu1 %v7655_v1 }
0x4e9b   :  { %6853 = vmatpush3.msra.mxu1 %v8979_v45 }
0x4e9c   :  { %6854 = vmatprep.subr.mxu1 %v7655_v1 }
0x4e9d   :  { %6855 = vmatpush3.msra.mxu1 %v8983_v53 }
0x4e9e   :  { %6856 = vmatprep.subr.mxu1 %v7655_v1 }
0x4e9f   :  { %6857 = vmatpush3.msra.mxu1 %v8989_v9 }
0x4ea0   :  { %6858 = vmatprep.subr.mxu1 %v7655_v1 }
0x4ea1   :  { %6859 = vmatpush3.msra.mxu1 %v8995_v51 }
0x4ea2   :  { %6890 = vmatprep.subr.mxu1 %v7655_v1 }
0x4f4a   :  { %v3766_v44 = vpop.f32.mrf.mxu1 }
0x4f4b   :  { %v3767_v5 = vadd.f32 %v9040_v36, %v3766_v44 }
0x4f4c   :  { %v6808_v54 = vpop.f32.mrf.mxu1 }
0x4f4d   :  { %7472 = vtanh.f32 %v3767_v5  ;;  %v5512_v59 = vmul.f32 -1.442695, %v3767_v5 }
0x4f4f   :  { %7474 = vpow2.f32 %v5512_v59 }
0x4f5a   :  { %v7473_v0 = vpop.eup %7472 }
0x4f5b   :  { %3779 = vrot.lane.b32.xlu1 %v7473_v0, %s7657_s15 }
0x4f5c   :  { %v7475_v48 = vpop.eup %7474 }
0x4f5d   :  { %v3773_v37 = vadd.f32 1.0, %v7475_v48 }
0x4f5f   :  { %7476 = vrcp.f32 %v3773_v37 }
0x4f6c   :  { %v7477_v15 = vpop.eup %7476 }
0x4f6d   :  { %v3777_v29 = vmul.f32 %v7477_v15, %v3680_v14 }
0x4fcd   :  { %v3780_v17 = vpop.permute.xlu1 %3779 }
0x4fce   :  { %v3782_v19 = vmul.f32 %v7477_v15, %v3780_v17 }
0x4fd0   :  { %3784 = vrot.lane.b32.xlu0 %v3782_v19, %s7658_s16 }
0x4fd4   :  { %2150 = vrot.lane.b32.xlu0 %v8437_v34, %s7658_s16 }
0x5042   :  { %v3785_v32 = vpop.permute.xlu0 %3784 }
0x5043   :  { %v3787_v33 = vadd.f32 %v3785_v32, %v3777_v29 }
0x5045   :  { %7478 = vtanh.f32 %v3787_v33 }
0x5046   :  { %v2151_v28 = vpop.permute.xlu0 %2150 }
0x5047   :  { %2154 = vst.msk [vmem:[#allocation3 + $0x4] sm:$0x3] %vm180_vm3, %v2151_v28 }
0x5052   :  { %v7479_v61 = vpop.eup %7478 }
0x5053   :  { %3790 = vrot.lane.b32.xlu1 %v7479_v61, %s7657_s15 }
0x5057   :  { %3351 = vrot.lane.b32.xlu1 %v8903_v18, %s7657_s15 }
0x50c5   :  { %v3791_v25 = vpop.permute.xlu1 %3790 }
0x50c6   :  { %v9093_v46 = vmul.f32 %v7477_v15, %v3791_v25 }
0x50c8   :  { %3800 = vrot.lane.b32.xlu0 %v9093_v46, %s7660_s18 }
0x50c9   :  { %v3352_v34 = vpop.permute.xlu1 %3351 }
0x50ca   :  { %3354 = vst.msk [vmem:[#allocation3 + $0x4] sm:$0x3] %vm1063_vm4, %v3352_v34 }
0x50d1   :  { %v3799_v39 = vld [vmem:[#allocation3 + $0x4] sm:$0x3] }
0x513a   :  { %v3801_v38 = vpop.permute.xlu0 %3800 }
0x513b   :  { %v3803_v40 = vsel %vm1828_vm5, %v3799_v39, %v3801_v38 }
0x513c   :  { %6834 = vmatmul.mubr.msk.f32.vlgmr.msra.gmra.mxu0 %vm1836_vm6, %v3803_v40 }
0x513d   :  { %6864 = vmatpush3.msra.mxu0 %v8933_v3  ;;  %6887 = vmatprep.mubr.msk.f32.mxu0 %vm7656_vm0, %v7655_v1 }
0x513e   :  { %6865 = vmatprep.subr.mxu0 %v7655_v1 }
0x513f   :  { %6866 = vmatpush3.msra.mxu0 %v8935_v20 }
0x5140   :  { %6867 = vmatprep.subr.mxu0 %v7655_v1 }
0x5141   :  { %6868 = vmatpush3.msra.mxu0 %v8940_v22 }
0x5142   :  { %6869 = vmatprep.subr.mxu0 %v7655_v1 }
0x5143   :  { %6870 = vmatpush3.msra.mxu0 %v8946_v31 }
0x5144   :  { %6871 = vmatprep.subr.mxu0 %v7655_v1 }
0x5145   :  { %6872 = vmatpush3.msra.mxu0 %v8952_v23 }
0x5146   :  { %6873 = vmatprep.subr.mxu0 %v7655_v1 }
0x5147   :  { %6874 = vmatpush3.msra.mxu0 %v8958_v27 }
0x5148   :  { %6875 = vmatprep.subr.mxu0 %v7655_v1 }
0x5149   :  { %6876 = vmatpush3.msra.mxu0 %v8964_v10 }
0x514a   :  { %6877 = vmatprep.subr.mxu0 %v7655_v1 }
0x514b   :  { %6878 = vmatpush3.msra.mxu0 %v8976_v30 }
0x514c   :  { %6879 = vmatprep.subr.mxu0 %v7655_v1 }
0x514d   :  { %6880 = vmatpush3.msra.mxu0 %v8979_v45 }
0x514e   :  { %6881 = vmatprep.subr.mxu0 %v7655_v1 }
0x514f   :  { %6882 = vmatpush3.msra.mxu0 %v8983_v53 }
0x5150   :  { %6883 = vmatprep.subr.mxu0 %v7655_v1 }
0x5151   :  { %6884 = vmatpush3.msra.mxu0 %v8989_v9 }
0x5152   :  { %6885 = vmatprep.subr.mxu0 %v7655_v1 }
0x5153   :  { %6886 = vmatpush3.msra.mxu0 %v8995_v51 }
0x5154   :  { %6917 = vmatprep.subr.mxu0 %v7655_v1 }
0x51fc   :  { %v3873_v18 = vpop.f32.mrf.mxu0 }
0x51fd   :  { %v3874_v55 = vadd.f32 %v9040_v36, %v3873_v18 }
0x51fe   :  { %v6835_v21 = vpop.f32.mrf.mxu0 }
0x51ff   :  { %7480 = vtanh.f32 %v3874_v55  ;;  %v5514_v41 = vmul.f32 -1.442695, %v3874_v55 }
0x5201   :  { %7482 = vpow2.f32 %v5514_v41 }
0x520c   :  { %v7481_v11 = vpop.eup %7480 }
0x520d   :  { %3886 = vrot.lane.b32.xlu1 %v7481_v11, %s7657_s15 }
0x520e   :  { %v7483_v12 = vpop.eup %7482 }
0x520f   :  { %v3880_v43 = vadd.f32 1.0, %v7483_v12 }
0x5211   :  { %7484 = vrcp.f32 %v3880_v43 }
0x521e   :  { %v7485_v26 = vpop.eup %7484 }
0x521f   :  { %v3884_v49 = vmul.f32 %v7485_v26, %v3787_v33 }
0x527f   :  { %v3887_v13 = vpop.permute.xlu1 %3886 }
0x5280   :  { %v3889_v14 = vmul.f32 %v7485_v26, %v3887_v13 }
0x5282   :  { %3891 = vrot.lane.b32.xlu0 %v3889_v14, %s7658_s16 }
0x5286   :  { %2258 = vrot.lane.b32.xlu0 %v8479_v60, %s7658_s16 }
0x52f4   :  { %v3892_v16 = vpop.permute.xlu0 %3891 }
0x52f5   :  { %v3894_v2 = vadd.f32 %v3892_v16, %v3884_v49 }
0x52f7   :  { %7486 = vtanh.f32 %v3894_v2 }
0x52f8   :  { %v2259_v58 = vpop.permute.xlu0 %2258 }
0x52f9   :  { %2262 = vst.msk [vmem:[#allocation3 + $0x6] sm:$0x3] %vm180_vm3, %v2259_v58 }
0x5304   :  { %v7487_v52 = vpop.eup %7486 }
0x5305   :  { %3897 = vrot.lane.b32.xlu1 %v7487_v52, %s7657_s15 }
0x5309   :  { %3244 = vrot.lane.b32.xlu1 %v8867_v56, %s7657_s15 }
0x5377   :  { %v3898_v4 = vpop.permute.xlu1 %3897 }
0x5378   :  { %v9135_v47 = vmul.f32 %v7485_v26, %v3898_v4 }
0x537a   :  { %3907 = vrot.lane.b32.xlu0 %v9135_v47, %s7660_s18 }
0x537b   :  { %v3245_v60 = vpop.permute.xlu1 %3244 }
0x537c   :  { %3247 = vst.msk [vmem:[#allocation3 + $0x6] sm:$0x3] %vm1063_vm4, %v3245_v60  ;;  %v7605_v60 = vld [vmem:[%s9720_s5] ss:$0 sm:$0xff] }
0x5383   :  { %v3906_v5 = vld [vmem:[#allocation3 + $0x6] sm:$0x3] }
0x53ec   :  { %v3908_v44 = vpop.permute.xlu0 %3907 }
0x53ed   :  { %v3910_v54 = vsel %vm1828_vm5, %v3906_v5, %v3908_v44 }
0x53ee   :  { %6861 = vmatmul.mubr.msk.f32.vlgmr.msra.gmra.mxu1 %vm1836_vm6, %v3910_v54 }
0x53ef   :  { %6891 = vmatpush3.msra.mxu1 %v8933_v3  ;;  %6914 = vmatprep.mubr.msk.f32.mxu1 %vm7656_vm0, %v7655_v1 }
0x53f0   :  { %6892 = vmatprep.subr.mxu1 %v7655_v1 }
0x53f1   :  { %6893 = vmatpush3.msra.mxu1 %v8935_v20 }
0x53f2   :  { %6894 = vmatprep.subr.mxu1 %v7655_v1 }
0x53f3   :  { %6895 = vmatpush3.msra.mxu1 %v8940_v22 }
0x53f4   :  { %6896 = vmatprep.subr.mxu1 %v7655_v1 }
0x53f5   :  { %6897 = vmatpush3.msra.mxu1 %v8946_v31 }
0x53f6   :  { %6898 = vmatprep.subr.mxu1 %v7655_v1 }
0x53f7   :  { %6899 = vmatpush3.msra.mxu1 %v8952_v23 }
0x53f8   :  { %6900 = vmatprep.subr.mxu1 %v7655_v1 }
0x53f9   :  { %6901 = vmatpush3.msra.mxu1 %v8958_v27 }
0x53fa   :  { %6902 = vmatprep.subr.mxu1 %v7655_v1 }
0x53fb   :  { %6903 = vmatpush3.msra.mxu1 %v8964_v10 }
0x53fc   :  { %6904 = vmatprep.subr.mxu1 %v7655_v1 }
0x53fd   :  { %6905 = vmatpush3.msra.mxu1 %v8976_v30 }
0x53fe   :  { %6906 = vmatprep.subr.mxu1 %v7655_v1 }
0x53ff   :  { %6907 = vmatpush3.msra.mxu1 %v8979_v45 }
0x5400   :  { %6908 = vmatprep.subr.mxu1 %v7655_v1 }
0x5401   :  { %6909 = vmatpush3.msra.mxu1 %v8983_v53 }
0x5402   :  { %6910 = vmatprep.subr.mxu1 %v7655_v1 }
0x5403   :  { %6911 = vmatpush3.msra.mxu1 %v8989_v9 }
0x5404   :  { %6912 = vmatprep.subr.mxu1 %v7655_v1 }
0x5405   :  { %6913 = vmatpush3.msra.mxu1 %v8995_v51 }
0x5406   :  { %6944 = vmatprep.subr.mxu1 %v7655_v1 }
0x54ae   :  { %v3980_v56 = vpop.f32.mrf.mxu1 }
0x54af   :  { %v3981_v0 = vadd.f32 %v9040_v36, %v3980_v56 }
0x54b0   :  { %v6862_v59 = vpop.f32.mrf.mxu1 }
0x54b1   :  { %7488 = vtanh.f32 %v3981_v0  ;;  %v5516_v37 = vmul.f32 -1.442695, %v3981_v0 }
0x54b3   :  { %7490 = vpow2.f32 %v5516_v37 }
0x54be   :  { %v7489_v48 = vpop.eup %7488 }
0x54bf   :  { %3993 = vrot.lane.b32.xlu1 %v7489_v48, %s7657_s15 }
0x54c0   :  { %v7491_v15 = vpop.eup %7490 }
0x54c1   :  { %v3987_v17 = vadd.f32 1.0, %v7491_v15 }
0x54c3   :  { %7492 = vrcp.f32 %v3987_v17 }
0x54d0   :  { %v7493_v19 = vpop.eup %7492 }
0x54d1   :  { %v3991_v33 = vmul.f32 %v7493_v19, %v3894_v2 }
0x5531   :  { %v3994_v29 = vpop.permute.xlu1 %3993 }
0x5532   :  { %v3996_v32 = vmul.f32 %v7493_v19, %v3994_v29 }
0x5534   :  { %3998 = vrot.lane.b32.xlu0 %v3996_v32, %s7658_s16 }
0x5538   :  { %2366 = vrot.lane.b32.xlu0 %v8528_v35, %s7658_s16 }
0x55a6   :  { %v3999_v28 = vpop.permute.xlu0 %3998 }
0x55a7   :  { %v4001_v61 = vadd.f32 %v3999_v28, %v3991_v33 }
0x55a9   :  { %7494 = vtanh.f32 %v4001_v61 }
0x55aa   :  { %v2367_v25 = vpop.permute.xlu0 %2366 }
0x55ab   :  { %2370 = vst.msk [vmem:[#allocation3 + $0x8] sm:$0x3] %vm180_vm3, %v2367_v25 }
0x55b6   :  { %v7495_v34 = vpop.eup %7494 }
0x55b7   :  { %4004 = vrot.lane.b32.xlu1 %v7495_v34, %s7657_s15 }
0x55bb   :  { %3137 = vrot.lane.b32.xlu1 %v8831_v57, %s7657_s15 }
0x5629   :  { %v4005_v38 = vpop.permute.xlu1 %4004 }
0x562a   :  { %v9177_v39 = vmul.f32 %v7493_v19, %v4005_v38 }
0x562c   :  { %4014 = vrot.lane.b32.xlu0 %v9177_v39, %s7660_s18 }
0x562d   :  { %v3138_v35 = vpop.permute.xlu1 %3137 }
0x562e   :  { %3140 = vst.msk [vmem:[#allocation3 + $0x8] sm:$0x3] %vm1063_vm4, %v3138_v35 }
0x5635   :  { %v4013_v18 = vld [vmem:[#allocation3 + $0x8] sm:$0x3] }
0x569e   :  { %v4015_v40 = vpop.permute.xlu0 %4014 }
0x569f   :  { %v4017_v55 = vsel %vm1828_vm5, %v4013_v18, %v4015_v40 }
0x56a0   :  { %6888 = vmatmul.mubr.msk.f32.vlgmr.msra.gmra.mxu0 %vm1836_vm6, %v4017_v55 }
0x56a1   :  { %6918 = vmatpush3.msra.mxu0 %v8933_v3  ;;  %6941 = vmatprep.mubr.msk.f32.mxu0 %vm7656_vm0, %v7655_v1 }
0x56a2   :  { %6919 = vmatprep.subr.mxu0 %v7655_v1 }
0x56a3   :  { %6920 = vmatpush3.msra.mxu0 %v8935_v20 }
0x56a4   :  { %6921 = vmatprep.subr.mxu0 %v7655_v1 }
0x56a5   :  { %6922 = vmatpush3.msra.mxu0 %v8940_v22 }
0x56a6   :  { %6923 = vmatprep.subr.mxu0 %v7655_v1 }
0x56a7   :  { %6924 = vmatpush3.msra.mxu0 %v8946_v31 }
0x56a8   :  { %6925 = vmatprep.subr.mxu0 %v7655_v1 }
0x56a9   :  { %6926 = vmatpush3.msra.mxu0 %v8952_v23 }
0x56aa   :  { %6927 = vmatprep.subr.mxu0 %v7655_v1 }
0x56ab   :  { %6928 = vmatpush3.msra.mxu0 %v8958_v27 }
0x56ac   :  { %6929 = vmatprep.subr.mxu0 %v7655_v1 }
0x56ad   :  { %6930 = vmatpush3.msra.mxu0 %v8964_v10 }
0x56ae   :  { %6931 = vmatprep.subr.mxu0 %v7655_v1 }
0x56af   :  { %6932 = vmatpush3.msra.mxu0 %v8976_v30 }
0x56b0   :  { %6933 = vmatprep.subr.mxu0 %v7655_v1 }
0x56b1   :  { %6934 = vmatpush3.msra.mxu0 %v8979_v45 }
0x56b2   :  { %6935 = vmatprep.subr.mxu0 %v7655_v1 }
0x56b3   :  { %6936 = vmatpush3.msra.mxu0 %v8983_v53 }
0x56b4   :  { %6937 = vmatprep.subr.mxu0 %v7655_v1 }
0x56b5   :  { %6938 = vmatpush3.msra.mxu0 %v8989_v9 }
0x56b6   :  { %6939 = vmatprep.subr.mxu0 %v7655_v1 }
0x56b7   :  { %6940 = vmatpush3.msra.mxu0 %v8995_v51 }
0x56b8   :  { %6971 = vmatprep.subr.mxu0 %v7655_v1 }
0x5760   :  { %v4087_v57 = vpop.f32.mrf.mxu0 }
0x5761   :  { %v4088_v21 = vadd.f32 %v9040_v36, %v4087_v57 }
0x5762   :  { %v6889_v11 = vpop.f32.mrf.mxu0 }
0x5763   :  { %7496 = vtanh.f32 %v4088_v21  ;;  %v5518_v12 = vmul.f32 -1.442695, %v4088_v21  ;;  %v9285_v21 = vld [vmem:[#allocation7 + $0xb8] sm:$0xff]  ;;  %v9289_v11 = vld [vmem:[#allocation7 + $0xb0] sm:$0xff] }
0x5765   :  { %7498 = vpow2.f32 %v5518_v12  ;;  %v9295_v12 = vld [vmem:[#allocation7 + $0xa8] sm:$0xff] }
0x5770   :  { %v7497_v41 = vpop.eup %7496 }
0x5771   :  { %4100 = vrot.lane.b32.xlu1 %v7497_v41, %s7657_s15 }
0x5772   :  { %v7499_v43 = vpop.eup %7498 }
0x5773   :  { %v4094_v26 = vadd.f32 1.0, %v7499_v43  ;;  %v9304_v43 = vld [vmem:[#allocation7 + $0x98] sm:$0xff] }
0x5775   :  { %7500 = vrcp.f32 %v4094_v26  ;;  %v9308_v26 = vld [vmem:[#allocation7 + $0x90] sm:$0xff] }
0x5782   :  { %v7501_v13 = vpop.eup %7500 }
0x5783   :  { %v4098_v16 = vmul.f32 %v7501_v13, %v4001_v61 }
0x57e3   :  { %v4101_v14 = vpop.permute.xlu1 %4100 }
0x57e4   :  { %v4103_v49 = vmul.f32 %v7501_v13, %v4101_v14  ;;  %v9316_v14 = vld [vmem:[#allocation7 + $0x80] sm:$0xff] }
0x57e6   :  { %4105 = vrot.lane.b32.xlu0 %v4103_v49, %s7658_s16  ;;  %v9320_v49 = vld [vmem:[#allocation7 + $0x78] sm:$0xff] }
0x57ea   :  { %2474 = vrot.lane.b32.xlu0 %v8579_v62, %s7658_s16  ;;  %v2662_v62 = vadd.f32 %v7605_v60, %v8752_v63 }
0x5858   :  { %v4106_v2 = vpop.permute.xlu0 %4105 }
0x5859   :  { %v9215_v58 = vadd.f32 %v4106_v2, %v4098_v16  ;;  %v9324_v16 = vld [vmem:[#allocation7 + $0x70] sm:$0xff]  ;;  %v9328_v2 = vld [vmem:[#allocation7 + $0x68] sm:$0xff] }
0x585b   :  { %7502 = vtanh.f32 %v9215_v58 }
0x585c   :  { %v2475_v52 = vpop.permute.xlu0 %2474  ;;  %7504 = vtanh.f32 %v2662_v62 }
0x585d   :  { %2478 = vst.msk [vmem:[#allocation3 + $0xa] sm:$0x3] %vm180_vm3, %v2475_v52 }
0x5868   :  { %v7503_v4 = vpop.eup %7502 }
0x5869   :  { %4111 = vrot.lane.b32.xlu1 %v7503_v4, %s7657_s15  ;;  %v7505_v56 = vpop.eup %7504 }
0x586d   :  { %3030 = vrot.lane.b32.xlu1 %v8795_v8, %s7657_s15  ;;  %v5489_v8 = vmul.f32 -1.442695, %v2662_v62 }
0x586f   :  { %7506 = vpow2.f32 %v5489_v8 }
0x587c   :  { %v7507_v0 = vpop.eup %7506 }
0x587d   :  { %v2668_v59 = vadd.f32 1.0, %v7507_v0 }
0x587f   :  { %7508 = vrcp.f32 %v2668_v59 }
0x588c   :  { %v7509_v15 = vpop.eup %7508 }
0x58db   :  { %v4112_v44 = vpop.permute.xlu1 %4111 }
0x58dc   :  { %v9226_v5 = vmul.f32 %v7501_v13, %v4112_v44  ;;  %v9312_v13 = vld [vmem:[#allocation7 + $0x88] sm:$0xff] }
0x58de   :  { %4121 = vrot.lane.b32.xlu0 %v9226_v5, %s7660_s18 }
0x58df   :  { %v3031_v54 = vpop.permute.xlu1 %3030 }
0x58e0   :  { %3033 = vst.msk [vmem:[#allocation3 + $0xa] sm:$0x3] %vm1063_vm4, %v3031_v54 }
0x58e2   :  { %2674 = vrot.lane.b32.xlu0 %v7505_v56, %s7657_s15  ;;  %v9371_v56 = vld [vmem:[%s9721_s6 + $0x1] ss:$0 sm:$0xff] }
0x58e7   :  { %v4120_v63 = vld [vmem:[#allocation3 + $0xa] sm:$0x3] }
0x5950   :  { %v4122_v48 = vpop.permute.xlu0 %4121 }
0x5951   :  { %v4124_v37 = vsel %vm1828_vm5, %v4120_v63, %v4122_v48 }
0x5952   :  { %6915 = vmatmul.mubr.msk.f32.vlgmr.msra.gmra.mxu1 %vm1836_vm6, %v4124_v37 }
0x5953   :  { %6945 = vmatpush3.msra.mxu1 %v8933_v3  ;;  %6968 = vmatprep.mubr.msk.f32.mxu1 %vm7656_vm0, %v7655_v1  ;;  %v2672_v3 = vmul.f32 %v7509_v15, %v8680_v50 }
0x5954   :  { %v2675_v17 = vpop.permute.xlu0 %2674  ;;  %6946 = vmatprep.subr.mxu1 %v7655_v1 }
0x5955   :  { %v2677_v19 = vmul.f32 %v7509_v15, %v2675_v17  ;;  %6947 = vmatpush3.msra.mxu1 %v8935_v20 }
0x5956   :  { %6948 = vmatprep.subr.mxu1 %v7655_v1 }
0x5957   :  { %2679 = vrot.lane.b32.xlu0 %v2677_v19, %s7658_s16  ;;  %6949 = vmatpush3.msra.mxu1 %v8940_v22 }
0x5958   :  { %6950 = vmatprep.subr.mxu1 %v7655_v1 }
0x5959   :  { %6951 = vmatpush3.msra.mxu1 %v8946_v31 }
0x595a   :  { %6952 = vmatprep.subr.mxu1 %v7655_v1 }
0x595b   :  { %6953 = vmatpush3.msra.mxu1 %v8952_v23 }
0x595c   :  { %6954 = vmatprep.subr.mxu1 %v7655_v1 }
0x595d   :  { %6955 = vmatpush3.msra.mxu1 %v8958_v27 }
0x595e   :  { %6956 = vmatprep.subr.mxu1 %v7655_v1 }
0x595f   :  { %6957 = vmatpush3.msra.mxu1 %v8964_v10 }
0x5960   :  { %6958 = vmatprep.subr.mxu1 %v7655_v1 }
0x5961   :  { %6959 = vmatpush3.msra.mxu1 %v8976_v30 }
0x5962   :  { %6960 = vmatprep.subr.mxu1 %v7655_v1 }
0x5963   :  { %6961 = vmatpush3.msra.mxu1 %v8979_v45 }
0x5964   :  { %6962 = vmatprep.subr.mxu1 %v7655_v1 }
0x5965   :  { %6963 = vmatpush3.msra.mxu1 %v8983_v53 }
0x5966   :  { %6964 = vmatprep.subr.mxu1 %v7655_v1 }
0x5967   :  { %6965 = vmatpush3.msra.mxu1 %v8989_v9 }
0x5968   :  { %6966 = vmatprep.subr.mxu1 %v7655_v1 }
0x5969   :  { %6967 = vmatpush3.msra.mxu1 %v8995_v51 }
0x596a   :  { %6998 = vmatprep.subr.mxu1 %v7655_v1 }
0x59c9   :  { %v2680_v20 = vpop.permute.xlu0 %2679 }
0x59ca   :  { %v2682_v22 = vadd.f32 %v2680_v20, %v2672_v3 }
0x59cc   :  { %7510 = vtanh.f32 %v2682_v22 }
0x59d9   :  { %v7511_v31 = vpop.eup %7510 }
0x59da   :  { %2685 = vrot.lane.b32.xlu0 %v7511_v31, %s7657_s15 }
0x59de   :  { %2923 = vrot.lane.b32.xlu0 %v8759_v7, %s7657_s15 }
0x5a12   :  { %v4194_v23 = vpop.f32.mrf.mxu1 }
0x5a13   :  { %v4195_v27 = vadd.f32 %v9040_v36, %v4194_v23 }
0x5a14   :  { %v6916_v10 = vpop.f32.mrf.mxu1 }
0x5a15   :  { %7512 = vtanh.f32 %v4195_v27  ;;  %v5520_v50 = vmul.f32 -1.442695, %v4195_v27 }
0x5a17   :  { %7514 = vpow2.f32 %v5520_v50 }
0x5a22   :  { %v7513_v30 = vpop.eup %7512 }
0x5a23   :  { %4207 = vrot.lane.b32.xlu1 %v7513_v30, %s7657_s15 }
0x5a24   :  { %v7515_v9 = vpop.eup %7514 }
0x5a25   :  { %v4201_v51 = vadd.f32 1.0, %v7515_v9 }
0x5a27   :  { %7516 = vrcp.f32 %v4201_v51 }
0x5a34   :  { %v7517_v29 = vpop.eup %7516 }
0x5a35   :  { %v4205_v61 = vmul.f32 %v7517_v29, %v9215_v58  ;;  %v9332_v58 = vld [vmem:[#allocation7 + $0x60] sm:$0xff] }
0x5a4c   :  { %v2686_v45 = vpop.permute.xlu0 %2685 }
0x5a4d   :  { %v2688_v53 = vmul.f32 %v7509_v15, %v2686_v45 }
0x5a4f   :  { %2690 = vrot.lane.b32.xlu0 %v2688_v53, %s7658_s16 }
0x5a50   :  { %v2924_v33 = vpop.permute.xlu0 %2923 }
0x5a95   :  { %v4208_v32 = vpop.permute.xlu1 %4207 }
0x5a96   :  { %v4210_v7 = vmul.f32 %v7517_v29, %v4208_v32 }
0x5a98   :  { %4212 = vrot.lane.b32.xlu1 %v4210_v7, %s7658_s16 }
0x5ac1   :  { %v2691_v28 = vpop.permute.xlu0 %2690 }
0x5ac2   :  { %2694 = vst.msk [vmem:[#allocation3 + $0xe] sm:$0x3] %vm180_vm3, %v2691_v28 }
0x5b0a   :  { %v4213_v25 = vpop.permute.xlu1 %4212 }
0x5b0b   :  { %v9271_v34 = vadd.f32 %v4213_v25, %v4205_v61 }
0x5b0d   :  { %7518 = vtanh.f32 %v9271_v34 }
0x5b1a   :  { %v7519_v38 = vpop.eup %7518 }
0x5b1b   :  { %4218 = vrot.lane.b32.xlu1 %v7519_v38, %s7657_s15 }
0x5b1f   :  { %2582 = vrot.lane.b32.xlu1 %v8688_v24, %s7658_s16 }
0x5b8d   :  { %v4219_v35 = vpop.permute.xlu1 %4218 }
0x5b8e   :  { %v9277_v40 = vmul.f32 %v7517_v29, %v4219_v35 }
0x5b90   :  { %4228 = vrot.lane.b32.xlu1 %v9277_v40, %s7660_s18 }
0x5b91   :  { %v2583_v18 = vpop.permute.xlu1 %2582 }
0x5b92   :  { %2586 = vst.msk [vmem:[#allocation3 + $0xc] sm:$0x3] %vm180_vm3, %v2583_v18 }
0x5b93   :  { %2926 = vst.msk [vmem:[#allocation3 + $0xc] sm:$0x3] %vm1063_vm4, %v2924_v33 }
0x5b94   :  { %2816 = vrot.lane.b32.xlu1 %v8692_v6, %s7657_s15  ;;  %v9300_v6 = vld [vmem:[#allocation7 + $0xa0] sm:$0xff] }
0x5b9a   :  { %v4227_v55 = vld [vmem:[#allocation3 + $0xc] sm:$0x3] }
0x5b9b   :  { %v4566_v38 = vld [vmem:[#allocation3 + $0xc] sm:$0x3] }
0x5c02   :  { %v4229_v57 = vpop.permute.xlu1 %4228 }
0x5c03   :  { %v4231_v24 = vsel %vm1828_vm5, %v4227_v55, %v4229_v57 }
0x5c04   :  { %6942 = vmatmul.mubr.msk.f32.vlgmr.msra.gmra.mxu0 %vm1836_vm6, %v4231_v24 }
0x5c05   :  { %6972 = vmatpush3.msra.mxu0 %v9285_v21  ;;  %6995 = vmatprep.mubr.msk.f32.mxu0 %vm7656_vm0, %v7655_v1 }
0x5c06   :  { %6973 = vmatprep.subr.mxu0 %v7655_v1  ;;  %v2817_v41 = vpop.permute.xlu1 %2816 }
0x5c07   :  { %6974 = vmatpush3.msra.mxu0 %v9289_v11  ;;  %2819 = vst.msk [vmem:[#allocation3 + $0xe] sm:$0x3] %vm1063_vm4, %v2817_v41 }
0x5c08   :  { %6975 = vmatprep.subr.mxu0 %v7655_v1 }
0x5c09   :  { %6976 = vmatpush3.msra.mxu0 %v9295_v12 }
0x5c0a   :  { %6977 = vmatprep.subr.mxu0 %v7655_v1 }
0x5c0b   :  { %6978 = vmatpush3.msra.mxu0 %v9300_v6 }
0x5c0c   :  { %6979 = vmatprep.subr.mxu0 %v7655_v1 }
0x5c0d   :  { %6980 = vmatpush3.msra.mxu0 %v9304_v43 }
0x5c0e   :  { %6981 = vmatprep.subr.mxu0 %v7655_v1  ;;  %v4456_v52 = vld [vmem:[#allocation3 + $0xe] sm:$0x3] }
0x5c0f   :  { %6982 = vmatpush3.msra.mxu0 %v9308_v26  ;;  %v4457_v4 = vsel %vm1828_vm5, %v4456_v52, 0.0  ;;  %v4334_v25 = vld [vmem:[#allocation3 + $0xe] sm:$0x3] }
0x5c10   :  { %6983 = vmatprep.subr.mxu0 %v7655_v1 }
0x5c11   :  { %6984 = vmatpush3.msra.mxu0 %v9312_v13 }
0x5c12   :  { %6985 = vmatprep.subr.mxu0 %v7655_v1 }
0x5c13   :  { %6986 = vmatpush3.msra.mxu0 %v9316_v14 }
0x5c14   :  { %6987 = vmatprep.subr.mxu0 %v7655_v1 }
0x5c15   :  { %6988 = vmatpush3.msra.mxu0 %v9320_v49 }
0x5c16   :  { %6989 = vmatprep.subr.mxu0 %v7655_v1 }
0x5c17   :  { %6990 = vmatpush3.msra.mxu0 %v9324_v16 }
0x5c18   :  { %6991 = vmatprep.subr.mxu0 %v7655_v1 }
0x5c19   :  { %6992 = vmatpush3.msra.mxu0 %v9328_v2 }
0x5c1a   :  { %6993 = vmatprep.subr.mxu0 %v7655_v1 }
0x5c1b   :  { %6994 = vmatpush3.msra.mxu0 %v9332_v58 }
0x5c1c   :  { %6996 = vmatmul.mubr.msk.f32.vlgmr.msra.gmra.mxu0 %vm1836_vm6, %v4457_v4  ;;  %7025 = vmatprep.subr.mxu0 %v7655_v1 }
0x5c1d   :  { %7026 = vmatpush3.msra.mxu0 %v9285_v21  ;;  %7049 = vmatprep.mubr.msk.f32.mxu0 %vm7656_vm0, %v7655_v1 }
0x5c1e   :  { %7027 = vmatprep.subr.mxu0 %v7655_v1 }
0x5c1f   :  { %7028 = vmatpush3.msra.mxu0 %v9289_v11 }
0x5c20   :  { %7029 = vmatprep.subr.mxu0 %v7655_v1 }
0x5c21   :  { %7030 = vmatpush3.msra.mxu0 %v9295_v12 }
0x5c22   :  { %7031 = vmatprep.subr.mxu0 %v7655_v1 }
0x5c23   :  { %7032 = vmatpush3.msra.mxu0 %v9300_v6 }
0x5c24   :  { %7033 = vmatprep.subr.mxu0 %v7655_v1 }
0x5c25   :  { %7034 = vmatpush3.msra.mxu0 %v9304_v43 }
0x5c26   :  { %7035 = vmatprep.subr.mxu0 %v7655_v1 }
0x5c27   :  { %7036 = vmatpush3.msra.mxu0 %v9308_v26 }
0x5c28   :  { %7037 = vmatprep.subr.mxu0 %v7655_v1 }
0x5c29   :  { %7038 = vmatpush3.msra.mxu0 %v9312_v13 }
0x5c2a   :  { %7039 = vmatprep.subr.mxu0 %v7655_v1 }
0x5c2b   :  { %7040 = vmatpush3.msra.mxu0 %v9316_v14 }
0x5c2c   :  { %7041 = vmatprep.subr.mxu0 %v7655_v1 }
0x5c2d   :  { %7042 = vmatpush3.msra.mxu0 %v9320_v49 }
0x5c2e   :  { %7043 = vmatprep.subr.mxu0 %v7655_v1 }
0x5c2f   :  { %7044 = vmatpush3.msra.mxu0 %v9324_v16 }
0x5c30   :  { %7045 = vmatprep.subr.mxu0 %v7655_v1 }
0x5c31   :  { %7046 = vmatpush3.msra.mxu0 %v9328_v2 }
0x5c32   :  { %7047 = vmatprep.subr.mxu0 %v7655_v1 }
0x5c33   :  { %7048 = vmatpush3.msra.mxu0 %v9332_v58 }
0x5c34   :  { %7079 = vmatprep.subr.mxu0 %v7655_v1 }
0x5cc4   :  { %v4301_v60 = vpop.f32.mrf.mxu0 }
0x5cc5   :  { %v4302_v62 = vadd.f32 %v9040_v36, %v4301_v60 }
0x5cc6   :  { %v6943_v44 = vpop.f32.mrf.mxu0 }
0x5cc7   :  { %7520 = vtanh.f32 %v4302_v62  ;;  %v5522_v63 = vmul.f32 -1.442695, %v4302_v62 }
0x5cd4   :  { %v7521_v54 = vpop.eup %7520 }
0x5cd5   :  { %4314 = vrot.lane.b32.xlu0 %v7521_v54, %s7657_s15 }
0x5cdc   :  { %v4533_v8 = vpop.f32.mrf.mxu0 }
0x5cdd   :  { %v4534_v0 = vadd.f32 %v9371_v56, %v4533_v8 }
0x5cde   :  { %v6997_v59 = vpop.f32.mrf.mxu0 }
0x5cdf   :  { %7522 = vtanh.f32 %v4534_v0  ;;  %v5528_v15 = vmul.f32 -1.442695, %v4534_v0 }
0x5ce0   :  { %7524 = vpow2.f32 %v5522_v63 }
0x5cec   :  { %v7523_v48 = vpop.eup %7522 }
0x5ced   :  { %4546 = vrot.lane.b32.xlu1 %v7523_v48, %s7657_s15  ;;  %v7525_v36 = vpop.eup %7524 }
0x5cee   :  { %v4308_v37 = vadd.f32 1.0, %v7525_v36 }
0x5cf0   :  { %7526 = vrcp.f32 %v4308_v37 }
0x5cf1   :  { %7528 = vpow2.f32 %v5528_v15 }
0x5cfd   :  { %v7527_v17 = vpop.eup %7526 }
0x5cfe   :  { %v7529_v20 = vpop.eup %7528  ;;  %v4312_v10 = vmul.f32 %v7527_v17, %v9271_v34 }
0x5cff   :  { %v4540_v22 = vadd.f32 1.0, %v7529_v20 }
0x5d01   :  { %7530 = vrcp.f32 %v4540_v22 }
0x5d0e   :  { %v7531_v31 = vpop.eup %7530 }
0x5d0f   :  { %v4544_v50 = vmul.f32 0.0, %v7531_v31 }
0x5d47   :  { %v4315_v19 = vpop.permute.xlu0 %4314 }
0x5d48   :  { %v4317_v3 = vmul.f32 %v7527_v17, %v4315_v19 }
0x5d4a   :  { %4319 = vrot.lane.b32.xlu0 %v4317_v3, %s7658_s16 }
0x5d5f   :  { %v4547_v23 = vpop.permute.xlu1 %4546 }
0x5d60   :  { %v4549_v27 = vmul.f32 %v7531_v31, %v4547_v23 }
0x5d62   :  { %4551 = vrot.lane.b32.xlu1 %v4549_v27, %s7658_s16 }
0x5dbc   :  { %v4320_v30 = vpop.permute.xlu0 %4319 }
0x5dbd   :  { %v9378_v45 = vadd.f32 %v4320_v30, %v4312_v10 }
0x5dbf   :  { %7532 = vtanh.f32 %v9378_v45 }
0x5dcc   :  { %v7533_v53 = vpop.eup %7532 }
0x5dcd   :  { %4325 = vrot.lane.b32.xlu0 %v7533_v53, %s7657_s15 }
0x5dd4   :  { %v4552_v9 = vpop.permute.xlu1 %4551 }
0x5dd5   :  { %v9382_v51 = vadd.f32 %v4552_v9, %v4544_v50 }
0x5dd7   :  { %7534 = vtanh.f32 %v9382_v51 }
0x5de4   :  { %v7535_v29 = vpop.eup %7534 }
0x5de5   :  { %4557 = vrot.lane.b32.xlu1 %v7535_v29, %s7657_s15 }
0x5e3f   :  { %v4326_v32 = vpop.permute.xlu0 %4325 }
0x5e40   :  { %v9386_v7 = vmul.f32 %v7527_v17, %v4326_v32  ;;  %v4673_v17 = vld [vmem:[#allocation3 + $0xa] sm:$0x3] }
0x5e42   :  { %4335 = vrot.lane.b32.xlu0 %v9386_v7, %s7660_s18 }
0x5e57   :  { %v4558_v33 = vpop.permute.xlu1 %4557 }
0x5e58   :  { %v9390_v28 = vmul.f32 %v7531_v31, %v4558_v33 }
0x5e5a   :  { %4567 = vrot.lane.b32.xlu1 %v9390_v28, %s7660_s18 }
0x5eb4   :  { %v4336_v61 = vpop.permute.xlu0 %4335 }
0x5eb5   :  { %v4338_v34 = vsel %vm1828_vm5, %v4334_v25, %v4336_v61 }
0x5eb6   :  { %6969 = vmatmul.mubr.msk.f32.vlgmr.msra.gmra.mxu1 %vm1836_vm6, %v4338_v34  ;;  %v4780_v34 = vld [vmem:[#allocation3 + $0x8] sm:$0x3] }
0x5eb7   :  { %6999 = vmatpush3.msra.mxu1 %v9285_v21  ;;  %7022 = vmatprep.mubr.msk.f32.mxu1 %vm7656_vm0, %v7655_v1 }
0x5eb8   :  { %7000 = vmatprep.subr.mxu1 %v7655_v1 }
0x5eb9   :  { %7001 = vmatpush3.msra.mxu1 %v9289_v11 }
0x5eba   :  { %7002 = vmatprep.subr.mxu1 %v7655_v1 }
0x5ebb   :  { %7003 = vmatpush3.msra.mxu1 %v9295_v12 }
0x5ebc   :  { %7004 = vmatprep.subr.mxu1 %v7655_v1 }
0x5ebd   :  { %7005 = vmatpush3.msra.mxu1 %v9300_v6 }
0x5ebe   :  { %7006 = vmatprep.subr.mxu1 %v7655_v1 }
0x5ebf   :  { %7007 = vmatpush3.msra.mxu1 %v9304_v43 }
0x5ec0   :  { %7008 = vmatprep.subr.mxu1 %v7655_v1 }
0x5ec1   :  { %7009 = vmatpush3.msra.mxu1 %v9308_v26 }
0x5ec2   :  { %7010 = vmatprep.subr.mxu1 %v7655_v1 }
0x5ec3   :  { %7011 = vmatpush3.msra.mxu1 %v9312_v13 }
0x5ec4   :  { %7012 = vmatprep.subr.mxu1 %v7655_v1 }
0x5ec5   :  { %7013 = vmatpush3.msra.mxu1 %v9316_v14 }
0x5ec6   :  { %7014 = vmatprep.subr.mxu1 %v7655_v1 }
0x5ec7   :  { %7015 = vmatpush3.msra.mxu1 %v9320_v49 }
0x5ec8   :  { %7016 = vmatprep.subr.mxu1 %v7655_v1 }
0x5ec9   :  { %7017 = vmatpush3.msra.mxu1 %v9324_v16 }
0x5eca   :  { %7018 = vmatprep.subr.mxu1 %v7655_v1 }
0x5ecb   :  { %7019 = vmatpush3.msra.mxu1 %v9328_v2 }
0x5ecc   :  { %v4568_v35 = vpop.permute.xlu1 %4567  ;;  %7020 = vmatprep.subr.mxu1 %v7655_v1 }
0x5ecd   :  { %v4570_v18 = vsel %vm1828_vm5, %v4566_v38, %v4568_v35  ;;  %7021 = vmatpush3.msra.mxu1 %v9332_v58 }
0x5ece   :  { %7023 = vmatmul.mubr.msk.f32.vlgmr.msra.gmra.mxu1 %vm1836_vm6, %v4570_v18  ;;  %7052 = vmatprep.subr.mxu1 %v7655_v1 }
0x5ecf   :  { %7053 = vmatpush3.msra.mxu1 %v9285_v21  ;;  %7076 = vmatprep.mubr.msk.f32.mxu1 %vm7656_vm0, %v7655_v1 }
0x5ed0   :  { %7054 = vmatprep.subr.mxu1 %v7655_v1 }
0x5ed1   :  { %7055 = vmatpush3.msra.mxu1 %v9289_v11 }
0x5ed2   :  { %7056 = vmatprep.subr.mxu1 %v7655_v1 }
0x5ed3   :  { %7057 = vmatpush3.msra.mxu1 %v9295_v12 }
0x5ed4   :  { %7058 = vmatprep.subr.mxu1 %v7655_v1 }
0x5ed5   :  { %7059 = vmatpush3.msra.mxu1 %v9300_v6 }
0x5ed6   :  { %7060 = vmatprep.subr.mxu1 %v7655_v1 }
0x5ed7   :  { %7061 = vmatpush3.msra.mxu1 %v9304_v43 }
0x5ed8   :  { %7062 = vmatprep.subr.mxu1 %v7655_v1 }
0x5ed9   :  { %7063 = vmatpush3.msra.mxu1 %v9308_v26 }
0x5eda   :  { %7064 = vmatprep.subr.mxu1 %v7655_v1 }
0x5edb   :  { %7065 = vmatpush3.msra.mxu1 %v9312_v13 }
0x5edc   :  { %7066 = vmatprep.subr.mxu1 %v7655_v1 }
0x5edd   :  { %7067 = vmatpush3.msra.mxu1 %v9316_v14 }
0x5ede   :  { %7068 = vmatprep.subr.mxu1 %v7655_v1 }
0x5edf   :  { %7069 = vmatpush3.msra.mxu1 %v9320_v49 }
0x5ee0   :  { %7070 = vmatprep.subr.mxu1 %v7655_v1 }
0x5ee1   :  { %7071 = vmatpush3.msra.mxu1 %v9324_v16 }
0x5ee2   :  { %7072 = vmatprep.subr.mxu1 %v7655_v1 }
0x5ee3   :  { %7073 = vmatpush3.msra.mxu1 %v9328_v2 }
0x5ee4   :  { %7074 = vmatprep.subr.mxu1 %v7655_v1 }
0x5ee5   :  { %7075 = vmatpush3.msra.mxu1 %v9332_v58 }
0x5ee6   :  { %7106 = vmatprep.subr.mxu1 %v7655_v1 }
0x5f76   :  { %v9450_v55 = vpop.f32.mrf.mxu1 }
0x5f78   :  { %v6970_v57 = vpop.f32.mrf.mxu1 }
0x5f8e   :  { %v4640_v24 = vpop.f32.mrf.mxu1 }
0x5f8f   :  { %v4641_v41 = vadd.f32 %v9371_v56, %v4640_v24 }
0x5f90   :  { %v7024_v52 = vpop.f32.mrf.mxu1 }
0x5f91   :  { %7536 = vtanh.f32 %v4641_v41  ;;  %v5530_v60 = vmul.f32 -1.442695, %v4641_v41 }
0x5f93   :  { %7538 = vpow2.f32 %v5530_v60 }
0x5f9e   :  { %v7537_v4 = vpop.eup %7536 }
0x5f9f   :  { %4653 = vrot.lane.b32.xlu0 %v7537_v4, %s7657_s15 }
0x5fa0   :  { %v7539_v62 = vpop.eup %7538 }
0x5fa1   :  { %v4647_v44 = vadd.f32 1.0, %v7539_v62 }
0x5fa3   :  { %7540 = vrcp.f32 %v4647_v44 }
0x5fb0   :  { %v7541_v54 = vpop.eup %7540 }
0x5fb1   :  { %v4651_v59 = vmul.f32 %v7541_v54, %v9382_v51 }
0x6011   :  { %v4654_v8 = vpop.permute.xlu0 %4653 }
0x6012   :  { %v4656_v0 = vmul.f32 %v7541_v54, %v4654_v8 }
0x6014   :  { %4658 = vrot.lane.b32.xlu1 %v4656_v0, %s7658_s16 }
0x6086   :  { %v4659_v48 = vpop.permute.xlu1 %4658 }
0x6087   :  { %v4661_v63 = vadd.f32 %v4659_v48, %v4651_v59 }
0x6089   :  { %7542 = vtanh.f32 %v4661_v63 }
0x6096   :  { %v7543_v36 = vpop.eup %7542 }
0x6097   :  { %4664 = vrot.lane.b32.xlu0 %v7543_v36, %s7657_s15 }
0x6109   :  { %v4665_v37 = vpop.permute.xlu0 %4664 }
0x610a   :  { %v9457_v15 = vmul.f32 %v7541_v54, %v4665_v37  ;;  %v4887_v37 = vld [vmem:[#allocation3 + $0x6] sm:$0x3] }
0x610c   :  { %4674 = vrot.lane.b32.xlu1 %v9457_v15, %s7660_s18 }
0x617e   :  { %v4675_v19 = vpop.permute.xlu1 %4674 }
0x617f   :  { %v4677_v3 = vsel %vm1828_vm5, %v4673_v17, %v4675_v19 }
0x6180   :  { %7050 = vmatmul.mubr.msk.f32.vlgmr.msra.gmra.mxu0 %vm1836_vm6, %v4677_v3 }
0x6181   :  { %7080 = vmatpush3.msra.mxu0 %v9285_v21  ;;  %7103 = vmatprep.mubr.msk.f32.mxu0 %vm7656_vm0, %v7655_v1 }
0x6182   :  { %7081 = vmatprep.subr.mxu0 %v7655_v1 }
0x6183   :  { %7082 = vmatpush3.msra.mxu0 %v9289_v11 }
0x6184   :  { %7083 = vmatprep.subr.mxu0 %v7655_v1 }
0x6185   :  { %7084 = vmatpush3.msra.mxu0 %v9295_v12 }
0x6186   :  { %7085 = vmatprep.subr.mxu0 %v7655_v1 }
0x6187   :  { %7086 = vmatpush3.msra.mxu0 %v9300_v6 }
0x6188   :  { %7087 = vmatprep.subr.mxu0 %v7655_v1 }
0x6189   :  { %7088 = vmatpush3.msra.mxu0 %v9304_v43 }
0x618a   :  { %7089 = vmatprep.subr.mxu0 %v7655_v1 }
0x618b   :  { %7090 = vmatpush3.msra.mxu0 %v9308_v26 }
0x618c   :  { %7091 = vmatprep.subr.mxu0 %v7655_v1 }
0x618d   :  { %7092 = vmatpush3.msra.mxu0 %v9312_v13 }
0x618e   :  { %7093 = vmatprep.subr.mxu0 %v7655_v1 }
0x618f   :  { %7094 = vmatpush3.msra.mxu0 %v9316_v14 }
0x6190   :  { %7095 = vmatprep.subr.mxu0 %v7655_v1 }
0x6191   :  { %7096 = vmatpush3.msra.mxu0 %v9320_v49 }
0x6192   :  { %7097 = vmatprep.subr.mxu0 %v7655_v1 }
0x6193   :  { %7098 = vmatpush3.msra.mxu0 %v9324_v16 }
0x6194   :  { %7099 = vmatprep.subr.mxu0 %v7655_v1 }
0x6195   :  { %7100 = vmatpush3.msra.mxu0 %v9328_v2 }
0x6196   :  { %7101 = vmatprep.subr.mxu0 %v7655_v1 }
0x6197   :  { %7102 = vmatpush3.msra.mxu0 %v9332_v58 }
0x6198   :  { %7133 = vmatprep.subr.mxu0 %v7655_v1 }
0x6240   :  { %v4747_v20 = vpop.f32.mrf.mxu0 }
0x6241   :  { %v4748_v22 = vadd.f32 %v9371_v56, %v4747_v20 }
0x6242   :  { %v7051_v31 = vpop.f32.mrf.mxu0 }
0x6243   :  { %7544 = vtanh.f32 %v4748_v22  ;;  %v5532_v27 = vmul.f32 -1.442695, %v4748_v22 }
0x6245   :  { %7546 = vpow2.f32 %v5532_v27 }
0x6250   :  { %v7545_v23 = vpop.eup %7544 }
0x6251   :  { %4760 = vrot.lane.b32.xlu0 %v7545_v23, %s7657_s15 }
0x6252   :  { %v7547_v10 = vpop.eup %7546 }
0x6253   :  { %v4754_v30 = vadd.f32 1.0, %v7547_v10 }
0x6255   :  { %7548 = vrcp.f32 %v4754_v30 }
0x6262   :  { %v7549_v53 = vpop.eup %7548 }
0x6263   :  { %v4758_v51 = vmul.f32 %v7549_v53, %v4661_v63 }
0x62c3   :  { %v4761_v50 = vpop.permute.xlu0 %4760 }
0x62c4   :  { %v4763_v9 = vmul.f32 %v7549_v53, %v4761_v50 }
0x62c6   :  { %4765 = vrot.lane.b32.xlu1 %v4763_v9, %s7658_s16 }
0x6338   :  { %v4766_v29 = vpop.permute.xlu1 %4765 }
0x6339   :  { %v4768_v32 = vadd.f32 %v4766_v29, %v4758_v51 }
0x633b   :  { %7550 = vtanh.f32 %v4768_v32 }
0x6348   :  { %v7551_v33 = vpop.eup %7550 }
0x6349   :  { %4771 = vrot.lane.b32.xlu0 %v7551_v33, %s7657_s15 }
0x63bb   :  { %v4772_v61 = vpop.permute.xlu0 %4771 }
0x63bc   :  { %v9493_v25 = vmul.f32 %v7549_v53, %v4772_v61 }
0x63be   :  { %4781 = vrot.lane.b32.xlu1 %v9493_v25, %s7660_s18 }
0x6430   :  { %v4782_v38 = vpop.permute.xlu1 %4781 }
0x6431   :  { %v4784_v35 = vsel %vm1828_vm5, %v4780_v34, %v4782_v38  ;;  %v4994_v34 = vld [vmem:[#allocation3 + $0x4] sm:$0x3] }
0x6432   :  { %7077 = vmatmul.mubr.msk.f32.vlgmr.msra.gmra.mxu1 %vm1836_vm6, %v4784_v35 }
0x6433   :  { %7107 = vmatpush3.msra.mxu1 %v9285_v21  ;;  %7130 = vmatprep.mubr.msk.f32.mxu1 %vm7656_vm0, %v7655_v1 }
0x6434   :  { %7108 = vmatprep.subr.mxu1 %v7655_v1 }
0x6435   :  { %7109 = vmatpush3.msra.mxu1 %v9289_v11 }
0x6436   :  { %7110 = vmatprep.subr.mxu1 %v7655_v1 }
0x6437   :  { %7111 = vmatpush3.msra.mxu1 %v9295_v12 }
0x6438   :  { %7112 = vmatprep.subr.mxu1 %v7655_v1 }
0x6439   :  { %7113 = vmatpush3.msra.mxu1 %v9300_v6 }
0x643a   :  { %7114 = vmatprep.subr.mxu1 %v7655_v1 }
0x643b   :  { %7115 = vmatpush3.msra.mxu1 %v9304_v43 }
0x643c   :  { %7116 = vmatprep.subr.mxu1 %v7655_v1 }
0x643d   :  { %7117 = vmatpush3.msra.mxu1 %v9308_v26 }
0x643e   :  { %7118 = vmatprep.subr.mxu1 %v7655_v1 }
0x643f   :  { %7119 = vmatpush3.msra.mxu1 %v9312_v13 }
0x6440   :  { %7120 = vmatprep.subr.mxu1 %v7655_v1 }
0x6441   :  { %7121 = vmatpush3.msra.mxu1 %v9316_v14 }
0x6442   :  { %7122 = vmatprep.subr.mxu1 %v7655_v1 }
0x6443   :  { %7123 = vmatpush3.msra.mxu1 %v9320_v49 }
0x6444   :  { %7124 = vmatprep.subr.mxu1 %v7655_v1 }
0x6445   :  { %7125 = vmatpush3.msra.mxu1 %v9324_v16 }
0x6446   :  { %7126 = vmatprep.subr.mxu1 %v7655_v1 }
0x6447   :  { %7127 = vmatpush3.msra.mxu1 %v9328_v2 }
0x6448   :  { %7128 = vmatprep.subr.mxu1 %v7655_v1 }
0x6449   :  { %7129 = vmatpush3.msra.mxu1 %v9332_v58 }
0x644a   :  { %7160 = vmatprep.subr.mxu1 %v7655_v1 }
0x64f2   :  { %v4854_v18 = vpop.f32.mrf.mxu1 }
0x64f3   :  { %v4855_v57 = vadd.f32 %v9371_v56, %v4854_v18 }
0x64f4   :  { %v7078_v24 = vpop.f32.mrf.mxu1 }
0x64f5   :  { %7552 = vtanh.f32 %v4855_v57  ;;  %v5534_v52 = vmul.f32 -1.442695, %v4855_v57 }
0x64f7   :  { %7554 = vpow2.f32 %v5534_v52  ;;  %v5101_v52 = vld [vmem:[#allocation3 + $0x2] sm:$0x3] }
0x6502   :  { %v7553_v41 = vpop.eup %7552 }
0x6503   :  { %4867 = vrot.lane.b32.xlu0 %v7553_v41, %s7657_s15 }
0x6504   :  { %v7555_v4 = vpop.eup %7554 }
0x6505   :  { %v4861_v60 = vadd.f32 1.0, %v7555_v4 }
0x6507   :  { %7556 = vrcp.f32 %v4861_v60 }
0x6514   :  { %v7557_v62 = vpop.eup %7556 }
0x6515   :  { %v4865_v8 = vmul.f32 %v7557_v62, %v4768_v32 }
0x6575   :  { %v4868_v44 = vpop.permute.xlu0 %4867 }
0x6576   :  { %v4870_v54 = vmul.f32 %v7557_v62, %v4868_v44 }
0x6578   :  { %4872 = vrot.lane.b32.xlu1 %v4870_v54, %s7658_s16 }
0x65ea   :  { %v4873_v0 = vpop.permute.xlu1 %4872 }
0x65eb   :  { %v4875_v59 = vadd.f32 %v4873_v0, %v4865_v8 }
0x65ed   :  { %7558 = vtanh.f32 %v4875_v59 }
0x65fa   :  { %v7559_v48 = vpop.eup %7558 }
0x65fb   :  { %4878 = vrot.lane.b32.xlu0 %v7559_v48, %s7657_s15 }
0x666d   :  { %v4879_v63 = vpop.permute.xlu0 %4878 }
0x666e   :  { %v9529_v36 = vmul.f32 %v7557_v62, %v4879_v63 }
0x6670   :  { %4888 = vrot.lane.b32.xlu1 %v9529_v36, %s7660_s18 }
0x66e2   :  { %v4889_v17 = vpop.permute.xlu1 %4888 }
0x66e3   :  { %v4891_v19 = vsel %vm1828_vm5, %v4887_v37, %v4889_v17 }
0x66e4   :  { %7104 = vmatmul.mubr.msk.f32.vlgmr.msra.gmra.mxu0 %vm1836_vm6, %v4891_v19 }
0x66e5   :  { %7134 = vmatpush3.msra.mxu0 %v9285_v21  ;;  %7157 = vmatprep.mubr.msk.f32.mxu0 %vm7656_vm0, %v7655_v1 }
0x66e6   :  { %7135 = vmatprep.subr.mxu0 %v7655_v1 }
0x66e7   :  { %7136 = vmatpush3.msra.mxu0 %v9289_v11 }
0x66e8   :  { %7137 = vmatprep.subr.mxu0 %v7655_v1 }
0x66e9   :  { %7138 = vmatpush3.msra.mxu0 %v9295_v12 }
0x66ea   :  { %7139 = vmatprep.subr.mxu0 %v7655_v1 }
0x66eb   :  { %7140 = vmatpush3.msra.mxu0 %v9300_v6 }
0x66ec   :  { %7141 = vmatprep.subr.mxu0 %v7655_v1 }
0x66ed   :  { %7142 = vmatpush3.msra.mxu0 %v9304_v43 }
0x66ee   :  { %7143 = vmatprep.subr.mxu0 %v7655_v1 }
0x66ef   :  { %7144 = vmatpush3.msra.mxu0 %v9308_v26 }
0x66f0   :  { %7145 = vmatprep.subr.mxu0 %v7655_v1 }
0x66f1   :  { %7146 = vmatpush3.msra.mxu0 %v9312_v13 }
0x66f2   :  { %7147 = vmatprep.subr.mxu0 %v7655_v1 }
0x66f3   :  { %7148 = vmatpush3.msra.mxu0 %v9316_v14 }
0x66f4   :  { %7149 = vmatprep.subr.mxu0 %v7655_v1 }
0x66f5   :  { %7150 = vmatpush3.msra.mxu0 %v9320_v49 }
0x66f6   :  { %7151 = vmatprep.subr.mxu0 %v7655_v1 }
0x66f7   :  { %7152 = vmatpush3.msra.mxu0 %v9324_v16 }
0x66f8   :  { %7153 = vmatprep.subr.mxu0 %v7655_v1 }
0x66f9   :  { %7154 = vmatpush3.msra.mxu0 %v9328_v2 }
0x66fa   :  { %7155 = vmatprep.subr.mxu0 %v7655_v1 }
0x66fb   :  { %7156 = vmatpush3.msra.mxu0 %v9332_v58 }
0x66fc   :  { %7187 = vmatprep.subr.mxu0 %v7655_v1 }
0x67a4   :  { %v4961_v3 = vpop.f32.mrf.mxu0 }
0x67a5   :  { %v4962_v20 = vadd.f32 %v9371_v56, %v4961_v3 }
0x67a6   :  { %v7105_v22 = vpop.f32.mrf.mxu0 }
0x67a7   :  { %7560 = vtanh.f32 %v4962_v20  ;;  %v5536_v23 = vmul.f32 -1.442695, %v4962_v20  ;;  %v7606_v22 = vld [vmem:[%s9721_s6] ss:$0 sm:$0xff] }
0x67a9   :  { %7562 = vpow2.f32 %v5536_v23 }
0x67b4   :  { %v7561_v31 = vpop.eup %7560 }
0x67b5   :  { %4974 = vrot.lane.b32.xlu0 %v7561_v31, %s7657_s15  ;;  %v4409_v31 = vadd.f32 %v7606_v22, %v9450_v55 }
0x67b6   :  { %v7563_v27 = vpop.eup %7562 }
0x67b7   :  { %v4968_v10 = vadd.f32 1.0, %v7563_v27 }
0x67b9   :  { %7564 = vrcp.f32 %v4968_v10  ;;  %v5524_v10 = vmul.f32 -1.442695, %v4409_v31 }
0x67c6   :  { %v7565_v30 = vpop.eup %7564 }
0x67c7   :  { %v4972_v9 = vmul.f32 %v7565_v30, %v4875_v59 }
0x6827   :  { %v4975_v53 = vpop.permute.xlu0 %4974 }
0x6828   :  { %v4977_v50 = vmul.f32 %v7565_v30, %v4975_v53 }
0x682a   :  { %4979 = vrot.lane.b32.xlu1 %v4977_v50, %s7658_s16 }
0x689c   :  { %v4980_v51 = vpop.permute.xlu1 %4979 }
0x689d   :  { %v4982_v29 = vadd.f32 %v4980_v51, %v4972_v9 }
0x689f   :  { %7566 = vtanh.f32 %v4982_v29 }
0x68ac   :  { %v7567_v32 = vpop.eup %7566 }
0x68ad   :  { %4985 = vrot.lane.b32.xlu0 %v7567_v32, %s7657_s15  ;;  %v5208_v32 = vld [vmem:[#allocation3] sm:$0x3] }
0x691f   :  { %v4986_v33 = vpop.permute.xlu0 %4985 }
0x6920   :  { %v9565_v61 = vmul.f32 %v7565_v30, %v4986_v33 }
0x6922   :  { %4995 = vrot.lane.b32.xlu1 %v9565_v61, %s7660_s18 }
0x6994   :  { %v4996_v38 = vpop.permute.xlu1 %4995 }
0x6995   :  { %v4998_v35 = vsel %vm1828_vm5, %v4994_v34, %v4996_v38 }
0x6996   :  { %7131 = vmatmul.mubr.msk.f32.vlgmr.msra.gmra.mxu1 %vm1836_vm6, %v4998_v35 }
0x6997   :  { %7161 = vmatpush3.msra.mxu1 %v9285_v21  ;;  %7184 = vmatprep.mubr.msk.f32.mxu1 %vm7656_vm0, %v7655_v1 }
0x6998   :  { %7162 = vmatprep.subr.mxu1 %v7655_v1 }
0x6999   :  { %7163 = vmatpush3.msra.mxu1 %v9289_v11 }
0x699a   :  { %7164 = vmatprep.subr.mxu1 %v7655_v1 }
0x699b   :  { %7165 = vmatpush3.msra.mxu1 %v9295_v12 }
0x699c   :  { %7166 = vmatprep.subr.mxu1 %v7655_v1 }
0x699d   :  { %7167 = vmatpush3.msra.mxu1 %v9300_v6 }
0x699e   :  { %7168 = vmatprep.subr.mxu1 %v7655_v1 }
0x699f   :  { %7169 = vmatpush3.msra.mxu1 %v9304_v43 }
0x69a0   :  { %7170 = vmatprep.subr.mxu1 %v7655_v1 }
0x69a1   :  { %7171 = vmatpush3.msra.mxu1 %v9308_v26 }
0x69a2   :  { %7172 = vmatprep.subr.mxu1 %v7655_v1 }
0x69a3   :  { %7173 = vmatpush3.msra.mxu1 %v9312_v13 }
0x69a4   :  { %7174 = vmatprep.subr.mxu1 %v7655_v1 }
0x69a5   :  { %7175 = vmatpush3.msra.mxu1 %v9316_v14 }
0x69a6   :  { %7176 = vmatprep.subr.mxu1 %v7655_v1 }
0x69a7   :  { %7177 = vmatpush3.msra.mxu1 %v9320_v49 }
0x69a8   :  { %7178 = vmatprep.subr.mxu1 %v7655_v1 }
0x69a9   :  { %7179 = vmatpush3.msra.mxu1 %v9324_v16 }
0x69aa   :  { %7180 = vmatprep.subr.mxu1 %v7655_v1 }
0x69ab   :  { %7181 = vmatpush3.msra.mxu1 %v9328_v2 }
0x69ac   :  { %7182 = vmatprep.subr.mxu1 %v7655_v1 }
0x69ad   :  { %7183 = vmatpush3.msra.mxu1 %v9332_v58 }
0x6a56   :  { %v5068_v21 = vpop.f32.mrf.mxu1 }
0x6a57   :  { %v5069_v11 = vadd.f32 %v9371_v56, %v5068_v21 }
0x6a58   :  { %v7132_v12 = vpop.f32.mrf.mxu1 }
0x6a59   :  { %7568 = vtanh.f32 %v5069_v11  ;;  %v5538_v43 = vmul.f32 -1.442695, %v5069_v11  ;;  %v5323_v12 = vld [vmem:[%s9722_s7 + $0x38] sm:$0xff] }
0x6a5b   :  { %7570 = vpow2.f32 %v5538_v43  ;;  %v5319_v43 = vld [vmem:[%s9722_s7 + $0x18] sm:$0xff] }
0x6a66   :  { %v7569_v6 = vpop.eup %7568 }
0x6a67   :  { %5081 = vrot.lane.b32.xlu0 %v7569_v6, %s7657_s15  ;;  %v5322_v6 = vld [vmem:[%s9722_s7 + $0x30] sm:$0xff] }
0x6a68   :  { %v7571_v26 = vpop.eup %7570 }
0x6a69   :  { %v5075_v13 = vadd.f32 1.0, %v7571_v26  ;;  %v5318_v26 = vld [vmem:[%s9722_s7 + $0x10] sm:$0xff] }
0x6a6b   :  { %7572 = vrcp.f32 %v5075_v13  ;;  %v5317_v13 = vld [vmem:[%s9722_s7 + $0x8] sm:$0xff] }
0x6a78   :  { %v7573_v14 = vpop.eup %7572 }
0x6a79   :  { %v5079_v2 = vmul.f32 %v7573_v14, %v4982_v29 }
0x6ad9   :  { %v5082_v49 = vpop.permute.xlu0 %5081 }
0x6ada   :  { %v5084_v16 = vmul.f32 %v7573_v14, %v5082_v49 }
0x6adc   :  { %5086 = vrot.lane.b32.xlu1 %v5084_v16, %s7658_s16 }
0x6b4e   :  { %v5087_v58 = vpop.permute.xlu1 %5086 }
0x6b4f   :  { %v5089_v18 = vadd.f32 %v5087_v58, %v5079_v2 }
0x6b51   :  { %7574 = vtanh.f32 %v5089_v18 }
0x6b5e   :  { %v7575_v57 = vpop.eup %7574 }
0x6b5f   :  { %5092 = vrot.lane.b32.xlu0 %v7575_v57, %s7657_s15 }
0x6bd1   :  { %v5093_v24 = vpop.permute.xlu0 %5092 }
0x6bd2   :  { %v9600_v41 = vmul.f32 %v7573_v14, %v5093_v24  ;;  %v5316_v14 = vld [vmem:[%s9722_s7] sm:$0xff] }
0x6bd4   :  { %5102 = vrot.lane.b32.xlu1 %v9600_v41, %s7660_s18 }
0x6c46   :  { %v5103_v4 = vpop.permute.xlu1 %5102 }
0x6c47   :  { %v5105_v60 = vsel %vm1828_vm5, %v5101_v52, %v5103_v4 }
0x6c48   :  { %7158 = vmatmul.mubr.msk.f32.vlgmr.msra.gmra.mxu0 %vm1836_vm6, %v5105_v60 }
0x6c49   :  { %7203 = vmatprep.mubr.msk.f32.mxu0 %vm7656_vm0, %v7655_v1  ;;  %7188 = vmatpush3.msra.mxu0 %v5323_v12 }
0x6c4a   :  { %7189 = vmatprep.subr.mxu0 %v7655_v1 }
0x6c4b   :  { %7190 = vmatpush3.msra.mxu0 %v5322_v6 }
0x6c4c   :  { %7191 = vmatprep.subr.mxu0 %v7655_v1 }
0x6d08   :  { %v5175_v62 = vpop.f32.mrf.mxu0 }
0x6d09   :  { %v5176_v44 = vadd.f32 %v9371_v56, %v5175_v62 }
0x6d0a   :  { %v7159_v54 = vpop.f32.mrf.mxu0 }
0x6d0b   :  { %7576 = vtanh.f32 %v5176_v44  ;;  %v5540_v0 = vmul.f32 -1.442695, %v5176_v44 }
0x6d0d   :  { %7578 = vpow2.f32 %v5540_v0 }
0x6d18   :  { %v7577_v8 = vpop.eup %7576 }
0x6d19   :  { %5188 = vrot.lane.b32.xlu0 %v7577_v8, %s7657_s15 }
0x6d1a   :  { %v7579_v59 = vpop.eup %7578 }
0x6d1b   :  { %v5182_v48 = vadd.f32 1.0, %v7579_v59 }
0x6d1d   :  { %7580 = vrcp.f32 %v5182_v48 }
0x6d2a   :  { %v7581_v63 = vpop.eup %7580 }
0x6d2b   :  { %v5186_v19 = vmul.f32 %v7581_v63, %v5089_v18 }
0x6d8b   :  { %v5189_v37 = vpop.permute.xlu0 %5188 }
0x6d8c   :  { %v5191_v17 = vmul.f32 %v7581_v63, %v5189_v37 }
0x6d8e   :  { %5193 = vrot.lane.b32.xlu1 %v5191_v17, %s7658_s16 }
0x6e00   :  { %v5194_v3 = vpop.permute.xlu1 %5193 }
0x6e01   :  { %v9611_v20 = vadd.f32 %v5194_v3, %v5186_v19 }
0x6e03   :  { %7582 = vtanh.f32 %v9611_v20 }
0x6e04   :  { %7584 = vtanh.f32 %v4409_v31 }
0x6e05   :  { %7586 = vpow2.f32 %v5524_v10 }
0x6e10   :  { %v7583_v23 = vpop.eup %7582 }
0x6e11   :  { %5199 = vrot.lane.b32.xlu0 %v7583_v23, %s7657_s15  ;;  %v7585_v27 = vpop.eup %7584 }
0x6e12   :  { %v7587_v30 = vpop.eup %7586 }
0x6e13   :  { %v4415_v53 = vadd.f32 1.0, %v7587_v30 }
0x6e15   :  { %4421 = vrot.lane.b32.xlu0 %v7585_v27, %s7657_s15  ;;  %7588 = vrcp.f32 %v4415_v53 }
0x6e22   :  { %v7589_v55 = vpop.eup %7588 }
0x6e23   :  { %v4419_v38 = vmul.f32 %v7589_v55, %v9378_v45  ;;  %v5321_v45 = vld [vmem:[%s9722_s7 + $0x28] sm:$0xff] }
0x6e24   :  { %7192 = vmatpush3.msra.mxu0 %v5321_v45 }
0x6e25   :  { %7193 = vmatprep.subr.mxu0 %v7655_v1 }
0x6e83   :  { %v5200_v50 = vpop.permute.xlu0 %5199 }
0x6e84   :  { %v9620_v9 = vmul.f32 %v7581_v63, %v5200_v50 }
0x6e86   :  { %5209 = vrot.lane.b32.xlu1 %v9620_v9, %s7660_s18 }
0x6e87   :  { %v4422_v51 = vpop.permute.xlu0 %4421 }
0x6e88   :  { %v4424_v29 = vmul.f32 %v7589_v55, %v4422_v51 }
0x6e8a   :  { %4426 = vrot.lane.b32.xlu1 %v4424_v29, %s7658_s16 }
0x6ef8   :  { %v5210_v33 = vpop.permute.xlu1 %5209 }
0x6ef9   :  { %v5212_v34 = vsel %vm1828_vm5, %v5208_v32, %v5210_v33 }
0x6efa   :  { %7185 = vmatmul.mubr.msk.f32.vlgmr.msra.gmra.mxu1 %vm1836_vm6, %v5212_v34 }
0x6efc   :  { %v4427_v35 = vpop.permute.xlu1 %4426 }
0x6efd   :  { %v4429_v21 = vadd.f32 %v4427_v35, %v4419_v38 }
0x6eff   :  { %7590 = vtanh.f32 %v4429_v21 }
0x6f0c   :  { %v7591_v11 = vpop.eup %7590 }
0x6f0d   :  { %4432 = vrot.lane.b32.xlu0 %v7591_v11, %s7657_s15 }
0x6f11   :  { %4562 = vrot.lane.b32.xlu0 %v9390_v28, %s7657_s15  ;;  %v5320_v28 = vld [vmem:[%s9722_s7 + $0x20] sm:$0xff] }
0x6f12   :  { %7194 = vmatpush3.msra.mxu0 %v5320_v28 }
0x6f13   :  { %7195 = vmatprep.subr.mxu0 %v7655_v1 }
0x6f14   :  { %7196 = vmatpush3.msra.mxu0 %v5319_v43 }
0x6f15   :  { %7197 = vmatprep.subr.mxu0 %v7655_v1 }
0x6f16   :  { %7198 = vmatpush3.msra.mxu0 %v5318_v26 }
0x6f17   :  { %7199 = vmatprep.subr.mxu0 %v7655_v1 }
0x6f18   :  { %7200 = vmatpush3.msra.mxu0 %v5317_v13 }
0x6f19   :  { %7201 = vmatprep.subr.mxu0 %v7655_v1 }
0x6f1a   :  { %7202 = vmatpush3.msra.mxu0 %v5316_v14 }
0x6f7f   :  { %v4433_v49 = vpop.permute.xlu0 %4432 }
0x6f80   :  { %v4435_v16 = vmul.f32 %v7589_v55, %v4433_v49 }
0x6f82   :  { %4437 = vrot.lane.b32.xlu1 %v4435_v16, %s7658_s16 }
0x6f83   :  { %v4563_v52 = vpop.permute.xlu0 %4562 }
0x6fba   :  { %v5282_v2 = vpop.f32.mrf.mxu1 }
0x6fbb   :  { %v5283_v58 = vadd.f32 %v9371_v56, %v5282_v2 }
0x6fbc   :  { %v7186_v18 = vpop.f32.mrf.mxu1 }
0x6fbd   :  { %7592 = vtanh.f32 %v5283_v58  ;;  %v5542_v4 = vmul.f32 -1.442695, %v5283_v58 }
0x6fbf   :  { %7594 = vpow2.f32 %v5542_v4 }
0x6fca   :  { %v7593_v57 = vpop.eup %7592 }
0x6fcb   :  { %5295 = vrot.lane.b32.xlu1 %v7593_v57, %s7657_s15 }
0x6fcc   :  { %v7595_v60 = vpop.eup %7594 }
0x6fcd   :  { %v5289_v62 = vadd.f32 1.0, %v7595_v60 }
0x6fcf   :  { %7596 = vrcp.f32 %v5289_v62 }
0x6fdc   :  { %v7597_v56 = vpop.eup %7596 }
0x6ff4   :  { %v4438_v24 = vpop.permute.xlu1 %4437 }
0x6ff5   :  { %4440 = vst.msk [vmem:[#allocation2 + $0xe] sm:$0x3] %vm180_vm3, %v4438_v24 }
0x6ff6   :  { %4565 = vst.msk [vmem:[#allocation2 + $0xe] sm:$0x3] %vm1063_vm4, %v4563_v52 }
0x6ffd   :  { %v5315_v1 = vld [vmem:[#allocation2 + $0xe] sm:$0x3] }
0x6ffe   :  { %7204 = vmatmul.mubr.msk.f32.vlgmr.msra.gmra.mxu0 %vm1828_vm5, %v5315_v1 }
0x703d   :  { %v5296_v44 = vpop.permute.xlu1 %5295 }
0x703e   :  { %v5298_v54 = vmul.f32 %v7597_v56, %v5296_v44 }
0x7040   :  { %5300 = vrot.lane.b32.xlu0 %v5298_v54, %s7658_s16 }
0x7044   :  { %3688 = vrot.lane.b32.xlu0 %v9051_v42, %s7658_s16  ;;  %v5293_v42 = vmul.f32 %v7597_v56, %v9611_v20 }
0x7048   :  { %3902 = vrot.lane.b32.xlu0 %v9135_v47, %s7658_s16 }
0x704c   :  { %4116 = vrot.lane.b32.xlu0 %v9226_v5, %s7658_s16 }
0x7050   :  { %4330 = vrot.lane.b32.xlu0 %v9386_v7, %s7658_s16  ;;  %v5543_v7 = vld [vmem:[#allocation4] ss:$0 sm:$0xff] }
0x7054   :  { %4776 = vrot.lane.b32.xlu0 %v9493_v25, %s7657_s15 }
0x7058   :  { %4990 = vrot.lane.b32.xlu0 %v9565_v61, %s7657_s15 }
0x705c   :  { %5204 = vrot.lane.b32.xlu0 %v9620_v9, %s7657_s15 }
0x70b2   :  { %v5301_v8 = vpop.permute.xlu0 %5300 }
0x70b3   :  { %v5303_v0 = vadd.f32 %v5301_v8, %v5293_v42 }
0x70b5   :  { %7598 = vtanh.f32 %v5303_v0 }
0x70b6   :  { %v3689_v47 = vpop.permute.xlu0 %3688 }
0x70b7   :  { %3691 = vst.msk [vmem:[#allocation2] sm:$0x3] %vm180_vm3, %v3689_v47 }
0x70ba   :  { %v3903_v5 = vpop.permute.xlu0 %3902 }
0x70bb   :  { %3905 = vst.msk [vmem:[#allocation2 + $0x4] sm:$0x3] %vm180_vm3, %v3903_v5 }
0x70be   :  { %v5400_v59 = vpop.f32.mrf.mxu0  ;;  %v4117_v25 = vpop.permute.xlu0 %4116 }
0x70bf   :  { %v5401_v48 = vadd.f32 %v5543_v7, %v5400_v59  ;;  %4119 = vst.msk [vmem:[#allocation2 + $0x8] sm:$0x3] %vm180_vm3, %v4117_v25 }
0x70c0   :  { %v7205_v61 = vpop.f32.mrf.mxu0 }
0x70c1   :  { %v5545_v63 = vmul.f32 -1.442695, %v5401_v48 }
0x70c2   :  { %v7599_v37 = vpop.eup %7598  ;;  %v4331_v17 = vpop.permute.xlu0 %4330 }
0x70c3   :  { %7600 = vpow2.f32 %v5545_v63  ;;  %4333 = vst.msk [vmem:[#allocation2 + $0xc] sm:$0x3] %vm180_vm3, %v4331_v17  ;;  %5306 = vrot.lane.b32.xlu1 %v7599_v37, %s7657_s15 }
0x70c7   :  { %3795 = vrot.lane.b32.xlu1 %v9093_v46, %s7658_s16 }
0x70cb   :  { %4009 = vrot.lane.b32.xlu1 %v9177_v39, %s7658_s16  ;;  %v4777_v39 = vpop.permute.xlu0 %4776 }
0x70cf   :  { %4223 = vrot.lane.b32.xlu1 %v9277_v40, %s7658_s16  ;;  %v4991_v40 = vpop.permute.xlu0 %4990 }
0x70d0   :  { %v7601_v19 = vpop.eup %7600 }
0x70d1   :  { %v5407_v3 = vadd.f32 1.0, %v7601_v19 }
0x70d3   :  { %7602 = vrcp.f32 %v5407_v3  ;;  %4669 = vrot.lane.b32.xlu1 %v9457_v15, %s7657_s15  ;;  %v5205_v15 = vpop.permute.xlu0 %5204 }
0x70d7   :  { %4883 = vrot.lane.b32.xlu1 %v9529_v36, %s7657_s15 }
0x70db   :  { %5097 = vrot.lane.b32.xlu1 %v9600_v41, %s7657_s15 }
0x70e0   :  { %v7603_v46 = vpop.eup %7602 }
0x70e1   :  { %5411 = vst.msk [vmem:[%s9724_s9] sm:$0x3] %vm5410_vm7, %v7603_v46 }
0x7135   :  { %v5307_v20 = vpop.permute.xlu1 %5306 }
0x7136   :  { %v5309_v22 = vmul.f32 %v7597_v56, %v5307_v20 }
0x7138   :  { %5311 = vrot.lane.b32.xlu1 %v5309_v22, %s7657_s15 }
0x7139   :  { %v3796_v31 = vpop.permute.xlu1 %3795 }
0x713a   :  { %3798 = vst.msk [vmem:[#allocation2 + $0x2] sm:$0x3] %vm180_vm3, %v3796_v31 }
0x713b   :  { %5207 = vst.msk [vmem:[#allocation2 + $0x2] sm:$0x3] %vm1063_vm4, %v5205_v15 }
0x713d   :  { %v4010_v36 = vpop.permute.xlu1 %4009 }
0x713e   :  { %4012 = vst.msk [vmem:[#allocation2 + $0x6] sm:$0x3] %vm180_vm3, %v4010_v36 }
0x713f   :  { %4993 = vst.msk [vmem:[#allocation2 + $0x6] sm:$0x3] %vm1063_vm4, %v4991_v40 }
0x7141   :  { %v4224_v41 = vpop.permute.xlu1 %4223 }
0x7142   :  { %4226 = vst.msk [vmem:[#allocation2 + $0xa] sm:$0x3] %vm180_vm3, %v4224_v41 }
0x7143   :  { %4779 = vst.msk [vmem:[#allocation2 + $0xa] sm:$0x3] %vm1063_vm4, %v4777_v39 }
0x7145   :  { %v4670_v23 = vpop.permute.xlu1 %4669 }
0x7146   :  { %4672 = vst.msk [vmem:[#allocation2 + $0xc] sm:$0x3] %vm1063_vm4, %v4670_v23 }
0x7149   :  { %v4884_v27 = vpop.permute.xlu1 %4883 }
0x714a   :  { %4886 = vst.msk [vmem:[#allocation2 + $0x8] sm:$0x3] %vm1063_vm4, %v4884_v27 }
0x714d   :  { %v5098_v10 = vpop.permute.xlu1 %5097 }
0x714e   :  { %5100 = vst.msk [vmem:[#allocation2 + $0x4] sm:$0x3] %vm1063_vm4, %v5098_v10 }
0x71aa   :  { %v5312_v30 = vpop.permute.xlu1 %5311 }
0x71ab   :  { %5314 = vst.msk [vmem:[#allocation2] sm:$0x3] %vm1063_vm4, %v5312_v30 }
0x71ac   :  { %5416 = vsyncpa [#allocation6], 1 }
0x71ad   :  { %5417 = vsyncpa [#allocation8], 1 }

</bundles_post_ra>
